<compile_context>
chip_gen: v6e
topology: v6e:2x2x1
jax: 0.10.0
libtpu: 0.0.40
codegen_flags: <defaults>
</compile_context>

<pallas_src>
import jax
import jax.numpy as jnp
from jax.experimental import pallas as pl
from jax.experimental.pallas import tpu as pltpu

LAYER_DIMS = [34, 128, 256, 512, 1024, 512, 256, 128, 8]
F_IN_PAD = 128            # lane-dense padded width of the input features
PADDED_OUT = 128          # lane-dense padded width of the final layer
NEG_BIAS = -1e30          # bias for padded logit columns -> exp() == 0


def _round_up(n, m):
    return ((n + m - 1) // m) * m


def _mlp_kernel(x_ref, *refs):
    """All 8 Linear layers + ReLU + final (padded) softmax, fused.

    refs = (w1, b1, w2, b2, ..., w8, b8, out_ref)
    Weights are bf16 (in, out); biases are f32 (1, out).
    """
    out_ref = refs[-1]
    wb = refs[:-1]
    n_layers = len(wb) // 2

    # bf16 activations between layers (they are MXU operands anyway); the MXU
    # accumulates in f32 and bias-add / ReLU run in f32 before the cast.
    h = x_ref[...].astype(jnp.bfloat16)
    for i in range(n_layers):
        w = wb[2 * i][...]                   # bf16 (in, out)
        b = wb[2 * i + 1][...]               # f32  (1, out)
        h = jnp.dot(h, w, preferred_element_type=jnp.float32) + b
        if i < n_layers - 1:
            # ReLU (dropout is identity in eval mode), then stage as bf16.
            h = jnp.maximum(h, 0.0).astype(jnp.bfloat16)
        else:
            # Numerically stable softmax over the lane axis; padded columns
            # carry a -1e30 bias so they contribute exp(...) == 0.  Exact
            # division so rows sum to 1 within f32 rounding.
            h = h - jnp.max(h, axis=-1, keepdims=True)
            e = jnp.exp(h)
            h = e / jnp.sum(e, axis=-1, keepdims=True)
    out_ref[...] = h.astype(out_ref.dtype)


def net_forward(x, weights, biases, *, batch_tile=1024):
    """x: (B, 34) f32.  weights[i]: bf16 (in_i, out_i) (first layer padded to
    128 input rows, last layer padded to 128 output cols).  biases[i]: f32
    (1, out_i) (last layer padded, pad = -1e30)."""
    B, f_in = x.shape
    assert f_in == LAYER_DIMS[0]

    # --- batch tile selection --------------------------------------------
    # Largest 8-aligned tile <= batch_tile that covers B; when B > 128, cap
    # at ~half the batch so the grid has >= 2 parallel steps (v7x megacore).
    bt = _round_up(min(batch_tile, max(B, 8)), 8)
    if B > 128:
        bt = min(bt, max(128, _round_up((B + 1) // 2, 8)))
    bt = max(bt, 8)
    b_pad = _round_up(B, bt)

    # Pad batch to a tile multiple and features 34 -> 128 (lane-dense K).
    x = jnp.pad(x, ((0, b_pad - B), (0, F_IN_PAD - f_in)))

    grid = (b_pad // bt,)

    in_specs = [pl.BlockSpec((bt, F_IN_PAD), lambda i: (i, 0))]
    flat_params = []
    for w, b in zip(weights, biases):
        # Constant index_map: the block never changes, so no per-step re-DMA.
        in_specs.append(pl.BlockSpec(w.shape, lambda i: (0, 0)))
        in_specs.append(pl.BlockSpec(b.shape, lambda i: (0, 0)))
        flat_params.extend([w, b])

    out_spec = pl.BlockSpec((bt, PADDED_OUT), lambda i: (i, 0))

    # Advisory cost hint so XLA schedules/overlaps the custom call sensibly.
    flops = 2 * b_pad * sum(int(w.shape[0]) * int(w.shape[1]) for w in weights)
    bytes_accessed = (
        sum(int(w.size) * w.dtype.itemsize for w in weights)
        + sum(int(b.size) * b.dtype.itemsize for b in biases)
        + int(x.size) * x.dtype.itemsize
        + b_pad * PADDED_OUT * 4
    )
    cost = pl.CostEstimate(
        flops=flops,
        transcendentals=b_pad * PADDED_OUT,
        bytes_accessed=int(bytes_accessed),
    )

    out_padded = pl.pallas_call(
        _mlp_kernel,
        out_shape=jax.ShapeDtypeStruct((b_pad, PADDED_OUT), jnp.float32),
        grid_spec=pltpu.PrefetchScalarGridSpec(
            num_scalar_prefetch=0,
            grid=grid,
            in_specs=in_specs,
            out_specs=out_spec,
        ),
        compiler_params=pltpu.CompilerParams(
            dimension_semantics=("parallel",),
            vmem_limit_bytes=32 * 1024 * 1024,
        ),
        cost_estimate=cost,
    )(x, *flat_params)

    return out_padded[:B, :LAYER_DIMS[-1]]


def init_params(key):
    """Deterministic f32 parameter init (PyTorch-style uniform fan_in bounds)."""
    weights, biases = [], []
    for i in range(len(LAYER_DIMS) - 1):
        fan_in, fan_out = LAYER_DIMS[i], LAYER_DIMS[i + 1]
        key, kw, kb = jax.random.split(key, 3)
        bound = 1.0 / jnp.sqrt(fan_in)
        # stored as (in, out) == transpose of nn.Linear's (out, in) weight
        w = jax.random.uniform(kw, (fan_in, fan_out), jnp.float32, -bound, bound)
        b = jax.random.uniform(kb, (1, fan_out), jnp.float32, -bound, bound)
        weights.append(w)
        biases.append(b)
    return weights, biases


def prepare_params(weights_f32, biases_f32):
    """Cast weights to bf16, pad W1 rows 34->128 and the final layer to
    PADDED_OUT columns (padded logit bias = -1e30, kept in f32)."""
    ws, bs = [], []
    n = len(weights_f32)
    for i, (w, b) in enumerate(zip(weights_f32, biases_f32)):
        if i == 0:
            w = jnp.pad(w, ((0, F_IN_PAD - w.shape[0]), (0, 0)))
        if i == n - 1:
            pad = PADDED_OUT - w.shape[1]
            w = jnp.pad(w, ((0, 0), (0, pad)))
            b = jnp.pad(b, ((0, 0), (0, pad)), constant_values=NEG_BIAS)
        ws.append(w.astype(jnp.bfloat16))
        bs.append(b.astype(jnp.float32))
    return ws, bs


def reference_forward(x, weights_f32, biases_f32):
    """Pure-JAX reference mimicking the kernel's bf16 operand rounding."""
    def r(a):
        return a.astype(jnp.bfloat16).astype(jnp.float32)
    h = x
    n = len(weights_f32)
    for i, (w, b) in enumerate(zip(weights_f32, biases_f32)):
        h = r(h) @ r(w) + b
        if i < n - 1:
            h = jnp.maximum(h, 0.0)
        else:
            h = jax.nn.softmax(h, axis=1)
    return h


if __name__ == "__main__":
    key = jax.random.PRNGKey(0)
    key, kx = jax.random.split(key)

    weights_f32, biases_f32 = init_params(key)
    w_bf16, b_f32 = prepare_params(weights_f32, biases_f32)

    # Main run: B=256 -> batch tile 128, 2 parallel grid steps.
    B = 256
    x = jax.random.normal(kx, (B, LAYER_DIMS[0]), jnp.float32)
    out = jax.block_until_ready(net_forward(x, w_bf16, b_f32))
    ref = reference_forward(x, weights_f32, biases_f32)
    assert out.shape == (B, LAYER_DIMS[-1])
    assert jnp.allclose(out, ref, atol=5e-3)
    assert jnp.allclose(jnp.sum(out, axis=1), 1.0, atol=2e-3)

    # Ragged batch (exercises batch/feature padding path).
    B2 = 50
    x2 = jax.random.normal(jax.random.PRNGKey(1), (B2, LAYER_DIMS[0]), jnp.float32)
    out2 = jax.block_until_ready(net_forward(x2, w_bf16, b_f32))
    ref2 = reference_forward(x2, weights_f32, biases_f32)
    assert out2.shape == (B2, LAYER_DIMS[-1])
    assert jnp.allclose(out2, ref2, atol=5e-3)
    assert jnp.allclose(jnp.sum(out2, axis=1), 1.0, atol=2e-3)

    print("KERNEL_OK")
</pallas_src>

<mosaic_0001>
module attributes {stable_mosaic.version = 11 : i64} {
  func.func @_mlp_kernel(%arg0: i32, %arg1: memref<128x128xf32, #tpu.memory_space<vmem>>, %arg2: memref<128x128xbf16, #tpu.memory_space<vmem>>, %arg3: memref<1x128xf32, #tpu.memory_space<vmem>>, %arg4: memref<128x256xbf16, #tpu.memory_space<vmem>>, %arg5: memref<1x256xf32, #tpu.memory_space<vmem>>, %arg6: memref<256x512xbf16, #tpu.memory_space<vmem>>, %arg7: memref<1x512xf32, #tpu.memory_space<vmem>>, %arg8: memref<512x1024xbf16, #tpu.memory_space<vmem>>, %arg9: memref<1x1024xf32, #tpu.memory_space<vmem>>, %arg10: memref<1024x512xbf16, #tpu.memory_space<vmem>>, %arg11: memref<1x512xf32, #tpu.memory_space<vmem>>, %arg12: memref<512x256xbf16, #tpu.memory_space<vmem>>, %arg13: memref<1x256xf32, #tpu.memory_space<vmem>>, %arg14: memref<256x128xbf16, #tpu.memory_space<vmem>>, %arg15: memref<1x128xf32, #tpu.memory_space<vmem>>, %arg16: memref<128x128xbf16, #tpu.memory_space<vmem>>, %arg17: memref<1x128xf32, #tpu.memory_space<vmem>>, %arg18: memref<128x128xf32, #tpu.memory_space<vmem>>) attributes {dimension_semantics = [#tpu.dimension_semantics<parallel>], iteration_bounds = array<i64: 2>, scalar_prefetch = 0 : i64, scratch_operands = 0 : i64, tpu.core_type = #tpu.core_type<tc>, window_params = [{transform_indices = @transform_0, window_bounds = array<i64: 128, 128>}, {pipeline_mode = #tpu.pipeline_mode<synchronous>, transform_indices = @transform_1, window_bounds = array<i64: 128, 128>}, {pipeline_mode = #tpu.pipeline_mode<synchronous>, transform_indices = @transform_2, window_bounds = array<i64: 1, 128>}, {pipeline_mode = #tpu.pipeline_mode<synchronous>, transform_indices = @transform_3, window_bounds = array<i64: 128, 256>}, {pipeline_mode = #tpu.pipeline_mode<synchronous>, transform_indices = @transform_4, window_bounds = array<i64: 1, 256>}, {pipeline_mode = #tpu.pipeline_mode<synchronous>, transform_indices = @transform_5, window_bounds = array<i64: 256, 512>}, {pipeline_mode = #tpu.pipeline_mode<synchronous>, transform_indices = @transform_6, window_bounds = array<i64: 1, 512>}, {pipeline_mode = #tpu.pipeline_mode<synchronous>, transform_indices = @transform_7, window_bounds = array<i64: 512, 1024>}, {pipeline_mode = #tpu.pipeline_mode<synchronous>, transform_indices = @transform_8, window_bounds = array<i64: 1, 1024>}, {pipeline_mode = #tpu.pipeline_mode<synchronous>, transform_indices = @transform_9, window_bounds = array<i64: 1024, 512>}, {pipeline_mode = #tpu.pipeline_mode<synchronous>, transform_indices = @transform_10, window_bounds = array<i64: 1, 512>}, {pipeline_mode = #tpu.pipeline_mode<synchronous>, transform_indices = @transform_11, window_bounds = array<i64: 512, 256>}, {pipeline_mode = #tpu.pipeline_mode<synchronous>, transform_indices = @transform_12, window_bounds = array<i64: 1, 256>}, {pipeline_mode = #tpu.pipeline_mode<synchronous>, transform_indices = @transform_13, window_bounds = array<i64: 256, 128>}, {pipeline_mode = #tpu.pipeline_mode<synchronous>, transform_indices = @transform_14, window_bounds = array<i64: 1, 128>}, {pipeline_mode = #tpu.pipeline_mode<synchronous>, transform_indices = @transform_15, window_bounds = array<i64: 128, 128>}, {pipeline_mode = #tpu.pipeline_mode<synchronous>, transform_indices = @transform_16, window_bounds = array<i64: 1, 128>}, {transform_indices = @transform_17, window_bounds = array<i64: 128, 128>}]} {
    %c0 = arith.constant 0 : index
    %c0_0 = arith.constant 0 : index
    %0 = vector.load %arg1[%c0, %c0_0] : memref<128x128xf32, #tpu.memory_space<vmem>>, vector<128x128xf32>
    %1 = arith.truncf %0 : vector<128x128xf32> to vector<128x128xbf16>
    %c0_1 = arith.constant 0 : index
    %c0_2 = arith.constant 0 : index
    %2 = vector.load %arg2[%c0_1, %c0_2] : memref<128x128xbf16, #tpu.memory_space<vmem>>, vector<128x128xbf16>
    %c0_3 = arith.constant 0 : index
    %c0_4 = arith.constant 0 : index
    %3 = vector.load %arg3[%c0_3, %c0_4] : memref<1x128xf32, #tpu.memory_space<vmem>>, vector<1x128xf32>
    %cst = arith.constant dense<0.000000e+00> : vector<128x128xf32>
    %4 = tpu.matmul %1, %2, %cst {dimension_numbers = #tpu.dot_dimension_numbers<[1], [0], [0], [1], [0, 0, 1, 1], [], []>} : vector<128x128xbf16>, vector<128x128xbf16>, vector<128x128xf32> -> vector<128x128xf32>
    %5 = vector.broadcast %3 : vector<1x128xf32> to vector<128x128xf32>
    %6 = arith.addf %4, %5 : vector<128x128xf32>
    %cst_5 = arith.constant 0.000000e+00 : f32
    %7 = vector.broadcast %cst_5 : f32 to vector<128x128xf32>
    %8 = arith.maximumf %6, %7 : vector<128x128xf32>
    %9 = arith.truncf %8 : vector<128x128xf32> to vector<128x128xbf16>
    %c0_6 = arith.constant 0 : index
    %c0_7 = arith.constant 0 : index
    %10 = vector.load %arg4[%c0_6, %c0_7] : memref<128x256xbf16, #tpu.memory_space<vmem>>, vector<128x256xbf16>
    %c0_8 = arith.constant 0 : index
    %c0_9 = arith.constant 0 : index
    %11 = vector.load %arg5[%c0_8, %c0_9] : memref<1x256xf32, #tpu.memory_space<vmem>>, vector<1x256xf32>
    %cst_10 = arith.constant dense<0.000000e+00> : vector<128x256xf32>
    %12 = tpu.matmul %9, %10, %cst_10 {dimension_numbers = #tpu.dot_dimension_numbers<[1], [0], [0], [1], [0, 0, 1, 1], [], []>} : vector<128x128xbf16>, vector<128x256xbf16>, vector<128x256xf32> -> vector<128x256xf32>
    %13 = vector.broadcast %11 : vector<1x256xf32> to vector<128x256xf32>
    %14 = arith.addf %12, %13 : vector<128x256xf32>
    %cst_11 = arith.constant 0.000000e+00 : f32
    %15 = vector.broadcast %cst_11 : f32 to vector<128x256xf32>
    %16 = arith.maximumf %14, %15 : vector<128x256xf32>
    %17 = arith.truncf %16 : vector<128x256xf32> to vector<128x256xbf16>
    %c0_12 = arith.constant 0 : index
    %c0_13 = arith.constant 0 : index
    %18 = vector.load %arg6[%c0_12, %c0_13] : memref<256x512xbf16, #tpu.memory_space<vmem>>, vector<256x512xbf16>
    %c0_14 = arith.constant 0 : index
    %c0_15 = arith.constant 0 : index
    %19 = vector.load %arg7[%c0_14, %c0_15] : memref<1x512xf32, #tpu.memory_space<vmem>>, vector<1x512xf32>
    %cst_16 = arith.constant dense<0.000000e+00> : vector<128x512xf32>
    %20 = tpu.matmul %17, %18, %cst_16 {dimension_numbers = #tpu.dot_dimension_numbers<[1], [0], [0], [1], [0, 0, 1, 1], [], []>} : vector<128x256xbf16>, vector<256x512xbf16>, vector<128x512xf32> -> vector<128x512xf32>
    %21 = vector.broadcast %19 : vector<1x512xf32> to vector<128x512xf32>
    %22 = arith.addf %20, %21 : vector<128x512xf32>
    %cst_17 = arith.constant 0.000000e+00 : f32
    %23 = vector.broadcast %cst_17 : f32 to vector<128x512xf32>
    %24 = arith.maximumf %22, %23 : vector<128x512xf32>
    %25 = arith.truncf %24 : vector<128x512xf32> to vector<128x512xbf16>
    %c0_18 = arith.constant 0 : index
    %c0_19 = arith.constant 0 : index
    %26 = vector.load %arg8[%c0_18, %c0_19] : memref<512x1024xbf16, #tpu.memory_space<vmem>>, vector<512x1024xbf16>
    %c0_20 = arith.constant 0 : index
    %c0_21 = arith.constant 0 : index
    %27 = vector.load %arg9[%c0_20, %c0_21] : memref<1x1024xf32, #tpu.memory_space<vmem>>, vector<1x1024xf32>
    %cst_22 = arith.constant dense<0.000000e+00> : vector<128x1024xf32>
    %28 = tpu.matmul %25, %26, %cst_22 {dimension_numbers = #tpu.dot_dimension_numbers<[1], [0], [0], [1], [0, 0, 1, 1], [], []>} : vector<128x512xbf16>, vector<512x1024xbf16>, vector<128x1024xf32> -> vector<128x1024xf32>
    %29 = vector.broadcast %27 : vector<1x1024xf32> to vector<128x1024xf32>
    %30 = arith.addf %28, %29 : vector<128x1024xf32>
    %cst_23 = arith.constant 0.000000e+00 : f32
    %31 = vector.broadcast %cst_23 : f32 to vector<128x1024xf32>
    %32 = arith.maximumf %30, %31 : vector<128x1024xf32>
    %33 = arith.truncf %32 : vector<128x1024xf32> to vector<128x1024xbf16>
    %c0_24 = arith.constant 0 : index
    %c0_25 = arith.constant 0 : index
    %34 = vector.load %arg10[%c0_24, %c0_25] : memref<1024x512xbf16, #tpu.memory_space<vmem>>, vector<1024x512xbf16>
    %c0_26 = arith.constant 0 : index
    %c0_27 = arith.constant 0 : index
    %35 = vector.load %arg11[%c0_26, %c0_27] : memref<1x512xf32, #tpu.memory_space<vmem>>, vector<1x512xf32>
    %cst_28 = arith.constant dense<0.000000e+00> : vector<128x512xf32>
    %36 = tpu.matmul %33, %34, %cst_28 {dimension_numbers = #tpu.dot_dimension_numbers<[1], [0], [0], [1], [0, 0, 1, 1], [], []>} : vector<128x1024xbf16>, vector<1024x512xbf16>, vector<128x512xf32> -> vector<128x512xf32>
    %37 = vector.broadcast %35 : vector<1x512xf32> to vector<128x512xf32>
    %38 = arith.addf %36, %37 : vector<128x512xf32>
    %cst_29 = arith.constant 0.000000e+00 : f32
    %39 = vector.broadcast %cst_29 : f32 to vector<128x512xf32>
    %40 = arith.maximumf %38, %39 : vector<128x512xf32>
    %41 = arith.truncf %40 : vector<128x512xf32> to vector<128x512xbf16>
    %c0_30 = arith.constant 0 : index
    %c0_31 = arith.constant 0 : index
    %42 = vector.load %arg12[%c0_30, %c0_31] : memref<512x256xbf16, #tpu.memory_space<vmem>>, vector<512x256xbf16>
    %c0_32 = arith.constant 0 : index
    %c0_33 = arith.constant 0 : index
    %43 = vector.load %arg13[%c0_32, %c0_33] : memref<1x256xf32, #tpu.memory_space<vmem>>, vector<1x256xf32>
    %cst_34 = arith.constant dense<0.000000e+00> : vector<128x256xf32>
    %44 = tpu.matmul %41, %42, %cst_34 {dimension_numbers = #tpu.dot_dimension_numbers<[1], [0], [0], [1], [0, 0, 1, 1], [], []>} : vector<128x512xbf16>, vector<512x256xbf16>, vector<128x256xf32> -> vector<128x256xf32>
    %45 = vector.broadcast %43 : vector<1x256xf32> to vector<128x256xf32>
    %46 = arith.addf %44, %45 : vector<128x256xf32>
    %cst_35 = arith.constant 0.000000e+00 : f32
    %47 = vector.broadcast %cst_35 : f32 to vector<128x256xf32>
    %48 = arith.maximumf %46, %47 : vector<128x256xf32>
    %49 = arith.truncf %48 : vector<128x256xf32> to vector<128x256xbf16>
    %c0_36 = arith.constant 0 : index
    %c0_37 = arith.constant 0 : index
    %50 = vector.load %arg14[%c0_36, %c0_37] : memref<256x128xbf16, #tpu.memory_space<vmem>>, vector<256x128xbf16>
    %c0_38 = arith.constant 0 : index
    %c0_39 = arith.constant 0 : index
    %51 = vector.load %arg15[%c0_38, %c0_39] : memref<1x128xf32, #tpu.memory_space<vmem>>, vector<1x128xf32>
    %cst_40 = arith.constant dense<0.000000e+00> : vector<128x128xf32>
    %52 = tpu.matmul %49, %50, %cst_40 {dimension_numbers = #tpu.dot_dimension_numbers<[1], [0], [0], [1], [0, 0, 1, 1], [], []>} : vector<128x256xbf16>, vector<256x128xbf16>, vector<128x128xf32> -> vector<128x128xf32>
    %53 = vector.broadcast %51 : vector<1x128xf32> to vector<128x128xf32>
    %54 = arith.addf %52, %53 : vector<128x128xf32>
    %cst_41 = arith.constant 0.000000e+00 : f32
    %55 = vector.broadcast %cst_41 : f32 to vector<128x128xf32>
    %56 = arith.maximumf %54, %55 : vector<128x128xf32>
    %57 = arith.truncf %56 : vector<128x128xf32> to vector<128x128xbf16>
    %c0_42 = arith.constant 0 : index
    %c0_43 = arith.constant 0 : index
    %58 = vector.load %arg16[%c0_42, %c0_43] : memref<128x128xbf16, #tpu.memory_space<vmem>>, vector<128x128xbf16>
    %c0_44 = arith.constant 0 : index
    %c0_45 = arith.constant 0 : index
    %59 = vector.load %arg17[%c0_44, %c0_45] : memref<1x128xf32, #tpu.memory_space<vmem>>, vector<1x128xf32>
    %cst_46 = arith.constant dense<0.000000e+00> : vector<128x128xf32>
    %60 = tpu.matmul %57, %58, %cst_46 {dimension_numbers = #tpu.dot_dimension_numbers<[1], [0], [0], [1], [0, 0, 1, 1], [], []>} : vector<128x128xbf16>, vector<128x128xbf16>, vector<128x128xf32> -> vector<128x128xf32>
    %61 = vector.broadcast %59 : vector<1x128xf32> to vector<128x128xf32>
    %62 = arith.addf %60, %61 : vector<128x128xf32>
    %cst_47 = arith.constant dense<0xFF800000> : vector<128xf32>
    %63 = vector.multi_reduction <maximumf>, %62, %cst_47 [1] : vector<128x128xf32> to vector<128xf32>
    %64 = vector.shape_cast %63 : vector<128xf32> to vector<128x1xf32>
    %65 = vector.broadcast %64 : vector<128x1xf32> to vector<128x128xf32>
    %66 = arith.subf %62, %65 : vector<128x128xf32>
    %67 = math.exp %66 : vector<128x128xf32>
    %cst_48 = arith.constant dense<0.000000e+00> : vector<128xf32>
    %68 = vector.multi_reduction <add>, %67, %cst_48 [1] : vector<128x128xf32> to vector<128xf32>
    %69 = vector.shape_cast %68 : vector<128xf32> to vector<128x1xf32>
    %70 = vector.broadcast %69 : vector<128x1xf32> to vector<128x128xf32>
    %71 = arith.divf %67, %70 : vector<128x128xf32>
    %c0_49 = arith.constant 0 : index
    %c0_50 = arith.constant 0 : index
    %72 = vector.load %arg18[%c0_49, %c0_50] : memref<128x128xf32, #tpu.memory_space<vmem>>, vector<128x128xf32>
    tpu.vector_store %arg18[%c0_49, %c0_50], %71 {strides = array<i32>} : memref<128x128xf32, #tpu.memory_space<vmem>>, vector<128x128xf32>,
    return
  }
  func.func @transform_0(%arg0: i32) -> (i32, i32) {
    %c0_i32 = arith.constant 0 : i32
    %c0_i32_0 = arith.constant 0 : i32
    return %arg0, %c0_i32 : i32, i32
  }
  func.func @transform_1(%arg0: i32) -> (i32, i32) {
    %c0_i32 = arith.constant 0 : i32
    %c0_i32_0 = arith.constant 0 : i32
    %c0_i32_1 = arith.constant 0 : i32
    return %c0_i32, %c0_i32_0 : i32, i32
  }
  func.func @transform_2(%arg0: i32) -> (i32, i32) {
    %c0_i32 = arith.constant 0 : i32
    %c0_i32_0 = arith.constant 0 : i32
    %c0_i32_1 = arith.constant 0 : i32
    return %c0_i32, %c0_i32_0 : i32, i32
  }
  func.func @transform_3(%arg0: i32) -> (i32, i32) {
    %c0_i32 = arith.constant 0 : i32
    %c0_i32_0 = arith.constant 0 : i32
    %c0_i32_1 = arith.constant 0 : i32
    return %c0_i32, %c0_i32_0 : i32, i32
  }
  func.func @transform_4(%arg0: i32) -> (i32, i32) {
    %c0_i32 = arith.constant 0 : i32
    %c0_i32_0 = arith.constant 0 : i32
    %c0_i32_1 = arith.constant 0 : i32
    return %c0_i32, %c0_i32_0 : i32, i32
  }
  func.func @transform_5(%arg0: i32) -> (i32, i32) {
    %c0_i32 = arith.constant 0 : i32
    %c0_i32_0 = arith.constant 0 : i32
    %c0_i32_1 = arith.constant 0 : i32
    return %c0_i32, %c0_i32_0 : i32, i32
  }
  func.func @transform_6(%arg0: i32) -> (i32, i32) {
    %c0_i32 = arith.constant 0 : i32
    %c0_i32_0 = arith.constant 0 : i32
    %c0_i32_1 = arith.constant 0 : i32
    return %c0_i32, %c0_i32_0 : i32, i32
  }
  func.func @transform_7(%arg0: i32) -> (i32, i32) {
    %c0_i32 = arith.constant 0 : i32
    %c0_i32_0 = arith.constant 0 : i32
    %c0_i32_1 = arith.constant 0 : i32
    return %c0_i32, %c0_i32_0 : i32, i32
  }
  func.func @transform_8(%arg0: i32) -> (i32, i32) {
    %c0_i32 = arith.constant 0 : i32
    %c0_i32_0 = arith.constant 0 : i32
    %c0_i32_1 = arith.constant 0 : i32
    return %c0_i32, %c0_i32_0 : i32, i32
  }
  func.func @transform_9(%arg0: i32) -> (i32, i32) {
    %c0_i32 = arith.constant 0 : i32
    %c0_i32_0 = arith.constant 0 : i32
    %c0_i32_1 = arith.constant 0 : i32
    return %c0_i32, %c0_i32_0 : i32, i32
  }
  func.func @transform_10(%arg0: i32) -> (i32, i32) {
    %c0_i32 = arith.constant 0 : i32
    %c0_i32_0 = arith.constant 0 : i32
    %c0_i32_1 = arith.constant 0 : i32
    return %c0_i32, %c0_i32_0 : i32, i32
  }
  func.func @transform_11(%arg0: i32) -> (i32, i32) {
    %c0_i32 = arith.constant 0 : i32
    %c0_i32_0 = arith.constant 0 : i32
    %c0_i32_1 = arith.constant 0 : i32
    return %c0_i32, %c0_i32_0 : i32, i32
  }
  func.func @transform_12(%arg0: i32) -> (i32, i32) {
    %c0_i32 = arith.constant 0 : i32
    %c0_i32_0 = arith.constant 0 : i32
    %c0_i32_1 = arith.constant 0 : i32
    return %c0_i32, %c0_i32_0 : i32, i32
  }
  func.func @transform_13(%arg0: i32) -> (i32, i32) {
    %c0_i32 = arith.constant 0 : i32
    %c0_i32_0 = arith.constant 0 : i32
    %c0_i32_1 = arith.constant 0 : i32
    return %c0_i32, %c0_i32_0 : i32, i32
  }
  func.func @transform_14(%arg0: i32) -> (i32, i32) {
    %c0_i32 = arith.constant 0 : i32
    %c0_i32_0 = arith.constant 0 : i32
    %c0_i32_1 = arith.constant 0 : i32
    return %c0_i32, %c0_i32_0 : i32, i32
  }
  func.func @transform_15(%arg0: i32) -> (i32, i32) {
    %c0_i32 = arith.constant 0 : i32
    %c0_i32_0 = arith.constant 0 : i32
    %c0_i32_1 = arith.constant 0 : i32
    return %c0_i32, %c0_i32_0 : i32, i32
  }
  func.func @transform_16(%arg0: i32) -> (i32, i32) {
    %c0_i32 = arith.constant 0 : i32
    %c0_i32_0 = arith.constant 0 : i32
    %c0_i32_1 = arith.constant 0 : i32
    return %c0_i32, %c0_i32_0 : i32, i32
  }
  func.func @transform_17(%arg0: i32) -> (i32, i32) {
    %c0_i32 = arith.constant 0 : i32
    %c0_i32_0 = arith.constant 0 : i32
    return %arg0, %c0_i32 : i32, i32
  }
}

</mosaic_0001>

<bundles_post_ra>
// kernel: tpu_custom_call.1
= control target key start
LH: loop header
LB: loop body
LE: loop exit
PB: predicated region body
PF: predicated region fallthrough
CT: control target
= control target key end

     0   :  { %s13093_s0 = inlined_call_operand.hbm [shape: f32[256,128], index: 0, kind: input, shape index: {}]   ;;  %s13094_s1 = inlined_call_operand.hbm [shape: bf16[128,128], index: 1, kind: input, shape index: {}]   ;;  %s13095_s2 = inlined_call_operand.hbm [shape: f32[1,128], index: 2, kind: input, shape index: {}]   ;;  %s13096_s3 = inlined_call_operand.hbm [shape: bf16[128,256], index: 3, kind: input, shape index: {}]   ;;  %s13097_s4 = inlined_call_operand.hbm [shape: f32[1,256], index: 4, kind: input, shape index: {}]   ;;  %s13098_s5 = inlined_call_operand.hbm [shape: bf16[256,512], index: 5, kind: input, shape index: {}]   ;;  %s13099_s6 = inlined_call_operand.vmem [shape: f32[1,512], index: 6, kind: input, shape index: {}]   ;;  %s13100_s7 = inlined_call_operand.hbm [shape: bf16[512,1024], index: 7, kind: input, shape index: {}]   ;;  %s13101_s8 = inlined_call_operand.vmem [shape: f32[1,1024], index: 8, kind: input, shape index: {}]   ;;  %s13102_s9 = inlined_call_operand.hbm [shape: bf16[1024,512], index: 9, kind: input, shape index: {}]   ;;  %s13103_s10 = inlined_call_operand.vmem [shape: f32[1,512], index: 10, kind: input, shape index: {}]   ;;  %s13104_s11 = inlined_call_operand.hbm [shape: bf16[512,256], index: 11, kind: input, shape index: {}]   ;;  %s13105_s12 = inlined_call_operand.vmem [shape: f32[1,256], index: 12, kind: input, shape index: {}]   ;;  %s13106_s13 = inlined_call_operand.hbm [shape: bf16[256,128], index: 13, kind: input, shape index: {}]   ;;  %s13107_s14 = inlined_call_operand.vmem [shape: f32[1,128], index: 14, kind: input, shape index: {}]   ;;  %s13108_s15 = inlined_call_operand.hbm [shape: bf16[128,128], index: 15, kind: input, shape index: {}]   ;;  %s13109_s16 = inlined_call_operand.vmem [shape: f32[1,128], index: 16, kind: input, shape index: {}]   ;;  %s13110_s17 = inlined_call_operand.hbm [shape: f32[256,128], index: 17, kind: output, shape index: {}]  }
   0x1   :  { %13146 = sst [smem:[#allocation65_spill]] %s13093_s0 }
   0x2   :  { %13147 = sst [smem:[#allocation66_spill]] %s13094_s1 }
   0x3   :  { %13148 = sst [smem:[#allocation67_spill]] %s13095_s2 }
   0x4   :  { %13149 = sst [smem:[#allocation68_spill]] %s13096_s3 }
   0x5   :  { %13150 = sst [smem:[#allocation69_spill]] %s13097_s4 }
   0x6   :  { %13151 = sst [smem:[#allocation70_spill]] %s13098_s5 }
   0x7   :  { %13152 = sst [smem:[#allocation71_spill]] %s13100_s7 }
   0x8   :  { %13153 = sst [smem:[#allocation72_spill]] %s13102_s9 }
   0x9   :  { %13154 = sst [smem:[#allocation73_spill]] %s13104_s11 }
   0xa   :  { %13155 = sst [smem:[#allocation74_spill]] %s13105_s12 }
   0xb   :  { %13156 = sst [smem:[#allocation75_spill]] %s13106_s13 }
   0xc   :  { %13157 = sst [smem:[#allocation76_spill]] %s13107_s14 }
   0xd   :  { %13158 = sst [smem:[#allocation77_spill]] %s13109_s16 }
   0xe   :  { %13159 = sst [smem:[#allocation78_spill]] %s13110_s17 }
   0xf   :  { %22 = vsyncpa [#allocation3], 0 }
  0x10   :  { %24 = vsyncpa [#allocation3 + $0x1], 0 }
  0x11   :  { %25 = vsyncpa [#allocation6], 0 }
  0x12   :  { %26 = vsyncpa [#allocation9], 0 }
  0x13   :  { %27 = vsyncpa [#allocation12], 0 }
  0x14   :  { %28 = vsyncpa [#allocation15], 0 }
  0x15   :  { %29 = vsyncpa [#allocation18], 0 }
  0x16   :  { %30 = vsyncpa [#allocation4], 0 }
  0x17   :  { %32 = vsyncpa [#allocation4 + $0x1], 0  ;;  %s10822_s24 = smov 0   ;;  %s10824_s25 = smov 0  }
  0x18   :  { %s10826_s26 = smov 0   ;;  %s10828_s27 = smov 0  }
  0x19 LB: > { %s10709_s28 = smov [#allocation5]   ;;  %s10843_s0 = sadd.s32 4294967295, %s10707_s27   ;;  %s10707_s27 = sphi %s10828_s27, %s13357_s27   ;;  %s10703_s26 = sphi %s10826_s26, %s13356_s26   ;;  %s10699_s25 = sphi %s10824_s25, %s13355_s25   ;;  %s10695_s24 = sphi %s10822_s24, %s13354_s24  }
  0x1a   : > { %s443_s29 = sshll.u32 %s10709_s28, 4  ;;  %p8593_p0 = scmp.ge.s32.totalorder %s10707_s27, 1  ;;  %s444_s29 = int_to_ptr.vmem [resolvable:$true] %s443_s29 }
  0x1b   : > { %p13121_p1 = scmp.eq.s32.totalorder %s10843_s0, 0  ;;  %p431_p2 = scmp.lt.s32.totalorder %s10707_s27, 3 }
  0x1c   : > { %s10710_s18 = smov [#allocation8]   ;;  %s10711_s20 = smov [#allocation11]  }
  0x1d   : > { %p10848_p3 = pnand %p8593_p0, %p431_p2  ;;  %s467_s19 = sshll.u32 %s10710_s18, 4  ;;  %s10861_s19 = int_to_ptr.vmem [resolvable:$true] %s467_s19 }
  0x1e   : > { %s10863_s21 = sshll.u32 %s10711_s20, 4  ;;  %s10346_s23 = scalar_lea.vmem %s444_s29, 1024  ;;  %s492_s21 = int_to_ptr.vmem [resolvable:$true] %s10863_s21 }
  0x1f   : > { %s13160_s30 = scalar_select %p10848_p3, 1, 0 }
  0x20   : > { %p9523_p5 = pneg %p10848_p3  ;;  %p10347_p8 = scmp.ne.s32.totalorder %s444_s29, %s10346_s23 }
  0x21   : > { %p10354_p11 = scmp.lt.s32.totalorder %s444_s29, %s444_s29  ;;  %p10355_p12 = scmp.lt.s32.totalorder %s10346_s23, %s10346_s23 }
  0x22   : > { %p10857_p6 = pnand %p9523_p5, %p13121_p1 }
  0x23   : > { %p10356_p13 = por %p10355_p12, %p10354_p11 }
  0x24   : > { %p10867_p7 = pneg %p10857_p6 }
  0x26   : > { %p10349_p9 = pnand %p10347_p8, %p10867_p7 }
  0x28   : > { %p10350_p10 = pneg %p10349_p9 }
  0x2a   : > { %p10357_p0 = pnand %p10356_p13, %p10350_p10 }
  0x2c   : > { %10360 = shalt.err (!%p10357_p0)
}
  0x2d   : > { %s13113_s28 = smov 64   ;;  %s13115_s18 = smov 4  }
  0x2e   : > { %s13163_s16 = sld [smem:[#allocation66_spill]]  ;;  %s10372_s14 = scalar_lea.vmem %s10861_s19, 2048 }
  0x2f   : > { %p10373_p2 = scmp.ne.s32.totalorder %s10861_s19, %s10372_s14  ;;  %p10380_p9 = scmp.lt.s32.totalorder %s10861_s19, %s10861_s19 }
  0x30   : > { %p10381_p10 = scmp.lt.s32.totalorder %s10372_s14, %s10372_s14 }
  0x31   : > { %p10375_p5 = pnand %p10373_p2, %p10867_p7 }
  0x32   : > { %p10382_p11 = por %p10381_p10, %p10380_p9 }
  0x33   : > { %p10376_p8 = pneg %p10375_p5 }
  0x34   : > { %9526 = dma.hbm_to_vmem [thread:$0]  (!%p10857_p6), %s13163_s16, 1024, %s444_s29, [#allocation6], %s13113_s28, %s13113_s28, %s13115_s18  }
  0x35   : > { %p10383_p12 = pnand %p10382_p11, %p10376_p8 }
  0x37   : > { %10386 = shalt.err (!%p10383_p12)
}
  0x38   : > { %s13117_s23 = smov 128   ;;  %s13119_s12 = smov 8  }
  0x39   : > { %s13164_s3 = sld [smem:[#allocation68_spill]]  ;;  %s10398_s29 = scalar_lea.vmem %s492_s21, 8192 }
  0x3a   : > { %p10399_p13 = scmp.ne.s32.totalorder %s492_s21, %s10398_s29  ;;  %p10406_p5 = scmp.lt.s32.totalorder %s492_s21, %s492_s21 }
  0x3b   : > { %p10407_p8 = scmp.lt.s32.totalorder %s10398_s29, %s10398_s29 }
  0x3c   : > { %p10401_p0 = pnand %p10399_p13, %p10867_p7 }
  0x3d   : > { %p10408_p9 = por %p10407_p8, %p10406_p5 }
  0x3e   : > { %p10402_p2 = pneg %p10401_p0 }
  0x3f   : > { %9532 = dma.hbm_to_vmem [thread:$0]  (!%p10857_p6), %s13164_s3, 2048, %s10861_s19, [#allocation9], %s13117_s23, %s13117_s23, %s13119_s12  }
  0x40   : > { %p10409_p10 = pnand %p10408_p9, %p10402_p2 }
  0x42   : > { %10412 = shalt.err (!%p10409_p10)
}
  0x43   : > { %s10716_s14 = smov 256   ;;  %s10717_s20 = smov 16  }
  0x44   : > { %s13165_s5 = sld [smem:[#allocation70_spill]]  ;;  %s10718_s19 = smov [#allocation14]  }
  0x45   : > { %s523_s16 = sshll.u32 %s10718_s19, 4  ;;  %s10719_s17 = smov [#allocation17]   ;;  %s524_s16 = int_to_ptr.vmem [resolvable:$true] %s523_s16 }
  0x46   : > { %s555_s23 = sshll.u32 %s10719_s17, 4  ;;  %s10424_s12 = scalar_lea.vmem %s524_s16, 32768  ;;  %s556_s23 = int_to_ptr.vmem [resolvable:$true] %s555_s23 }
  0x47   : > { %p10425_p11 = scmp.ne.s32.totalorder %s524_s16, %s10424_s12  ;;  %p10432_p0 = scmp.lt.s32.totalorder %s524_s16, %s524_s16 }
  0x48   : > { %p10433_p2 = scmp.lt.s32.totalorder %s10424_s12, %s10424_s12 }
  0x49   : > { %p10427_p12 = pnand %p10425_p11, %p10867_p7 }
  0x4a   : > { %9538 = dma.hbm_to_vmem [thread:$0]  (!%p10857_p6), %s13165_s5, 8192, %s492_s21, [#allocation12], %s10716_s14, %s10716_s14, %s10717_s20  }
  0x4b   : > { %p10428_p13 = pneg %p10427_p12  ;;  %p10434_p5 = por %p10433_p2, %p10432_p0 }
  0x4d   : > { %p10435_p8 = pnand %p10434_p5, %p10428_p13 }
  0x4f   : > { %10438 = shalt.err (!%p10435_p8)
}
  0x50   : > { %s13166_s9 = sld [smem:[#allocation72_spill]]  ;;  %s10450_s21 = scalar_lea.vmem %s556_s23, 2048 }
  0x51   : > { %p10451_p9 = scmp.ne.s32.totalorder %s556_s23, %s10450_s21  ;;  %p10458_p11 = scmp.lt.s32.totalorder %s556_s23, %s556_s23 }
  0x52   : > { %p10459_p12 = scmp.lt.s32.totalorder %s10450_s21, %s10450_s21 }
  0x53   : > { %p10453_p10 = pnand %p10451_p9, %p10867_p7 }
  0x54   : > { %p10460_p1 = por %p10459_p12, %p10458_p11 }
  0x55   : > { %p10454_p4 = pneg %p10453_p10 }
  0x56   : > { %9544 = dma.hbm_to_vmem [thread:$0]  (!%p10857_p6), %s13166_s9, 32768, %s524_s16, [#allocation15], %s10716_s14, %s10716_s14, %s10717_s20  }
  0x57   : > { %p10461_p3 = pnand %p10460_p1, %p10454_p4 }
  0x59   : > { %10464 = shalt.err (!%p10461_p3)
}
  0x5a   : > { %s13167_s12 = smov 4   ;;  %s13168_s18 = smov 64  }
  0x5b   : > { %s13169_s13 = sld [smem:[#allocation75_spill]]  ;;  %s10720_s14 = smov [#allocation7]  }
  0x5c   : > { %s457_s20 = sshll.u32 %s10720_s14, 4  ;;  %s10721_s16 = smov [#allocation10]   ;;  %s458_s20 = int_to_ptr.vmem [resolvable:$true] %s457_s20 }
  0x5d   : > { %s481_s29 = sshll.u32 %s10721_s16, 4  ;;  %s10476_s28 = scalar_lea.vmem %s458_s20, 16  ;;  %s482_s29 = int_to_ptr.vmem [resolvable:$true] %s481_s29 }
  0x5e   : > { %p10477_p13 = scmp.ne.s32.totalorder %s458_s20, %s10476_s28  ;;  %s10483_s21 = scalar_lea.vmem %s458_s20, 32 }
  0x5f   : > { %p10484_p4 = scmp.lt.s32.totalorder %s458_s20, %s458_s20  ;;  %p10485_p0 = scmp.lt.s32.totalorder %s10483_s21, %s10476_s28 }
  0x60   : > { %p10479_p1 = pnand %p10477_p13, %p10867_p7 }
  0x61   : > { %9550 = dma.hbm_to_vmem [thread:$0]  (!%p10857_p6), %s13169_s13, 2048, %s556_s23, [#allocation18], %s13168_s18, %s13168_s18, %s13167_s12  }
  0x62   : > { %p10480_p3 = pneg %p10479_p1  ;;  %p10486_p2 = por %p10485_p0, %p10484_p4 }
  0x64   : > { %p10487_p5 = pnand %p10486_p2, %p10480_p3 }
  0x66   : > { %10490 = shalt.err (!%p10487_p5)
}
  0x67   : > { %s13170_s2 = sld [smem:[#allocation67_spill]]  ;;  %s10502_s17 = scalar_lea.vmem %s482_s29, 32 }
  0x68   : > { %p10503_p8 = scmp.ne.s32.totalorder %s482_s29, %s10502_s17  ;;  %p10510_p11 = scmp.lt.s32.totalorder %s482_s29, %s482_s29 }
  0x69   : > { %p10511_p12 = scmp.lt.s32.totalorder %s10502_s17, %s10502_s17 }
  0x6a   : > { %p10505_p9 = pnand %p10503_p8, %p10867_p7 }
  0x6b   : > { %p10512_p13 = por %p10511_p12, %p10510_p11 }
  0x6c   : > { %p10506_p10 = pneg %p10505_p9 }
  0x6d   : > { %9529 = dma.hbm_to_vmem [thread:$0]  (!%p10857_p6), %s13170_s2, 16, %s458_s20, [#allocation6]  }
  0x6e   : > { %p10513_p1 = pnand %p10512_p13, %p10506_p10 }
  0x70   : > { %10516 = shalt.err (!%p10513_p1)
}
  0x71   : > { %s13171_s4 = sld [smem:[#allocation69_spill]]  ;;  %s10722_s28 = smov [#allocation13]  }
  0x72   : > { %s507_s20 = sshll.u32 %s10722_s28, 4  ;;  %s508_s20 = int_to_ptr.vmem [resolvable:$true] %s507_s20 }
  0x73   : > { %s10528_s21 = scalar_lea.vmem %s508_s20, 32768  ;;  %p10536_p2 = scmp.lt.s32.totalorder %s508_s20, %s508_s20 }
  0x74   : > { %p10529_p3 = scmp.ne.s32.totalorder %s508_s20, %s10528_s21  ;;  %p10537_p5 = scmp.lt.s32.totalorder %s10528_s21, %s10528_s21 }
  0x76   : > { %p10531_p4 = pnand %p10529_p3, %p10867_p7  ;;  %p10538_p8 = por %p10537_p5, %p10536_p2 }
  0x77   : > { %9535 = dma.hbm_to_vmem [thread:$0]  (!%p10857_p6), %s13171_s4, 32, %s482_s29, [#allocation9]  }
  0x78   : > { %p10532_p0 = pneg %p10531_p4 }
  0x7a   : > { %p10539_p9 = pnand %p10538_p8, %p10532_p0 }
  0x7c   : > { %10542 = shalt.err (!%p10539_p9)
}
  0x7d   : > { %s10723_s19 = smov 512   ;;  %s10724_s23 = smov 32  }
  0x7e   : > { %s13172_s7 = sld [smem:[#allocation71_spill]]  ;;  %s10725_s14 = smov [#allocation16]  }
  0x7f   : > { %s539_s16 = sshll.u32 %s10725_s14, 4  ;;  %s10726_s28 = smov [#allocation19]   ;;  %s540_s16 = int_to_ptr.vmem [resolvable:$true] %s539_s16 }
  0x80   : > { %s571_s2 = sshll.u32 %s10726_s28, 4  ;;  %s10554_s3 = scalar_lea.vmem %s540_s16, 8192  ;;  %s572_s2 = int_to_ptr.vmem [resolvable:$true] %s571_s2 }
  0x81   : > { %p10555_p10 = scmp.ne.s32.totalorder %s540_s16, %s10554_s3  ;;  %p10562_p13 = scmp.lt.s32.totalorder %s540_s16, %s540_s16 }
  0x82   : > { %p10563_p1 = scmp.lt.s32.totalorder %s10554_s3, %s10554_s3 }
  0x83   : > { %p10557_p11 = pnand %p10555_p10, %p10867_p7 }
  0x84   : > { %9541 = dma.hbm_to_vmem [thread:$0]  (!%p10857_p6), %s13172_s7, 32768, %s508_s20, [#allocation12], %s10723_s19, %s10723_s19, %s10724_s23  }
  0x85   : > { %p10558_p12 = pneg %p10557_p11  ;;  %p10564_p3 = por %p10563_p1, %p10562_p13 }
  0x87   : > { %p10565_p4 = pnand %p10564_p3, %p10558_p12 }
  0x89   : > { %10568 = shalt.err (!%p10565_p4)
}
  0x8a   : > { %s13173_s21 = smov 8   ;;  %s13174_s20 = smov 128  }
  0x8b   : > { %s13175_s11 = sld [smem:[#allocation73_spill]]  ;;  %s10580_s17 = scalar_lea.vmem %s572_s2, 1024 }
  0x8c   : > { %p10581_p0 = scmp.ne.s32.totalorder %s572_s2, %s10580_s17  ;;  %p10588_p8 = scmp.lt.s32.totalorder %s572_s2, %s572_s2 }
  0x8d   : > { %p10589_p9 = scmp.lt.s32.totalorder %s10580_s17, %s10580_s17 }
  0x8e   : > { %p10583_p2 = pnand %p10581_p0, %p10867_p7 }
  0x8f   : > { %p10590_p10 = por %p10589_p9, %p10588_p8 }
  0x90   : > { %p10584_p5 = pneg %p10583_p2 }
  0x91   : > { %9547 = dma.hbm_to_vmem [thread:$0]  (!%p10857_p6), %s13175_s11, 8192, %s540_s16, [#allocation15], %s13174_s20, %s13174_s20, %s13173_s21  }
  0x92   : > { %p10591_p11 = pnand %p10590_p10, %p10584_p5 }
  0x94   : > { %10594 = shalt.err (!%p10591_p11)
}
  0x95   : > { %9553 = dma.hbm_to_vmem [thread:$0]  (!%p10857_p6), %s13108_s15, 1024, %s572_s2, [#allocation18], %s13168_s18, %s13168_s18, %s13167_s12  }
  0x96   : > { %s8592_s1 = sadd.s32 4294967294, %s10707_s27   ;;  %s10964_s22 = sadd.s32 1, %s10707_s27  }
  0x97   : > { %s42_s14 = ssub.s32 %s10707_s27, %s10964_s22  ;;  %s45_s16 = sadd.s32 1, %s10703_s26 }
  0x98   : > { %p43_p7 = scmp.eq.s32.totalorder %s42_s14, 0  ;;  %p52_p12 = scmp.ne.s32.totalorder %s10703_s26, %s10699_s25 }
  0x99   : > { %p53_p13 = scmp.eq.s32.totalorder %s10707_s27, 0  ;;  %p58_p1 = scmp.ne.s32.totalorder %s10699_s25, %s10695_s24 }
  0x9a   : > { %s10975_s28 = scalar_select %p43_p7, %s10703_s26, %s45_s16  }
  0x9b   : > { %p10977_p3 = por %p53_p13, %p52_p12  ;;  %p13177_p4 = scmp.eq.s32.totalorder %s10843_s0, 0 }
  0x9c   : > { %p418_p0 = scmp.eq.s32.totalorder %s10843_s0, 1  ;;  %p424_p2 = scmp.eq.s32.totalorder %s8592_s1, 1 }
  0x9d   : > { %p10983_p6 = por %p13177_p4, %p58_p1  ;;  %p9572_p5 = scmp.lt.s32.totalorder %s10707_s27, 2 }
  0x9e   : > { %s588_s12 = sand.u32 1, %s10703_s26   ;;  %p10990_p8 = por %p418_p0, %p52_p12 }
  0x9f   : > { %s13178_s2 = scalar_select %p10983_p6, 1, 0 }
  0xa0   : > { %s13179_s18 = scalar_select %p10990_p8, 1, 0 }
  0xa1   : > { %p10994_p9 = por %p424_p2, %p58_p1  ;;  %s8605_s17 = sshll.u32 %s588_s12, 7 }
  0xa2   : > { %s9317_s3 = sshll.u32 %s10707_s27, 11  ;;  %s13181_s16 = sld [smem:[#allocation65_spill]] }
  0xa3   : > { %s13180_s23 = scalar_select %p10994_p9, 1, 0 }
  0xa4   : > { %s592_s1 = scalar_lea.vmem [#allocation2], %s8605_s17  ;;  %p11008_p10 = pnand %p9572_p5, %p10977_p3 }
  0xa5   : > { %s599_s5 = sshll.u32 %s592_s1, 4  ;;  %s11012_s9 = scalar_lea.sflag [#allocation3], %s588_s12  ;;  %s11004_s5 = int_to_ptr.vmem [resolvable:$true] %s599_s5 }
  0xa6   : > { %p10597_p7 = pneg %p11008_p10 }
  0xa8   : > { %s11002_s4 = scalar_lea.hbm %s13181_s16, %s9317_s3  ;;  %s10600_s17 = scalar_lea.hbm %s13181_s16, 4096 }
  0xa9   : > { %s10595_s11 = scalar_lea.hbm %s11002_s4, 2048  ;;  %p10601_p1 = scmp.lt.s32.totalorder %s11002_s4, %s13181_s16 }
  0xaa   : > { %p10596_p11 = scmp.ne.s32.totalorder %s11002_s4, %s10595_s11  ;;  %p10602_p3 = scmp.lt.s32.totalorder %s10600_s17, %s10595_s11 }
  0xac   : > { %p10598_p12 = pnand %p10597_p7, %p10596_p11  ;;  %p10603_p4 = por %p10602_p3, %p10601_p1 }
  0xae   : > { %p10599_p13 = pneg %p10598_p12 }
  0xb0   : > { %p10604_p0 = pnand %p10603_p4, %p10599_p13 }
  0xb2   : > { %10607 = shalt.err (!%p10604_p0)
}
  0xb3   : > { %s10608_s19 = scalar_lea.vmem %s11004_s5, 2048  ;;  %s10727_s12 = smov [#allocation2]  }
  0xb4   : > { %p10609_p2 = scmp.ne.s32.totalorder %s11004_s5, %s10608_s19  ;;  %s10613_s13 = sshll.u32 %s10727_s12, 4  ;;  %s10614_s13 = int_to_ptr.vmem [resolvable:$false] %s10613_s13 }
  0xb5   : > { %s10615_s3 = scalar_lea.vmem %s10614_s13, 4096  ;;  %p10616_p12 = scmp.lt.s32.totalorder %s11004_s5, %s10614_s13 }
  0xb6   : > { %p10611_p5 = pnand %p10609_p2, %p10597_p7  ;;  %p10617_p9 = scmp.lt.s32.totalorder %s10615_s3, %s10608_s19 }
  0xb8   : > { %p10612_p11 = pneg %p10611_p5  ;;  %p10618_p8 = por %p10617_p9, %p10616_p12 }
  0xba   : > { %p10619_p6 = pnand %p10618_p8, %p10612_p11 }
  0xbc   : > { %10622 = shalt.err (!%p10619_p6)
}
  0xbd   : > { %9557 = dma.hbm_to_vmem [thread:$0]  (!%p11008_p10), %s11002_s4, 2048, %s11004_s5, %s11012_s9, %s13174_s20, %s13174_s20, %s13173_s21  }
  0xbe   : > { %p13183_p7 = scmp.ne.s32.totalorder %s13160_s30, 0 }
  0xc0   : > { %611 = sbr.rel (%p13183_p7) target bundleno = 2599 (0xa27), region = 88 }
  0xc5   : > { %s11039_s11 = sand.u32 1, %s10699_s25   ;;  %p13184_p6 = scmp.ne.s32.totalorder %s13178_s2, 0 }
  0xc6   : > { %s8609_s13 = sshll.u32 %s11039_s11, 7  ;;  %s614_s29 = scalar_lea.sflag [#allocation3], %s11039_s11 }
  0xc7   : > { %s11045_s7 = scalar_lea.vmem [#allocation2], %s8609_s13 }
  0xc8   : > { %10666 = dma.done.wait (%p13184_p6), %s614_s29, 2048  }
  0xc9   : > { %10668 = vsyncadd (%p13184_p6), %s614_s29, 4294965248  ;;  %p13185_p8 = scmp.eq.s32.totalorder %s10843_s0, 0 }
  0xcb   : > { %10670 = dma.done.wait (%p13185_p8), [#allocation6], 1040   ;;  %p13186_p9 = pmov %p13185_p8 }
  0xcc   : > { %p13187_p10 = pmov %p13185_p8 }
  0xcd   : > { %10672 = vsyncadd (%p13186_p9), [#allocation6], 4294966256 }
  0xce   : > { %10674 = dma.done.wait (%p13187_p10), [#allocation9], 2080   ;;  %p13188_p13 = pmov %p13185_p8 }
  0xcf   : > { %p13189_p1 = pmov %p13185_p8 }
  0xd0   : > { %10676 = vsyncadd (%p13188_p13), [#allocation9], 4294965216 }
  0xd1   : > { %10678 = dma.done.wait (%p13189_p1), [#allocation12], 40960   ;;  %p13190_p3 = pmov %p13189_p1 }
  0xd2   : > { %p13191_p4 = pmov %p13189_p1 }
  0xd3   : > { %10680 = vsyncadd (%p13190_p3), [#allocation12], 4294926336 }
  0xd4   : > { %10682 = dma.done.wait (%p13191_p4), [#allocation15], 40960   ;;  %p13192_p0 = pmov %p13189_p1 }
  0xd6   : > { %10684 = vsyncadd (%p13192_p0), [#allocation15], 4294926336  ;;  %p13193_p2 = pmov %p13192_p0 }
  0xd7   : > { %p13194_p5 = pmov %p13192_p0 }
  0xd8   : > { %10686 = dma.done.wait (%p13193_p2), [#allocation18], 3072  }
  0xd9   : > { %10688 = vsyncadd (%p13194_p5), [#allocation18], 4294964224  ;;  %v9637_v0 = vld [vmem:[#allocation5 + $0x38] sm:$0xff]   ;;  %v9638_v1 = vld [vmem:[#allocation5 + $0x30] sm:$0xff]   ;;  %v10728_v48 = vmov 0   ;;  %s13345_s3 = sld [smem:[#allocation74_spill]] }
  0xda   : > { %9415 = vmatprep.subr.bf16.mxu0 %v9637_v0  ;;  %v9639_v2 = vld [vmem:[#allocation5 + $0x28] sm:$0xff]   ;;  %v9640_v3 = vld [vmem:[#allocation5 + $0x20] sm:$0xff]   ;;  %v9641_v7 = vld [vmem:[#allocation5 + $0x18] sm:$0xff]   ;;  %1067 = vmatprep.mubr.bf16.mxu1 %v10728_v48  ;;  %s13348_s4 = sld [smem:[#allocation76_spill]]  ;;  %s13010_s21 = scalar_lea.vmem [#allocation20], %s8609_s13 }
  0xdb   : > { %9416 = vmatpush3.bf16.msra.mxu0 %v9637_v0  ;;  %v711_v4 = vld [vmem:[%s11045_s7] sm:$0xff]  ;;  %v712_v5 = vld [vmem:[%s11045_s7 + $0x8] sm:$0xff]  ;;  %v9647_v9 = vld [vmem:[#allocation8 + $0x70] ss:$8 sps:$4 sm:$0xff]   ;;  %s13349_s30 = sld [smem:[#allocation77_spill]]  ;;  %s9318_s13 = sshll.u32 %s10843_s0, 11 }
  0xdc   : > { %9417 = vmatprep.subr.bf16.mxu0 %v9638_v1  ;;  %v727_v6 = vpack.c.bf16 %v712_v5, %v711_v4  ;;  %v9645_v8 = vld [vmem:[#allocation8 + $0x74] ss:$8 sps:$4 sm:$0xff]   ;;  %v9648_v10 = vld [vmem:[#allocation8 + $0x64] ss:$8 sps:$4 sm:$0xff]   ;;  %v9650_v12 = vld [vmem:[#allocation8 + $0x60] ss:$8 sps:$4 sm:$0xff]  }
  0xdd   : > { %v9642_v11 = vld [vmem:[#allocation5 + $0x10] sm:$0xff]   ;;  %1035 = vmatprep.subr.bf16.mxu1 %v9645_v8  ;;  %v9643_v14 = vld [vmem:[#allocation5 + $0x8] sm:$0xff]   ;;  %v9644_v17 = vld [vmem:[#allocation5] sm:$0xff]   ;;  %s8424_s20 = sshll.u32 %s13010_s21, 4  ;;  %s13350_s14 = sld [smem:[#allocation78_spill]]  ;;  %s13048_s20 = int_to_ptr.vmem [resolvable:$true] %s8424_s20 }
  0xde   : > { %9431 = vmatprep.mubr.bf16.mxu0 %v727_v6  ;;  %1036 = vmatpush1.bf16.msra.mxu1 %v9647_v9  ;;  %v9651_v13 = vld [vmem:[#allocation8 + $0x54] ss:$8 sps:$4 sm:$0xff]   ;;  %v9653_v15 = vld [vmem:[#allocation8 + $0x50] ss:$8 sps:$4 sm:$0xff]   ;;  %v9654_v16 = vld [vmem:[#allocation8 + $0x44] ss:$8 sps:$4 sm:$0xff]  }
  0xdf   : > { %9418 = vmatpush3.bf16.msra.mxu0 %v9638_v1  ;;  %1037 = vmatprep.subr.bf16.mxu1 %v9648_v10  ;;  %v9656_v18 = vld [vmem:[#allocation8 + $0x40] ss:$8 sps:$4 sm:$0xff]   ;;  %v9657_v19 = vld [vmem:[#allocation8 + $0x34] ss:$8 sps:$4 sm:$0xff]   ;;  %v9659_v24 = vld [vmem:[#allocation8 + $0x30] ss:$8 sps:$4 sm:$0xff]  }
  0xe0   : > { %9419 = vmatprep.subr.bf16.mxu0 %v9639_v2  ;;  %v713_v20 = vld [vmem:[%s11045_s7 + $0x10] sm:$0xff]  ;;  %v714_v21 = vld [vmem:[%s11045_s7 + $0x18] sm:$0xff]  ;;  %v715_v22 = vld [vmem:[%s11045_s7 + $0x20] sm:$0xff]  ;;  %s8411_s0 = scalar_lea.sflag [#allocation4], %s11039_s11  ;;  %s10623_s19 = scalar_lea.vmem %s13048_s20, 2048 }
  0xe1   : > { %v716_v23 = vld [vmem:[%s11045_s7 + $0x28] sm:$0xff]  ;;  %v728_v25 = vpack.c.bf16 %v714_v21, %v713_v20  ;;  %v717_v27 = vld [vmem:[%s11045_s7 + $0x30] sm:$0xff]  ;;  %v718_v28 = vld [vmem:[%s11045_s7 + $0x38] sm:$0xff]  ;;  %p10624_p11 = scmp.ne.s32.totalorder %s13048_s20, %s10623_s19  ;;  %p13351_p12 = scmp.ne.s32.totalorder %s13179_s18, 0 }
  0xe2   : > { %1038 = vmatpush1.bf16.msra.mxu1 %v9650_v12  ;;  %v729_v26 = vpack.c.bf16 %v716_v23, %v715_v22  ;;  %v719_v29 = vld [vmem:[%s11045_s7 + $0x40] sm:$0xff]  ;;  %v720_v30 = vld [vmem:[%s11045_s7 + $0x48] sm:$0xff]  ;;  %v730_v31 = vpack.c.bf16 %v718_v28, %v717_v27  ;;  %v721_v33 = vld [vmem:[%s11045_s7 + $0x50] sm:$0xff]  ;;  %s10729_s12 = smov [#allocation20]  }
  0xe3   : > { %9420 = vmatpush3.bf16.msra.mxu0 %v9639_v2  ;;  %1039 = vmatprep.subr.bf16.mxu1 %v9651_v13  ;;  %v731_v32 = vpack.c.bf16 %v720_v30, %v719_v29  ;;  %v722_v34 = vld [vmem:[%s11045_s7 + $0x58] sm:$0xff]  ;;  %v723_v35 = vld [vmem:[%s11045_s7 + $0x60] sm:$0xff]  ;;  %v724_v36 = vld [vmem:[%s11045_s7 + $0x68] sm:$0xff]  ;;  %s13046_s1 = scalar_lea.hbm %s13350_s14, %s9318_s13  ;;  %p10625_p7 = pnand %p10624_p11, %p13351_p12 }
  0xe4   : > { %9421 = vmatprep.subr.bf16.mxu0 %v9640_v3  ;;  %v732_v37 = vpack.c.bf16 %v722_v34, %v721_v33  ;;  %v733_v38 = vpack.c.bf16 %v724_v36, %v723_v35  ;;  %v725_v39 = vld [vmem:[%s11045_s7 + $0x70] sm:$0xff]  ;;  %v726_v40 = vld [vmem:[%s11045_s7 + $0x78] sm:$0xff]  ;;  %v9662_v43 = vld [vmem:[#allocation8 + $0x20] ss:$8 sps:$4 sm:$0xff]  }
  0xe5   : > { %v734_v41 = vpack.c.bf16 %v726_v40, %v725_v39  ;;  %v9660_v42 = vld [vmem:[#allocation8 + $0x24] ss:$8 sps:$4 sm:$0xff]   ;;  %v9663_v44 = vld [vmem:[#allocation8 + $0x14] ss:$8 sps:$4 sm:$0xff]   ;;  %v9665_v45 = vld [vmem:[#allocation8 + $0x10] ss:$8 sps:$4 sm:$0xff]   ;;  %p10626_p6 = pneg %p10625_p7 }
  0xe6   : > { %1040 = vmatpush1.bf16.msra.mxu1 %v9653_v15  ;;  %v9666_v46 = vld [vmem:[#allocation8 + $0x4] ss:$8 sps:$4 sm:$0xff]   ;;  %v9668_v47 = vld [vmem:[#allocation8] ss:$8 sps:$4 sm:$0xff]  }
  0xe7   : > { %9422 = vmatpush3.bf16.msra.mxu0 %v9640_v3  ;;  %1041 = vmatprep.subr.bf16.mxu1 %v9654_v16  ;;  %v9669_v49 = vld [vmem:[#allocation11 + $0xe0] ss:$16 sps:$4 sm:$0xff]   ;;  %v9671_v50 = vld [vmem:[#allocation11 + $0xe4] ss:$16 sps:$4 sm:$0xff]   ;;  %v9674_v51 = vld [vmem:[#allocation11 + $0xec] ss:$16 sps:$4 sm:$0xff]  }
  0xe8   : > { %9423 = vmatprep.subr.bf16.mxu0 %v9641_v7  ;;  %v9677_v52 = vld [vmem:[#allocation11 + $0xc4] ss:$16 sps:$4 sm:$0xff]   ;;  %v9675_v53 = vld [vmem:[#allocation11 + $0xc0] ss:$16 sps:$4 sm:$0xff]   ;;  %v9672_v23 = vld [vmem:[#allocation11 + $0xe8] ss:$16 sps:$4 sm:$0xff]  }
  0xe9   : > { %v9683_v54 = vld [vmem:[#allocation11 + $0xa4] ss:$16 sps:$4 sm:$0xff]   ;;  %v9681_v55 = vld [vmem:[#allocation11 + $0xa0] ss:$16 sps:$4 sm:$0xff]   ;;  %v9678_v29 = vld [vmem:[#allocation11 + $0xc8] ss:$16 sps:$4 sm:$0xff]  }
  0xea   : > { %1042 = vmatpush1.bf16.msra.mxu1 %v9656_v18  ;;  %v9689_v56 = vld [vmem:[#allocation11 + $0x84] ss:$16 sps:$4 sm:$0xff]   ;;  %v9687_v57 = vld [vmem:[#allocation11 + $0x80] ss:$16 sps:$4 sm:$0xff]   ;;  %v9684_v34 = vld [vmem:[#allocation11 + $0xa8] ss:$16 sps:$4 sm:$0xff]  }
  0xeb   : > { %9424 = vmatpush3.bf16.msra.mxu0 %v9641_v7  ;;  %1043 = vmatprep.subr.bf16.mxu1 %v9657_v19  ;;  %v9695_v58 = vld [vmem:[#allocation11 + $0x64] ss:$16 sps:$4 sm:$0xff]   ;;  %v9693_v59 = vld [vmem:[#allocation11 + $0x60] ss:$16 sps:$4 sm:$0xff]   ;;  %v9690_v40 = vld [vmem:[#allocation11 + $0x88] ss:$16 sps:$4 sm:$0xff]  }
  0xec   : > { %9425 = vmatprep.subr.bf16.mxu0 %v9642_v11  ;;  %v9701_v60 = vld [vmem:[#allocation11 + $0x44] ss:$16 sps:$4 sm:$0xff]   ;;  %v9699_v61 = vld [vmem:[#allocation11 + $0x40] ss:$16 sps:$4 sm:$0xff]  }
  0xed   : > { %v9707_v62 = vld [vmem:[#allocation11 + $0x24] ss:$16 sps:$4 sm:$0xff]   ;;  %v9705_v63 = vld [vmem:[#allocation11 + $0x20] ss:$16 sps:$4 sm:$0xff]  }
  0xee   : > { %1044 = vmatpush1.bf16.msra.mxu1 %v9659_v24  ;;  %v9713_v0 = vld [vmem:[#allocation11 + $0x4] ss:$16 sps:$4 sm:$0xff]   ;;  %v9711_v1 = vld [vmem:[#allocation11] ss:$16 sps:$4 sm:$0xff]  }
  0xef   : > { %9426 = vmatpush3.bf16.msra.mxu0 %v9642_v11  ;;  %1045 = vmatprep.subr.bf16.mxu1 %v9660_v42  ;;  %v9719_v2 = vld [vmem:[#allocation11 + $0x1e4] ss:$16 sps:$4 sm:$0xff]   ;;  %v9717_v3 = vld [vmem:[#allocation11 + $0x1e0] ss:$16 sps:$4 sm:$0xff]  }
  0xf0   : > { %9427 = vmatprep.subr.bf16.mxu0 %v9643_v14  ;;  %v9725_v4 = vld [vmem:[#allocation11 + $0x1c4] ss:$16 sps:$4 sm:$0xff]   ;;  %v9723_v5 = vld [vmem:[#allocation11 + $0x1c0] ss:$16 sps:$4 sm:$0xff]  }
  0xf1   : > { %v9731_v6 = vld [vmem:[#allocation11 + $0x1a4] ss:$16 sps:$4 sm:$0xff]   ;;  %v9729_v7 = vld [vmem:[#allocation11 + $0x1a0] ss:$16 sps:$4 sm:$0xff]  }
  0xf2   : > { %1046 = vmatpush1.bf16.msra.mxu1 %v9662_v43  ;;  %v9737_v8 = vld [vmem:[#allocation11 + $0x184] ss:$16 sps:$4 sm:$0xff]   ;;  %v9735_v9 = vld [vmem:[#allocation11 + $0x180] ss:$16 sps:$4 sm:$0xff]   ;;  %v9698_v43 = vld [vmem:[#allocation11 + $0x6c] ss:$16 sps:$4 sm:$0xff]  }
  0xf3   : > { %9428 = vmatpush3.bf16.msra.mxu0 %v9643_v14  ;;  %1047 = vmatprep.subr.bf16.mxu1 %v9663_v44  ;;  %v9743_v10 = vld [vmem:[#allocation11 + $0x164] ss:$16 sps:$4 sm:$0xff]   ;;  %v9741_v11 = vld [vmem:[#allocation11 + $0x160] ss:$16 sps:$4 sm:$0xff]   ;;  %v11088_v14 = vld [vmem:[#allocation7] ss:$0 sm:$0xff] }
  0xf4   : > { %9429 = vmatprep.subr.bf16.mxu0 %v9644_v17 }
  0xf6   : > { %1048 = vmatpush1.bf16.msra.mxu1 %v9665_v45  ;;  %v9696_v45 = vld [vmem:[#allocation11 + $0x68] ss:$16 sps:$4 sm:$0xff]  }
  0xf7   : > { %9430 = vmatpush3.bf16.msra.mxu0 %v9644_v17  ;;  %1049 = vmatprep.subr.bf16.mxu1 %v9666_v46 }
  0xf8   : > { %1602 = vmatprep.subr.bf16.mxu0 %v9671_v50  ;;  %v9704_v50 = vld [vmem:[#allocation11 + $0x4c] ss:$16 sps:$4 sm:$0xff]  }
  0xfa   : > { %9432 = vmatmul.mubr.bf16.vlgmr.msra.gmra.mxu0 %v728_v25  ;;  %1050 = vmatpush1.bf16.msra.mxu1 %v9668_v47 }
  0xfb   : > { %9435 = vmatprep.mubr.bf16.mxu0 %v729_v26  ;;  %1715 = vmatprep.subr.bf16.mxu1 %v9674_v51  ;;  %v9680_v26 = vld [vmem:[#allocation11 + $0xcc] ss:$16 sps:$4 sm:$0xff]  }
  0xfc   : > { %1603 = vmatpush1.bf16.msra.mxu0 %v9669_v49 }
  0xfd   : > { %1604 = vmatprep.subr.bf16.mxu0 %v9677_v52  ;;  %v9702_v52 = vld [vmem:[#allocation11 + $0x48] ss:$16 sps:$4 sm:$0xff]  }
 0x100   : > { %1605 = vmatpush1.bf16.msra.mxu0 %v9675_v53 }
 0x101   : > { %1606 = vmatprep.subr.bf16.mxu0 %v9683_v54 }
 0x102   : > { %9436 = vmatmul.mubr.bf16.gmra.mxu0 %v730_v31  ;;  %v9686_v31 = vld [vmem:[#allocation11 + $0xac] ss:$16 sps:$4 sm:$0xff]  }
 0x103   : > { %9439 = vmatprep.mubr.bf16.mxu0 %v731_v32 }
 0x104   : > { %1607 = vmatpush1.bf16.msra.mxu0 %v9681_v55  ;;  %v9710_v55 = vld [vmem:[#allocation11 + $0x2c] ss:$16 sps:$4 sm:$0xff]  }
 0x105   : > { %1608 = vmatprep.subr.bf16.mxu0 %v9689_v56 }
 0x108   : > { %1609 = vmatpush1.bf16.msra.mxu0 %v9687_v57  ;;  %v9708_v57 = vld [vmem:[#allocation11 + $0x28] ss:$16 sps:$4 sm:$0xff]  }
 0x109   : > { %1610 = vmatprep.subr.bf16.mxu0 %v9695_v58 }
 0x10a   : > { %9440 = vmatmul.mubr.bf16.gmra.mxu0 %v732_v37 }
 0x10b   : > { %9443 = vmatprep.mubr.bf16.mxu0 %v733_v38  ;;  %v9692_v38 = vld [vmem:[#allocation11 + $0x8c] ss:$16 sps:$4 sm:$0xff]  }
 0x10c   : > { %1611 = vmatpush1.bf16.msra.mxu0 %v9693_v59 }
 0x10d   : > { %1612 = vmatprep.subr.bf16.mxu0 %v9701_v60 }
 0x110   : > { %1613 = vmatpush1.bf16.msra.mxu0 %v9699_v61  ;;  %v9716_v61 = vld [vmem:[#allocation11 + $0xc] ss:$16 sps:$4 sm:$0xff]  }
 0x111   : > { %1614 = vmatprep.subr.bf16.mxu0 %v9707_v62 }
 0x112   : > { %9444 = vmatmul.mubr.bf16.gmra.mxu0 %v734_v41 }
 0x114   : > { %1615 = vmatpush1.bf16.msra.mxu0 %v9705_v63  ;;  %v9714_v63 = vld [vmem:[#allocation11 + $0x8] ss:$16 sps:$4 sm:$0xff]  }
 0x115   : > { %1616 = vmatprep.subr.bf16.mxu0 %v9713_v0 }
 0x118   : > { %1617 = vmatpush1.bf16.msra.mxu0 %v9711_v1 }
 0x119   : > { %1618 = vmatprep.subr.bf16.mxu0 %v9719_v2  ;;  %v9722_v2 = vld [vmem:[#allocation11 + $0x1ec] ss:$16 sps:$4 sm:$0xff]  }
 0x11c   : > { %1619 = vmatpush2.bf16.msra.mxu0 %v9717_v3 }
 0x11d   : > { %1620 = vmatprep.subr.bf16.mxu0 %v9725_v4  ;;  %v9720_v4 = vld [vmem:[#allocation11 + $0x1e8] ss:$16 sps:$4 sm:$0xff]  }
 0x120   : > { %1621 = vmatpush2.bf16.msra.mxu0 %v9723_v5 }
 0x121   : > { %1622 = vmatprep.subr.bf16.mxu0 %v9731_v6 }
 0x124   : > { %1623 = vmatpush2.bf16.msra.mxu0 %v9729_v7 }
 0x125   : > { %1624 = vmatprep.subr.bf16.mxu0 %v9737_v8  ;;  %v9728_v8 = vld [vmem:[#allocation11 + $0x1cc] ss:$16 sps:$4 sm:$0xff]  }
 0x128   : > { %1625 = vmatpush2.bf16.msra.mxu0 %v9735_v9 }
 0x129   : > { %1626 = vmatprep.subr.bf16.mxu0 %v9743_v10  ;;  %v9726_v10 = vld [vmem:[#allocation11 + $0x1c8] ss:$16 sps:$4 sm:$0xff]  }
 0x12c   : > { %1627 = vmatpush2.bf16.msra.mxu0 %v9741_v11 }
 0x1ba   : > { %v9433_v12 = vpop.f32.mrf.mxu0 }
 0x1bb   : > { %v849_v28 = vadd.f32 %v9433_v12, %v11088_v14 }
 0x1bc   : > { %v840_v13 = vpop.f32.mrf.mxu0 }
 0x1bd   : > { %v841_v16 = vadd.f32 %v11088_v14, %v840_v13  ;;  %v905_v33 = vmax.f32 %v849_v28, 0.0  ;;  %v9734_v13 = vld [vmem:[#allocation11 + $0x1ac] ss:$16 sps:$4 sm:$0xff]  }
 0x1be   : > { %v9434_v15 = vpop.f32.mrf.mxu0 }
 0x1bf   : > { %v903_v20 = vmax.f32 %v841_v16, 0.0  ;;  %v852_v24 = vadd.f32 %v9434_v15, %v11088_v14  ;;  %v9732_v16 = vld [vmem:[#allocation11 + $0x1a8] ss:$16 sps:$4 sm:$0xff]  }
 0x1c0   : > { %v843_v17 = vpop.f32.mrf.mxu0 }
 0x1c1   : > { %v844_v18 = vadd.f32 %v11088_v14, %v843_v17  ;;  %v906_v30 = vmax.f32 %v852_v24, 0.0  ;;  %v9746_v24 = vld [vmem:[#allocation11 + $0x16c] ss:$16 sps:$4 sm:$0xff]  }
 0x1c2   : > { %v9437_v19 = vpop.f32.mrf.mxu0 }
 0x1c3   : > { %v904_v21 = vmax.f32 %v844_v18, 0.0  ;;  %v920_v35 = vpack.c.bf16 %v906_v30, %v905_v33  ;;  %v865_v46 = vadd.f32 %v9437_v19, %v11088_v14  ;;  %v9752_v33 = vld [vmem:[#allocation11 + $0x14c] ss:$16 sps:$4 sm:$0xff]  }
 0x1c4   : > { %v856_v22 = vpop.f32.mrf.mxu0 }
 0x1c5   : > { %v919_v25 = vpack.c.bf16 %v904_v21, %v903_v20  ;;  %v857_v36 = vadd.f32 %v11088_v14, %v856_v22  ;;  %v909_v53 = vmax.f32 %v865_v46, 0.0  ;;  %v9740_v20 = vld [vmem:[#allocation11 + $0x18c] ss:$16 sps:$4 sm:$0xff]   ;;  %v9738_v21 = vld [vmem:[#allocation11 + $0x188] ss:$16 sps:$4 sm:$0xff]  }
 0x1c6   : > { %v9438_v27 = vpop.f32.mrf.mxu0 }
 0x1c7   : > { %1068 = vmatmul.mubr.bf16.vlgmr.msra.gmra.mxu1 %v919_v25  ;;  %v907_v41 = vmax.f32 %v857_v36, 0.0  ;;  %v868_v47 = vadd.f32 %v9438_v27, %v11088_v14  ;;  %v9744_v25 = vld [vmem:[#allocation11 + $0x168] ss:$16 sps:$4 sm:$0xff]   ;;  %v9755_v36 = vld [vmem:[#allocation11 + $0x124] ss:$16 sps:$4 sm:$0xff]  }
 0x1c8   : > { %1077 = vmatprep.mubr.bf16.mxu1 %v10728_v48  ;;  %1716 = vmatpush1.bf16.msra.mxu1 %v9672_v23  ;;  %v859_v32 = vpop.f32.mrf.mxu0 }
 0x1c9   : > { %1717 = vmatprep.subr.bf16.mxu1 %v9680_v26  ;;  %v860_v37 = vadd.f32 %v11088_v14, %v859_v32  ;;  %v910_v54 = vmax.f32 %v868_v47, 0.0  ;;  %v9749_v32 = vld [vmem:[#allocation11 + $0x144] ss:$16 sps:$4 sm:$0xff]  }
 0x1ca   : > { %v9441_v39 = vpop.f32.mrf.mxu0  ;;  %1628 = vmatprep.subr.bf16.mxu0 %v9749_v32  ;;  %v2112_v47 = vld [vmem:[#allocation13 + $0x5e0] sm:$0xff] }
 0x1cb   : > { %v908_v42 = vmax.f32 %v860_v37, 0.0  ;;  %v922_v58 = vpack.c.bf16 %v910_v54, %v909_v53  ;;  %v881_v5 = vadd.f32 %v9441_v39, %v11088_v14  ;;  %v9753_v37 = vld [vmem:[#allocation11 + $0x120] ss:$16 sps:$4 sm:$0xff]   ;;  %v9764_v39 = vld [vmem:[#allocation11 + $0x10c] ss:$16 sps:$4 sm:$0xff]  }
 0x1cc   : > { %1718 = vmatpush1.bf16.msra.mxu1 %v9678_v29  ;;  %v872_v44 = vpop.f32.mrf.mxu0 }
 0x1cd   : > { %1719 = vmatprep.subr.bf16.mxu1 %v9686_v31  ;;  %v921_v49 = vpack.c.bf16 %v908_v42, %v907_v41  ;;  %v873_v59 = vadd.f32 %v11088_v14, %v872_v44  ;;  %v913_v11 = vmax.f32 %v881_v5, 0.0  ;;  %v9762_v41 = vld [vmem:[#allocation11 + $0x108] ss:$16 sps:$4 sm:$0xff]   ;;  %v1980_v42 = vld [vmem:[#allocation13 + $0x1c0] sm:$0xff] }
 0x1ce   : > { %v9442_v51 = vpop.f32.mrf.mxu0  ;;  %v2108_v44 = vld [vmem:[#allocation13 + $0x5c0] sm:$0xff] }
 0x1cf   : > { %1078 = vmatmul.mubr.bf16.gmra.mxu1 %v920_v35  ;;  %v911_v0 = vmax.f32 %v873_v59, 0.0  ;;  %v884_v6 = vadd.f32 %v9442_v51, %v11088_v14  ;;  %v9750_v35 = vld [vmem:[#allocation11 + $0x148] ss:$16 sps:$4 sm:$0xff]   ;;  %v945_v51 = vlaneseq }
 0x1d0   : > { %1087 = vmatprep.mubr.bf16.mxu1 %v10728_v48  ;;  %1720 = vmatpush1.bf16.msra.mxu1 %v9684_v34  ;;  %v875_v56 = vpop.f32.mrf.mxu0  ;;  %v9747_v34 = vld [vmem:[#allocation11 + $0x140] ss:$16 sps:$4 sm:$0xff]  }
 0x1d1   : > { %1721 = vmatprep.subr.bf16.mxu1 %v9692_v38  ;;  %v876_v60 = vadd.f32 %v11088_v14, %v875_v56  ;;  %v914_v12 = vmax.f32 %v884_v6, 0.0  ;;  %1629 = vmatpush2.bf16.msra.mxu0 %v9747_v34  ;;  %v9756_v38 = vld [vmem:[#allocation11 + $0x128] ss:$16 sps:$4 sm:$0xff]  }
 0x1d2   : > { %v9445_v62 = vpop.f32.mrf.mxu0  ;;  %1630 = vmatprep.subr.bf16.mxu0 %v9755_v36  ;;  %v1960_v36 = vld [vmem:[#allocation13 + $0x120] sm:$0xff] }
 0x1d3   : > { %v912_v1 = vmax.f32 %v876_v60, 0.0  ;;  %v924_v17 = vpack.c.bf16 %v914_v12, %v913_v11  ;;  %v897_v26 = vadd.f32 %v9445_v62, %v11088_v14 }
 0x1d4   : > { %1722 = vmatpush1.bf16.msra.mxu1 %v9690_v40  ;;  %v888_v3 = vpop.f32.mrf.mxu0  ;;  %v9759_v40 = vld [vmem:[#allocation11 + $0x100] ss:$16 sps:$4 sm:$0xff]  }
 0x1d5   : > { %1723 = vmatprep.subr.bf16.mxu1 %v9698_v43  ;;  %v923_v7 = vpack.c.bf16 %v912_v1, %v911_v0  ;;  %v889_v18 = vadd.f32 %v11088_v14, %v888_v3  ;;  %v917_v29 = vmax.f32 %v897_v26, 0.0  ;;  %1631 = vmatpush2.bf16.msra.mxu0 %v9753_v37  ;;  %v1984_v43 = vld [vmem:[#allocation13 + $0x1e0] sm:$0xff] }
 0x1d6   : > { %v9446_v9 = vpop.f32.mrf.mxu0  ;;  %v8767_v46 = vcombine.high %v1980_v42, %v1984_v43  ;;  %v2088_v37 = vld [vmem:[#allocation13 + $0x520] sm:$0xff] }
 0x1d7   : > { %1088 = vmatmul.mubr.bf16.gmra.mxu1 %v921_v49  ;;  %v915_v22 = vmax.f32 %v889_v18, 0.0  ;;  %v900_v27 = vadd.f32 %v9446_v9, %v11088_v14  ;;  %v8894_v49 = vcombine.low %v2108_v44, %v2112_v47  ;;  %v2104_v9 = vld [vmem:[#allocation13 + $0x5a0] sm:$0xff] }
 0x1d8   : > { %1097 = vmatprep.mubr.bf16.mxu1 %v10728_v48  ;;  %1724 = vmatpush1.bf16.msra.mxu1 %v9696_v45  ;;  %v891_v15 = vpop.f32.mrf.mxu0  ;;  %v8766_v45 = vcombine.low %v1980_v42, %v1984_v43  ;;  %v1964_v18 = vld [vmem:[#allocation13 + $0x140] sm:$0xff] }
 0x1d9   : > { %1725 = vmatprep.subr.bf16.mxu1 %v9704_v50  ;;  %v892_v19 = vadd.f32 %v11088_v14, %v891_v15  ;;  %v918_v30 = vmax.f32 %v900_v27, 0.0  ;;  %v9758_v14 = vld [vmem:[#allocation11 + $0x12c] ss:$16 sps:$4 sm:$0xff]   ;;  %v8895_v50 = vcombine.high %v2108_v44, %v2112_v47 }
 0x1db   : > { %v916_v23 = vmax.f32 %v892_v19, 0.0  ;;  %v926_v31 = vpack.c.bf16 %v918_v30, %v917_v29 }
 0x1dc   : > { %1726 = vmatpush1.bf16.msra.mxu1 %v9702_v52  ;;  %v11113_v52 = vshrl.u32 %v945_v51, 7  ;;  %v2076_v51 = vld [vmem:[#allocation13 + $0x4c0] sm:$0xff] }
 0x1dd   : > { %1727 = vmatprep.subr.bf16.mxu1 %v9710_v55  ;;  %v925_v28 = vpack.c.bf16 %v916_v23, %v915_v22  ;;  %v943_v55 = vld [vmem:[#allocation10] sm:$0x3]  ;;  %v2092_v22 = vld [vmem:[#allocation13 + $0x540] sm:$0xff] }
 0x1de   : > { %13195 = vst [vmem:[#allocation28_spill] sm:$0xff] %v11113_v52  ;;  %v11116_v53 = vsub.s32 1, %v11113_v52  ;;  %v11119_v54 = vsub.s32 0, %v11113_v52  ;;  %v2096_v23 = vld [vmem:[#allocation13 + $0x560] sm:$0xff] }
 0x1df   : > { %1098 = vmatmul.mubr.bf16.gmra.mxu1 %v922_v58  ;;  %v8879_v32 = vcombine.high %v2092_v22, %v2096_v23 }
 0x1e0   : > { %1107 = vmatprep.mubr.bf16.mxu1 %v10728_v48  ;;  %1728 = vmatpush1.bf16.msra.mxu1 %v9708_v57  ;;  %13196 = vst [vmem:[#allocation29_spill] sm:$0xff] %v11116_v53  ;;  %13197 = vst [vmem:[#allocation30_spill] sm:$0xff] %v11119_v54  ;;  %v11122_v57 = vrot.slane %v943_v55, %v11116_v53  ;;  %v11125_v58 = vrot.slane %v943_v55, %v11119_v54  ;;  %v2080_v55 = vld [vmem:[#allocation13 + $0x4e0] sm:$0xff] }
 0x1e1   : > { %1729 = vmatprep.subr.bf16.mxu1 %v9716_v61 }
 0x1e4   : > { %1730 = vmatpush1.bf16.msra.mxu1 %v9714_v63 }
 0x1e5   : > { %1731 = vmatprep.subr.bf16.mxu1 %v9722_v2 }
 0x1e7   : > { %1108 = vmatmul.mubr.bf16.gmra.mxu1 %v923_v7  ;;  %v1976_v7 = vld [vmem:[#allocation13 + $0x1a0] sm:$0xff] }
 0x1e8   : > { %1117 = vmatprep.mubr.bf16.mxu1 %v10728_v48  ;;  %1732 = vmatpush2.bf16.msra.mxu1 %v9720_v4  ;;  %v1972_v4 = vld [vmem:[#allocation13 + $0x180] sm:$0xff] }
 0x1e9   : > { %1733 = vmatprep.subr.bf16.mxu1 %v9728_v8  ;;  %v2100_v8 = vld [vmem:[#allocation13 + $0x580] sm:$0xff]  ;;  %v8758_v27 = vcombine.low %v1972_v4, %v1976_v7 }
 0x1ec   : > { %1734 = vmatpush2.bf16.msra.mxu1 %v9726_v10 }
 0x1ed   : > { %1735 = vmatprep.subr.bf16.mxu1 %v9734_v13 }
 0x1ef   : > { %1118 = vmatmul.mubr.bf16.gmra.mxu1 %v924_v17  ;;  %v8887_v17 = vcombine.high %v2100_v8, %v2104_v9 }
 0x1f0   : > { %1127 = vmatprep.mubr.bf16.mxu1 %v10728_v48  ;;  %1736 = vmatpush2.bf16.msra.mxu1 %v9732_v16  ;;  %v8759_v16 = vcombine.high %v1972_v4, %v1976_v7  ;;  %v2068_v7 = vld [vmem:[#allocation13 + $0x480] sm:$0xff] }
 0x1f1   : > { %1737 = vmatprep.subr.bf16.mxu1 %v9740_v20 }
 0x1f4   : > { %1738 = vmatpush2.bf16.msra.mxu1 %v9738_v21  ;;  %v1968_v21 = vld [vmem:[#allocation13 + $0x160] sm:$0xff] }
 0x1f5   : > { %1739 = vmatprep.subr.bf16.mxu1 %v9746_v24 }
 0x1f7   : > { %1128 = vmatmul.mubr.bf16.gmra.mxu1 %v925_v28  ;;  %v8886_v28 = vcombine.low %v2100_v8, %v2104_v9  ;;  %v2072_v8 = vld [vmem:[#allocation13 + $0x4a0] sm:$0xff] }
 0x1f8   : > { %1137 = vmatprep.mubr.bf16.mxu1 %v10728_v48  ;;  %1740 = vmatpush2.bf16.msra.mxu1 %v9744_v25  ;;  %v9761_v48 = vld [vmem:[#allocation11 + $0x104] ss:$16 sps:$4 sm:$0xff]  }
 0x1f9   : > { %1741 = vmatprep.subr.bf16.mxu1 %v9752_v33  ;;  %1632 = vmatprep.subr.bf16.mxu0 %v9761_v48  ;;  %v1956_v33 = vld [vmem:[#allocation13 + $0x100] sm:$0xff] }
 0x1fa   : > { %1633 = vmatpush2.bf16.msra.mxu0 %v9759_v40  ;;  %v8750_v40 = vcombine.low %v1964_v18, %v1968_v21  ;;  %v8743_v44 = vcombine.high %v1956_v33, %v1960_v36 }
 0x1fb   : > { %3502 = vmatprep.subr.bf16.mxu0 %v8767_v46  ;;  %v1948_v46 = vld [vmem:[#allocation13 + $0xc0] sm:$0xff] }
 0x1fc   : > { %1742 = vmatpush2.bf16.msra.mxu1 %v9750_v35 }
 0x1fd   : > { %1743 = vmatprep.subr.bf16.mxu1 %v9758_v14  ;;  %v2084_v14 = vld [vmem:[#allocation13 + $0x500] sm:$0xff] }
 0x1ff   : > { %1138 = vmatmul.mubr.bf16.gmra.mxu1 %v926_v31  ;;  %v8751_v31 = vcombine.high %v1964_v18, %v1968_v21  ;;  %v8855_v18 = vcombine.high %v2068_v7, %v2072_v8 }
 0x200   : > { %1744 = vmatpush2.bf16.msra.mxu1 %v9756_v38 }
 0x201   : > { %1745 = vmatprep.subr.bf16.mxu1 %v9764_v39 }
 0x204   : > { %1746 = vmatpush2.bf16.msra.mxu1 %v9762_v41  ;;  %v8878_v41 = vcombine.low %v2092_v22, %v2096_v23  ;;  %v1936_v22 = vld [vmem:[#allocation13 + $0x60] sm:$0xff] }
 0x205   : > { %3615 = vmatprep.subr.bf16.mxu1 %v8895_v50  ;;  %v1952_v50 = vld [vmem:[#allocation13 + $0xe0] sm:$0xff] }
 0x206   : > { %v2060_v23 = vld [vmem:[#allocation13 + $0x440] sm:$0xff] }
 0x287   : > { %v1069_v56 = vpop.f32.mrf.mxu1 }
 0x288   : > { %v1070_v63 = vadd.f32 %v1069_v56, %v11125_v58 }
 0x289   : > { %v1071_v59 = vpop.f32.mrf.mxu1 }
 0x28a   : > { %v1072_v61 = vadd.f32 %v1071_v59, %v11122_v57  ;;  %v1148_v10 = vmax.f32 %v1070_v63, 0.0 }
 0x28b   : > { %v1073_v60 = vpop.f32.mrf.mxu1 }
 0x28c   : > { %v1074_v62 = vadd.f32 %v1073_v60, %v11125_v58  ;;  %v1149_v5 = vmax.f32 %v1072_v61, 0.0  ;;  %v8742_v61 = vcombine.low %v1956_v33, %v1960_v36 }
 0x28d   : > { %v1075_v0 = vpop.f32.mrf.mxu1 }
 0x28e   : > { %v1076_v1 = vadd.f32 %v1075_v0, %v11122_v57  ;;  %v1150_v2 = vmax.f32 %v1074_v62, 0.0  ;;  %v8870_v62 = vcombine.low %v2084_v14, %v2088_v37 }
 0x28f   : > { %v1079_v3 = vpop.f32.mrf.mxu1 }
 0x290   : > { %v1151_v6 = vmax.f32 %v1076_v1, 0.0  ;;  %v1180_v13 = vpack.c.bf16 %v1150_v2, %v1148_v10  ;;  %v1080_v24 = vadd.f32 %v1079_v3, %v11125_v58  ;;  %v8735_v1 = vcombine.high %v1948_v46, %v1952_v50  ;;  %v1940_v3 = vld [vmem:[#allocation13 + $0x80] sm:$0xff] }
 0x291   : > { %v1081_v11 = vpop.f32.mrf.mxu1  ;;  %v8863_v2 = vcombine.high %v2076_v51, %v2080_v55 }
 0x292   : > { %v1181_v12 = vpack.c.bf16 %v1151_v6, %v1149_v5  ;;  %v1082_v19 = vadd.f32 %v1081_v11, %v11122_v57  ;;  %v1152_v38 = vmax.f32 %v1080_v24, 0.0  ;;  %v1944_v6 = vld [vmem:[#allocation13 + $0xa0] sm:$0xff] }
 0x293   : > { %v1083_v15 = vpop.f32.mrf.mxu1  ;;  %v2064_v24 = vld [vmem:[#allocation13 + $0x460] sm:$0xff] }
 0x294   : > { %v1084_v20 = vadd.f32 %v1083_v15, %v11125_v58  ;;  %1634 = vmatprep.mubr.bf16.mxu0 %v1181_v12  ;;  %1747 = vmatprep.mubr.bf16.mxu1 %v1181_v12  ;;  %v1153_v34 = vmax.f32 %v1082_v19, 0.0  ;;  %v8734_v12 = vcombine.low %v1948_v46, %v1952_v50  ;;  %v1932_v19 = vld [vmem:[#allocation13 + $0x40] sm:$0xff]  ;;  %v8847_v33 = vcombine.high %v2060_v23, %v2064_v24 }
 0x295   : > { %v1085_v25 = vpop.f32.mrf.mxu1  ;;  %1635 = vmatmul.mubr.bf16.vlgmr.msra.gmra.mxu0 %v1180_v13  ;;  %1748 = vmatmul.mubr.bf16.vlgmr.msra.gmra.mxu1 %v1180_v13  ;;  %v8862_v13 = vcombine.low %v2076_v51, %v2080_v55  ;;  %v2048_v51 = vld [vmem:[#allocation13 + $0x3e0] sm:$0xff] }
 0x296   : > { %v1086_v26 = vadd.f32 %v1085_v25, %v11122_v57  ;;  %3503 = vmatpush1.bf16.msra.mxu0 %v8766_v45  ;;  %3616 = vmatpush1.bf16.msra.mxu1 %v8894_v49  ;;  %v1154_v29 = vmax.f32 %v1084_v20, 0.0  ;;  %v8871_v45 = vcombine.high %v2084_v14, %v2088_v37  ;;  %v1928_v14 = vld [vmem:[#allocation13 + $0x20] sm:$0xff] }
 0x297   : > { %v1089_v30 = vpop.f32.mrf.mxu1  ;;  %3504 = vmatprep.subr.bf16.mxu0 %v8759_v16  ;;  %3617 = vmatprep.subr.bf16.mxu1 %v8887_v17  ;;  %v8727_v17 = vcombine.high %v1940_v3, %v1944_v6  ;;  %v2052_v37 = vld [vmem:[#allocation13 + $0x400] sm:$0xff] }
 0x298   : > { %v1155_v35 = vmax.f32 %v1086_v26, 0.0  ;;  %v1182_v42 = vpack.c.bf16 %v1154_v29, %v1152_v38  ;;  %v1090_v56 = vadd.f32 %v1089_v30, %v11125_v58  ;;  %v8854_v29 = vcombine.low %v2068_v7, %v2072_v8  ;;  %v2056_v38 = vld [vmem:[#allocation13 + $0x420] sm:$0xff] }
 0x299   : > { %v1091_v48 = vpop.f32.mrf.mxu1  ;;  %v8839_v46 = vcombine.high %v2052_v37, %v2056_v38  ;;  %v2172_v55 = vld [vmem:[#allocation13 + $0x7c0] sm:$0xff] }
 0x29a   : > { %v1183_v39 = vpack.c.bf16 %v1155_v35, %v1153_v34  ;;  %3505 = vmatpush1.bf16.msra.mxu0 %v8758_v27  ;;  %3618 = vmatpush1.bf16.msra.mxu1 %v8886_v28  ;;  %v1092_v47 = vadd.f32 %v1091_v48, %v11122_v57  ;;  %v1156_v9 = vmax.f32 %v1090_v56, 0.0  ;;  %v8726_v28 = vcombine.low %v1940_v3, %v1944_v6  ;;  %v1924_v34 = vld [vmem:[#allocation13] sm:$0xff] }
 0x29b   : > { %v1093_v43 = vpop.f32.mrf.mxu1  ;;  %3506 = vmatprep.subr.bf16.mxu0 %v8751_v31  ;;  %3619 = vmatprep.subr.bf16.mxu1 %v8879_v32  ;;  %v8719_v32 = vcombine.high %v1932_v19, %v1936_v22  ;;  %v2176_v56 = vld [vmem:[#allocation13 + $0x7e0] sm:$0xff] }
 0x29c   : > { %v1094_v49 = vadd.f32 %v1093_v43, %v11125_v58  ;;  %1644 = vmatprep.mubr.bf16.mxu0 %v1183_v39  ;;  %1757 = vmatprep.mubr.bf16.mxu1 %v1183_v39  ;;  %v1157_v4 = vmax.f32 %v1092_v47, 0.0  ;;  %v2044_v47 = vld [vmem:[#allocation13 + $0x3c0] sm:$0xff]  ;;  %v8959_v3 = vcombine.high %v2172_v55, %v2176_v56 }
 0x29d   : > { %v1095_v59 = vpop.f32.mrf.mxu1  ;;  %1645 = vmatmul.mubr.bf16.gmra.mxu0 %v1182_v42  ;;  %1758 = vmatmul.mubr.bf16.gmra.mxu1 %v1182_v42  ;;  %v8846_v42 = vcombine.low %v2060_v23, %v2064_v24  ;;  %v2040_v7 = vld [vmem:[#allocation13 + $0x3a0] sm:$0xff] }
 0x29e   : > { %v1096_v60 = vadd.f32 %v1095_v59, %v11122_v57  ;;  %3507 = vmatpush1.bf16.msra.mxu0 %v8750_v40  ;;  %3620 = vmatpush1.bf16.msra.mxu1 %v8878_v41  ;;  %v1158_v63 = vmax.f32 %v1094_v49, 0.0  ;;  %v8718_v41 = vcombine.low %v1932_v19, %v1936_v22  ;;  %v2164_v8 = vld [vmem:[#allocation13 + $0x780] sm:$0xff] }
 0x29f   : > { %v1099_v0 = vpop.f32.mrf.mxu1  ;;  %3508 = vmatprep.subr.bf16.mxu0 %v8743_v44  ;;  %3621 = vmatprep.subr.bf16.mxu1 %v8871_v45  ;;  %v8711_v45 = vcombine.high %v1924_v34, %v1928_v14  ;;  %v2032_v23 = vld [vmem:[#allocation13 + $0x360] sm:$0xff] }
 0x2a0   : > { %v1159_v5 = vmax.f32 %v1096_v60, 0.0  ;;  %v1184_v15 = vpack.c.bf16 %v1158_v63, %v1156_v9  ;;  %v1100_v25 = vadd.f32 %v1099_v0, %v11125_v58  ;;  %v8838_v63 = vcombine.low %v2052_v37, %v2056_v38  ;;  %v2168_v9 = vld [vmem:[#allocation13 + $0x7a0] sm:$0xff] }
 0x2a1   : > { %v1101_v10 = vpop.f32.mrf.mxu1  ;;  %v8951_v19 = vcombine.high %v2164_v8, %v2168_v9  ;;  %v2156_v24 = vld [vmem:[#allocation13 + $0x740] sm:$0xff] }
 0x2a2   : > { %v1185_v11 = vpack.c.bf16 %v1159_v5, %v1157_v4  ;;  %3509 = vmatpush1.bf16.msra.mxu0 %v8742_v61  ;;  %3622 = vmatpush1.bf16.msra.mxu1 %v8870_v62  ;;  %v1102_v20 = vadd.f32 %v1101_v10, %v11122_v57  ;;  %v1160_v48 = vmax.f32 %v1100_v25, 0.0  ;;  %v8710_v62 = vcombine.low %v1924_v34, %v1928_v14  ;;  %v2036_v4 = vld [vmem:[#allocation13 + $0x380] sm:$0xff] }
 0x2a3   : > { %v1103_v16 = vpop.f32.mrf.mxu1  ;;  %3510 = vmatprep.subr.bf16.mxu0 %v8735_v1  ;;  %3623 = vmatprep.subr.bf16.mxu1 %v8863_v2  ;;  %v8831_v2 = vcombine.high %v2044_v47, %v2048_v51  ;;  %v2160_v25 = vld [vmem:[#allocation13 + $0x760] sm:$0xff] }
 0x2a4   : > { %v1104_v21 = vadd.f32 %v1103_v16, %v11125_v58  ;;  %1654 = vmatprep.mubr.bf16.mxu0 %v1185_v11  ;;  %1767 = vmatprep.mubr.bf16.mxu1 %v1185_v11  ;;  %v1161_v35 = vmax.f32 %v1102_v20, 0.0  ;;  %v2028_v20 = vld [vmem:[#allocation13 + $0x340] sm:$0xff]  ;;  %v8943_v34 = vcombine.high %v2156_v24, %v2160_v25 }
 0x2a5   : > { %v1105_v26 = vpop.f32.mrf.mxu1  ;;  %1655 = vmatmul.mubr.bf16.gmra.mxu0 %v1184_v15  ;;  %1768 = vmatmul.mubr.bf16.gmra.mxu1 %v1184_v15  ;;  %v8958_v15 = vcombine.low %v2172_v55, %v2176_v56  ;;  %v2024_v37 = vld [vmem:[#allocation13 + $0x320] sm:$0xff] }
 0x2a6   : > { %v1106_v27 = vadd.f32 %v1105_v26, %v11122_v57  ;;  %3511 = vmatpush1.bf16.msra.mxu0 %v8734_v12  ;;  %3624 = vmatpush1.bf16.msra.mxu1 %v8862_v13  ;;  %v1162_v30 = vmax.f32 %v1104_v21, 0.0  ;;  %v8830_v13 = vcombine.low %v2044_v47, %v2048_v51  ;;  %v2148_v38 = vld [vmem:[#allocation13 + $0x700] sm:$0xff] }
 0x2a7   : > { %v1109_v31 = vpop.f32.mrf.mxu1  ;;  %3512 = vmatprep.subr.bf16.mxu0 %v8727_v17  ;;  %3625 = vmatprep.subr.bf16.mxu1 %v8855_v18  ;;  %v8823_v18 = vcombine.high %v2036_v4, %v2040_v7  ;;  %v2016_v55 = vld [vmem:[#allocation13 + $0x2e0] sm:$0xff] }
 0x2a8   : > { %v1163_v36 = vmax.f32 %v1106_v27, 0.0  ;;  %v1186_v43 = vpack.c.bf16 %v1162_v30, %v1160_v48  ;;  %v1110_v59 = vadd.f32 %v1109_v31, %v11125_v58  ;;  %v8950_v30 = vcombine.low %v2164_v8, %v2168_v9  ;;  %v2152_v48 = vld [vmem:[#allocation13 + $0x720] sm:$0xff] }
 0x2a9   : > { %v1111_v39 = vpop.f32.mrf.mxu1  ;;  %v8935_v47 = vcombine.high %v2148_v38, %v2152_v48  ;;  %v2140_v56 = vld [vmem:[#allocation13 + $0x6c0] sm:$0xff] }
 0x2aa   : > { %v1187_v40 = vpack.c.bf16 %v1163_v36, %v1161_v35  ;;  %3513 = vmatpush1.bf16.msra.mxu0 %v8726_v28  ;;  %3626 = vmatpush1.bf16.msra.mxu1 %v8854_v29  ;;  %v1112_v49 = vadd.f32 %v1111_v39, %v11122_v57  ;;  %v1164_v10 = vmax.f32 %v1110_v59, 0.0  ;;  %v8822_v29 = vcombine.low %v2036_v4, %v2040_v7  ;;  %v2020_v35 = vld [vmem:[#allocation13 + $0x300] sm:$0xff] }
 0x2ab   : > { %v1113_v44 = vpop.f32.mrf.mxu1  ;;  %3514 = vmatprep.subr.bf16.mxu0 %v8719_v32  ;;  %3627 = vmatprep.subr.bf16.mxu1 %v8847_v33  ;;  %v8815_v33 = vcombine.high %v2028_v20, %v2032_v23  ;;  %v2144_v59 = vld [vmem:[#allocation13 + $0x6e0] sm:$0xff] }
 0x2ac   : > { %v1114_v50 = vadd.f32 %v1113_v44, %v11125_v58  ;;  %1664 = vmatprep.mubr.bf16.mxu0 %v1187_v40  ;;  %1777 = vmatprep.mubr.bf16.mxu1 %v1187_v40  ;;  %v1165_v5 = vmax.f32 %v1112_v49, 0.0  ;;  %v2012_v49 = vld [vmem:[#allocation13 + $0x2c0] sm:$0xff]  ;;  %v8927_v4 = vcombine.high %v2140_v56, %v2144_v59 }
 0x2ad   : > { %v1115_v60 = vpop.f32.mrf.mxu1  ;;  %1665 = vmatmul.mubr.bf16.gmra.mxu0 %v1186_v43  ;;  %1778 = vmatmul.mubr.bf16.gmra.mxu1 %v1186_v43  ;;  %v8942_v43 = vcombine.low %v2156_v24, %v2160_v25 }
 0x2ae   : > { %v1116_v61 = vadd.f32 %v1115_v60, %v11122_v57  ;;  %3515 = vmatpush1.bf16.msra.mxu0 %v8718_v41  ;;  %3628 = vmatpush1.bf16.msra.mxu1 %v8846_v42  ;;  %v1166_v0 = vmax.f32 %v1114_v50, 0.0  ;;  %v8814_v42 = vcombine.low %v2028_v20, %v2032_v23 }
 0x2af   : > { %v1119_v1 = vpop.f32.mrf.mxu1  ;;  %3516 = vmatprep.subr.bf16.mxu0 %v8711_v45  ;;  %3629 = vmatprep.subr.bf16.mxu1 %v8839_v46  ;;  %v8807_v46 = vcombine.high %v2020_v35, %v2024_v37 }
 0x2b0   : > { %v1167_v6 = vmax.f32 %v1116_v61, 0.0  ;;  %v1188_v16 = vpack.c.bf16 %v1166_v0, %v1164_v10  ;;  %v1120_v26 = vadd.f32 %v1119_v1, %v11125_v58  ;;  %v8934_v0 = vcombine.low %v2148_v38, %v2152_v48  ;;  %v1988_v48 = vld [vmem:[#allocation13 + $0x200] sm:$0xff] }
 0x2b1   : > { %v1121_v11 = vpop.f32.mrf.mxu1  ;;  %v8798_v10 = vcombine.low %v2012_v49, %v2016_v55 }
 0x2b2   : > { %v1189_v12 = vpack.c.bf16 %v1167_v6, %v1165_v5  ;;  %3517 = vmatpush1.bf16.msra.mxu0 %v8710_v62  ;;  %3630 = vmatpush1.bf16.msra.mxu1 %v8838_v63  ;;  %v1122_v21 = vadd.f32 %v1121_v11, %v11122_v57  ;;  %v1168_v39 = vmax.f32 %v1120_v26, 0.0  ;;  %v8806_v63 = vcombine.low %v2020_v35, %v2024_v37  ;;  %v2004_v26 = vld [vmem:[#allocation13 + $0x280] sm:$0xff] }
 0x2b3   : > { %v1123_v17 = vpop.f32.mrf.mxu1  ;;  %3518 = vmatprep.subr.bf16.mxu0 %v8831_v2  ;;  %3631 = vmatprep.subr.bf16.mxu1 %v8959_v3  ;;  %v8799_v3 = vcombine.high %v2012_v49, %v2016_v55  ;;  %v8926_v11 = vcombine.low %v2140_v56, %v2144_v59  ;;  %v11163_v49 = vld [vmem:[#allocation13 + $0x5c8] sm:$0xff] }
 0x2b4   : > { %v1124_v22 = vadd.f32 %v1123_v17, %v11125_v58  ;;  %1674 = vmatprep.mubr.bf16.mxu0 %v1189_v12  ;;  %1787 = vmatprep.mubr.bf16.mxu1 %v1189_v12  ;;  %v1169_v36 = vmax.f32 %v1122_v21, 0.0 }
 0x2b5   : > { %v1125_v27 = vpop.f32.mrf.mxu1  ;;  %1675 = vmatmul.mubr.bf16.gmra.mxu0 %v1188_v16  ;;  %1788 = vmatmul.mubr.bf16.gmra.mxu1 %v1188_v16 }
 0x2b6   : > { %v1126_v28 = vadd.f32 %v1125_v27, %v11122_v57  ;;  %3519 = vmatpush2.bf16.msra.mxu0 %v8830_v13  ;;  %3632 = vmatpush2.bf16.msra.mxu1 %v8958_v15  ;;  %v1170_v31 = vmax.f32 %v1124_v22, 0.0  ;;  %v2008_v27 = vld [vmem:[#allocation13 + $0x2a0] sm:$0xff] }
 0x2b7   : > { %v1129_v32 = vpop.f32.mrf.mxu1  ;;  %3520 = vmatprep.subr.bf16.mxu0 %v8823_v18  ;;  %3633 = vmatprep.subr.bf16.mxu1 %v8951_v19 }
 0x2b8   : > { %v1171_v14 = vmax.f32 %v1126_v28, 0.0  ;;  %v1190_v44 = vpack.c.bf16 %v1170_v31, %v1168_v39  ;;  %v1130_v60 = vadd.f32 %v1129_v32, %v11125_v58  ;;  %v8791_v28 = vcombine.high %v2004_v26, %v2008_v27  ;;  %v1996_v32 = vld [vmem:[#allocation13 + $0x240] sm:$0xff] }
 0x2b9   : > { %v1131_v40 = vpop.f32.mrf.mxu1  ;;  %v1992_v39 = vld [vmem:[#allocation13 + $0x220] sm:$0xff] }
 0x2ba   : > { %v1191_v41 = vpack.c.bf16 %v1171_v14, %v1169_v36  ;;  %3521 = vmatpush2.bf16.msra.mxu0 %v8822_v29  ;;  %3634 = vmatpush2.bf16.msra.mxu1 %v8950_v30  ;;  %v1132_v50 = vadd.f32 %v1131_v40, %v11122_v57  ;;  %v1172_v7 = vmax.f32 %v1130_v60, 0.0  ;;  %v2136_v29 = vld [vmem:[#allocation13 + $0x6a0] sm:$0xff]  ;;  %v8790_v30 = vcombine.low %v2004_v26, %v2008_v27 }
 0x2bb   : > { %v1133_v45 = vpop.f32.mrf.mxu1  ;;  %3522 = vmatprep.subr.bf16.mxu0 %v8815_v33  ;;  %3635 = vmatprep.subr.bf16.mxu1 %v8943_v34  ;;  %v2000_v33 = vld [vmem:[#allocation13 + $0x260] sm:$0xff]  ;;  %v11176_v60 = vsub.s32 3, %v11113_v52 }
 0x2bc   : > { %v1134_v51 = vadd.f32 %v1133_v45, %v11125_v58  ;;  %1684 = vmatprep.mubr.bf16.mxu0 %v1191_v41  ;;  %1797 = vmatprep.mubr.bf16.mxu1 %v1191_v41  ;;  %v1173_v5 = vmax.f32 %v1132_v50, 0.0  ;;  %v2124_v34 = vld [vmem:[#allocation13 + $0x640] sm:$0xff]  ;;  %v8783_v35 = vcombine.high %v1996_v32, %v2000_v33  ;;  %v8782_v14 = vcombine.low %v1996_v32, %v2000_v33 }
 0x2bd   : > { %v1135_v61 = vpop.f32.mrf.mxu1  ;;  %1685 = vmatmul.mubr.bf16.gmra.mxu0 %v1190_v44  ;;  %1798 = vmatmul.mubr.bf16.gmra.mxu1 %v1190_v44  ;;  %v2128_v36 = vld [vmem:[#allocation13 + $0x660] sm:$0xff]  ;;  %v8775_v41 = vcombine.high %v1988_v48, %v1992_v39  ;;  %13198 = vst [vmem:[#allocation31_spill] sm:$0xff] %v11176_v60 }
 0x2be   : > { %v1136_v62 = vadd.f32 %v1135_v61, %v11122_v57  ;;  %3523 = vmatpush2.bf16.msra.mxu0 %v8814_v42  ;;  %3636 = vmatpush2.bf16.msra.mxu1 %v8942_v43  ;;  %v1174_v1 = vmax.f32 %v1134_v51, 0.0  ;;  %v8910_v37 = vcombine.low %v2124_v34, %v2128_v36  ;;  %v8911_v38 = vcombine.high %v2124_v34, %v2128_v36  ;;  %v2116_v40 = vld [vmem:[#allocation13 + $0x600] sm:$0xff]  ;;  %v11167_v51 = vld [vmem:[#allocation13 + $0x5e8] sm:$0xff] }
 0x2bf   : > { %v1139_v2 = vpop.f32.mrf.mxu1  ;;  %3524 = vmatprep.subr.bf16.mxu0 %v8807_v46  ;;  %3637 = vmatprep.subr.bf16.mxu1 %v8935_v47  ;;  %v2120_v42 = vld [vmem:[#allocation13 + $0x620] sm:$0xff]  ;;  %v8774_v43 = vcombine.low %v1988_v48, %v1992_v39  ;;  %v11159_v46 = vld [vmem:[#allocation13 + $0x1c8] sm:$0xff]  ;;  %v8896_v56 = vcombine.low %v11163_v49, %v11167_v51  ;;  %v8897_v59 = vcombine.high %v11163_v49, %v11167_v51  ;;  %v11179_v61 = vsub.s32 2, %v11113_v52 }
 0x2c0   : > { %v1175_v6 = vmax.f32 %v1136_v62, 0.0  ;;  %v1192_v12 = vpack.c.bf16 %v1174_v1, %v1172_v7  ;;  %v1140_v17 = vadd.f32 %v1139_v2, %v11125_v58  ;;  %v8902_v44 = vcombine.low %v2116_v40, %v2120_v42  ;;  %v11161_v47 = vld [vmem:[#allocation13 + $0x1e8] sm:$0xff]  ;;  %v1260_v62 = vld [vmem:[%s13099_s6] sm:$0xf] }
 0x2c1   : > { %v1141_v8 = vpop.f32.mrf.mxu1  ;;  %v8903_v45 = vcombine.high %v2116_v40, %v2120_v42  ;;  %v8769_v50 = vcombine.high %v11159_v46, %v11161_v47  ;;  %v8768_v55 = vcombine.low %v11159_v46, %v11161_v47  ;;  %13199 = vst [vmem:[#allocation32_spill] sm:$0xff] %v11179_v61  ;;  %v11185_v1 = vrot.slane %v1260_v62, %v11116_v53  ;;  %v11256_v49 = vld [vmem:[#allocation13 + $0x128] sm:$0xff] }
 0x2c2   : > { %v1193_v9 = vpack.c.bf16 %v1175_v6, %v1173_v5  ;;  %3525 = vmatpush2.bf16.msra.mxu0 %v8806_v63  ;;  %3638 = vmatpush2.bf16.msra.mxu1 %v8934_v0  ;;  %v1142_v15 = vadd.f32 %v1141_v8, %v11122_v57  ;;  %v1176_v23 = vmax.f32 %v1140_v17, 0.0  ;;  %v11188_v2 = vrot.slane %v1260_v62, %v11176_v60  ;;  %v11258_v51 = vld [vmem:[#allocation13 + $0x508] sm:$0xff] }
 0x2c3   : > { %v1143_v13 = vpop.f32.mrf.mxu1  ;;  %3526 = vmatprep.subr.bf16.mxu0 %v8799_v3  ;;  %3639 = vmatprep.subr.bf16.mxu1 %v8927_v4  ;;  %v11191_v3 = vrot.slane %v1260_v62, %v11119_v54  ;;  %v11194_v4 = vrot.slane %v1260_v62, %v11179_v61 }
 0x2c4   : > { %v1144_v16 = vadd.f32 %v1143_v13, %v11125_v58  ;;  %1694 = vmatprep.mubr.bf16.mxu0 %v1193_v9  ;;  %1807 = vmatprep.mubr.bf16.mxu1 %v1193_v9  ;;  %v1177_v21 = vmax.f32 %v1142_v15, 0.0  ;;  %v2132_v58 = vld [vmem:[#allocation13 + $0x680] sm:$0xff] }
 0x2c5   : > { %v1145_v18 = vpop.f32.mrf.mxu1  ;;  %1695 = vmatmul.mubr.bf16.gmra.mxu0 %v1192_v12  ;;  %1808 = vmatmul.mubr.bf16.gmra.mxu1 %v1192_v12  ;;  %v8918_v31 = vcombine.low %v2132_v58, %v2136_v29 }
 0x2c6   : > { %v1146_v19 = vadd.f32 %v1145_v18, %v11122_v57  ;;  %3527 = vmatpush2.bf16.msra.mxu0 %v8798_v10  ;;  %3640 = vmatpush2.bf16.msra.mxu1 %v8926_v11  ;;  %v1178_v20 = vmax.f32 %v1144_v16, 0.0  ;;  %v8919_v57 = vcombine.high %v2132_v58, %v2136_v29  ;;  %v11208_v29 = vld [vmem:[#allocation13 + $0x588] sm:$0xff] }
 0x2c7   : > { %3528 = vmatprep.subr.bf16.mxu0 %v8791_v28 }
 0x2c8   : > { %v1179_v22 = vmax.f32 %v1146_v19, 0.0  ;;  %v1194_v25 = vpack.c.bf16 %v1178_v20, %v1176_v23  ;;  %3641 = vmatprep.subr.bf16.mxu1 %v8919_v57 }
 0x2ca   : > { %v1195_v24 = vpack.c.bf16 %v1179_v22, %v1177_v21  ;;  %3529 = vmatpush2.bf16.msra.mxu0 %v8790_v30  ;;  %3642 = vmatpush2.bf16.msra.mxu1 %v8918_v31  ;;  %v11210_v30 = vld [vmem:[#allocation13 + $0x5a8] sm:$0xff] }
 0x2cb   : > { %3530 = vmatprep.subr.bf16.mxu0 %v8783_v35  ;;  %3643 = vmatprep.subr.bf16.mxu1 %v8911_v38  ;;  %v8889_v40 = vcombine.high %v11208_v29, %v11210_v30 }
 0x2cc   : > { %1704 = vmatprep.mubr.bf16.mxu0 %v1195_v24  ;;  %1817 = vmatprep.mubr.bf16.mxu1 %v1195_v24  ;;  %v11204_v24 = vld [vmem:[#allocation13 + $0x188] sm:$0xff] }
 0x2cd   : > { %1705 = vmatmul.mubr.bf16.gmra.mxu0 %v1194_v25  ;;  %1818 = vmatmul.mubr.bf16.gmra.mxu1 %v1194_v25  ;;  %v11206_v25 = vld [vmem:[#allocation13 + $0x1a8] sm:$0xff] }
 0x2ce   : > { %3531 = vmatpush2.bf16.msra.mxu0 %v8782_v14  ;;  %3644 = vmatpush2.bf16.msra.mxu1 %v8910_v37  ;;  %v8761_v36 = vcombine.high %v11204_v24, %v11206_v25 }
 0x2cf   : > { %3532 = vmatprep.subr.bf16.mxu0 %v8775_v41  ;;  %3645 = vmatprep.subr.bf16.mxu1 %v8903_v45  ;;  %v11232_v45 = vld [vmem:[#allocation13 + $0x168] sm:$0xff] }
 0x2d2   : > { %3533 = vmatpush2.bf16.msra.mxu0 %v8774_v43  ;;  %3646 = vmatpush2.bf16.msra.mxu1 %v8902_v44  ;;  %v11230_v44 = vld [vmem:[#allocation13 + $0x148] sm:$0xff] }
 0x2d3   : > { %3728 = vmatprep.subr.bf16.mxu0 %v8769_v50  ;;  %3841 = vmatprep.subr.bf16.mxu1 %v8897_v59  ;;  %v8752_v46 = vcombine.low %v11230_v44, %v11232_v45  ;;  %v8753_v47 = vcombine.high %v11230_v44, %v11232_v45 }
 0x355   : > { %v1636_v63 = vpop.f32.mrf.mxu0  ;;  %v1749_v0 = vpop.f32.mrf.mxu1 }
 0x356   : > { %v1637_v13 = vadd.f32 %v1636_v63, %v11191_v3  ;;  %v1750_v15 = vadd.f32 %v1749_v0, %v11194_v4  ;;  %v8760_v0 = vcombine.low %v11204_v24, %v11206_v25 }
 0x357   : > { %v1638_v5 = vpop.f32.mrf.mxu0  ;;  %v1751_v6 = vpop.f32.mrf.mxu1 }
 0x358   : > { %v1639_v9 = vadd.f32 %v1638_v5, %v11185_v1  ;;  %v1752_v10 = vadd.f32 %v1751_v6, %v11188_v2  ;;  %v1828_v31 = vmax.f32 %v1637_v13, 0.0  ;;  %v1830_v57 = vmax.f32 %v1750_v15, 0.0 }
 0x359   : > { %v1640_v7 = vpop.f32.mrf.mxu0  ;;  %v1753_v8 = vpop.f32.mrf.mxu1 }
 0x35a   : > { %v1641_v11 = vadd.f32 %v1640_v7, %v11191_v3  ;;  %v1754_v12 = vadd.f32 %v1753_v8, %v11194_v4  ;;  %v1829_v26 = vmax.f32 %v1639_v9, 0.0  ;;  %v1831_v27 = vmax.f32 %v1752_v10, 0.0  ;;  %v2093_v8 = vld [vmem:[#allocation13 + $0x548] sm:$0xff] }
 0x35b   : > { %v1642_v16 = vpop.f32.mrf.mxu0  ;;  %v1755_v17 = vpop.f32.mrf.mxu1  ;;  %v8888_v7 = vcombine.low %v11208_v29, %v11210_v30  ;;  %v2097_v9 = vld [vmem:[#allocation13 + $0x568] sm:$0xff] }
 0x35c   : > { %v1643_v18 = vadd.f32 %v1642_v16, %v11185_v1  ;;  %v1756_v19 = vadd.f32 %v1755_v17, %v11188_v2  ;;  %v1832_v20 = vmax.f32 %v1641_v11, 0.0  ;;  %v1834_v21 = vmax.f32 %v1754_v12, 0.0  ;;  %v11250_v10 = vld [vmem:[#allocation13 + $0x108] sm:$0xff] }
 0x35d   : > { %v1646_v22 = vpop.f32.mrf.mxu0  ;;  %v1759_v23 = vpop.f32.mrf.mxu1  ;;  %v8881_v24 = vcombine.high %v2093_v8, %v2097_v9 }
 0x35e   : > { %v1833_v58 = vmax.f32 %v1643_v18, 0.0  ;;  %v1835_v28 = vmax.f32 %v1756_v19, 0.0  ;;  %v11218_v14 = vpack.c.bf16 %v1832_v20, %v1828_v31  ;;  %v11220_v37 = vpack.c.bf16 %v1834_v21, %v1830_v57 }
 0x35f   : > { %v1648_v32 = vpop.f32.mrf.mxu0  ;;  %v1761_v33 = vpop.f32.mrf.mxu1  ;;  %v1647_v50 = vadd.f32 %v1646_v22, %v11191_v3  ;;  %v1760_v59 = vadd.f32 %v1759_v23, %v11194_v4  ;;  %v8880_v23 = vcombine.low %v2093_v8, %v2097_v9 }
 0x360   : > { %v11212_v34 = vpack.c.bf16 %v1833_v58, %v1829_v26  ;;  %v11214_v35 = vpack.c.bf16 %v1835_v28, %v1831_v27  ;;  %v1649_v38 = vadd.f32 %v1648_v32, %v11185_v1  ;;  %v1762_v41 = vadd.f32 %v1761_v33, %v11188_v2 }
 0x361   : > { %v1650_v48 = vpop.f32.mrf.mxu0  ;;  %v1763_v39 = vpop.f32.mrf.mxu1  ;;  %v1836_v19 = vmax.f32 %v1647_v50, 0.0  ;;  %v1838_v20 = vmax.f32 %v1760_v59, 0.0  ;;  %v8745_v27 = vcombine.high %v11250_v10, %v11256_v49  ;;  %v2077_v59 = vld [vmem:[#allocation13 + $0x4c8] sm:$0xff] }
 0x362   : > { %v1651_v42 = vadd.f32 %v1650_v48, %v11191_v3  ;;  %v1764_v43 = vadd.f32 %v1763_v39, %v11194_v4  ;;  %3534 = vmatprep.mubr.bf16.mxu0 %v11212_v34  ;;  %3647 = vmatprep.mubr.bf16.mxu1 %v11214_v35  ;;  %v1839_v16 = vmax.f32 %v1762_v41, 0.0  ;;  %v11282_v48 = vld [vmem:[#allocation13 + $0xe8] sm:$0xff] }
 0x363   : > { %v1652_v62 = vpop.f32.mrf.mxu0  ;;  %v1765_v63 = vpop.f32.mrf.mxu1  ;;  %3535 = vmatmul.mubr.bf16.vlgmr.msra.gmra.mxu0 %v11218_v14  ;;  %3648 = vmatmul.mubr.bf16.vlgmr.msra.gmra.mxu1 %v11220_v37 }
 0x364   : > { %v1653_v5 = vadd.f32 %v1652_v62, %v11185_v1  ;;  %v1766_v6 = vadd.f32 %v1765_v63, %v11188_v2  ;;  %3729 = vmatpush1.bf16.msra.mxu0 %v8768_v55  ;;  %3842 = vmatpush1.bf16.msra.mxu1 %v8896_v56  ;;  %v1840_v11 = vmax.f32 %v1651_v42, 0.0  ;;  %v1842_v12 = vmax.f32 %v1764_v43, 0.0  ;;  %v11260_v55 = vld [vmem:[#allocation13 + $0x528] sm:$0xff] }
 0x365   : > { %v1656_v13 = vpop.f32.mrf.mxu0  ;;  %v1769_v15 = vpop.f32.mrf.mxu1  ;;  %3730 = vmatprep.subr.bf16.mxu0 %v8761_v36  ;;  %3843 = vmatprep.subr.bf16.mxu1 %v8889_v40  ;;  %v1837_v56 = vmax.f32 %v1649_v38, 0.0  ;;  %v8873_v58 = vcombine.high %v11258_v51, %v11260_v55  ;;  %v11280_v38 = vld [vmem:[#allocation13 + $0xc8] sm:$0xff]  ;;  %v8744_v43 = vcombine.low %v11250_v10, %v11256_v49  ;;  %v8872_v50 = vcombine.low %v11258_v51, %v11260_v55 }
 0x366   : > { %v1841_v17 = vmax.f32 %v1653_v5, 0.0  ;;  %v1843_v18 = vmax.f32 %v1766_v6, 0.0  ;;  %v11270_v28 = vpack.c.bf16 %v1840_v11, %v1836_v19  ;;  %v11272_v29 = vpack.c.bf16 %v1842_v12, %v1838_v20  ;;  %v2081_v62 = vld [vmem:[#allocation13 + $0x4e8] sm:$0xff] }
 0x367   : > { %v1658_v21 = vpop.f32.mrf.mxu0  ;;  %v1771_v22 = vpop.f32.mrf.mxu1  ;;  %v1657_v39 = vadd.f32 %v1656_v13, %v11191_v3  ;;  %v1770_v40 = vadd.f32 %v1769_v15, %v11194_v4  ;;  %v11294_v63 = vld [vmem:[#allocation13 + $0x88] sm:$0xff]  ;;  %v8736_v8 = vcombine.low %v11280_v38, %v11282_v48  ;;  %v8737_v9 = vcombine.high %v11280_v38, %v11282_v48 }
 0x368   : > { %v11262_v25 = vpack.c.bf16 %v1841_v17, %v1837_v56  ;;  %v11264_v26 = vpack.c.bf16 %v1843_v18, %v1839_v16  ;;  %3731 = vmatpush1.bf16.msra.mxu0 %v8760_v0  ;;  %v1659_v30 = vadd.f32 %v1658_v21, %v11185_v1  ;;  %3844 = vmatpush1.bf16.msra.mxu1 %v8888_v7  ;;  %v11300_v10 = vld [vmem:[#allocation13 + $0xa8] sm:$0xff] }
 0x369   : > { %v1660_v31 = vpop.f32.mrf.mxu0  ;;  %v1773_v57 = vpop.f32.mrf.mxu1  ;;  %3732 = vmatprep.subr.bf16.mxu0 %v8753_v47  ;;  %v1772_v32 = vadd.f32 %v1771_v22, %v11188_v2  ;;  %3845 = vmatprep.subr.bf16.mxu1 %v8881_v24  ;;  %v11302_v11 = vld [vmem:[#allocation13 + $0x488] sm:$0xff]  ;;  %v1844_v49 = vmax.f32 %v1657_v39, 0.0  ;;  %v1846_v51 = vmax.f32 %v1770_v40, 0.0  ;;  %v8864_v16 = vcombine.low %v2077_v59, %v2081_v62 }
 0x36a   : > { %v1661_v33 = vadd.f32 %v1660_v31, %v11191_v3  ;;  %v1774_v36 = vadd.f32 %v1773_v57, %v11194_v4  ;;  %3544 = vmatprep.mubr.bf16.mxu0 %v11262_v25  ;;  %3657 = vmatprep.mubr.bf16.mxu1 %v11264_v26  ;;  %v11304_v12 = vld [vmem:[#allocation13 + $0x4a8] sm:$0xff]  ;;  %v1845_v13 = vmax.f32 %v1659_v30, 0.0  ;;  %v8865_v17 = vcombine.high %v2077_v59, %v2081_v62 }
 0x36b   : > { %v1662_v41 = vpop.f32.mrf.mxu0  ;;  %v1775_v42 = vpop.f32.mrf.mxu1  ;;  %3545 = vmatmul.mubr.bf16.gmra.mxu0 %v11270_v28  ;;  %3658 = vmatmul.mubr.bf16.gmra.mxu1 %v11272_v29  ;;  %v1847_v15 = vmax.f32 %v1772_v32, 0.0  ;;  %v8729_v20 = vcombine.high %v11294_v63, %v11300_v10  ;;  %v8857_v21 = vcombine.high %v11302_v11, %v11304_v12  ;;  %v11324_v32 = vld [vmem:[#allocation13 + $0x48] sm:$0xff]  ;;  %v8728_v40 = vcombine.low %v11294_v63, %v11300_v10 }
 0x36c   : > { %v1663_v44 = vadd.f32 %v1662_v41, %v11185_v1  ;;  %v1776_v45 = vadd.f32 %v1775_v42, %v11188_v2  ;;  %3733 = vmatpush1.bf16.msra.mxu0 %v8752_v46  ;;  %v1848_v0 = vmax.f32 %v1661_v33, 0.0  ;;  %v1850_v5 = vmax.f32 %v1774_v36, 0.0  ;;  %3846 = vmatpush1.bf16.msra.mxu1 %v8880_v23  ;;  %v11326_v33 = vld [vmem:[#allocation13 + $0x68] sm:$0xff] }
 0x36d   : > { %v1666_v6 = vpop.f32.mrf.mxu0  ;;  %v1779_v7 = vpop.f32.mrf.mxu1  ;;  %3734 = vmatprep.subr.bf16.mxu0 %v8745_v27  ;;  %3847 = vmatprep.subr.bf16.mxu1 %v8873_v58  ;;  %v8720_v63 = vcombine.low %v11324_v32, %v11326_v33 }
 0x36e   : > { %v1849_v46 = vmax.f32 %v1663_v44, 0.0  ;;  %v1851_v47 = vmax.f32 %v1776_v45, 0.0  ;;  %v11314_v22 = vpack.c.bf16 %v1848_v0, %v1844_v49  ;;  %v11316_v23 = vpack.c.bf16 %v1850_v5, %v1846_v51  ;;  %v2061_v44 = vld [vmem:[#allocation13 + $0x448] sm:$0xff] }
 0x36f   : > { %v1668_v55 = vpop.f32.mrf.mxu0  ;;  %v1781_v56 = vpop.f32.mrf.mxu1  ;;  %v1667_v36 = vadd.f32 %v1666_v6, %v11191_v3  ;;  %v1780_v38 = vadd.f32 %v1779_v7, %v11194_v4  ;;  %v2065_v45 = vld [vmem:[#allocation13 + $0x468] sm:$0xff]  ;;  %v8721_v6 = vcombine.high %v11324_v32, %v11326_v33 }
 0x370   : > { %v11306_v18 = vpack.c.bf16 %v1849_v46, %v1845_v13  ;;  %v11308_v19 = vpack.c.bf16 %v1851_v47, %v1847_v15  ;;  %3735 = vmatpush1.bf16.msra.mxu0 %v8744_v43  ;;  %v1669_v24 = vadd.f32 %v1668_v55, %v11185_v1  ;;  %3848 = vmatpush1.bf16.msra.mxu1 %v8872_v50  ;;  %v11338_v50 = vld [vmem:[#allocation13 + $0x8] sm:$0xff] }
 0x371   : > { %v1670_v27 = vpop.f32.mrf.mxu0  ;;  %v1783_v58 = vpop.f32.mrf.mxu1  ;;  %3736 = vmatprep.subr.bf16.mxu0 %v8737_v9  ;;  %v1782_v30 = vadd.f32 %v1781_v56, %v11188_v2  ;;  %3849 = vmatprep.subr.bf16.mxu1 %v8865_v17  ;;  %v8856_v43 = vcombine.low %v11302_v11, %v11304_v12  ;;  %v11344_v7 = vld [vmem:[#allocation13 + $0x28] sm:$0xff]  ;;  %v1852_v15 = vmax.f32 %v1667_v36, 0.0  ;;  %v1854_v46 = vmax.f32 %v1780_v38, 0.0 }
 0x372   : > { %v1671_v31 = vadd.f32 %v1670_v27, %v11191_v3  ;;  %v1784_v57 = vadd.f32 %v1783_v58, %v11194_v4  ;;  %3554 = vmatprep.mubr.bf16.mxu0 %v11306_v18  ;;  %3667 = vmatprep.mubr.bf16.mxu1 %v11308_v19  ;;  %v11348_v9 = vld [vmem:[#allocation13 + $0x428] sm:$0xff]  ;;  %v1853_v10 = vmax.f32 %v1669_v24, 0.0  ;;  %v8848_v51 = vcombine.low %v2061_v44, %v2065_v45 }
 0x373   : > { %v1672_v48 = vpop.f32.mrf.mxu0  ;;  %v1785_v39 = vpop.f32.mrf.mxu1  ;;  %3555 = vmatmul.mubr.bf16.gmra.mxu0 %v11314_v22  ;;  %3668 = vmatmul.mubr.bf16.gmra.mxu1 %v11316_v23  ;;  %v1855_v11 = vmax.f32 %v1782_v30, 0.0  ;;  %v8849_v55 = vcombine.high %v2061_v44, %v2065_v45  ;;  %v8713_v17 = vcombine.high %v11338_v50, %v11344_v7  ;;  %v11368_v33 = vld [vmem:[#allocation13 + $0x3c8] sm:$0xff] }
 0x374   : > { %v1673_v41 = vadd.f32 %v1672_v48, %v11185_v1  ;;  %v1786_v42 = vadd.f32 %v1785_v39, %v11188_v2  ;;  %3737 = vmatpush1.bf16.msra.mxu0 %v8736_v8  ;;  %v1856_v59 = vmax.f32 %v1671_v31, 0.0  ;;  %v1858_v62 = vmax.f32 %v1784_v57, 0.0  ;;  %3850 = vmatpush1.bf16.msra.mxu1 %v8864_v16  ;;  %v11346_v8 = vld [vmem:[#allocation13 + $0x408] sm:$0xff] }
 0x375   : > { %v1676_v0 = vpop.f32.mrf.mxu0  ;;  %v1789_v5 = vpop.f32.mrf.mxu1  ;;  %3738 = vmatprep.subr.bf16.mxu0 %v8729_v20  ;;  %3851 = vmatprep.subr.bf16.mxu1 %v8857_v21  ;;  %v8841_v20 = vcombine.high %v11346_v8, %v11348_v9  ;;  %v11370_v36 = vld [vmem:[#allocation13 + $0x3e8] sm:$0xff]  ;;  %v8840_v44 = vcombine.low %v11346_v8, %v11348_v9 }
 0x376   : > { %v1857_v12 = vmax.f32 %v1673_v41, 0.0  ;;  %v1859_v13 = vmax.f32 %v1786_v42, 0.0  ;;  %v11358_v24 = vpack.c.bf16 %v1856_v59, %v1852_v15  ;;  %v11360_v21 = vpack.c.bf16 %v1858_v62, %v1854_v46  ;;  %v2173_v45 = vld [vmem:[#allocation13 + $0x7c8] sm:$0xff] }
 0x377   : > { %v1678_v47 = vpop.f32.mrf.mxu0  ;;  %v1791_v49 = vpop.f32.mrf.mxu1  ;;  %v1677_v38 = vadd.f32 %v1676_v0, %v11191_v3  ;;  %v1790_v48 = vadd.f32 %v1789_v5, %v11194_v4  ;;  %v8712_v41 = vcombine.low %v11338_v50, %v11344_v7  ;;  %v2177_v59 = vld [vmem:[#allocation13 + $0x7e8] sm:$0xff]  ;;  %v8832_v50 = vcombine.low %v11368_v33, %v11370_v36 }
 0x378   : > { %v11350_v56 = vpack.c.bf16 %v1857_v12, %v1853_v10  ;;  %v11352_v16 = vpack.c.bf16 %v1859_v13, %v1855_v11  ;;  %3739 = vmatpush1.bf16.msra.mxu0 %v8728_v40  ;;  %v1679_v27 = vadd.f32 %v1678_v47, %v11185_v1  ;;  %3852 = vmatpush1.bf16.msra.mxu1 %v8856_v43  ;;  %v11382_v62 = vld [vmem:[#allocation13 + $0x388] sm:$0xff] }
 0x379   : > { %v1680_v58 = vpop.f32.mrf.mxu0  ;;  %v1793_v30 = vpop.f32.mrf.mxu1  ;;  %3740 = vmatprep.subr.bf16.mxu0 %v8721_v6  ;;  %v1792_v31 = vadd.f32 %v1791_v49, %v11188_v2  ;;  %3853 = vmatprep.subr.bf16.mxu1 %v8849_v55  ;;  %v11388_v7 = vld [vmem:[#allocation13 + $0x3a8] sm:$0xff]  ;;  %v1860_v46 = vmax.f32 %v1677_v38, 0.0  ;;  %v1862_v47 = vmax.f32 %v1790_v48, 0.0  ;;  %v8960_v55 = vcombine.low %v2173_v45, %v2177_v59 }
 0x37a   : > { %v1681_v57 = vadd.f32 %v1680_v58, %v11191_v3  ;;  %v1794_v32 = vadd.f32 %v1793_v30, %v11194_v4  ;;  %3564 = vmatprep.mubr.bf16.mxu0 %v11350_v56  ;;  %3677 = vmatprep.mubr.bf16.mxu1 %v11352_v16  ;;  %v11390_v11 = vld [vmem:[#allocation13 + $0x788] sm:$0xff]  ;;  %v1861_v9 = vmax.f32 %v1679_v27, 0.0 }
 0x37b   : > { %v1682_v39 = vpop.f32.mrf.mxu0  ;;  %v1795_v40 = vpop.f32.mrf.mxu1  ;;  %3565 = vmatmul.mubr.bf16.gmra.mxu0 %v11358_v24  ;;  %3678 = vmatmul.mubr.bf16.gmra.mxu1 %v11360_v21  ;;  %v11392_v8 = vld [vmem:[#allocation13 + $0x7a8] sm:$0xff]  ;;  %v1863_v12 = vmax.f32 %v1792_v31, 0.0 }
 0x37c   : > { %v1683_v42 = vadd.f32 %v1682_v39, %v11185_v1  ;;  %v1796_v43 = vadd.f32 %v1795_v40, %v11188_v2  ;;  %3741 = vmatpush1.bf16.msra.mxu0 %v8720_v63  ;;  %v1864_v0 = vmax.f32 %v1681_v57, 0.0  ;;  %v1866_v5 = vmax.f32 %v1794_v32, 0.0  ;;  %3854 = vmatpush1.bf16.msra.mxu1 %v8848_v51  ;;  %v11412_v40 = vld [vmem:[#allocation13 + $0x348] sm:$0xff] }
 0x37d   : > { %v1686_v6 = vpop.f32.mrf.mxu0  ;;  %v1799_v10 = vpop.f32.mrf.mxu1  ;;  %3742 = vmatprep.subr.bf16.mxu0 %v8713_v17  ;;  %v8833_v63 = vcombine.high %v11368_v33, %v11370_v36  ;;  %3855 = vmatprep.subr.bf16.mxu1 %v8841_v20  ;;  %v8961_v17 = vcombine.high %v2173_v45, %v2177_v59  ;;  %v8825_v57 = vcombine.high %v11382_v62, %v11388_v7 }
 0x37e   : > { %v1865_v13 = vmax.f32 %v1683_v42, 0.0  ;;  %v1867_v15 = vmax.f32 %v1796_v43, 0.0  ;;  %v8953_v27 = vcombine.high %v11390_v11, %v11392_v8  ;;  %v11402_v31 = vpack.c.bf16 %v1864_v0, %v1860_v46 }
 0x37f   : > { %v1688_v49 = vpop.f32.mrf.mxu0  ;;  %v1801_v51 = vpop.f32.mrf.mxu1  ;;  %v11404_v20 = vpack.c.bf16 %v1866_v5, %v1862_v47  ;;  %v1687_v42 = vadd.f32 %v1686_v6, %v11191_v3  ;;  %v1800_v43 = vadd.f32 %v1799_v10, %v11194_v4  ;;  %v8824_v59 = vcombine.low %v11382_v62, %v11388_v7  ;;  %v2161_v10 = vld [vmem:[#allocation13 + $0x768] sm:$0xff] }
 0x380   : > { %v11394_v58 = vpack.c.bf16 %v1865_v13, %v1861_v9  ;;  %v11396_v30 = vpack.c.bf16 %v1867_v15, %v1863_v12  ;;  %3743 = vmatpush1.bf16.msra.mxu0 %v8712_v41  ;;  %v1689_v32 = vadd.f32 %v1688_v49, %v11185_v1  ;;  %3856 = vmatpush1.bf16.msra.mxu1 %v8840_v44  ;;  %v11414_v41 = vld [vmem:[#allocation13 + $0x368] sm:$0xff] }
 0x381   : > { %v1690_v33 = vpop.f32.mrf.mxu0  ;;  %v1803_v36 = vpop.f32.mrf.mxu1  ;;  %3744 = vmatprep.subr.bf16.mxu0 %v8833_v63  ;;  %v1802_v38 = vadd.f32 %v1801_v51, %v11188_v2  ;;  %3857 = vmatprep.subr.bf16.mxu1 %v8961_v17  ;;  %v8952_v6 = vcombine.low %v11390_v11, %v11392_v8  ;;  %v2157_v63 = vld [vmem:[#allocation13 + $0x748] sm:$0xff]  ;;  %v8816_v62 = vcombine.low %v11412_v40, %v11414_v41 }
 0x382   : > { %v1691_v48 = vadd.f32 %v1690_v33, %v11191_v3  ;;  %v1804_v39 = vadd.f32 %v1803_v36, %v11194_v4  ;;  %3574 = vmatprep.mubr.bf16.mxu0 %v11394_v58  ;;  %3687 = vmatprep.mubr.bf16.mxu1 %v11396_v30  ;;  %v11426_v9 = vld [vmem:[#allocation13 + $0x308] sm:$0xff]  ;;  %v1869_v8 = vmax.f32 %v1689_v32, 0.0  ;;  %v1870_v33 = vmax.f32 %v1800_v43, 0.0 }
 0x383   : > { %v1692_v44 = vpop.f32.mrf.mxu0  ;;  %v1805_v45 = vpop.f32.mrf.mxu1  ;;  %3575 = vmatmul.mubr.bf16.gmra.mxu0 %v11402_v31  ;;  %3688 = vmatmul.mubr.bf16.gmra.mxu1 %v11404_v20  ;;  %v11432_v7 = vld [vmem:[#allocation13 + $0x328] sm:$0xff]  ;;  %v1871_v49 = vmax.f32 %v1802_v38, 0.0 }
 0x384   : > { %v1693_v0 = vadd.f32 %v1692_v44, %v11185_v1  ;;  %v1806_v5 = vadd.f32 %v1805_v45, %v11188_v2  ;;  %3745 = vmatpush2.bf16.msra.mxu0 %v8832_v50  ;;  %v1872_v12 = vmax.f32 %v1691_v48, 0.0  ;;  %v1874_v13 = vmax.f32 %v1804_v39, 0.0  ;;  %3858 = vmatpush2.bf16.msra.mxu1 %v8960_v55  ;;  %v11434_v47 = vld [vmem:[#allocation13 + $0x708] sm:$0xff] }
 0x385   : > { %v1696_v15 = vpop.f32.mrf.mxu0  ;;  %v1809_v46 = vpop.f32.mrf.mxu1  ;;  %3746 = vmatprep.subr.bf16.mxu0 %v8825_v57  ;;  %v8817_v50 = vcombine.high %v11412_v40, %v11414_v41  ;;  %v11436_v11 = vld [vmem:[#allocation13 + $0x728] sm:$0xff]  ;;  %3859 = vmatprep.subr.bf16.mxu1 %v8953_v27  ;;  %v1868_v55 = vmax.f32 %v1687_v42, 0.0  ;;  %v8944_v48 = vcombine.low %v2157_v63, %v2161_v10  ;;  %v8945_v39 = vcombine.high %v2157_v63, %v2161_v10 }
 0x386   : > { %v1873_v51 = vmax.f32 %v1693_v0, 0.0  ;;  %v1875_v17 = vmax.f32 %v1806_v5, 0.0  ;;  %v8809_v41 = vcombine.high %v11426_v9, %v11432_v7  ;;  %v8937_v32 = vcombine.high %v11434_v47, %v11436_v11  ;;  %v11456_v63 = vld [vmem:[#allocation13 + $0x2c8] sm:$0xff] }
 0x387   : > { %v1698_v57 = vpop.f32.mrf.mxu0  ;;  %v1811_v36 = vpop.f32.mrf.mxu1  ;;  %v11446_v38 = vpack.c.bf16 %v1872_v12, %v1868_v55  ;;  %v11448_v27 = vpack.c.bf16 %v1874_v13, %v1870_v33  ;;  %v11458_v10 = vld [vmem:[#allocation13 + $0x2e8] sm:$0xff]  ;;  %v1697_v12 = vadd.f32 %v1696_v15, %v11191_v3  ;;  %v8936_v15 = vcombine.low %v11434_v47, %v11436_v11 }
 0x388   : > { %v11438_v44 = vpack.c.bf16 %v1873_v51, %v1869_v8  ;;  %v11440_v40 = vpack.c.bf16 %v1875_v17, %v1871_v49  ;;  %3747 = vmatpush2.bf16.msra.mxu0 %v8824_v59  ;;  %v1699_v42 = vadd.f32 %v1698_v57, %v11185_v1  ;;  %3860 = vmatpush2.bf16.msra.mxu1 %v8952_v6  ;;  %v2141_v17 = vld [vmem:[#allocation13 + $0x6c8] sm:$0xff] }
 0x389   : > { %v1700_v43 = vpop.f32.mrf.mxu0  ;;  %v1813_v45 = vpop.f32.mrf.mxu1  ;;  %3748 = vmatprep.subr.bf16.mxu0 %v8817_v50  ;;  %v1812_v0 = vadd.f32 %v1811_v36, %v11188_v2  ;;  %v1810_v6 = vadd.f32 %v1809_v46, %v11194_v4  ;;  %v8808_v8 = vcombine.low %v11426_v9, %v11432_v7  ;;  %3861 = vmatprep.subr.bf16.mxu1 %v8945_v39  ;;  %v2145_v46 = vld [vmem:[#allocation13 + $0x6e8] sm:$0xff] }
 0x38a   : > { %v1701_v59 = vadd.f32 %v1700_v43, %v11191_v3  ;;  %v1814_v5 = vadd.f32 %v1813_v45, %v11194_v4  ;;  %3584 = vmatprep.mubr.bf16.mxu0 %v11438_v44  ;;  %3697 = vmatprep.mubr.bf16.mxu1 %v11440_v40  ;;  %v11470_v55 = vld [vmem:[#allocation13 + $0x288] sm:$0xff]  ;;  %v8800_v9 = vcombine.low %v11456_v63, %v11458_v10  ;;  %v1877_v11 = vmax.f32 %v1699_v42, 0.0 }
 0x38b   : > { %v1702_v13 = vpop.f32.mrf.mxu0  ;;  %v1815_v50 = vpop.f32.mrf.mxu1  ;;  %3585 = vmatmul.mubr.bf16.gmra.mxu0 %v11446_v38  ;;  %3698 = vmatmul.mubr.bf16.gmra.mxu1 %v11448_v27  ;;  %v11476_v7 = vld [vmem:[#allocation13 + $0x2a8] sm:$0xff]  ;;  %v1879_v45 = vmax.f32 %v1812_v0, 0.0  ;;  %v8928_v52 = vcombine.low %v2141_v17, %v2145_v46  ;;  %v8929_v61 = vcombine.high %v2141_v17, %v2145_v46 }
 0x38c   : > { %v1703_v49 = vadd.f32 %v1702_v13, %v11185_v1  ;;  %v1816_v51 = vadd.f32 %v1815_v50, %v11188_v2  ;;  %3749 = vmatpush2.bf16.msra.mxu0 %v8816_v62  ;;  %v1880_v33 = vmax.f32 %v1701_v59, 0.0  ;;  %v1882_v57 = vmax.f32 %v1814_v5, 0.0  ;;  %3862 = vmatpush2.bf16.msra.mxu1 %v8944_v48  ;;  %v11478_v39 = vld [vmem:[#allocation13 + $0x688] sm:$0xff] }
 0x38d   : > { %v1706_v36 = vpop.f32.mrf.mxu0  ;;  %v1819_v43 = vpop.f32.mrf.mxu1  ;;  %3750 = vmatprep.subr.bf16.mxu0 %v8809_v41  ;;  %v8801_v62 = vcombine.high %v11456_v63, %v11458_v10  ;;  %v11480_v47 = vld [vmem:[#allocation13 + $0x6a8] sm:$0xff]  ;;  %3863 = vmatprep.subr.bf16.mxu1 %v8937_v32  ;;  %v1876_v48 = vmax.f32 %v1697_v12, 0.0  ;;  %v1878_v13 = vmax.f32 %v1810_v6, 0.0  ;;  %v8793_v10 = vcombine.high %v11470_v55, %v11476_v7 }
 0x38e   : > { %v1881_v59 = vmax.f32 %v1703_v49, 0.0  ;;  %v1883_v5 = vmax.f32 %v1816_v51, 0.0  ;;  %v8921_v42 = vcombine.high %v11478_v39, %v11480_v47  ;;  %v1997_v46 = vld [vmem:[#allocation13 + $0x248] sm:$0xff] }
 0x38f   : > { %v1708_v41 = vpop.f32.mrf.mxu0  ;;  %v1821_v50 = vpop.f32.mrf.mxu1  ;;  %v11490_v0 = vpack.c.bf16 %v1880_v33, %v1876_v48  ;;  %v11492_v32 = vpack.c.bf16 %v1882_v57, %v1878_v13  ;;  %v2001_v33 = vld [vmem:[#allocation13 + $0x268] sm:$0xff]  ;;  %v1707_v57 = vadd.f32 %v1706_v36, %v11191_v3 }
 0x390   : > { %v11482_v60 = vpack.c.bf16 %v1881_v59, %v1877_v11  ;;  %v11484_v63 = vpack.c.bf16 %v1883_v5, %v1879_v45  ;;  %3751 = vmatpush2.bf16.msra.mxu0 %v8808_v8  ;;  %v1709_v12 = vadd.f32 %v1708_v41, %v11185_v1  ;;  %3864 = vmatpush2.bf16.msra.mxu1 %v8936_v15  ;;  %v2125_v36 = vld [vmem:[#allocation13 + $0x648] sm:$0xff] }
 0x391   : > { %v1710_v6 = vpop.f32.mrf.mxu0  ;;  %v1823_v49 = vpop.f32.mrf.mxu1  ;;  %3752 = vmatprep.subr.bf16.mxu0 %v8801_v62  ;;  %v1822_v51 = vadd.f32 %v1821_v50, %v11188_v2  ;;  %v1820_v11 = vadd.f32 %v1819_v43, %v11194_v4  ;;  %3865 = vmatprep.subr.bf16.mxu1 %v8929_v61  ;;  %v8792_v5 = vcombine.low %v11470_v55, %v11476_v7  ;;  %v2129_v43 = vld [vmem:[#allocation13 + $0x668] sm:$0xff] }
 0x392   : > { %v1711_v8 = vadd.f32 %v1710_v6, %v11191_v3  ;;  %v1824_v17 = vadd.f32 %v1823_v49, %v11194_v4  ;;  %3594 = vmatprep.mubr.bf16.mxu0 %v11482_v60  ;;  %3707 = vmatprep.mubr.bf16.mxu1 %v11484_v63  ;;  %v8920_v3 = vcombine.low %v11478_v39, %v11480_v47  ;;  %v1885_v41 = vmax.f32 %v1709_v12, 0.0  ;;  %v1993_v49 = vld [vmem:[#allocation13 + $0x228] sm:$0xff] }
 0x393   : > { %v1712_v15 = vpop.f32.mrf.mxu0  ;;  %v1825_v45 = vpop.f32.mrf.mxu1  ;;  %3595 = vmatmul.mubr.bf16.gmra.mxu0 %v11490_v0  ;;  %3708 = vmatmul.mubr.bf16.gmra.mxu1 %v11492_v32  ;;  %v8785_v4 = vcombine.high %v1997_v46, %v2001_v33  ;;  %v1887_v50 = vmax.f32 %v1822_v51, 0.0  ;;  %v1886_v61 = vmax.f32 %v1820_v11, 0.0  ;;  %v2117_v39 = vld [vmem:[#allocation13 + $0x608] sm:$0xff]  ;;  %v2114_v11 = vld [vmem:[#allocation13 + $0x5f0] sm:$0xff] }
 0x394   : > { %v1713_v62 = vadd.f32 %v1712_v15, %v11185_v1  ;;  %v1826_v59 = vadd.f32 %v1825_v45, %v11188_v2  ;;  %3753 = vmatpush2.bf16.msra.mxu0 %v8800_v9  ;;  %v1888_v48 = vmax.f32 %v1711_v8, 0.0  ;;  %v1890_v13 = vmax.f32 %v1824_v17, 0.0  ;;  %3866 = vmatpush2.bf16.msra.mxu1 %v8928_v52  ;;  %v1989_v9 = vld [vmem:[#allocation13 + $0x208] sm:$0xff]  ;;  %v1982_v17 = vld [vmem:[#allocation13 + $0x1d0] sm:$0xff] }
 0x395   : > { %3754 = vmatprep.subr.bf16.mxu0 %v8793_v10  ;;  %3867 = vmatprep.subr.bf16.mxu1 %v8921_v42  ;;  %v1884_v2 = vmax.f32 %v1707_v57, 0.0  ;;  %v8784_v52 = vcombine.low %v1997_v46, %v2001_v33  ;;  %v8913_v10 = vcombine.high %v2125_v36, %v2129_v43  ;;  %v2121_v47 = vld [vmem:[#allocation13 + $0x628] sm:$0xff]  ;;  %v8912_v42 = vcombine.low %v2125_v36, %v2129_v43  ;;  %v1986_v57 = vld [vmem:[#allocation13 + $0x1f0] sm:$0xff] }
 0x396   : > { %v1889_v1 = vmax.f32 %v1713_v62, 0.0  ;;  %v1891_v6 = vmax.f32 %v1826_v59, 0.0  ;;  %v11516_v12 = vpack.c.bf16 %v1890_v13, %v1886_v61  ;;  %v8777_v51 = vcombine.high %v1989_v9, %v1993_v49  ;;  %v2110_v33 = vld [vmem:[#allocation13 + $0x5d0] sm:$0xff] }
 0x397   : > { %v11514_v8 = vpack.c.bf16 %v1888_v48, %v1884_v2  ;;  %v8905_v46 = vcombine.high %v2117_v39, %v2121_v47  ;;  %v8776_v15 = vcombine.low %v1989_v9, %v1993_v49  ;;  %v8904_v45 = vcombine.low %v2117_v39, %v2121_v47  ;;  %v1978_v48 = vld [vmem:[#allocation13 + $0x1b0] sm:$0xff] }
 0x398   : > { %v11510_v55 = vpack.c.bf16 %v1889_v1, %v1885_v41  ;;  %v11512_v7 = vpack.c.bf16 %v1891_v6, %v1887_v50  ;;  %3755 = vmatpush2.bf16.msra.mxu0 %v8792_v5  ;;  %3868 = vmatpush2.bf16.msra.mxu1 %v8920_v3  ;;  %v8771_v62 = vcombine.high %v1982_v17, %v1986_v57  ;;  %v1974_v5 = vld [vmem:[#allocation13 + $0x190] sm:$0xff] }
 0x399   : > { %3756 = vmatprep.subr.bf16.mxu0 %v8785_v4  ;;  %3869 = vmatprep.subr.bf16.mxu1 %v8913_v10  ;;  %v8899_v59 = vcombine.high %v2110_v33, %v2114_v11  ;;  %v8770_v13 = vcombine.low %v1982_v17, %v1986_v57  ;;  %v2102_v3 = vld [vmem:[#allocation13 + $0x590] sm:$0xff]  ;;  %v8898_v36 = vcombine.low %v2110_v33, %v2114_v11 }
 0x39a   : > { %3604 = vmatprep.mubr.bf16.mxu0 %v11510_v55  ;;  %3717 = vmatprep.mubr.bf16.mxu1 %v11512_v7  ;;  %v2106_v4 = vld [vmem:[#allocation13 + $0x5b0] sm:$0xff]  ;;  %v8763_v43 = vcombine.high %v1974_v5, %v1978_v48  ;;  %v8762_v6 = vcombine.low %v1974_v5, %v1978_v48 }
 0x39b   : > { %3605 = vmatmul.mubr.bf16.gmra.mxu0 %v11514_v8  ;;  %3718 = vmatmul.mubr.bf16.gmra.mxu1 %v11516_v12  ;;  %v1966_v41 = vld [vmem:[#allocation13 + $0x150] sm:$0xff]  ;;  %v8891_v1 = vcombine.high %v2102_v3, %v2106_v4  ;;  %v8890_v49 = vcombine.low %v2102_v3, %v2106_v4 }
 0x39c   : > { %3757 = vmatpush2.bf16.msra.mxu0 %v8784_v52  ;;  %3760 = vmatprep.mubr.bf16.mxu0 %v11212_v34  ;;  %v1970_v50 = vld [vmem:[#allocation13 + $0x170] sm:$0xff] }
 0x39d   : > { %3870 = vmatpush2.bf16.msra.mxu1 %v8912_v42  ;;  %3873 = vmatprep.mubr.bf16.mxu1 %v11214_v35  ;;  %v2094_v2 = vld [vmem:[#allocation13 + $0x550] sm:$0xff]  ;;  %v8755_v9 = vcombine.high %v1966_v41, %v1970_v50  ;;  %v8754_v47 = vcombine.low %v1966_v41, %v1970_v50 }
 0x39e   : > { %3758 = vmatprep.subr.bf16.mxu0 %v8777_v51  ;;  %3871 = vmatprep.subr.bf16.mxu1 %v8905_v46  ;;  %v2098_v61 = vld [vmem:[#allocation13 + $0x570] sm:$0xff] }
 0x39f   : > { %v8883_v52 = vcombine.high %v2094_v2, %v2098_v61  ;;  %v1958_v10 = vld [vmem:[#allocation13 + $0x110] sm:$0xff]  ;;  %v8882_v17 = vcombine.low %v2094_v2, %v2098_v61 }
 0x3a0   : > { %3759 = vmatpush2.bf16.msra.mxu0 %v8776_v15  ;;  %v1962_v39 = vld [vmem:[#allocation13 + $0x130] sm:$0xff] }
 0x3a1   : > { %3872 = vmatpush2.bf16.msra.mxu1 %v8904_v45  ;;  %3954 = vmatprep.subr.bf16.mxu0 %v8771_v62  ;;  %v2086_v42 = vld [vmem:[#allocation13 + $0x510] sm:$0xff]  ;;  %v8747_v57 = vcombine.high %v1958_v10, %v1962_v39  ;;  %v8746_v15 = vcombine.low %v1958_v10, %v1962_v39 }
 0x3a2   : > { %4067 = vmatprep.subr.bf16.mxu1 %v8899_v59  ;;  %v2090_v51 = vld [vmem:[#allocation13 + $0x530] sm:$0xff] }
 0x3a3   : > { %3761 = vmatmul.mubr.bf16.vlgmr.msra.gmra.mxu0 %v11218_v14  ;;  %v1950_v46 = vld [vmem:[#allocation13 + $0xd0] sm:$0xff]  ;;  %v8875_v11 = vcombine.high %v2086_v42, %v2090_v51  ;;  %v8874_v5 = vcombine.low %v2086_v42, %v2090_v51 }
 0x3a4   : > { %3874 = vmatmul.mubr.bf16.vlgmr.msra.gmra.mxu1 %v11220_v37  ;;  %3955 = vmatpush1.bf16.msra.mxu0 %v8770_v13  ;;  %v1954_v33 = vld [vmem:[#allocation13 + $0xf0] sm:$0xff] }
 0x3a5   : > { %3770 = vmatprep.mubr.bf16.mxu0 %v11262_v25  ;;  %3883 = vmatprep.mubr.bf16.mxu1 %v11264_v26  ;;  %v2078_v45 = vld [vmem:[#allocation13 + $0x4d0] sm:$0xff]  ;;  %v8739_v59 = vcombine.high %v1950_v46, %v1954_v33  ;;  %v8738_v4 = vcombine.low %v1950_v46, %v1954_v33 }
 0x3a6   : > { %4068 = vmatpush1.bf16.msra.mxu1 %v8898_v36  ;;  %3956 = vmatprep.subr.bf16.mxu0 %v8763_v43  ;;  %v2082_v62 = vld [vmem:[#allocation13 + $0x4f0] sm:$0xff] }
 0x3a7   : > { %4069 = vmatprep.subr.bf16.mxu1 %v8891_v1  ;;  %v8867_v48 = vcombine.high %v2078_v45, %v2082_v62  ;;  %v1942_v13 = vld [vmem:[#allocation13 + $0x90] sm:$0xff]  ;;  %v8866_v41 = vcombine.low %v2078_v45, %v2082_v62 }
 0x3a8   : > { %3957 = vmatpush1.bf16.msra.mxu0 %v8762_v6  ;;  %v1946_v3 = vld [vmem:[#allocation13 + $0xb0] sm:$0xff] }
 0x3a9   : > { %3958 = vmatprep.subr.bf16.mxu0 %v8755_v9  ;;  %v2070_v36 = vld [vmem:[#allocation13 + $0x490] sm:$0xff]  ;;  %v8731_v50 = vcombine.high %v1942_v13, %v1946_v3  ;;  %v8730_v61 = vcombine.low %v1942_v13, %v1946_v3 }
 0x3aa   : > { %4070 = vmatpush1.bf16.msra.mxu1 %v8890_v49  ;;  %v2074_v43 = vld [vmem:[#allocation13 + $0x4b0] sm:$0xff] }
 0x3ab   : > { %3771 = vmatmul.mubr.bf16.gmra.mxu0 %v11270_v28  ;;  %4071 = vmatprep.subr.bf16.mxu1 %v8883_v52  ;;  %v1934_v1 = vld [vmem:[#allocation13 + $0x50] sm:$0xff]  ;;  %v8859_v2 = vcombine.high %v2070_v36, %v2074_v43  ;;  %v8858_v10 = vcombine.low %v2070_v36, %v2074_v43 }
 0x3ac   : > { %3884 = vmatmul.mubr.bf16.gmra.mxu1 %v11272_v29  ;;  %3959 = vmatpush1.bf16.msra.mxu0 %v8754_v47  ;;  %v1938_v6 = vld [vmem:[#allocation13 + $0x70] sm:$0xff] }
 0x3ad   : > { %3780 = vmatprep.mubr.bf16.mxu0 %v11306_v18  ;;  %3893 = vmatprep.mubr.bf16.mxu1 %v11308_v19  ;;  %v2062_v9 = vld [vmem:[#allocation13 + $0x450] sm:$0xff]  ;;  %v8723_v52 = vcombine.high %v1934_v1, %v1938_v6  ;;  %v8722_v51 = vcombine.low %v1934_v1, %v1938_v6 }
 0x3ae   : > { %4072 = vmatpush1.bf16.msra.mxu1 %v8882_v17  ;;  %3960 = vmatprep.subr.bf16.mxu0 %v8747_v57  ;;  %v2066_v49 = vld [vmem:[#allocation13 + $0x470] sm:$0xff] }
 0x3af   : > { %4073 = vmatprep.subr.bf16.mxu1 %v8875_v11  ;;  %v8851_v39 = vcombine.high %v2062_v9, %v2066_v49  ;;  %v1926_v47 = vld [vmem:[#allocation13 + $0x10] sm:$0xff]  ;;  %v8850_v46 = vcombine.low %v2062_v9, %v2066_v49 }
 0x3b0   : > { %3961 = vmatpush1.bf16.msra.mxu0 %v8746_v15  ;;  %v1930_v42 = vld [vmem:[#allocation13 + $0x30] sm:$0xff] }
 0x3b1   : > { %3962 = vmatprep.subr.bf16.mxu0 %v8739_v59  ;;  %v2054_v17 = vld [vmem:[#allocation13 + $0x410] sm:$0xff]  ;;  %v8715_v33 = vcombine.high %v1926_v47, %v1930_v42  ;;  %v8714_v62 = vcombine.low %v1926_v47, %v1930_v42 }
 0x3b2   : > { %4074 = vmatpush1.bf16.msra.mxu1 %v8874_v5  ;;  %v2058_v57 = vld [vmem:[#allocation13 + $0x430] sm:$0xff] }
 0x3b3   : > { %3781 = vmatmul.mubr.bf16.gmra.mxu0 %v11314_v22  ;;  %4075 = vmatprep.subr.bf16.mxu1 %v8867_v48  ;;  %v2046_v11 = vld [vmem:[#allocation13 + $0x3d0] sm:$0xff]  ;;  %v8843_v45 = vcombine.high %v2054_v17, %v2058_v57  ;;  %v8842_v13 = vcombine.low %v2054_v17, %v2058_v57 }
 0x3b4   : > { %3894 = vmatmul.mubr.bf16.gmra.mxu1 %v11316_v23  ;;  %3963 = vmatpush1.bf16.msra.mxu0 %v8738_v4  ;;  %v2050_v15 = vld [vmem:[#allocation13 + $0x3f0] sm:$0xff] }
 0x3b5   : > { %3790 = vmatprep.mubr.bf16.mxu0 %v11350_v56  ;;  %3903 = vmatprep.mubr.bf16.mxu1 %v11352_v16  ;;  %v2174_v59 = vld [vmem:[#allocation13 + $0x7d0] sm:$0xff]  ;;  %v8835_v48 = vcombine.high %v2046_v11, %v2050_v15  ;;  %v8834_v43 = vcombine.low %v2046_v11, %v2050_v15 }
 0x3b6   : > { %4076 = vmatpush1.bf16.msra.mxu1 %v8866_v41  ;;  %3964 = vmatprep.subr.bf16.mxu0 %v8731_v50  ;;  %v2178_v5 = vld [vmem:[#allocation13 + $0x7f0] sm:$0xff] }
 0x3b7   : > { %4077 = vmatprep.subr.bf16.mxu1 %v8859_v2  ;;  %v8963_v3 = vcombine.high %v2174_v59, %v2178_v5  ;;  %v2038_v4 = vld [vmem:[#allocation13 + $0x390] sm:$0xff]  ;;  %v8962_v1 = vcombine.low %v2174_v59, %v2178_v5 }
 0x3b8   : > { %3965 = vmatpush1.bf16.msra.mxu0 %v8730_v61  ;;  %v2042_v36 = vld [vmem:[#allocation13 + $0x3b0] sm:$0xff] }
 0x3b9   : > { %3966 = vmatprep.subr.bf16.mxu0 %v8723_v52  ;;  %v2166_v41 = vld [vmem:[#allocation13 + $0x790] sm:$0xff]  ;;  %v8827_v6 = vcombine.high %v2038_v4, %v2042_v36  ;;  %v8826_v49 = vcombine.low %v2038_v4, %v2042_v36 }
 0x3ba   : > { %4078 = vmatpush1.bf16.msra.mxu1 %v8858_v10  ;;  %v2170_v50 = vld [vmem:[#allocation13 + $0x7b0] sm:$0xff] }
 0x3bb   : > { %3791 = vmatmul.mubr.bf16.gmra.mxu0 %v11358_v24  ;;  %4079 = vmatprep.subr.bf16.mxu1 %v8851_v39  ;;  %v2030_v2 = vld [vmem:[#allocation13 + $0x350] sm:$0xff]  ;;  %v8955_v9 = vcombine.high %v2166_v41, %v2170_v50  ;;  %v8954_v47 = vcombine.low %v2166_v41, %v2170_v50 }
 0x3bc   : > { %3904 = vmatmul.mubr.bf16.gmra.mxu1 %v11360_v21  ;;  %3967 = vmatpush1.bf16.msra.mxu0 %v8722_v51  ;;  %v2034_v61 = vld [vmem:[#allocation13 + $0x370] sm:$0xff] }
 0x3bd   : > { %3800 = vmatprep.mubr.bf16.mxu0 %v11394_v58  ;;  %3913 = vmatprep.mubr.bf16.mxu1 %v11396_v30  ;;  %v2158_v52 = vld [vmem:[#allocation13 + $0x750] sm:$0xff]  ;;  %v8819_v39 = vcombine.high %v2030_v2, %v2034_v61  ;;  %v8818_v57 = vcombine.low %v2030_v2, %v2034_v61 }
 0x3be   : > { %4080 = vmatpush1.bf16.msra.mxu1 %v8850_v46  ;;  %3968 = vmatprep.subr.bf16.mxu0 %v8715_v33  ;;  %v2162_v10 = vld [vmem:[#allocation13 + $0x770] sm:$0xff] }
 0x3bf   : > { %4081 = vmatprep.subr.bf16.mxu1 %v8843_v45  ;;  %v8947_v42 = vcombine.high %v2158_v52, %v2162_v10  ;;  %v2022_v51 = vld [vmem:[#allocation13 + $0x310] sm:$0xff]  ;;  %v8946_v11 = vcombine.low %v2158_v52, %v2162_v10 }
 0x3c0   : > { %3969 = vmatpush1.bf16.msra.mxu0 %v8714_v62  ;;  %v2026_v17 = vld [vmem:[#allocation13 + $0x330] sm:$0xff] }
 0x3c1   : > { %3970 = vmatprep.subr.bf16.mxu0 %v8835_v48  ;;  %v2150_v46 = vld [vmem:[#allocation13 + $0x710] sm:$0xff]  ;;  %v8811_v15 = vcombine.high %v2022_v51, %v2026_v17  ;;  %v8810_v5 = vcombine.low %v2022_v51, %v2026_v17 }
 0x3c2   : > { %4082 = vmatpush1.bf16.msra.mxu1 %v8842_v13  ;;  %v2154_v33 = vld [vmem:[#allocation13 + $0x730] sm:$0xff] }
 0x3c3   : > { %3801 = vmatmul.mubr.bf16.gmra.mxu0 %v11402_v31  ;;  %4083 = vmatprep.subr.bf16.mxu1 %v8963_v3  ;;  %v2014_v45 = vld [vmem:[#allocation13 + $0x2d0] sm:$0xff]  ;;  %v8939_v59 = vcombine.high %v2150_v46, %v2154_v33  ;;  %v8938_v4 = vcombine.low %v2150_v46, %v2154_v33 }
 0x3c4   : > { %3914 = vmatmul.mubr.bf16.gmra.mxu1 %v11404_v20  ;;  %3971 = vmatpush2.bf16.msra.mxu0 %v8834_v43  ;;  %v2018_v62 = vld [vmem:[#allocation13 + $0x2f0] sm:$0xff] }
 0x3c5   : > { %3810 = vmatprep.mubr.bf16.mxu0 %v11438_v44  ;;  %3923 = vmatprep.mubr.bf16.mxu1 %v11440_v40  ;;  %v2142_v48 = vld [vmem:[#allocation13 + $0x6d0] sm:$0xff]  ;;  %v8803_v3 = vcombine.high %v2014_v45, %v2018_v62  ;;  %v8802_v50 = vcombine.low %v2014_v45, %v2018_v62 }
 0x3c6   : > { %4084 = vmatpush2.bf16.msra.mxu1 %v8962_v1  ;;  %3972 = vmatprep.subr.bf16.mxu0 %v8827_v6  ;;  %v2146_v13 = vld [vmem:[#allocation13 + $0x6f0] sm:$0xff] }
 0x3c7   : > { %4085 = vmatprep.subr.bf16.mxu1 %v8955_v9  ;;  %v8931_v36 = vcombine.high %v2142_v48, %v2146_v13  ;;  %v2006_v43 = vld [vmem:[#allocation13 + $0x290] sm:$0xff]  ;;  %v8930_v2 = vcombine.low %v2142_v48, %v2146_v13 }
 0x3c8   : > { %3973 = vmatpush2.bf16.msra.mxu0 %v8826_v49  ;;  %v2010_v41 = vld [vmem:[#allocation13 + $0x2b0] sm:$0xff] }
 0x3c9   : > { %3974 = vmatprep.subr.bf16.mxu0 %v8819_v39  ;;  %v2134_v1 = vld [vmem:[#allocation13 + $0x690] sm:$0xff]  ;;  %v8795_v61 = vcombine.high %v2006_v43, %v2010_v41  ;;  %v8794_v10 = vcombine.low %v2006_v43, %v2010_v41  ;;  %v1975_v41 = vld [vmem:[#allocation13 + $0x198] sm:$0xff] }
 0x3ca   : > { %4086 = vmatpush2.bf16.msra.mxu1 %v8954_v47  ;;  %v2138_v6 = vld [vmem:[#allocation13 + $0x6b0] sm:$0xff] }
 0x3cb   : > { %3811 = vmatmul.mubr.bf16.gmra.mxu0 %v11446_v38  ;;  %4087 = vmatprep.subr.bf16.mxu1 %v8947_v42  ;;  %v1998_v9 = vld [vmem:[#allocation13 + $0x250] sm:$0xff]  ;;  %v8923_v52 = vcombine.high %v2134_v1, %v2138_v6  ;;  %v8922_v51 = vcombine.low %v2134_v1, %v2138_v6 }
 0x3cc   : > { %3924 = vmatmul.mubr.bf16.gmra.mxu1 %v11448_v27  ;;  %3975 = vmatpush2.bf16.msra.mxu0 %v8818_v57  ;;  %v2002_v49 = vld [vmem:[#allocation13 + $0x270] sm:$0xff] }
 0x3cd   : > { %3820 = vmatprep.mubr.bf16.mxu0 %v11482_v60  ;;  %3933 = vmatprep.mubr.bf16.mxu1 %v11484_v63  ;;  %v2126_v39 = vld [vmem:[#allocation13 + $0x650] sm:$0xff]  ;;  %v8787_v42 = vcombine.high %v1998_v9, %v2002_v49  ;;  %v8786_v33 = vcombine.low %v1998_v9, %v2002_v49 }
 0x3ce   : > { %4088 = vmatpush2.bf16.msra.mxu1 %v8946_v11  ;;  %3976 = vmatprep.subr.bf16.mxu0 %v8811_v15  ;;  %v2130_v47 = vld [vmem:[#allocation13 + $0x670] sm:$0xff] }
 0x3cf   : > { %4089 = vmatprep.subr.bf16.mxu1 %v8939_v59  ;;  %v8915_v17 = vcombine.high %v2126_v39, %v2130_v47  ;;  %v1990_v57 = vld [vmem:[#allocation13 + $0x210] sm:$0xff]  ;;  %v8914_v45 = vcombine.low %v2126_v39, %v2130_v47  ;;  %v1983_v59 = vld [vmem:[#allocation13 + $0x1d8] sm:$0xff] }
 0x3d0   : > { %3977 = vmatpush2.bf16.msra.mxu0 %v8810_v5  ;;  %v1994_v46 = vld [vmem:[#allocation13 + $0x230] sm:$0xff]  ;;  %v1987_v5 = vld [vmem:[#allocation13 + $0x1f8] sm:$0xff] }
 0x3d1   : > { %3978 = vmatprep.subr.bf16.mxu0 %v8803_v3  ;;  %v2118_v11 = vld [vmem:[#allocation13 + $0x610] sm:$0xff]  ;;  %v8779_v62 = vcombine.high %v1990_v57, %v1994_v46  ;;  %v8778_v13 = vcombine.low %v1990_v57, %v1994_v46  ;;  %v2111_v3 = vld [vmem:[#allocation13 + $0x5d8] sm:$0xff]  ;;  %v8772_v6 = vcombine.low %v1983_v59, %v1987_v5 }
 0x3d2   : > { %4090 = vmatpush2.bf16.msra.mxu1 %v8938_v4  ;;  %v2122_v15 = vld [vmem:[#allocation13 + $0x630] sm:$0xff]  ;;  %v2115_v4 = vld [vmem:[#allocation13 + $0x5f8] sm:$0xff] }
 0x3d3   : > { %3821 = vmatmul.mubr.bf16.gmra.mxu0 %v11490_v0  ;;  %4091 = vmatprep.subr.bf16.mxu1 %v8931_v36  ;;  %v8907_v48 = vcombine.high %v2118_v11, %v2122_v15  ;;  %v8773_v36 = vcombine.high %v1983_v59, %v1987_v5  ;;  %v8906_v43 = vcombine.low %v2118_v11, %v2122_v15  ;;  %v1959_v46 = vld [vmem:[#allocation13 + $0x118] sm:$0xff] }
 0x3d4   : > { %3934 = vmatmul.mubr.bf16.gmra.mxu1 %v11492_v32  ;;  %3979 = vmatpush2.bf16.msra.mxu0 %v8802_v50  ;;  %v1979_v50 = vld [vmem:[#allocation13 + $0x1b8] sm:$0xff]  ;;  %v8901_v1 = vcombine.high %v2111_v3, %v2115_v4  ;;  %v8900_v49 = vcombine.low %v2111_v3, %v2115_v4 }
 0x3d5   : > { %3830 = vmatprep.mubr.bf16.mxu0 %v11510_v55  ;;  %3943 = vmatprep.mubr.bf16.mxu1 %v11512_v7  ;;  %v8765_v9 = vcombine.high %v1975_v41, %v1979_v50  ;;  %v8764_v47 = vcombine.low %v1975_v41, %v1979_v50 }
 0x3d6   : > { %4092 = vmatpush2.bf16.msra.mxu1 %v8930_v2  ;;  %3980 = vmatprep.subr.bf16.mxu0 %v8795_v61  ;;  %v2103_v2 = vld [vmem:[#allocation13 + $0x598] sm:$0xff] }
 0x3d7   : > { %4093 = vmatprep.subr.bf16.mxu1 %v8923_v52  ;;  %v2107_v61 = vld [vmem:[#allocation13 + $0x5b8] sm:$0xff] }
 0x3d8   : > { %3981 = vmatpush2.bf16.msra.mxu0 %v8794_v10  ;;  %v1967_v52 = vld [vmem:[#allocation13 + $0x158] sm:$0xff]  ;;  %v8893_v39 = vcombine.high %v2103_v2, %v2107_v61  ;;  %v8892_v57 = vcombine.low %v2103_v2, %v2107_v61 }
 0x3d9   : > { %3982 = vmatprep.subr.bf16.mxu0 %v8787_v42  ;;  %v1971_v10 = vld [vmem:[#allocation13 + $0x178] sm:$0xff] }
 0x3da   : > { %4094 = vmatpush2.bf16.msra.mxu1 %v8922_v51  ;;  %v2095_v42 = vld [vmem:[#allocation13 + $0x558] sm:$0xff]  ;;  %v8756_v15 = vcombine.low %v1967_v52, %v1971_v10 }
 0x3db   : > { %3831 = vmatmul.mubr.bf16.gmra.mxu0 %v11514_v8  ;;  %4095 = vmatprep.subr.bf16.mxu1 %v8915_v17  ;;  %v2099_v51 = vld [vmem:[#allocation13 + $0x578] sm:$0xff]  ;;  %v8757_v17 = vcombine.high %v1967_v52, %v1971_v10 }
 0x3dc   : > { %3944 = vmatmul.mubr.bf16.gmra.mxu1 %v11516_v12  ;;  %3983 = vmatpush2.bf16.msra.mxu0 %v8786_v33  ;;  %v1963_v33 = vld [vmem:[#allocation13 + $0x138] sm:$0xff]  ;;  %v8885_v11 = vcombine.high %v2095_v42, %v2099_v51  ;;  %v8884_v5 = vcombine.low %v2095_v42, %v2099_v51 }
 0x3dd   : > { %3986 = vmatprep.mubr.bf16.mxu0 %v11212_v34  ;;  %4099 = vmatprep.mubr.bf16.mxu1 %v11214_v35  ;;  %v8749_v59 = vcombine.high %v1959_v46, %v1963_v33  ;;  %v8748_v4 = vcombine.low %v1959_v46, %v1963_v33 }
 0x3de   : > { %4096 = vmatpush2.bf16.msra.mxu1 %v8914_v45  ;;  %3984 = vmatprep.subr.bf16.mxu0 %v8779_v62  ;;  %v2087_v45 = vld [vmem:[#allocation13 + $0x518] sm:$0xff] }
 0x3df   : > { %4097 = vmatprep.subr.bf16.mxu1 %v8907_v48  ;;  %v2091_v62 = vld [vmem:[#allocation13 + $0x538] sm:$0xff] }
 0x3e0   : > { %3985 = vmatpush2.bf16.msra.mxu0 %v8778_v13  ;;  %v1951_v48 = vld [vmem:[#allocation13 + $0xd8] sm:$0xff]  ;;  %v8877_v3 = vcombine.high %v2087_v45, %v2091_v62  ;;  %v8876_v50 = vcombine.low %v2087_v45, %v2091_v62 }
 0x3e1   : > { %4180 = vmatprep.subr.bf16.mxu0 %v8773_v36  ;;  %v1955_v13 = vld [vmem:[#allocation13 + $0xf8] sm:$0xff] }
 0x3e2   : > { %4098 = vmatpush2.bf16.msra.mxu1 %v8906_v43  ;;  %v2079_v36 = vld [vmem:[#allocation13 + $0x4d8] sm:$0xff]  ;;  %v8741_v41 = vcombine.high %v1951_v48, %v1955_v13  ;;  %v8740_v61 = vcombine.low %v1951_v48, %v1955_v13 }
 0x3e3   : > { %3987 = vmatmul.mubr.bf16.vlgmr.msra.gmra.mxu0 %v11218_v14  ;;  %4293 = vmatprep.subr.bf16.mxu1 %v8901_v1  ;;  %v2083_v43 = vld [vmem:[#allocation13 + $0x4f8] sm:$0xff] }
 0x3e4   : > { %4181 = vmatpush1.bf16.msra.mxu0 %v8772_v6  ;;  %3996 = vmatprep.mubr.bf16.mxu0 %v11262_v25  ;;  %v1943_v1 = vld [vmem:[#allocation13 + $0x98] sm:$0xff]  ;;  %v8869_v2 = vcombine.high %v2079_v36, %v2083_v43  ;;  %v8868_v10 = vcombine.low %v2079_v36, %v2083_v43 }
 0x3e5   : > { %4100 = vmatmul.mubr.bf16.vlgmr.msra.gmra.mxu1 %v11220_v37  ;;  %4182 = vmatprep.subr.bf16.mxu0 %v8765_v9  ;;  %v1947_v6 = vld [vmem:[#allocation13 + $0xb8] sm:$0xff] }
 0x3e6   : > { %4109 = vmatprep.mubr.bf16.mxu1 %v11264_v26  ;;  %4294 = vmatpush1.bf16.msra.mxu1 %v8900_v49  ;;  %v2071_v9 = vld [vmem:[#allocation13 + $0x498] sm:$0xff]  ;;  %v8733_v52 = vcombine.high %v1943_v1, %v1947_v6  ;;  %v8732_v51 = vcombine.low %v1943_v1, %v1947_v6 }
 0x3e7   : > { %4295 = vmatprep.subr.bf16.mxu1 %v8893_v39  ;;  %v2075_v49 = vld [vmem:[#allocation13 + $0x4b8] sm:$0xff] }
 0x3e8   : > { %4183 = vmatpush1.bf16.msra.mxu0 %v8764_v47  ;;  %v1935_v39 = vld [vmem:[#allocation13 + $0x58] sm:$0xff]  ;;  %v8861_v42 = vcombine.high %v2071_v9, %v2075_v49  ;;  %v8860_v33 = vcombine.low %v2071_v9, %v2075_v49 }
 0x3e9   : > { %4184 = vmatprep.subr.bf16.mxu0 %v8757_v17  ;;  %v1939_v47 = vld [vmem:[#allocation13 + $0x78] sm:$0xff] }
 0x3ea   : > { %4296 = vmatpush1.bf16.msra.mxu1 %v8892_v57  ;;  %v2063_v17 = vld [vmem:[#allocation13 + $0x458] sm:$0xff]  ;;  %v8725_v46 = vcombine.high %v1935_v39, %v1939_v47  ;;  %v8724_v62 = vcombine.low %v1935_v39, %v1939_v47 }
 0x3eb   : > { %3997 = vmatmul.mubr.bf16.gmra.mxu0 %v11270_v28  ;;  %4297 = vmatprep.subr.bf16.mxu1 %v8885_v11  ;;  %v2067_v57 = vld [vmem:[#allocation13 + $0x478] sm:$0xff] }
 0x3ec   : > { %4185 = vmatpush1.bf16.msra.mxu0 %v8756_v15  ;;  %4006 = vmatprep.mubr.bf16.mxu0 %v11306_v18  ;;  %v1927_v11 = vld [vmem:[#allocation13 + $0x18] sm:$0xff]  ;;  %v8853_v45 = vcombine.high %v2063_v17, %v2067_v57  ;;  %v8852_v13 = vcombine.low %v2063_v17, %v2067_v57 }
 0x3ed   : > { %4110 = vmatmul.mubr.bf16.gmra.mxu1 %v11272_v29  ;;  %4186 = vmatprep.subr.bf16.mxu0 %v8749_v59  ;;  %v1931_v15 = vld [vmem:[#allocation13 + $0x38] sm:$0xff] }
 0x3ee   : > { %4119 = vmatprep.mubr.bf16.mxu1 %v11308_v19  ;;  %4298 = vmatpush1.bf16.msra.mxu1 %v8884_v5  ;;  %v2055_v59 = vld [vmem:[#allocation13 + $0x418] sm:$0xff]  ;;  %v8717_v48 = vcombine.high %v1927_v11, %v1931_v15  ;;  %v8716_v43 = vcombine.low %v1927_v11, %v1931_v15 }
 0x3ef   : > { %4299 = vmatprep.subr.bf16.mxu1 %v8877_v3  ;;  %v2059_v5 = vld [vmem:[#allocation13 + $0x438] sm:$0xff] }
 0x3f0   : > { %4187 = vmatpush1.bf16.msra.mxu0 %v8748_v4  ;;  %v2047_v3 = vld [vmem:[#allocation13 + $0x3d8] sm:$0xff]  ;;  %v8845_v36 = vcombine.high %v2055_v59, %v2059_v5  ;;  %v8844_v6 = vcombine.low %v2055_v59, %v2059_v5 }
 0x3f1   : > { %4188 = vmatprep.subr.bf16.mxu0 %v8741_v41  ;;  %v2051_v4 = vld [vmem:[#allocation13 + $0x3f8] sm:$0xff] }
 0x3f2   : > { %4300 = vmatpush1.bf16.msra.mxu1 %v8876_v50  ;;  %v2175_v41 = vld [vmem:[#allocation13 + $0x7d8] sm:$0xff]  ;;  %v8837_v1 = vcombine.high %v2047_v3, %v2051_v4  ;;  %v8836_v49 = vcombine.low %v2047_v3, %v2051_v4 }
 0x3f3   : > { %4007 = vmatmul.mubr.bf16.gmra.mxu0 %v11314_v22  ;;  %4301 = vmatprep.subr.bf16.mxu1 %v8869_v2  ;;  %v2179_v50 = vld [vmem:[#allocation13 + $0x7f8] sm:$0xff] }
 0x3f4   : > { %4189 = vmatpush1.bf16.msra.mxu0 %v8740_v61  ;;  %4016 = vmatprep.mubr.bf16.mxu0 %v11350_v56  ;;  %v2039_v2 = vld [vmem:[#allocation13 + $0x398] sm:$0xff]  ;;  %v8965_v9 = vcombine.high %v2175_v41, %v2179_v50  ;;  %v8964_v47 = vcombine.low %v2175_v41, %v2179_v50 }
 0x3f5   : > { %4120 = vmatmul.mubr.bf16.gmra.mxu1 %v11316_v23  ;;  %4190 = vmatprep.subr.bf16.mxu0 %v8733_v52  ;;  %v2043_v61 = vld [vmem:[#allocation13 + $0x3b8] sm:$0xff] }
 0x3f6   : > { %4129 = vmatprep.mubr.bf16.mxu1 %v11352_v16  ;;  %4302 = vmatpush1.bf16.msra.mxu1 %v8868_v10  ;;  %v2167_v52 = vld [vmem:[#allocation13 + $0x798] sm:$0xff]  ;;  %v8829_v39 = vcombine.high %v2039_v2, %v2043_v61  ;;  %v8828_v57 = vcombine.low %v2039_v2, %v2043_v61 }
 0x3f7   : > { %4303 = vmatprep.subr.bf16.mxu1 %v8861_v42  ;;  %v2171_v10 = vld [vmem:[#allocation13 + $0x7b8] sm:$0xff] }
 0x3f8   : > { %4191 = vmatpush1.bf16.msra.mxu0 %v8732_v51  ;;  %v2031_v42 = vld [vmem:[#allocation13 + $0x358] sm:$0xff]  ;;  %v8957_v17 = vcombine.high %v2167_v52, %v2171_v10  ;;  %v8956_v15 = vcombine.low %v2167_v52, %v2171_v10 }
 0x3f9   : > { %4192 = vmatprep.subr.bf16.mxu0 %v8725_v46  ;;  %v2035_v51 = vld [vmem:[#allocation13 + $0x378] sm:$0xff] }
 0x3fa   : > { %4304 = vmatpush1.bf16.msra.mxu1 %v8860_v33  ;;  %v2159_v46 = vld [vmem:[#allocation13 + $0x758] sm:$0xff]  ;;  %v8821_v11 = vcombine.high %v2031_v42, %v2035_v51  ;;  %v8820_v5 = vcombine.low %v2031_v42, %v2035_v51 }
 0x3fb   : > { %4017 = vmatmul.mubr.bf16.gmra.mxu0 %v11358_v24  ;;  %4305 = vmatprep.subr.bf16.mxu1 %v8853_v45  ;;  %v2163_v33 = vld [vmem:[#allocation13 + $0x778] sm:$0xff] }
 0x3fc   : > { %4193 = vmatpush1.bf16.msra.mxu0 %v8724_v62  ;;  %4026 = vmatprep.mubr.bf16.mxu0 %v11394_v58  ;;  %v2023_v45 = vld [vmem:[#allocation13 + $0x318] sm:$0xff]  ;;  %v8949_v59 = vcombine.high %v2159_v46, %v2163_v33  ;;  %v8948_v4 = vcombine.low %v2159_v46, %v2163_v33 }
 0x3fd   : > { %4130 = vmatmul.mubr.bf16.gmra.mxu1 %v11360_v21  ;;  %4194 = vmatprep.subr.bf16.mxu0 %v8717_v48  ;;  %v2027_v62 = vld [vmem:[#allocation13 + $0x338] sm:$0xff] }
 0x3fe   : > { %4139 = vmatprep.mubr.bf16.mxu1 %v11396_v30  ;;  %4306 = vmatpush1.bf16.msra.mxu1 %v8852_v13  ;;  %v2151_v48 = vld [vmem:[#allocation13 + $0x718] sm:$0xff]  ;;  %v8813_v3 = vcombine.high %v2023_v45, %v2027_v62  ;;  %v8812_v50 = vcombine.low %v2023_v45, %v2027_v62 }
 0x3ff   : > { %4307 = vmatprep.subr.bf16.mxu1 %v8845_v36  ;;  %v2155_v13 = vld [vmem:[#allocation13 + $0x738] sm:$0xff] }
 0x400   : > { %4195 = vmatpush1.bf16.msra.mxu0 %v8716_v43  ;;  %v2015_v36 = vld [vmem:[#allocation13 + $0x2d8] sm:$0xff]  ;;  %v8941_v41 = vcombine.high %v2151_v48, %v2155_v13  ;;  %v8940_v61 = vcombine.low %v2151_v48, %v2155_v13 }
 0x401   : > { %4196 = vmatprep.subr.bf16.mxu0 %v8837_v1  ;;  %v2019_v43 = vld [vmem:[#allocation13 + $0x2f8] sm:$0xff] }
 0x402   : > { %4308 = vmatpush1.bf16.msra.mxu1 %v8844_v6  ;;  %v2143_v1 = vld [vmem:[#allocation13 + $0x6d8] sm:$0xff]  ;;  %v8805_v2 = vcombine.high %v2015_v36, %v2019_v43  ;;  %v8804_v10 = vcombine.low %v2015_v36, %v2019_v43 }
 0x403   : > { %4027 = vmatmul.mubr.bf16.gmra.mxu0 %v11402_v31  ;;  %4309 = vmatprep.subr.bf16.mxu1 %v8965_v9  ;;  %v2147_v6 = vld [vmem:[#allocation13 + $0x6f8] sm:$0xff] }
 0x404   : > { %4197 = vmatpush2.bf16.msra.mxu0 %v8836_v49  ;;  %4036 = vmatprep.mubr.bf16.mxu0 %v11438_v44  ;;  %v2007_v9 = vld [vmem:[#allocation13 + $0x298] sm:$0xff]  ;;  %v8933_v52 = vcombine.high %v2143_v1, %v2147_v6  ;;  %v8932_v51 = vcombine.low %v2143_v1, %v2147_v6  ;;  %v9767_v1 = vld [vmem:[#allocation14 + $0xe4] ss:$16 sps:$4 sm:$0xff]  }
 0x405   : > { %4140 = vmatmul.mubr.bf16.gmra.mxu1 %v11404_v20  ;;  %4198 = vmatprep.subr.bf16.mxu0 %v8829_v39  ;;  %v2011_v49 = vld [vmem:[#allocation13 + $0x2b8] sm:$0xff] }
 0x406   : > { %4149 = vmatprep.mubr.bf16.mxu1 %v11440_v40  ;;  %4310 = vmatpush2.bf16.msra.mxu1 %v8964_v47  ;;  %v2135_v39 = vld [vmem:[#allocation13 + $0x698] sm:$0xff]  ;;  %v8797_v42 = vcombine.high %v2007_v9, %v2011_v49  ;;  %v8796_v33 = vcombine.low %v2007_v9, %v2011_v49  ;;  %v9770_v9 = vld [vmem:[#allocation14 + $0xc4] ss:$16 sps:$4 sm:$0xff]   ;;  %v9780_v49 = vld [vmem:[#allocation14 + $0x2e0] ss:$16 sps:$4 sm:$0xff]  }
 0x407   : > { %4311 = vmatprep.subr.bf16.mxu1 %v8957_v17  ;;  %v2139_v47 = vld [vmem:[#allocation13 + $0x6b8] sm:$0xff] }
 0x408   : > { %4199 = vmatpush2.bf16.msra.mxu0 %v8828_v57  ;;  %v1999_v17 = vld [vmem:[#allocation13 + $0x258] sm:$0xff]  ;;  %v8925_v46 = vcombine.high %v2135_v39, %v2139_v47  ;;  %v8924_v62 = vcombine.low %v2135_v39, %v2139_v47 }
 0x409   : > { %4200 = vmatprep.subr.bf16.mxu0 %v8821_v11  ;;  %v2003_v57 = vld [vmem:[#allocation13 + $0x278] sm:$0xff] }
 0x40a   : > { %4312 = vmatpush2.bf16.msra.mxu1 %v8956_v15  ;;  %v2127_v11 = vld [vmem:[#allocation13 + $0x658] sm:$0xff]  ;;  %v8789_v45 = vcombine.high %v1999_v17, %v2003_v57  ;;  %v8788_v13 = vcombine.low %v1999_v17, %v2003_v57  ;;  %v9771_v57 = vld [vmem:[#allocation14 + $0xa0] ss:$16 sps:$4 sm:$0xff]  }
 0x40b   : > { %4037 = vmatmul.mubr.bf16.gmra.mxu0 %v11446_v38  ;;  %4313 = vmatprep.subr.bf16.mxu1 %v8949_v59  ;;  %v2131_v15 = vld [vmem:[#allocation13 + $0x678] sm:$0xff] }
 0x40c   : > { %4201 = vmatpush2.bf16.msra.mxu0 %v8820_v5  ;;  %4046 = vmatprep.mubr.bf16.mxu0 %v11482_v60  ;;  %v1991_v59 = vld [vmem:[#allocation13 + $0x218] sm:$0xff]  ;;  %v8917_v48 = vcombine.high %v2127_v11, %v2131_v15  ;;  %v8916_v43 = vcombine.low %v2127_v11, %v2131_v15  ;;  %v9792_v11 = vld [vmem:[#allocation14 + $0x2a0] ss:$16 sps:$4 sm:$0xff]  }
 0x40d   : > { %4150 = vmatmul.mubr.bf16.gmra.mxu1 %v11448_v27  ;;  %4202 = vmatprep.subr.bf16.mxu0 %v8813_v3  ;;  %v1995_v5 = vld [vmem:[#allocation13 + $0x238] sm:$0xff] }
 0x40e   : > { %4159 = vmatprep.mubr.bf16.mxu1 %v11484_v63  ;;  %4314 = vmatpush2.bf16.msra.mxu1 %v8948_v4  ;;  %v2119_v3 = vld [vmem:[#allocation13 + $0x618] sm:$0xff]  ;;  %v8781_v36 = vcombine.high %v1991_v59, %v1995_v5 }
 0x40f   : > { %4315 = vmatprep.subr.bf16.mxu1 %v8941_v41  ;;  %v2123_v4 = vld [vmem:[#allocation13 + $0x638] sm:$0xff] }
 0x410   : > { %4203 = vmatpush2.bf16.msra.mxu0 %v8812_v50  ;;  %v8909_v41 = vcombine.high %v2119_v3, %v2123_v4  ;;  %v8780_v50 = vcombine.low %v1991_v59, %v1995_v5  ;;  %v8908_v6 = vcombine.low %v2119_v3, %v2123_v4  ;;  %v9777_v4 = vld [vmem:[#allocation14 + $0x60] ss:$16 sps:$4 sm:$0xff]  }
 0x411   : > { %4204 = vmatprep.subr.bf16.mxu0 %v8805_v2  ;;  %v9782_v2 = vld [vmem:[#allocation14 + $0x2e4] ss:$16 sps:$4 sm:$0xff]  }
 0x412   : > { %4316 = vmatpush2.bf16.msra.mxu1 %v8940_v61  ;;  %v9765_v61 = vld [vmem:[#allocation14 + $0xe0] ss:$16 sps:$4 sm:$0xff]  }
 0x413   : > { %4047 = vmatmul.mubr.bf16.gmra.mxu0 %v11490_v0  ;;  %4317 = vmatprep.subr.bf16.mxu1 %v8933_v52 }
 0x414   : > { %4205 = vmatpush2.bf16.msra.mxu0 %v8804_v10  ;;  %4056 = vmatprep.mubr.bf16.mxu0 %v11510_v55  ;;  %v9788_v10 = vld [vmem:[#allocation14 + $0x2c4] ss:$16 sps:$4 sm:$0xff]  }
 0x415   : > { %4160 = vmatmul.mubr.bf16.gmra.mxu1 %v11492_v32  ;;  %4206 = vmatprep.subr.bf16.mxu0 %v8797_v42  ;;  %v9773_v42 = vld [vmem:[#allocation14 + $0xa4] ss:$16 sps:$4 sm:$0xff]  }
 0x416   : > { %4169 = vmatprep.mubr.bf16.mxu1 %v11512_v7  ;;  %4318 = vmatpush2.bf16.msra.mxu1 %v8932_v51  ;;  %v9786_v51 = vld [vmem:[#allocation14 + $0x2c0] ss:$16 sps:$4 sm:$0xff]  }
 0x417   : > { %4319 = vmatprep.subr.bf16.mxu1 %v8925_v46 }
 0x418   : > { %4207 = vmatpush2.bf16.msra.mxu0 %v8796_v33  ;;  %v9776_v33 = vld [vmem:[#allocation14 + $0x84] ss:$16 sps:$4 sm:$0xff]  }
 0x419   : > { %4208 = vmatprep.subr.bf16.mxu0 %v8789_v45  ;;  %v9800_v45 = vld [vmem:[#allocation14 + $0x284] ss:$16 sps:$4 sm:$0xff]  }
 0x41a   : > { %4320 = vmatpush2.bf16.msra.mxu1 %v8924_v62  ;;  %v9774_v62 = vld [vmem:[#allocation14 + $0x80] ss:$16 sps:$4 sm:$0xff]  }
 0x41b   : > { %4057 = vmatmul.mubr.bf16.gmra.mxu0 %v11514_v8  ;;  %4321 = vmatprep.subr.bf16.mxu1 %v8917_v48  ;;  %v9779_v48 = vld [vmem:[#allocation14 + $0x64] ss:$16 sps:$4 sm:$0xff]  }
 0x41c   : > { %4209 = vmatpush2.bf16.msra.mxu0 %v8788_v13  ;;  %4212 = vmatprep.mubr.bf16.mxu0 %v11212_v34  ;;  %v9798_v13 = vld [vmem:[#allocation14 + $0x280] ss:$16 sps:$4 sm:$0xff]  }
 0x41d   : > { %4170 = vmatmul.mubr.bf16.gmra.mxu1 %v11516_v12  ;;  %4210 = vmatprep.subr.bf16.mxu0 %v8781_v36 }
 0x41e   : > { %4322 = vmatpush2.bf16.msra.mxu1 %v8916_v43  ;;  %4325 = vmatprep.mubr.bf16.mxu1 %v11214_v35  ;;  %v9768_v35 = vld [vmem:[#allocation14 + $0xc0] ss:$16 sps:$4 sm:$0xff]   ;;  %v9785_v43 = vld [vmem:[#allocation14 + $0x44] ss:$16 sps:$4 sm:$0xff]  }
 0x41f   : > { %4323 = vmatprep.subr.bf16.mxu1 %v8909_v41  ;;  %v9804_v41 = vld [vmem:[#allocation14 + $0x260] ss:$16 sps:$4 sm:$0xff]  }
 0x420   : > { %4211 = vmatpush2.bf16.msra.mxu0 %v8780_v50 }
 0x421   : > { %6156 = vmatprep.subr.bf16.mxu0 %v9767_v1  ;;  %v9812_v1 = vld [vmem:[#allocation14 + $0x244] ss:$16 sps:$4 sm:$0xff]  }
 0x422   : > { %4324 = vmatpush2.bf16.msra.mxu1 %v8908_v6  ;;  %v9783_v6 = vld [vmem:[#allocation14 + $0x40] ss:$16 sps:$4 sm:$0xff]  }
 0x423   : > { %v11588_v52 = vpop.f32.mrf.mxu0  ;;  %v11590_v34 = vpop.f32.mrf.mxu1  ;;  %4213 = vmatmul.mubr.bf16.vlgmr.msra.gmra.mxu0 %v11218_v14  ;;  %6269 = vmatprep.subr.bf16.mxu1 %v9782_v2 }
 0x424   : > { %4222 = vmatprep.mubr.bf16.mxu0 %v11262_v25  ;;  %6157 = vmatpush1.bf16.msra.mxu0 %v9765_v61  ;;  %v9794_v25 = vld [vmem:[#allocation14 + $0x2a4] ss:$16 sps:$4 sm:$0xff]  }
 0x425   : > { %4326 = vmatmul.mubr.bf16.vlgmr.msra.gmra.mxu1 %v11220_v37  ;;  %v11595_v39 = vpop.f32.mrf.mxu0  ;;  %v11597_v47 = vpop.f32.mrf.mxu1  ;;  %6158 = vmatprep.subr.bf16.mxu0 %v9770_v9  ;;  %v9791_v9 = vld [vmem:[#allocation14 + $0x24] ss:$16 sps:$4 sm:$0xff]  }
 0x426   : > { %4335 = vmatprep.mubr.bf16.mxu1 %v11264_v26  ;;  %6270 = vmatpush1.bf16.msra.mxu1 %v9780_v49  ;;  %v9810_v49 = vld [vmem:[#allocation14 + $0x240] ss:$16 sps:$4 sm:$0xff]  }
 0x427   : > { %v11600_v17 = vpop.f32.mrf.mxu0  ;;  %v11602_v14 = vpop.f32.mrf.mxu1  ;;  %6271 = vmatprep.subr.bf16.mxu1 %v9788_v10 }
 0x428   : > { %6159 = vmatpush1.bf16.msra.mxu0 %v9768_v35  ;;  %v9789_v35 = vld [vmem:[#allocation14 + $0x20] ss:$16 sps:$4 sm:$0xff]  }
 0x429   : > { %v11604_v46 = vpop.f32.mrf.mxu0  ;;  %v11606_v37 = vpop.f32.mrf.mxu1  ;;  %6160 = vmatprep.subr.bf16.mxu0 %v9773_v42 }
 0x42a   : > { %6272 = vmatpush1.bf16.msra.mxu1 %v9786_v51  ;;  %v9797_v51 = vld [vmem:[#allocation14 + $0x4] ss:$16 sps:$4 sm:$0xff]  }
 0x42b   : > { %v11608_v15 = vpop.f32.mrf.mxu0  ;;  %v11610_v26 = vpop.f32.mrf.mxu1  ;;  %4223 = vmatmul.mubr.bf16.gmra.mxu0 %v11270_v28  ;;  %6273 = vmatprep.subr.bf16.mxu1 %v9794_v25  ;;  %v9816_v25 = vld [vmem:[#allocation14 + $0x220] ss:$16 sps:$4 sm:$0xff]  }
 0x42c   : > { %4232 = vmatprep.mubr.bf16.mxu0 %v11306_v18  ;;  %6161 = vmatpush1.bf16.msra.mxu0 %v9771_v57  ;;  %v9806_v18 = vld [vmem:[#allocation14 + $0x264] ss:$16 sps:$4 sm:$0xff]  }
 0x42d   : > { %4336 = vmatmul.mubr.bf16.gmra.mxu1 %v11272_v29  ;;  %v11615_v59 = vpop.f32.mrf.mxu0  ;;  %v11617_v5 = vpop.f32.mrf.mxu1  ;;  %6162 = vmatprep.subr.bf16.mxu0 %v9776_v33  ;;  %v9824_v33 = vld [vmem:[#allocation14 + $0x204] ss:$16 sps:$4 sm:$0xff]  }
 0x42e   : > { %4345 = vmatprep.mubr.bf16.mxu1 %v11308_v19  ;;  %6274 = vmatpush1.bf16.msra.mxu1 %v9792_v11  ;;  %v9795_v11 = vld [vmem:[#allocation14] ss:$16 sps:$4 sm:$0xff]  }
 0x42f   : > { %v11620_v3 = vpop.f32.mrf.mxu0  ;;  %v11622_v28 = vpop.f32.mrf.mxu1  ;;  %6275 = vmatprep.subr.bf16.mxu1 %v9800_v45 }
 0x430   : > { %6163 = vmatpush1.bf16.msra.mxu0 %v9774_v62 }
 0x431   : > { %v11624_v36 = vpop.f32.mrf.mxu0  ;;  %v11626_v29 = vpop.f32.mrf.mxu1  ;;  %6164 = vmatprep.subr.bf16.mxu0 %v9779_v48  ;;  %v9803_v48 = vld [vmem:[#allocation14 + $0x1e4] ss:$16 sps:$4 sm:$0xff]  }
 0x432   : > { %6276 = vmatpush1.bf16.msra.mxu1 %v9798_v13  ;;  %v9822_v13 = vld [vmem:[#allocation14 + $0x200] ss:$16 sps:$4 sm:$0xff]  }
 0x433   : > { %v11628_v50 = vpop.f32.mrf.mxu0  ;;  %v11630_v19 = vpop.f32.mrf.mxu1  ;;  %4233 = vmatmul.mubr.bf16.gmra.mxu0 %v11314_v22  ;;  %6277 = vmatprep.subr.bf16.mxu1 %v9806_v18 }
 0x434   : > { %4242 = vmatprep.mubr.bf16.mxu0 %v11350_v56  ;;  %6165 = vmatpush1.bf16.msra.mxu0 %v9777_v4  ;;  %v9818_v56 = vld [vmem:[#allocation14 + $0x224] ss:$16 sps:$4 sm:$0xff]   ;;  %v9801_v4 = vld [vmem:[#allocation14 + $0x1e0] ss:$16 sps:$4 sm:$0xff]  }
 0x435   : > { %4346 = vmatmul.mubr.bf16.gmra.mxu1 %v11316_v23  ;;  %v11635_v2 = vpop.f32.mrf.mxu0  ;;  %v11637_v61 = vpop.f32.mrf.mxu1  ;;  %6166 = vmatprep.subr.bf16.mxu0 %v9785_v43 }
 0x436   : > { %4355 = vmatprep.mubr.bf16.mxu1 %v11352_v16  ;;  %6278 = vmatpush1.bf16.msra.mxu1 %v9804_v41  ;;  %v9809_v41 = vld [vmem:[#allocation14 + $0x1c4] ss:$16 sps:$4 sm:$0xff]  }
 0x437   : > { %v11640_v10 = vpop.f32.mrf.mxu0  ;;  %v11642_v22 = vpop.f32.mrf.mxu1  ;;  %6279 = vmatprep.subr.bf16.mxu1 %v9812_v1  ;;  %v9828_v1 = vld [vmem:[#allocation14 + $0x3e0] ss:$16 sps:$4 sm:$0xff]  }
 0x438   : > { %6167 = vmatpush1.bf16.msra.mxu0 %v9783_v6 }
 0x439   : > { %v11644_v42 = vpop.f32.mrf.mxu0  ;;  %v11646_v23 = vpop.f32.mrf.mxu1  ;;  %6168 = vmatprep.subr.bf16.mxu0 %v9791_v9  ;;  %v9836_v9 = vld [vmem:[#allocation14 + $0x3c4] ss:$16 sps:$4 sm:$0xff]  }
 0x43a   : > { %6280 = vmatpush1.bf16.msra.mxu1 %v9810_v49  ;;  %v9807_v49 = vld [vmem:[#allocation14 + $0x1c0] ss:$16 sps:$4 sm:$0xff]  }
 0x43b   : > { %v11648_v57 = vpop.f32.mrf.mxu0  ;;  %v11650_v16 = vpop.f32.mrf.mxu1  ;;  %4243 = vmatmul.mubr.bf16.gmra.mxu0 %v11358_v24  ;;  %6281 = vmatprep.subr.bf16.mxu1 %v9818_v56 }
 0x43c   : > { %4252 = vmatprep.mubr.bf16.mxu0 %v11394_v58  ;;  %6169 = vmatpush1.bf16.msra.mxu0 %v9789_v35  ;;  %v9830_v58 = vld [vmem:[#allocation14 + $0x3e4] ss:$16 sps:$4 sm:$0xff]  }
 0x43d   : > { %4356 = vmatmul.mubr.bf16.gmra.mxu1 %v11360_v21  ;;  %v11655_v45 = vpop.f32.mrf.mxu0  ;;  %v11657_v62 = vpop.f32.mrf.mxu1  ;;  %6170 = vmatprep.subr.bf16.mxu0 %v9797_v51  ;;  %v9815_v51 = vld [vmem:[#allocation14 + $0x1a4] ss:$16 sps:$4 sm:$0xff]  }
 0x43e   : > { %4365 = vmatprep.mubr.bf16.mxu1 %v11396_v30  ;;  %6282 = vmatpush1.bf16.msra.mxu1 %v9816_v25  ;;  %v9834_v25 = vld [vmem:[#allocation14 + $0x3c0] ss:$16 sps:$4 sm:$0xff]  }
 0x43f   : > { %v11660_v18 = vpop.f32.mrf.mxu0  ;;  %v11662_v24 = vpop.f32.mrf.mxu1  ;;  %6283 = vmatprep.subr.bf16.mxu1 %v9824_v33 }
 0x440   : > { %6171 = vmatpush1.bf16.msra.mxu0 %v9795_v11  ;;  %v9813_v11 = vld [vmem:[#allocation14 + $0x1a0] ss:$16 sps:$4 sm:$0xff]  }
 0x441   : > { %v11664_v43 = vpop.f32.mrf.mxu0  ;;  %v11666_v21 = vpop.f32.mrf.mxu1  ;;  %6172 = vmatprep.subr.bf16.mxu0 %v9803_v48 }
 0x442   : > { %6284 = vmatpush1.bf16.msra.mxu1 %v9822_v13  ;;  %v9821_v13 = vld [vmem:[#allocation14 + $0x184] ss:$16 sps:$4 sm:$0xff]  }
 0x443   : > { %v11668_v6 = vpop.f32.mrf.mxu0  ;;  %v11670_v30 = vpop.f32.mrf.mxu1  ;;  %4253 = vmatmul.mubr.bf16.gmra.mxu0 %v11402_v31  ;;  %6285 = vmatprep.subr.bf16.mxu1 %v9830_v58  ;;  %v9840_v58 = vld [vmem:[#allocation14 + $0x3a0] ss:$16 sps:$4 sm:$0xff]  }
 0x444   : > { %4262 = vmatprep.mubr.bf16.mxu0 %v11438_v44  ;;  %6173 = vmatpush2.bf16.msra.mxu0 %v9801_v4  ;;  %v9842_v44 = vld [vmem:[#allocation14 + $0x3a4] ss:$16 sps:$4 sm:$0xff]  }
 0x445   : > { %4366 = vmatmul.mubr.bf16.gmra.mxu1 %v11404_v20  ;;  %v11675_v56 = vpop.f32.mrf.mxu0  ;;  %v11677_v35 = vpop.f32.mrf.mxu1  ;;  %6174 = vmatprep.subr.bf16.mxu0 %v9809_v41 }
 0x446   : > { %4375 = vmatprep.mubr.bf16.mxu1 %v11440_v40  ;;  %6286 = vmatpush2.bf16.msra.mxu1 %v9828_v1  ;;  %v11691_v40 = vld [vmem:[%s13101_s8] sm:$0xff]  ;;  %v9848_v1 = vld [vmem:[#allocation14 + $0x384] ss:$16 sps:$4 sm:$0xff]  }
 0x447   : > { %v11680_v33 = vpop.f32.mrf.mxu0  ;;  %v11682_v31 = vpop.f32.mrf.mxu1  ;;  %6287 = vmatprep.subr.bf16.mxu1 %v9836_v9  ;;  %v11700_v9 = vrot.slane %v11691_v40, %v11116_v53 }
 0x448   : > { %6175 = vmatpush2.bf16.msra.mxu0 %v9807_v49  ;;  %v9819_v49 = vld [vmem:[#allocation14 + $0x180] ss:$16 sps:$4 sm:$0xff]  }
 0x449   : > { %v11684_v48 = vpop.f32.mrf.mxu0  ;;  %v11686_v20 = vpop.f32.mrf.mxu1  ;;  %6176 = vmatprep.subr.bf16.mxu0 %v9815_v51 }
 0x44a   : > { %6288 = vmatpush2.bf16.msra.mxu1 %v9834_v25 }
 0x44b   : > { %v11693_v4 = vpop.f32.mrf.mxu0  ;;  %v11695_v41 = vpop.f32.mrf.mxu1  ;;  %4263 = vmatmul.mubr.bf16.gmra.mxu0 %v11446_v38  ;;  %6289 = vmatprep.subr.bf16.mxu1 %v9842_v44  ;;  %v3543_v38 = vadd.f32 %v11604_v46, %v11700_v9  ;;  %v9846_v44 = vld [vmem:[#allocation14 + $0x380] ss:$16 sps:$4 sm:$0xff]   ;;  %v9833_v46 = vld [vmem:[#allocation14 + $0x144] ss:$16 sps:$4 sm:$0xff]  }
 0x44c   : > { %13200 = vst [vmem:[#allocation33_spill] sm:$0xff] %v11693_v4  ;;  %13201 = vst [vmem:[#allocation34_spill] sm:$0xff] %v11695_v41  ;;  %4272 = vmatprep.mubr.bf16.mxu0 %v11482_v60  ;;  %6177 = vmatpush2.bf16.msra.mxu0 %v9813_v11  ;;  %v9827_v41 = vld [vmem:[#allocation14 + $0x164] ss:$16 sps:$4 sm:$0xff]   ;;  %v9825_v4 = vld [vmem:[#allocation14 + $0x160] ss:$16 sps:$4 sm:$0xff]  }
 0x44d   : > { %4376 = vmatmul.mubr.bf16.gmra.mxu1 %v11448_v27  ;;  %v11704_v51 = vpop.f32.mrf.mxu0  ;;  %v11706_v25 = vpop.f32.mrf.mxu1  ;;  %6178 = vmatprep.subr.bf16.mxu0 %v9821_v13  ;;  %v9851_v11 = vld [vmem:[#allocation14 + $0x364] ss:$16 sps:$4 sm:$0xff]   ;;  %v3539_v27 = vadd.f32 %v11595_v39, %v11700_v9 }
 0x44e   : > { %13202 = vst [vmem:[#allocation35_spill] sm:$0xff] %v11706_v25  ;;  %4385 = vmatprep.mubr.bf16.mxu1 %v11484_v63  ;;  %6290 = vmatpush2.bf16.msra.mxu1 %v9840_v58  ;;  %v3656_v63 = vadd.f32 %v11606_v37, %v3543_v38  ;;  %v9849_v58 = vld [vmem:[#allocation14 + $0x360] ss:$16 sps:$4 sm:$0xff]   ;;  %v9854_v39 = vld [vmem:[#allocation14 + $0x344] ss:$16 sps:$4 sm:$0xff]  }
 0x44f   : > { %v11711_v53 = vpop.f32.mrf.mxu0  ;;  %v11713_v60 = vpop.f32.mrf.mxu1  ;;  %6291 = vmatprep.subr.bf16.mxu1 %v9848_v1  ;;  %v9831_v37 = vld [vmem:[#allocation14 + $0x140] ss:$16 sps:$4 sm:$0xff]  }
 0x450   : > { %13203 = vst [vmem:[#allocation36_spill] sm:$0xff] %v11711_v53  ;;  %13204 = vst [vmem:[#allocation37_spill] sm:$0xff] %v11713_v60  ;;  %6179 = vmatpush2.bf16.msra.mxu0 %v9819_v49  ;;  %v11724_v60 = vrot.slane %v11691_v40, %v11119_v54  ;;  %v3652_v49 = vadd.f32 %v11597_v47, %v3539_v27  ;;  %v9839_v54 = vld [vmem:[#allocation14 + $0x124] ss:$16 sps:$4 sm:$0xff]  }
 0x451   : > { %v11717_v13 = vpop.f32.mrf.mxu0  ;;  %v11719_v25 = vpop.f32.mrf.mxu1  ;;  %6180 = vmatprep.subr.bf16.mxu0 %v9827_v41 }
 0x452   : > { %6292 = vmatpush2.bf16.msra.mxu1 %v9846_v44  ;;  %v3541_v41 = vadd.f32 %v11600_v17, %v11724_v60  ;;  %v3537_v47 = vadd.f32 %v11588_v52, %v11724_v60  ;;  %v4407_v27 = vmax.f32 %v3652_v49, 0.0  ;;  %v9845_v52 = vld [vmem:[#allocation14 + $0x104] ss:$16 sps:$4 sm:$0xff]  }
 0x453   : > { %v11726_v1 = vpop.f32.mrf.mxu0  ;;  %v11728_v53 = vpop.f32.mrf.mxu1  ;;  %4273 = vmatmul.mubr.bf16.gmra.mxu0 %v11490_v0  ;;  %6293 = vmatprep.subr.bf16.mxu1 %v9851_v11  ;;  %v4415_v0 = vmax.f32 %v3656_v63, 0.0  ;;  %v3553_v11 = vadd.f32 %v11624_v36, %v11700_v9  ;;  %v9837_v63 = vld [vmem:[#allocation14 + $0x120] ss:$16 sps:$4 sm:$0xff]  }
 0x454   : > { %13205 = vst [vmem:[#allocation38_spill] sm:$0xff] %v11728_v53  ;;  %4282 = vmatprep.mubr.bf16.mxu0 %v11510_v55  ;;  %6181 = vmatpush2.bf16.msra.mxu0 %v9825_v4  ;;  %v9852_v55 = vld [vmem:[#allocation14 + $0x340] ss:$16 sps:$4 sm:$0xff]   ;;  %v9857_v4 = vld [vmem:[#allocation14 + $0x324] ss:$16 sps:$4 sm:$0xff]   ;;  %v3654_v36 = vadd.f32 %v11602_v14, %v3541_v41  ;;  %v3650_v49 = vadd.f32 %v11590_v34, %v3537_v47 }
 0x455   : > { %4386 = vmatmul.mubr.bf16.gmra.mxu1 %v11492_v32  ;;  %v11736_v38 = vpop.f32.mrf.mxu0  ;;  %v11738_v44 = vpop.f32.mrf.mxu1  ;;  %6182 = vmatprep.subr.bf16.mxu0 %v9833_v46  ;;  %v3549_v46 = vadd.f32 %v11615_v59, %v11700_v9  ;;  %v3666_v53 = vadd.f32 %v11626_v29, %v3553_v11  ;;  %v9860_v14 = vld [vmem:[#allocation14 + $0x304] ss:$16 sps:$4 sm:$0xff]   ;;  %v3551_v41 = vadd.f32 %v11620_v3, %v11724_v60 }
 0x456   : > { %4395 = vmatprep.mubr.bf16.mxu1 %v11512_v7  ;;  %6294 = vmatpush2.bf16.msra.mxu1 %v9849_v58  ;;  %v4414_v29 = vmax.f32 %v3654_v36, 0.0  ;;  %v3563_v34 = vadd.f32 %v11644_v42, %v11700_v9  ;;  %v9863_v11 = vld [vmem:[#allocation14 + $0x4e4] ss:$16 sps:$4 sm:$0xff]   ;;  %v4406_v47 = vmax.f32 %v3650_v49, 0.0  ;;  %v3559_v3 = vadd.f32 %v11635_v2, %v11700_v9 }
 0x457   : > { %v11745_v17 = vpop.f32.mrf.mxu0  ;;  %v11747_v32 = vpop.f32.mrf.mxu1  ;;  %6295 = vmatprep.subr.bf16.mxu1 %v9854_v39  ;;  %v9855_v39 = vld [vmem:[#allocation14 + $0x320] ss:$16 sps:$4 sm:$0xff]   ;;  %v9866_v2 = vld [vmem:[#allocation14 + $0x4c4] ss:$16 sps:$4 sm:$0xff]  }
 0x458   : > { %13206 = vst [vmem:[#allocation39_spill] sm:$0xff] %v11745_v17  ;;  %13207 = vst [vmem:[#allocation40_spill] sm:$0xff] %v11747_v32  ;;  %6183 = vmatpush2.bf16.msra.mxu0 %v9831_v37  ;;  %v11757_v17 = vpack.c.bf16 %v4415_v0, %v4407_v27  ;;  %v3662_v37 = vadd.f32 %v11617_v5, %v3549_v46  ;;  %v4431_v5 = vmax.f32 %v3666_v53, 0.0 }
 0x459   : > { %v11752_v7 = vpop.f32.mrf.mxu0  ;;  %v11754_v58 = vpop.f32.mrf.mxu1  ;;  %6184 = vmatprep.subr.bf16.mxu0 %v9839_v54  ;;  %v9843_v54 = vld [vmem:[#allocation14 + $0x100] ss:$16 sps:$4 sm:$0xff]   ;;  %v11784_v36 = vpack.c.bf16 %v4414_v29, %v4406_v47  ;;  %v3664_v53 = vadd.f32 %v11622_v28, %v3551_v41  ;;  %v3561_v41 = vadd.f32 %v11640_v10, %v11724_v60  ;;  %v9869_v47 = vld [vmem:[#allocation14 + $0x4a4] ss:$16 sps:$4 sm:$0xff]  }
 0x45a   : > { %13208 = vst [vmem:[#allocation41_spill] sm:$0xff] %v11757_v17  ;;  %6296 = vmatpush2.bf16.msra.mxu1 %v9852_v55  ;;  %v9858_v55 = vld [vmem:[#allocation14 + $0x300] ss:$16 sps:$4 sm:$0xff]   ;;  %v4423_v46 = vmax.f32 %v3662_v37, 0.0 }
 0x45b   : > { %v11760_v32 = vpop.f32.mrf.mxu0  ;;  %v11762_v59 = vpop.f32.mrf.mxu1  ;;  %4283 = vmatmul.mubr.bf16.gmra.mxu0 %v11514_v8  ;;  %6297 = vmatprep.subr.bf16.mxu1 %v9857_v4  ;;  %v3547_v4 = vadd.f32 %v11608_v15, %v11724_v60  ;;  %v13211_v28 = vld [vmem:[#allocation32_spill] sm:$0xff] }
 0x45c   : > { %6185 = vmatpush2.bf16.msra.mxu0 %v9837_v63  ;;  %6188 = vmatprep.mubr.bf16.mxu0 %v11757_v17  ;;  %v9861_v63 = vld [vmem:[#allocation14 + $0x4e0] ss:$16 sps:$4 sm:$0xff]   ;;  %v11792_v49 = vpack.c.bf16 %v4431_v5, %v4423_v46  ;;  %v13210_v17 = vld [vmem:[#allocation31_spill] sm:$0xff]  ;;  %v4430_v5 = vmax.f32 %v3664_v53, 0.0  ;;  %v3674_v53 = vadd.f32 %v11642_v22, %v3561_v41  ;;  %v9872_v22 = vld [vmem:[#allocation14 + $0x484] ss:$16 sps:$4 sm:$0xff]  }
 0x45d   : > { %4396 = vmatmul.mubr.bf16.gmra.mxu1 %v11516_v12  ;;  %v11772_v0 = vpop.f32.mrf.mxu0  ;;  %v11774_v8 = vpop.f32.mrf.mxu1  ;;  %6186 = vmatprep.subr.bf16.mxu0 %v9845_v52  ;;  %v9911_v12 = vld [vmem:[#allocation14 + $0x6e4] ss:$16 sps:$4 sm:$0xff]   ;;  %v3676_v52 = vadd.f32 %v11646_v23, %v3563_v34  ;;  %v3660_v37 = vadd.f32 %v11610_v26, %v3547_v4  ;;  %v11802_v23 = vrot.slane %v11691_v40, %v13211_v28  ;;  %v9867_v28 = vld [vmem:[#allocation14 + $0x4a0] ss:$16 sps:$4 sm:$0xff]  }
 0x45e   : > { %6298 = vmatpush2.bf16.msra.mxu1 %v9855_v39  ;;  %13209 = vst [vmem:[#allocation42_spill] sm:$0xff] %v11792_v49  ;;  %v3557_v26 = vadd.f32 %v11628_v50, %v11724_v60  ;;  %v3573_v4 = vadd.f32 %v11664_v43, %v11700_v9  ;;  %v3569_v50 = vadd.f32 %v11655_v45, %v11700_v9 }
 0x45f   : > { %v11780_v27 = vpop.f32.mrf.mxu0  ;;  %v11782_v42 = vpop.f32.mrf.mxu1  ;;  %6299 = vmatprep.subr.bf16.mxu1 %v9860_v14  ;;  %v11796_v14 = vrot.slane %v11691_v40, %v13210_v17  ;;  %v4422_v10 = vmax.f32 %v3660_v37, 0.0  ;;  %v3571_v37 = vadd.f32 %v11660_v18, %v11724_v60  ;;  %v4446_v18 = vmax.f32 %v3674_v53, 0.0 }
 0x460   : > { %6187 = vmatpush2.bf16.msra.mxu0 %v9843_v54  ;;  %v3672_v54 = vadd.f32 %v11637_v61, %v3559_v3  ;;  %v4447_v61 = vmax.f32 %v3676_v52, 0.0  ;;  %v3670_v43 = vadd.f32 %v11630_v19, %v3557_v26  ;;  %v3686_v41 = vadd.f32 %v11666_v21, %v3573_v4  ;;  %v9870_v21 = vld [vmem:[#allocation14 + $0x480] ss:$16 sps:$4 sm:$0xff]  }
 0x461   : > { %v11788_v39 = vpop.f32.mrf.mxu0  ;;  %v11790_v15 = vpop.f32.mrf.mxu1  ;;  %6382 = vmatprep.subr.bf16.mxu0 %v9863_v11  ;;  %v9864_v11 = vld [vmem:[#allocation14 + $0x4c0] ss:$16 sps:$4 sm:$0xff]   ;;  %v3682_v26 = vadd.f32 %v11657_v62, %v3569_v50 }
 0x462   : > { %6300 = vmatpush2.bf16.msra.mxu1 %v9858_v55  ;;  %v4439_v46 = vmax.f32 %v3672_v54, 0.0  ;;  %v4438_v4 = vmax.f32 %v3670_v43, 0.0 }
 0x463   : > { %v3762_v29 = vpop.f32.mrf.mxu0  ;;  %6189 = vmatmul.mubr.bf16.vlgmr.msra.gmra.mxu0 %v11784_v36  ;;  %6495 = vmatprep.subr.bf16.mxu1 %v9911_v12 }
 0x464   : > { %v3875_v34 = vpop.f32.mrf.mxu1  ;;  %6198 = vmatprep.mubr.bf16.mxu0 %v11792_v49  ;;  %6383 = vmatpush1.bf16.msra.mxu0 %v9861_v63  ;;  %v3763_v17 = vadd.f32 %v3762_v29, %v11802_v23  ;;  %v11818_v49 = vpack.c.bf16 %v4430_v5, %v4422_v10  ;;  %v11823_v29 = vpack.c.bf16 %v4447_v61, %v4439_v46  ;;  %v4463_v46 = vmax.f32 %v3686_v41, 0.0 }
 0x465   : > { %v3764_v55 = vpop.f32.mrf.mxu0  ;;  %6384 = vmatprep.subr.bf16.mxu0 %v9866_v2  ;;  %v3567_v5 = vadd.f32 %v11648_v57, %v11724_v60 }
 0x466   : > { %v3765_v3 = vadd.f32 %v3764_v55, %v11796_v14  ;;  %v3877_v12 = vpop.f32.mrf.mxu1  ;;  %v3876_v10 = vadd.f32 %v3875_v34, %v3763_v17  ;;  %v9875_v34 = vld [vmem:[#allocation14 + $0x464] ss:$16 sps:$4 sm:$0xff]  }
 0x467   : > { %v3766_v63 = vpop.f32.mrf.mxu0 }
 0x468   : > { %v3767_v52 = vadd.f32 %v3766_v63, %v11802_v23  ;;  %v3879_v2 = vpop.f32.mrf.mxu1  ;;  %6385 = vmatpush1.bf16.msra.mxu0 %v9864_v11  ;;  %v3878_v45 = vadd.f32 %v3877_v12, %v3765_v3  ;;  %v3684_v3 = vadd.f32 %v11662_v24, %v3571_v37  ;;  %v3583_v12 = vadd.f32 %v11684_v48, %v11700_v9 }
 0x469   : > { %v3768_v54 = vpop.f32.mrf.mxu0  ;;  %6386 = vmatprep.subr.bf16.mxu0 %v9869_v47  ;;  %v4408_v43 = vmax.f32 %v3876_v10, 0.0  ;;  %v11840_v48 = vpack.c.bf16 %v4446_v18, %v4438_v4  ;;  %v9878_v10 = vld [vmem:[#allocation14 + $0x444] ss:$16 sps:$4 sm:$0xff]  }
 0x46a   : > { %v3880_v55 = vadd.f32 %v3879_v2, %v3767_v52  ;;  %v3769_v63 = vadd.f32 %v3768_v54, %v11796_v14  ;;  %v3881_v11 = vpop.f32.mrf.mxu1  ;;  %v4409_v53 = vmax.f32 %v3878_v45, 0.0  ;;  %v3680_v2 = vadd.f32 %v11650_v16, %v3567_v5 }
 0x46b   : > { %v3772_v19 = vpop.f32.mrf.mxu0  ;;  %6199 = vmatmul.mubr.bf16.gmra.mxu0 %v11818_v49  ;;  %v4455_v54 = vmax.f32 %v3682_v26, 0.0  ;;  %v3577_v16 = vadd.f32 %v11668_v6, %v11724_v60 }
 0x46c   : > { %v3882_v61 = vadd.f32 %v3881_v11, %v3769_v63  ;;  %v3885_v47 = vpop.f32.mrf.mxu1  ;;  %6208 = vmatprep.mubr.bf16.mxu0 %v11823_v29  ;;  %6387 = vmatpush1.bf16.msra.mxu0 %v9867_v28  ;;  %v4416_v57 = vmax.f32 %v3880_v55, 0.0  ;;  %v3579_v28 = vadd.f32 %v11675_v56, %v11700_v9  ;;  %v3773_v24 = vadd.f32 %v3772_v19, %v11802_v23  ;;  %v9873_v55 = vld [vmem:[#allocation14 + $0x460] ss:$16 sps:$4 sm:$0xff]  }
 0x46d   : > { %v3774_v17 = vpop.f32.mrf.mxu0  ;;  %6388 = vmatprep.subr.bf16.mxu0 %v9872_v22  ;;  %v4462_v63 = vmax.f32 %v3684_v3, 0.0  ;;  %v3696_v56 = vadd.f32 %v11686_v20, %v3583_v12  ;;  %v9909_v19 = vld [vmem:[#allocation14 + $0x6e0] ss:$16 sps:$4 sm:$0xff]   ;;  %v9917_v3 = vld [vmem:[#allocation14 + $0x6c4] ss:$16 sps:$4 sm:$0xff]  }
 0x46e   : > { %v4417_v52 = vmax.f32 %v3882_v61, 0.0  ;;  %v3775_v62 = vadd.f32 %v3774_v17, %v11796_v14  ;;  %v3887_v50 = vpop.f32.mrf.mxu1  ;;  %v11848_v11 = vpack.c.bf16 %v4416_v57, %v4408_v43  ;;  %v4454_v17 = vmax.f32 %v3680_v2, 0.0  ;;  %v9881_v2 = vld [vmem:[#allocation14 + $0x424] ss:$16 sps:$4 sm:$0xff]  }
 0x46f   : > { %v3776_v37 = vpop.f32.mrf.mxu0  ;;  %v3692_v6 = vadd.f32 %v11677_v35, %v3579_v28  ;;  %v3886_v20 = vadd.f32 %v3885_v47, %v3773_v24  ;;  %v3581_v57 = vadd.f32 %v11680_v33, %v11724_v60  ;;  %v3593_v35 = vadd.f32 %v11717_v13, %v11700_v9  ;;  %v9915_v28 = vld [vmem:[#allocation14 + $0x6c0] ss:$16 sps:$4 sm:$0xff]  }
 0x470   : > { %v3777_v22 = vadd.f32 %v3776_v37, %v11802_v23  ;;  %v3889_v41 = vpop.f32.mrf.mxu1  ;;  %v11843_v45 = vpack.c.bf16 %v4417_v52, %v4409_v53  ;;  %6389 = vmatpush1.bf16.msra.mxu0 %v9870_v21  ;;  %v3888_v18 = vadd.f32 %v3887_v50, %v3775_v62  ;;  %v11852_v21 = vpack.c.bf16 %v4463_v46, %v4455_v54  ;;  %v9876_v46 = vld [vmem:[#allocation14 + $0x440] ss:$16 sps:$4 sm:$0xff]  }
 0x471   : > { %v3778_v5 = vpop.f32.mrf.mxu0  ;;  %6390 = vmatprep.subr.bf16.mxu0 %v9875_v34  ;;  %v11860_v52 = vpack.c.bf16 %v4462_v63, %v4454_v17  ;;  %v4479_v62 = vmax.f32 %v3696_v56, 0.0  ;;  %v11865_v33 = vadd.f32 %v11670_v30, %v3577_v16  ;;  %v3589_v13 = vadd.f32 %v11704_v51, %v11700_v9  ;;  %v13212_v30 = vld [vmem:[#allocation36_spill] sm:$0xff] }
 0x472   : > { %v3890_v26 = vadd.f32 %v3889_v41, %v3777_v22  ;;  %v3779_v61 = vadd.f32 %v3778_v5, %v11796_v14  ;;  %v3891_v4 = vpop.f32.mrf.mxu1  ;;  %6301 = vmatprep.mubr.bf16.mxu1 %v11843_v45  ;;  %v4425_v43 = vmax.f32 %v3888_v18, 0.0  ;;  %v9923_v22 = vld [vmem:[#allocation14 + $0x6a4] ss:$16 sps:$4 sm:$0xff]   ;;  %v4471_v41 = vmax.f32 %v3692_v6, 0.0 }
 0x473   : > { %v3782_v12 = vpop.f32.mrf.mxu0  ;;  %6209 = vmatmul.mubr.bf16.gmra.mxu0 %v11840_v48  ;;  %6302 = vmatmul.mubr.bf16.vlgmr.msra.gmra.mxu1 %v11848_v11  ;;  %v3694_v5 = vadd.f32 %v11682_v31, %v3581_v57  ;;  %v3591_v16 = vadd.f32 %v13212_v30, %v11724_v60  ;;  %v9884_v17 = vld [vmem:[#allocation14 + $0x404] ss:$16 sps:$4 sm:$0xff]   ;;  %v9921_v31 = vld [vmem:[#allocation14 + $0x6a0] ss:$16 sps:$4 sm:$0xff]  }
 0x474   : > { %v3892_v34 = vadd.f32 %v3891_v4, %v3779_v61  ;;  %v3895_v53 = vpop.f32.mrf.mxu1  ;;  %6218 = vmatprep.mubr.bf16.mxu0 %v11852_v21  ;;  %6391 = vmatpush1.bf16.msra.mxu0 %v9873_v55  ;;  %v4432_v47 = vmax.f32 %v3890_v26, 0.0  ;;  %v4424_v55 = vmax.f32 %v3886_v20, 0.0  ;;  %v3783_v63 = vadd.f32 %v3782_v12, %v11802_v23  ;;  %v9879_v26 = vld [vmem:[#allocation14 + $0x420] ss:$16 sps:$4 sm:$0xff]  }
 0x475   : > { %v3784_v50 = vpop.f32.mrf.mxu0  ;;  %6392 = vmatprep.subr.bf16.mxu0 %v9878_v10  ;;  %6496 = vmatpush1.bf16.msra.mxu1 %v9909_v19  ;;  %v3706_v61 = vadd.f32 %v11719_v25, %v3593_v35 }
 0x476   : > { %v4433_v24 = vmax.f32 %v3892_v34, 0.0  ;;  %v3785_v37 = vadd.f32 %v3784_v50, %v11796_v14  ;;  %v3897_v54 = vpop.f32.mrf.mxu1  ;;  %6497 = vmatprep.subr.bf16.mxu1 %v9917_v3  ;;  %v11878_v4 = vpack.c.bf16 %v4432_v47, %v4424_v55  ;;  %v11880_v3 = vpack.c.bf16 %v4479_v62, %v4471_v41  ;;  %v9929_v34 = vld [vmem:[#allocation14 + $0x684] ss:$16 sps:$4 sm:$0xff]   ;;  %v13214_v50 = vld [vmem:[#allocation33_spill] sm:$0xff]  ;;  %v9927_v55 = vld [vmem:[#allocation14 + $0x680] ss:$16 sps:$4 sm:$0xff]  }
 0x477   : > { %v3786_v56 = vpop.f32.mrf.mxu0  ;;  %v3896_v35 = vadd.f32 %v3895_v53, %v3783_v63  ;;  %v4478_v62 = vmax.f32 %v3694_v5, 0.0  ;;  %v3603_v53 = vadd.f32 %v11752_v7, %v11700_v9  ;;  %v13215_v63 = vld [vmem:[#allocation37_spill] sm:$0xff] }
 0x478   : > { %v3787_v10 = vadd.f32 %v3786_v56, %v11802_v23  ;;  %v3899_v19 = vpop.f32.mrf.mxu1  ;;  %v11875_v18 = vpack.c.bf16 %v4433_v24, %v4425_v43  ;;  %6393 = vmatpush1.bf16.msra.mxu0 %v9876_v46  ;;  %v3898_v6 = vadd.f32 %v3897_v54, %v3785_v37  ;;  %v13213_v46 = vld [vmem:[#allocation35_spill] sm:$0xff]  ;;  %v9882_v24 = vld [vmem:[#allocation14 + $0x400] ss:$16 sps:$4 sm:$0xff]   ;;  %v9887_v37 = vld [vmem:[#allocation14 + $0x5e4] ss:$16 sps:$4 sm:$0xff]   ;;  %v4470_v54 = vmax.f32 %v11865_v33, 0.0 }
 0x479   : > { %v3788_v51 = vpop.f32.mrf.mxu0  ;;  %6394 = vmatprep.subr.bf16.mxu0 %v9881_v2  ;;  %6498 = vmatpush1.bf16.msra.mxu1 %v9915_v28  ;;  %v3702_v25 = vadd.f32 %v13213_v46, %v3589_v13  ;;  %v3587_v2 = vadd.f32 %v13214_v50, %v11724_v60  ;;  %v3704_v56 = vadd.f32 %v13215_v63, %v3591_v16 }
 0x47a   : > { %v3900_v20 = vadd.f32 %v3899_v19, %v3787_v10  ;;  %v3789_v12 = vadd.f32 %v3788_v51, %v11796_v14  ;;  %v3901_v57 = vpop.f32.mrf.mxu1  ;;  %6311 = vmatprep.mubr.bf16.mxu1 %v11875_v18  ;;  %6499 = vmatprep.subr.bf16.mxu1 %v9923_v22  ;;  %v4495_v22 = vmax.f32 %v3706_v61, 0.0  ;;  %v4441_v5 = vmax.f32 %v3898_v6, 0.0 }
 0x47b   : > { %v3792_v47 = vpop.f32.mrf.mxu0  ;;  %6219 = vmatmul.mubr.bf16.gmra.mxu0 %v11860_v52  ;;  %6312 = vmatmul.mubr.bf16.gmra.mxu1 %v11878_v4  ;;  %v4487_v51 = vmax.f32 %v3702_v25, 0.0  ;;  %v3599_v33 = vadd.f32 %v11736_v38, %v11700_v9  ;;  %v4440_v61 = vmax.f32 %v3896_v35, 0.0  ;;  %v3716_v46 = vadd.f32 %v11754_v58, %v3603_v53 }
 0x47c   : > { %v3902_v28 = vadd.f32 %v3901_v57, %v3789_v12  ;;  %v3905_v43 = vpop.f32.mrf.mxu1  ;;  %6228 = vmatprep.mubr.bf16.mxu0 %v11880_v3  ;;  %6395 = vmatpush1.bf16.msra.mxu0 %v9879_v26  ;;  %v4448_v41 = vmax.f32 %v3900_v20, 0.0  ;;  %v9935_v26 = vld [vmem:[#allocation14 + $0x664] ss:$16 sps:$4 sm:$0xff]   ;;  %v3793_v7 = vadd.f32 %v3792_v47, %v11802_v23  ;;  %v4494_v50 = vmax.f32 %v3704_v56, 0.0 }
 0x47d   : > { %v3794_v13 = vpop.f32.mrf.mxu0  ;;  %6396 = vmatprep.subr.bf16.mxu0 %v9884_v17  ;;  %6500 = vmatpush1.bf16.msra.mxu1 %v9921_v31  ;;  %v11898_v17 = vpack.c.bf16 %v4478_v62, %v4470_v54  ;;  %v13216_v31 = vld [vmem:[#allocation34_spill] sm:$0xff]  ;;  %v11907_v35 = vpack.c.bf16 %v4495_v22, %v4487_v51  ;;  %v3712_v58 = vadd.f32 %v11738_v44, %v3599_v33  ;;  %v4511_v44 = vmax.f32 %v3716_v46, 0.0 }
 0x47e   : > { %v4449_v30 = vmax.f32 %v3902_v28, 0.0  ;;  %v3795_v10 = vadd.f32 %v3794_v13, %v11796_v14  ;;  %v3907_v19 = vpop.f32.mrf.mxu1  ;;  %6501 = vmatprep.subr.bf16.mxu1 %v9929_v34  ;;  %v3700_v12 = vadd.f32 %v13216_v31, %v3587_v2  ;;  %v9885_v34 = vld [vmem:[#allocation14 + $0x5e0] ss:$16 sps:$4 sm:$0xff]   ;;  %v11905_v25 = vpack.c.bf16 %v4448_v41, %v4440_v61  ;;  %v9890_v47 = vld [vmem:[#allocation14 + $0x5c4] ss:$16 sps:$4 sm:$0xff]  }
 0x47f   : > { %v3796_v20 = vpop.f32.mrf.mxu0  ;;  %v9933_v62 = vld [vmem:[#allocation14 + $0x660] ss:$16 sps:$4 sm:$0xff]   ;;  %v3906_v53 = vadd.f32 %v3905_v43, %v3793_v7  ;;  %v3597_v22 = vadd.f32 %v11726_v1, %v11724_v60  ;;  %v3613_v43 = vadd.f32 %v11788_v39, %v11700_v9  ;;  %v9947_v31 = vld [vmem:[#allocation14 + $0x624] ss:$16 sps:$4 sm:$0xff]  }
 0x480   : > { %v3797_v16 = vadd.f32 %v3796_v20, %v11802_v23  ;;  %v3909_v6 = vpop.f32.mrf.mxu1  ;;  %v11902_v57 = vpack.c.bf16 %v4449_v30, %v4441_v5  ;;  %6397 = vmatpush1.bf16.msra.mxu0 %v9882_v24  ;;  %v3908_v2 = vadd.f32 %v3907_v19, %v3795_v10  ;;  %v9941_v24 = vld [vmem:[#allocation14 + $0x644] ss:$16 sps:$4 sm:$0xff]   ;;  %v9888_v30 = vld [vmem:[#allocation14 + $0x5c0] ss:$16 sps:$4 sm:$0xff]  }
 0x481   : > { %v3798_v38 = vpop.f32.mrf.mxu0  ;;  %6398 = vmatprep.subr.bf16.mxu0 %v9887_v37  ;;  %6502 = vmatpush1.bf16.msra.mxu1 %v9927_v55  ;;  %v4486_v37 = vmax.f32 %v3700_v12, 0.0  ;;  %v13217_v55 = vld [vmem:[#allocation39_spill] sm:$0xff]  ;;  %v9939_v51 = vld [vmem:[#allocation14 + $0x640] ss:$16 sps:$4 sm:$0xff]   ;;  %v4503_v12 = vmax.f32 %v3712_v58, 0.0  ;;  %v4456_v39 = vmax.f32 %v3906_v53, 0.0 }
 0x482   : > { %v3910_v28 = vadd.f32 %v3909_v6, %v3797_v16  ;;  %v3799_v54 = vadd.f32 %v3798_v38, %v11796_v14  ;;  %v3911_v13 = vpop.f32.mrf.mxu1  ;;  %6321 = vmatprep.mubr.bf16.mxu1 %v11902_v57  ;;  %6503 = vmatprep.subr.bf16.mxu1 %v9935_v26  ;;  %v3601_v63 = vadd.f32 %v13217_v55, %v11724_v60  ;;  %v9893_v26 = vld [vmem:[#allocation14 + $0x5a4] ss:$16 sps:$4 sm:$0xff]   ;;  %v4457_v33 = vmax.f32 %v3908_v2, 0.0  ;;  %v9945_v53 = vld [vmem:[#allocation14 + $0x620] ss:$16 sps:$4 sm:$0xff]  }
 0x483   : > { %v3802_v41 = vpop.f32.mrf.mxu0  ;;  %6229 = vmatmul.mubr.bf16.gmra.mxu0 %v11898_v17  ;;  %6322 = vmatmul.mubr.bf16.gmra.mxu1 %v11905_v25  ;;  %v11921_v1 = vpack.c.bf16 %v4494_v50, %v4486_v37  ;;  %v3609_v16 = vadd.f32 %v11772_v0, %v11700_v9  ;;  %v13218_v46 = vld [vmem:[#allocation38_spill] sm:$0xff]  ;;  %v11935_v0 = vpack.c.bf16 %v4511_v44, %v4503_v12 }
 0x484   : > { %v3912_v56 = vadd.f32 %v3911_v13, %v3799_v54  ;;  %v3915_v5 = vpop.f32.mrf.mxu1  ;;  %6238 = vmatprep.mubr.bf16.mxu0 %v11907_v35  ;;  %6399 = vmatpush2.bf16.msra.mxu0 %v9885_v34  ;;  %v4464_v10 = vmax.f32 %v3910_v28, 0.0  ;;  %v3803_v6 = vadd.f32 %v3802_v41, %v11802_v23  ;;  %v3710_v38 = vadd.f32 %v13218_v46, %v3597_v22  ;;  %v9891_v54 = vld [vmem:[#allocation14 + $0x5a0] ss:$16 sps:$4 sm:$0xff]   ;;  %v9896_v58 = vld [vmem:[#allocation14 + $0x584] ss:$16 sps:$4 sm:$0xff]  }
 0x485   : > { %v3804_v19 = vpop.f32.mrf.mxu0  ;;  %6400 = vmatprep.subr.bf16.mxu0 %v9890_v47  ;;  %6504 = vmatpush1.bf16.msra.mxu1 %v9933_v62  ;;  %v13219_v47 = vld [vmem:[#allocation40_spill] sm:$0xff]  ;;  %v3726_v13 = vadd.f32 %v11790_v15, %v3613_v43  ;;  %v3722_v15 = vadd.f32 %v11774_v8, %v3609_v16 }
 0x486   : > { %v4465_v61 = vmax.f32 %v3912_v56, 0.0  ;;  %v3805_v7 = vadd.f32 %v3804_v19, %v11796_v14  ;;  %v3917_v20 = vpop.f32.mrf.mxu1  ;;  %6505 = vmatprep.subr.bf16.mxu1 %v9941_v24  ;;  %v3714_v62 = vadd.f32 %v13219_v47, %v3601_v63  ;;  %v11933_v24 = vpack.c.bf16 %v4464_v10, %v4456_v39  ;;  %v9953_v63 = vld [vmem:[#allocation14 + $0x604] ss:$16 sps:$4 sm:$0xff]   ;;  %v9894_v19 = vld [vmem:[#allocation14 + $0x580] ss:$16 sps:$4 sm:$0xff]  }
 0x487   : > { %v3806_v34 = vpop.f32.mrf.mxu0  ;;  %v3916_v56 = vadd.f32 %v3915_v5, %v3803_v6  ;;  %v9899_v8 = vld [vmem:[#allocation14 + $0x564] ss:$16 sps:$4 sm:$0xff]   ;;  %v9951_v5 = vld [vmem:[#allocation14 + $0x600] ss:$16 sps:$4 sm:$0xff]   ;;  %v3607_v6 = vadd.f32 %v11760_v32, %v11724_v60 }
 0x488   : > { %v3807_v50 = vadd.f32 %v3806_v34, %v11802_v23  ;;  %v3919_v2 = vpop.f32.mrf.mxu1  ;;  %v11930_v28 = vpack.c.bf16 %v4465_v61, %v4457_v33  ;;  %6401 = vmatpush2.bf16.msra.mxu0 %v9888_v30  ;;  %v3918_v41 = vadd.f32 %v3917_v20, %v3805_v7  ;;  %v4510_v44 = vmax.f32 %v3714_v62, 0.0  ;;  %v9959_v39 = vld [vmem:[#allocation14 + $0x7e4] ss:$16 sps:$4 sm:$0xff]  }
 0x489   : > { %v3808_v9 = vpop.f32.mrf.mxu0  ;;  %6402 = vmatprep.subr.bf16.mxu0 %v9893_v26  ;;  %6506 = vmatpush1.bf16.msra.mxu1 %v9939_v51  ;;  %v3611_v26 = vadd.f32 %v11780_v27, %v11724_v60  ;;  %v4527_v51 = vmax.f32 %v3726_v13, 0.0  ;;  %v4502_v7 = vmax.f32 %v3710_v38, 0.0  ;;  %v4519_v34 = vmax.f32 %v3722_v15, 0.0  ;;  %v9902_v32 = vld [vmem:[#allocation14 + $0x544] ss:$16 sps:$4 sm:$0xff]  }
 0x48a   : > { %v3920_v37 = vadd.f32 %v3919_v2, %v3807_v50  ;;  %v3809_v22 = vadd.f32 %v3808_v9, %v11796_v14  ;;  %v3921_v55 = vpop.f32.mrf.mxu1  ;;  %6331 = vmatprep.mubr.bf16.mxu1 %v11930_v28  ;;  %6507 = vmatprep.subr.bf16.mxu1 %v9947_v31  ;;  %v4473_v20 = vmax.f32 %v3918_v41, 0.0  ;;  %v4472_v27 = vmax.f32 %v3916_v56, 0.0 }
 0x48b   : > { %v3812_v30 = vpop.f32.mrf.mxu0  ;;  %6239 = vmatmul.mubr.bf16.gmra.mxu0 %v11921_v1  ;;  %6332 = vmatmul.mubr.bf16.gmra.mxu1 %v11933_v24  ;;  %v11949_v62 = vpack.c.bf16 %v4510_v44, %v4502_v7  ;;  %v3724_v13 = vadd.f32 %v11782_v42, %v3611_v26  ;;  %v11957_v60 = vpack.c.bf16 %v4527_v51, %v4519_v34  ;;  %v9971_v7 = vld [vmem:[#allocation14 + $0x7a4] ss:$16 sps:$4 sm:$0xff]  }
 0x48c   : > { %v3922_v43 = vadd.f32 %v3921_v55, %v3809_v22  ;;  %v3925_v10 = vpop.f32.mrf.mxu1  ;;  %6248 = vmatprep.mubr.bf16.mxu0 %v11935_v0  ;;  %6403 = vmatpush2.bf16.msra.mxu0 %v9891_v54  ;;  %v4480_v33 = vmax.f32 %v3920_v37, 0.0  ;;  %v3813_v46 = vadd.f32 %v3812_v30, %v11802_v23  ;;  %v9897_v54 = vld [vmem:[#allocation14 + $0x560] ss:$16 sps:$4 sm:$0xff]   ;;  %v3720_v42 = vadd.f32 %v11762_v59, %v3607_v6 }
 0x48d   : > { %v3814_v61 = vpop.f32.mrf.mxu0  ;;  %6404 = vmatprep.subr.bf16.mxu0 %v9896_v58  ;;  %6508 = vmatpush1.bf16.msra.mxu1 %v9945_v53  ;;  %v9957_v53 = vld [vmem:[#allocation14 + $0x7e0] ss:$16 sps:$4 sm:$0xff]  }
 0x48e   : > { %v4481_v31 = vmax.f32 %v3922_v43, 0.0  ;;  %v3815_v12 = vadd.f32 %v3814_v61, %v11796_v14  ;;  %v3927_v16 = vpop.f32.mrf.mxu1  ;;  %6509 = vmatprep.subr.bf16.mxu1 %v9953_v63  ;;  %v11955_v9 = vpack.c.bf16 %v4480_v33, %v4472_v27  ;;  %v9965_v63 = vld [vmem:[#allocation14 + $0x7c4] ss:$16 sps:$4 sm:$0xff]   ;;  %v3926_v15 = vadd.f32 %v3925_v10, %v3813_v46  ;;  %v9900_v43 = vld [vmem:[#allocation14 + $0x540] ss:$16 sps:$4 sm:$0xff]  }
 0x48f   : > { %v3816_v47 = vpop.f32.mrf.mxu0  ;;  %v9905_v33 = vld [vmem:[#allocation14 + $0x524] ss:$16 sps:$4 sm:$0xff]   ;;  %v9963_v61 = vld [vmem:[#allocation14 + $0x7c0] ss:$16 sps:$4 sm:$0xff]  }
 0x490   : > { %v3817_v50 = vadd.f32 %v3816_v47, %v11802_v23  ;;  %v3929_v38 = vpop.f32.mrf.mxu1  ;;  %v11952_v2 = vpack.c.bf16 %v4481_v31, %v4473_v20  ;;  %6405 = vmatpush2.bf16.msra.mxu0 %v9894_v19  ;;  %v3928_v41 = vadd.f32 %v3927_v16, %v3815_v12  ;;  %v4526_v19 = vmax.f32 %v3724_v13, 0.0  ;;  %v9903_v27 = vld [vmem:[#allocation14 + $0x520] ss:$16 sps:$4 sm:$0xff]  }
 0x491   : > { %v3818_v58 = vpop.f32.mrf.mxu0  ;;  %6406 = vmatprep.subr.bf16.mxu0 %v9899_v8  ;;  %6510 = vmatpush1.bf16.msra.mxu1 %v9951_v5  ;;  %v4518_v20 = vmax.f32 %v3720_v42, 0.0  ;;  %v4488_v31 = vmax.f32 %v3926_v15, 0.0  ;;  %v9906_v42 = vld [vmem:[#allocation14 + $0x500] ss:$16 sps:$4 sm:$0xff]  }
 0x492   : > { %v3930_v37 = vadd.f32 %v3929_v38, %v3817_v50  ;;  %v3819_v22 = vadd.f32 %v3818_v58, %v11796_v14  ;;  %v3931_v55 = vpop.f32.mrf.mxu1  ;;  %6341 = vmatprep.mubr.bf16.mxu1 %v11952_v2  ;;  %6511 = vmatprep.subr.bf16.mxu1 %v9959_v39  ;;  %v4489_v59 = vmax.f32 %v3928_v41, 0.0  ;;  %v9908_v38 = vld [vmem:[#allocation14 + $0x504] ss:$16 sps:$4 sm:$0xff]  }
 0x493   : > { %v3822_v56 = vpop.f32.mrf.mxu0  ;;  %6249 = vmatmul.mubr.bf16.gmra.mxu0 %v11949_v62  ;;  %6342 = vmatmul.mubr.bf16.gmra.mxu1 %v11955_v9  ;;  %v11970_v46 = vpack.c.bf16 %v4526_v19, %v4518_v20  ;;  %v9977_v41 = vld [vmem:[#allocation14 + $0x784] ss:$16 sps:$4 sm:$0xff]   ;;  %v9914_v19 = vld [vmem:[#allocation14 + $0xec] ss:$16 sps:$4 sm:$0xff]  }
 0x494   : > { %v3932_v30 = vadd.f32 %v3931_v55, %v3819_v22  ;;  %v3935_v44 = vpop.f32.mrf.mxu1  ;;  %6258 = vmatprep.mubr.bf16.mxu0 %v11957_v60  ;;  %6407 = vmatpush2.bf16.msra.mxu0 %v9897_v54  ;;  %v4496_v26 = vmax.f32 %v3930_v37, 0.0  ;;  %v3823_v12 = vadd.f32 %v3822_v56, %v11802_v23  ;;  %v9969_v54 = vld [vmem:[#allocation14 + $0x7a0] ss:$16 sps:$4 sm:$0xff]  }
 0x495   : > { %v3824_v51 = vpop.f32.mrf.mxu0  ;;  %6408 = vmatprep.subr.bf16.mxu0 %v9902_v32  ;;  %6512 = vmatpush2.bf16.msra.mxu1 %v9957_v53 }
 0x496   : > { %v4497_v10 = vmax.f32 %v3932_v30, 0.0  ;;  %v3825_v8 = vadd.f32 %v3824_v51, %v11796_v14  ;;  %v3937_v5 = vpop.f32.mrf.mxu1  ;;  %6513 = vmatprep.subr.bf16.mxu1 %v9965_v63  ;;  %v11972_v47 = vpack.c.bf16 %v4496_v26, %v4488_v31  ;;  %v3936_v37 = vadd.f32 %v3935_v44, %v3823_v12  ;;  %v13220_v30 = vld [vmem:[#allocation28_spill] sm:$0xff] }
 0x497   : > { %v3826_v16 = vpop.f32.mrf.mxu0  ;;  %v9975_v26 = vld [vmem:[#allocation14 + $0x780] ss:$16 sps:$4 sm:$0xff]  }
 0x498   : > { %v3827_v39 = vadd.f32 %v3826_v16, %v11802_v23  ;;  %v3939_v6 = vpop.f32.mrf.mxu1  ;;  %v11968_v34 = vpack.c.bf16 %v4497_v10, %v4489_v59  ;;  %6409 = vmatpush2.bf16.msra.mxu0 %v9900_v43  ;;  %v3938_v13 = vadd.f32 %v3937_v5, %v3825_v8  ;;  %v2204_v43 = vsub.s32 5, %v13220_v30  ;;  %v9983_v59 = vld [vmem:[#allocation14 + $0x764] ss:$16 sps:$4 sm:$0xff]  }
 0x499   : > { %v3828_v50 = vpop.f32.mrf.mxu0  ;;  %6410 = vmatprep.subr.bf16.mxu0 %v9905_v33  ;;  %6514 = vmatpush2.bf16.msra.mxu1 %v9963_v61  ;;  %v4504_v10 = vmax.f32 %v3936_v37, 0.0 }
 0x49a   : > { %v3940_v58 = vadd.f32 %v3939_v6, %v3827_v39  ;;  %v3829_v32 = vadd.f32 %v3828_v50, %v11796_v14  ;;  %v3941_v53 = vpop.f32.mrf.mxu1  ;;  %6351 = vmatprep.mubr.bf16.mxu1 %v11968_v34  ;;  %6515 = vmatprep.subr.bf16.mxu1 %v9971_v7  ;;  %v4505_v51 = vmax.f32 %v3938_v13, 0.0  ;;  %v2200_v7 = vsub.s32 4, %v13220_v30 }
 0x49b   : > { %v3832_v22 = vpop.f32.mrf.mxu0  ;;  %6259 = vmatmul.mubr.bf16.gmra.mxu0 %v11970_v46  ;;  %6352 = vmatmul.mubr.bf16.gmra.mxu1 %v11972_v47  ;;  %v11988_v6 = vrot.slane %v11691_v40, %v2204_v43 }
 0x49c   : > { %v3942_v55 = vadd.f32 %v3941_v53, %v3829_v32  ;;  %v3945_v63 = vpop.f32.mrf.mxu1  ;;  %6411 = vmatpush2.bf16.msra.mxu0 %v9903_v27  ;;  %v4512_v15 = vmax.f32 %v3940_v58, 0.0  ;;  %v3833_v8 = vadd.f32 %v3832_v22, %v11802_v23  ;;  %v9981_v27 = vld [vmem:[#allocation14 + $0x760] ss:$16 sps:$4 sm:$0xff]  }
 0x49d   : > { %v3834_v56 = vpop.f32.mrf.mxu0  ;;  %6412 = vmatprep.subr.bf16.mxu0 %v9908_v38  ;;  %6516 = vmatpush2.bf16.msra.mxu1 %v9969_v54  ;;  %v11995_v32 = vld [vmem:[%s13101_s8] sm:$0xff] }
 0x49e   : > { %v4513_v33 = vmax.f32 %v3942_v55, 0.0  ;;  %v3835_v44 = vadd.f32 %v3834_v56, %v11796_v14  ;;  %v3947_v61 = vpop.f32.mrf.mxu1  ;;  %6517 = vmatprep.subr.bf16.mxu1 %v9977_v41  ;;  %v11985_v16 = vpack.c.bf16 %v4512_v15, %v4504_v10  ;;  %v3946_v58 = vadd.f32 %v3945_v63, %v3833_v8  ;;  %v9987_v55 = vld [vmem:[#allocation14 + $0x740] ss:$16 sps:$4 sm:$0xff]   ;;  %v9995_v56 = vld [vmem:[#allocation14 + $0x724] ss:$16 sps:$4 sm:$0xff]  }
 0x49f   : > { %v3836_v5 = vpop.f32.mrf.mxu0  ;;  %v11998_v40 = vrot.slane %v11995_v32, %v2200_v7  ;;  %v9993_v8 = vld [vmem:[#allocation14 + $0x720] ss:$16 sps:$4 sm:$0xff]  }
 0x4a0   : > { %v3837_v20 = vadd.f32 %v3836_v5, %v11802_v23  ;;  %v3949_v31 = vpop.f32.mrf.mxu1  ;;  %v11983_v12 = vpack.c.bf16 %v4513_v33, %v4505_v51  ;;  %6413 = vmatpush2.bf16.msra.mxu0 %v9906_v42  ;;  %13222 = vst [vmem:[#allocation35_spill] sm:$0xff] %v11985_v16  ;;  %v3948_v50 = vadd.f32 %v3947_v61, %v3835_v44  ;;  %v9989_v23 = vld [vmem:[#allocation14 + $0x744] ss:$16 sps:$4 sm:$0xff]   ;;  %v4520_v43 = vmax.f32 %v3946_v58, 0.0  ;;  %v9999_v58 = vld [vmem:[#allocation14 + $0x700] ss:$16 sps:$4 sm:$0xff]  }
 0x4a1   : > { %v3838_v39 = vpop.f32.mrf.mxu0  ;;  %6608 = vmatprep.subr.bf16.mxu0 %v9914_v19  ;;  %6518 = vmatpush2.bf16.msra.mxu1 %v9975_v26 }
 0x4a2   : > { %13221 = vst [vmem:[#allocation36_spill] sm:$0xff] %v11983_v12  ;;  %v3950_v38 = vadd.f32 %v3949_v31, %v3837_v20  ;;  %v3839_v54 = vadd.f32 %v3838_v39, %v11796_v14  ;;  %v3951_v13 = vpop.f32.mrf.mxu1  ;;  %6361 = vmatprep.mubr.bf16.mxu1 %v11983_v12  ;;  %6519 = vmatprep.subr.bf16.mxu1 %v9983_v59  ;;  %v4521_v42 = vmax.f32 %v3948_v50, 0.0  ;;  %v10001_v31 = vld [vmem:[#allocation14 + $0x704] ss:$16 sps:$4 sm:$0xff]  }
 0x4a3   : > { %v3988_v53 = vpop.f32.mrf.mxu0  ;;  %6362 = vmatmul.mubr.bf16.gmra.mxu1 %v11985_v16 }
 0x4a4   : > { %v3952_v41 = vadd.f32 %v3951_v13, %v3839_v54  ;;  %v4528_v37 = vmax.f32 %v3950_v38, 0.0  ;;  %v3989_v19 = vadd.f32 %v3988_v53, %v11998_v40 }
 0x4a5   : > { %v4101_v14 = vpop.f32.mrf.mxu1  ;;  %v3990_v22 = vpop.f32.mrf.mxu0  ;;  %6520 = vmatpush2.bf16.msra.mxu1 %v9981_v27 }
 0x4a6   : > { %v4529_v15 = vmax.f32 %v3952_v41, 0.0  ;;  %v3991_v63 = vadd.f32 %v3990_v22, %v11988_v6  ;;  %6521 = vmatprep.subr.bf16.mxu1 %v9989_v23  ;;  %v12006_v61 = vpack.c.bf16 %v4528_v37, %v4520_v43  ;;  %v4102_v39 = vadd.f32 %v4101_v14, %v3989_v19  ;;  %v10007_v22 = vld [vmem:[#allocation14 + $0x2ec] ss:$16 sps:$4 sm:$0xff]   ;;  %v9912_v43 = vld [vmem:[#allocation14 + $0xe8] ss:$16 sps:$4 sm:$0xff]  }
 0x4a7   : > { %v4103_v26 = vpop.f32.mrf.mxu1  ;;  %v3992_v51 = vpop.f32.mrf.mxu0 }
 0x4a8   : > { %v3993_v33 = vadd.f32 %v3992_v51, %v11998_v40  ;;  %v12004_v44 = vpack.c.bf16 %v4529_v15, %v4521_v42  ;;  %13224 = vst [vmem:[#allocation37_spill] sm:$0xff] %v12006_v61  ;;  %v4104_v5 = vadd.f32 %v4103_v26, %v3991_v63 }
 0x4a9   : > { %v4105_v59 = vpop.f32.mrf.mxu1  ;;  %v3994_v10 = vpop.f32.mrf.mxu0  ;;  %6522 = vmatpush2.bf16.msra.mxu1 %v9987_v55  ;;  %v4410_v55 = vmax.f32 %v4102_v39, 0.0  ;;  %v9918_v39 = vld [vmem:[#allocation14 + $0xc8] ss:$16 sps:$4 sm:$0xff]  }
 0x4aa   : > { %13223 = vst [vmem:[#allocation33_spill] sm:$0xff] %v12004_v44  ;;  %v4106_v7 = vadd.f32 %v4105_v59, %v3993_v33  ;;  %v3995_v20 = vadd.f32 %v3994_v10, %v11988_v6  ;;  %6371 = vmatprep.mubr.bf16.mxu1 %v12004_v44  ;;  %6523 = vmatprep.subr.bf16.mxu1 %v9995_v56  ;;  %v4411_v53 = vmax.f32 %v4104_v5, 0.0  ;;  %v9920_v33 = vld [vmem:[#allocation14 + $0xcc] ss:$16 sps:$4 sm:$0xff]  }
 0x4ab   : > { %v4107_v27 = vpop.f32.mrf.mxu1  ;;  %v3998_v50 = vpop.f32.mrf.mxu0  ;;  %6372 = vmatmul.mubr.bf16.gmra.mxu1 %v12006_v61 }
 0x4ac   : > { %v4108_v38 = vadd.f32 %v4107_v27, %v3995_v20  ;;  %v4418_v54 = vmax.f32 %v4106_v7, 0.0  ;;  %v3999_v42 = vadd.f32 %v3998_v50, %v11998_v40 }
 0x4ad   : > { %v4111_v13 = vpop.f32.mrf.mxu1  ;;  %v4000_v23 = vpop.f32.mrf.mxu0  ;;  %6524 = vmatpush2.bf16.msra.mxu1 %v9993_v8 }
 0x4ae   : > { %v4419_v41 = vmax.f32 %v4108_v38, 0.0  ;;  %v4001_v37 = vadd.f32 %v4000_v23, %v11988_v6  ;;  %6525 = vmatprep.subr.bf16.mxu1 %v10001_v31  ;;  %v12016_v19 = vpack.c.bf16 %v4418_v54, %v4410_v55  ;;  %v4112_v5 = vadd.f32 %v4111_v13, %v3999_v42  ;;  %v9926_v54 = vld [vmem:[#allocation14 + $0xac] ss:$16 sps:$4 sm:$0xff]  }
 0x4af   : > { %v4113_v14 = vpop.f32.mrf.mxu1  ;;  %v4002_v15 = vpop.f32.mrf.mxu0 }
 0x4b0   : > { %v4003_v63 = vadd.f32 %v4002_v15, %v11998_v40  ;;  %v12014_v56 = vpack.c.bf16 %v4419_v41, %v4411_v53  ;;  %v4114_v59 = vadd.f32 %v4113_v14, %v4001_v37  ;;  %v4426_v41 = vmax.f32 %v4112_v5, 0.0  ;;  %v9924_v14 = vld [vmem:[#allocation14 + $0xa8] ss:$16 sps:$4 sm:$0xff]  }
 0x4b1   : > { %v4115_v26 = vpop.f32.mrf.mxu1  ;;  %v4004_v51 = vpop.f32.mrf.mxu0  ;;  %6526 = vmatpush2.bf16.msra.mxu1 %v9999_v58 }
 0x4b2   : > { %v4116_v10 = vadd.f32 %v4115_v26, %v4003_v63  ;;  %v4005_v8 = vadd.f32 %v4004_v51, %v11988_v6  ;;  %6414 = vmatprep.mubr.bf16.mxu0 %v12014_v56  ;;  %6721 = vmatprep.subr.bf16.mxu1 %v10007_v22  ;;  %v4427_v23 = vmax.f32 %v4114_v59, 0.0  ;;  %v9932_v26 = vld [vmem:[#allocation14 + $0x8c] ss:$16 sps:$4 sm:$0xff]  }
 0x4b3   : > { %v4117_v7 = vpop.f32.mrf.mxu1  ;;  %v4008_v20 = vpop.f32.mrf.mxu0  ;;  %6415 = vmatmul.mubr.bf16.vlgmr.msra.gmra.mxu0 %v12016_v19 }
 0x4b4   : > { %v4118_v31 = vadd.f32 %v4117_v7, %v4005_v8  ;;  %6609 = vmatpush1.bf16.msra.mxu0 %v9912_v43  ;;  %v4434_v27 = vmax.f32 %v4116_v10, 0.0  ;;  %v4009_v37 = vadd.f32 %v4008_v20, %v11998_v40  ;;  %v9930_v20 = vld [vmem:[#allocation14 + $0x88] ss:$16 sps:$4 sm:$0xff]  }
 0x4b5   : > { %v4121_v50 = vpop.f32.mrf.mxu1  ;;  %v4010_v38 = vpop.f32.mrf.mxu0  ;;  %6610 = vmatprep.subr.bf16.mxu0 %v9920_v33 }
 0x4b6   : > { %v4435_v58 = vmax.f32 %v4118_v31, 0.0  ;;  %v4011_v53 = vadd.f32 %v4010_v38, %v11988_v6  ;;  %v12026_v15 = vpack.c.bf16 %v4434_v27, %v4426_v41  ;;  %v4122_v10 = vadd.f32 %v4121_v50, %v4009_v37  ;;  %v9938_v38 = vld [vmem:[#allocation14 + $0x6c] ss:$16 sps:$4 sm:$0xff]  }
 0x4b7   : > { %v4123_v13 = vpop.f32.mrf.mxu1  ;;  %v4012_v22 = vpop.f32.mrf.mxu0 }
 0x4b8   : > { %v4013_v55 = vadd.f32 %v4012_v22, %v11998_v40  ;;  %6611 = vmatpush1.bf16.msra.mxu0 %v9918_v39  ;;  %v12024_v42 = vpack.c.bf16 %v4435_v58, %v4427_v23  ;;  %v4124_v51 = vadd.f32 %v4123_v13, %v4011_v53  ;;  %v4442_v53 = vmax.f32 %v4122_v10, 0.0 }
 0x4b9   : > { %v4125_v63 = vpop.f32.mrf.mxu1  ;;  %v4014_v43 = vpop.f32.mrf.mxu0  ;;  %6612 = vmatprep.subr.bf16.mxu0 %v9926_v54 }
 0x4ba   : > { %v4126_v33 = vadd.f32 %v4125_v63, %v4013_v55  ;;  %v4015_v59 = vadd.f32 %v4014_v43, %v11988_v6  ;;  %6424 = vmatprep.mubr.bf16.mxu0 %v12024_v42  ;;  %v4443_v54 = vmax.f32 %v4124_v51, 0.0  ;;  %v9936_v55 = vld [vmem:[#allocation14 + $0x68] ss:$16 sps:$4 sm:$0xff]  }
 0x4bb   : > { %v4127_v8 = vpop.f32.mrf.mxu1  ;;  %v4018_v5 = vpop.f32.mrf.mxu0  ;;  %6425 = vmatmul.mubr.bf16.gmra.mxu0 %v12026_v15 }
 0x4bc   : > { %v4128_v7 = vadd.f32 %v4127_v8, %v4015_v59  ;;  %6613 = vmatpush1.bf16.msra.mxu0 %v9924_v14  ;;  %v4450_v31 = vmax.f32 %v4126_v33, 0.0  ;;  %v4019_v41 = vadd.f32 %v4018_v5, %v11998_v40 }
 0x4bd   : > { %v4131_v39 = vpop.f32.mrf.mxu1  ;;  %v4020_v27 = vpop.f32.mrf.mxu0  ;;  %6614 = vmatprep.subr.bf16.mxu0 %v9932_v26  ;;  %v9944_v26 = vld [vmem:[#allocation14 + $0x4c] ss:$16 sps:$4 sm:$0xff]  }
 0x4be   : > { %v4451_v23 = vmax.f32 %v4128_v7, 0.0  ;;  %v4021_v58 = vadd.f32 %v4020_v27, %v11988_v6  ;;  %v12036_v14 = vpack.c.bf16 %v4450_v31, %v4442_v53  ;;  %v4132_v10 = vadd.f32 %v4131_v39, %v4019_v41 }
 0x4bf   : > { %v4133_v50 = vpop.f32.mrf.mxu1  ;;  %v4022_v37 = vpop.f32.mrf.mxu0 }
 0x4c0   : > { %v4023_v13 = vadd.f32 %v4022_v37, %v11998_v40  ;;  %6615 = vmatpush1.bf16.msra.mxu0 %v9930_v20  ;;  %v12034_v22 = vpack.c.bf16 %v4451_v23, %v4443_v54  ;;  %v4134_v51 = vadd.f32 %v4133_v50, %v4021_v58  ;;  %v9942_v20 = vld [vmem:[#allocation14 + $0x48] ss:$16 sps:$4 sm:$0xff]   ;;  %v4458_v50 = vmax.f32 %v4132_v10, 0.0 }
 0x4c1   : > { %v4135_v63 = vpop.f32.mrf.mxu1  ;;  %v4024_v43 = vpop.f32.mrf.mxu0  ;;  %6616 = vmatprep.subr.bf16.mxu0 %v9938_v38  ;;  %v9950_v38 = vld [vmem:[#allocation14 + $0x2c] ss:$16 sps:$4 sm:$0xff]  }
 0x4c2   : > { %v4136_v33 = vadd.f32 %v4135_v63, %v4023_v13  ;;  %v4025_v59 = vadd.f32 %v4024_v43, %v11988_v6  ;;  %6434 = vmatprep.mubr.bf16.mxu0 %v12034_v22  ;;  %v4459_v23 = vmax.f32 %v4134_v51, 0.0  ;;  %v9956_v51 = vld [vmem:[#allocation14 + $0xc] ss:$16 sps:$4 sm:$0xff]  }
 0x4c3   : > { %v4137_v8 = vpop.f32.mrf.mxu1  ;;  %v4028_v5 = vpop.f32.mrf.mxu0  ;;  %6435 = vmatmul.mubr.bf16.gmra.mxu0 %v12036_v14 }
 0x4c4   : > { %v4138_v7 = vadd.f32 %v4137_v8, %v4025_v59  ;;  %6617 = vmatpush1.bf16.msra.mxu0 %v9936_v55  ;;  %v4466_v31 = vmax.f32 %v4136_v33, 0.0  ;;  %v4029_v37 = vadd.f32 %v4028_v5, %v11998_v40  ;;  %v9948_v55 = vld [vmem:[#allocation14 + $0x28] ss:$16 sps:$4 sm:$0xff]  }
 0x4c5   : > { %v4141_v27 = vpop.f32.mrf.mxu1  ;;  %v4030_v54 = vpop.f32.mrf.mxu0  ;;  %6618 = vmatprep.subr.bf16.mxu0 %v9944_v26 }
 0x4c6   : > { %v4467_v58 = vmax.f32 %v4138_v7, 0.0  ;;  %v4031_v53 = vadd.f32 %v4030_v54, %v11988_v6  ;;  %v12046_v43 = vpack.c.bf16 %v4466_v31, %v4458_v50  ;;  %v4142_v5 = vadd.f32 %v4141_v27, %v4029_v37 }
 0x4c7   : > { %v4143_v39 = vpop.f32.mrf.mxu1  ;;  %v4032_v41 = vpop.f32.mrf.mxu0 }
 0x4c8   : > { %v4033_v13 = vadd.f32 %v4032_v41, %v11998_v40  ;;  %6619 = vmatpush1.bf16.msra.mxu0 %v9942_v20  ;;  %v12044_v63 = vpack.c.bf16 %v4467_v58, %v4459_v23  ;;  %v4144_v59 = vadd.f32 %v4143_v39, %v4031_v53  ;;  %v9954_v23 = vld [vmem:[#allocation14 + $0x8] ss:$16 sps:$4 sm:$0xff]  }
 0x4c9   : > { %v4145_v33 = vpop.f32.mrf.mxu1  ;;  %v4034_v26 = vpop.f32.mrf.mxu0  ;;  %6620 = vmatprep.subr.bf16.mxu0 %v9950_v38  ;;  %v9962_v38 = vld [vmem:[#allocation14 + $0x1ec] ss:$16 sps:$4 sm:$0xff]  }
 0x4ca   : > { %v4146_v8 = vadd.f32 %v4145_v33, %v4033_v13  ;;  %v4035_v10 = vadd.f32 %v4034_v26, %v11988_v6  ;;  %6444 = vmatprep.mubr.bf16.mxu0 %v12044_v63  ;;  %v4475_v41 = vmax.f32 %v4144_v59, 0.0  ;;  %v4474_v13 = vmax.f32 %v4142_v5, 0.0  ;;  %v9968_v59 = vld [vmem:[#allocation14 + $0x1cc] ss:$16 sps:$4 sm:$0xff]  }
 0x4cb   : > { %v4147_v7 = vpop.f32.mrf.mxu1  ;;  %v4038_v54 = vpop.f32.mrf.mxu0  ;;  %6445 = vmatmul.mubr.bf16.gmra.mxu0 %v12046_v43 }
 0x4cc   : > { %v4148_v20 = vadd.f32 %v4147_v7, %v4035_v10  ;;  %6621 = vmatpush1.bf16.msra.mxu0 %v9948_v55  ;;  %v4482_v31 = vmax.f32 %v4146_v8, 0.0  ;;  %v4039_v33 = vadd.f32 %v4038_v54, %v11998_v40  ;;  %v9960_v55 = vld [vmem:[#allocation14 + $0x1e8] ss:$16 sps:$4 sm:$0xff]  }
 0x4cd   : > { %v4151_v58 = vpop.f32.mrf.mxu1  ;;  %v4040_v50 = vpop.f32.mrf.mxu0  ;;  %6622 = vmatprep.subr.bf16.mxu0 %v9956_v51 }
 0x4ce   : > { %v4483_v53 = vmax.f32 %v4148_v20, 0.0  ;;  %v4041_v39 = vadd.f32 %v4040_v50, %v11988_v6  ;;  %v12056_v8 = vpack.c.bf16 %v4482_v31, %v4474_v13  ;;  %v4152_v54 = vadd.f32 %v4151_v58, %v4039_v33 }
 0x4cf   : > { %v4153_v27 = vpop.f32.mrf.mxu1  ;;  %v4042_v37 = vpop.f32.mrf.mxu0 }
 0x4d0   : > { %v4043_v26 = vadd.f32 %v4042_v37, %v11998_v40  ;;  %6623 = vmatpush1.bf16.msra.mxu0 %v9954_v23  ;;  %v12054_v10 = vpack.c.bf16 %v4483_v53, %v4475_v41  ;;  %v4154_v20 = vadd.f32 %v4153_v27, %v4041_v39  ;;  %v9966_v41 = vld [vmem:[#allocation14 + $0x1c8] ss:$16 sps:$4 sm:$0xff]  }
 0x4d1   : > { %v4155_v7 = vpop.f32.mrf.mxu1  ;;  %v4044_v51 = vpop.f32.mrf.mxu0  ;;  %6624 = vmatprep.subr.bf16.mxu0 %v9962_v38  ;;  %v9974_v38 = vld [vmem:[#allocation14 + $0x1ac] ss:$16 sps:$4 sm:$0xff]  }
 0x4d2   : > { %v4156_v61 = vadd.f32 %v4155_v7, %v4043_v26  ;;  %v4045_v5 = vadd.f32 %v4044_v51, %v11988_v6  ;;  %6454 = vmatprep.mubr.bf16.mxu0 %v12054_v10  ;;  %v4491_v37 = vmax.f32 %v4154_v20, 0.0  ;;  %v4490_v26 = vmax.f32 %v4152_v54, 0.0  ;;  %v9980_v20 = vld [vmem:[#allocation14 + $0x18c] ss:$16 sps:$4 sm:$0xff]  }
 0x4d3   : > { %v4157_v50 = vpop.f32.mrf.mxu1  ;;  %v4048_v44 = vpop.f32.mrf.mxu0  ;;  %6455 = vmatmul.mubr.bf16.gmra.mxu0 %v12056_v8 }
 0x4d4   : > { %v4158_v23 = vadd.f32 %v4157_v50, %v4045_v5  ;;  %6625 = vmatpush2.bf16.msra.mxu0 %v9960_v55  ;;  %v4498_v31 = vmax.f32 %v4156_v61, 0.0  ;;  %v4049_v7 = vadd.f32 %v4048_v44, %v11998_v40  ;;  %v9972_v55 = vld [vmem:[#allocation14 + $0x1a8] ss:$16 sps:$4 sm:$0xff]  }
 0x4d5   : > { %v4161_v53 = vpop.f32.mrf.mxu1  ;;  %v4050_v13 = vpop.f32.mrf.mxu0  ;;  %6626 = vmatprep.subr.bf16.mxu0 %v9968_v59 }
 0x4d6   : > { %v4499_v39 = vmax.f32 %v4158_v23, 0.0  ;;  %v4051_v27 = vadd.f32 %v4050_v13, %v11988_v6  ;;  %v12066_v61 = vpack.c.bf16 %v4498_v31, %v4490_v26  ;;  %v4162_v44 = vadd.f32 %v4161_v53, %v4049_v7 }
 0x4d7   : > { %v4163_v58 = vpop.f32.mrf.mxu1  ;;  %v4052_v33 = vpop.f32.mrf.mxu0 }
 0x4d8   : > { %v4053_v51 = vadd.f32 %v4052_v33, %v11998_v40  ;;  %6627 = vmatpush2.bf16.msra.mxu0 %v9966_v41  ;;  %v12064_v5 = vpack.c.bf16 %v4499_v39, %v4491_v37  ;;  %13225 = vst [vmem:[#allocation34_spill] sm:$0xff] %v12066_v61  ;;  %v4164_v23 = vadd.f32 %v4163_v58, %v4051_v27  ;;  %v9978_v37 = vld [vmem:[#allocation14 + $0x188] ss:$16 sps:$4 sm:$0xff]  }
 0x4d9   : > { %v4165_v50 = vpop.f32.mrf.mxu1  ;;  %v4054_v59 = vpop.f32.mrf.mxu0  ;;  %6628 = vmatprep.subr.bf16.mxu0 %v9974_v38  ;;  %v9986_v38 = vld [vmem:[#allocation14 + $0x16c] ss:$16 sps:$4 sm:$0xff]  }
 0x4da   : > { %v4166_v16 = vadd.f32 %v4165_v50, %v4053_v51  ;;  %v4055_v54 = vadd.f32 %v4054_v59, %v11988_v6  ;;  %6464 = vmatprep.mubr.bf16.mxu0 %v12064_v5  ;;  %v4507_v33 = vmax.f32 %v4164_v23, 0.0  ;;  %v2212_v51 = vsub.s32 7, %v13220_v30 }
 0x4db   : > { %v4167_v13 = vpop.f32.mrf.mxu1  ;;  %v4058_v12 = vpop.f32.mrf.mxu0  ;;  %6465 = vmatmul.mubr.bf16.gmra.mxu0 %v12066_v61  ;;  %v4506_v50 = vmax.f32 %v4162_v44, 0.0 }
 0x4dc   : > { %v4168_v41 = vadd.f32 %v4167_v13, %v4055_v54  ;;  %6629 = vmatpush2.bf16.msra.mxu0 %v9972_v55  ;;  %v4514_v31 = vmax.f32 %v4166_v16, 0.0  ;;  %v4059_v53 = vadd.f32 %v4058_v12, %v11998_v40  ;;  %v2208_v54 = vsub.s32 6, %v13220_v30 }
 0x4dd   : > { %v4171_v39 = vpop.f32.mrf.mxu1  ;;  %v4060_v26 = vpop.f32.mrf.mxu0  ;;  %6630 = vmatprep.subr.bf16.mxu0 %v9980_v20  ;;  %v9984_v20 = vld [vmem:[#allocation14 + $0x168] ss:$16 sps:$4 sm:$0xff]   ;;  %v12083_v30 = vrot.slane %v11995_v32, %v2212_v51 }
 0x4de   : > { %v4515_v27 = vmax.f32 %v4168_v41, 0.0  ;;  %v4061_v58 = vadd.f32 %v4060_v26, %v11988_v6  ;;  %v12078_v13 = vpack.c.bf16 %v4514_v31, %v4506_v50  ;;  %v9992_v26 = vld [vmem:[#allocation14 + $0x14c] ss:$16 sps:$4 sm:$0xff]  }
 0x4df   : > { %v4173_v7 = vpop.f32.mrf.mxu1  ;;  %v4062_v59 = vpop.f32.mrf.mxu0 }
 0x4e0   : > { %v4063_v55 = vadd.f32 %v4062_v59, %v11998_v40  ;;  %6631 = vmatpush2.bf16.msra.mxu0 %v9978_v37  ;;  %v12076_v16 = vpack.c.bf16 %v4515_v27, %v4507_v33  ;;  %13226 = vst [vmem:[#allocation39_spill] sm:$0xff] %v12078_v13  ;;  %v4174_v61 = vadd.f32 %v4173_v7, %v4061_v58 }
 0x4e1   : > { %v4175_v23 = vpop.f32.mrf.mxu1  ;;  %v4064_v41 = vpop.f32.mrf.mxu0  ;;  %6632 = vmatprep.subr.bf16.mxu0 %v9986_v38  ;;  %v4172_v40 = vadd.f32 %v4171_v39, %v4059_v53  ;;  %v12086_v33 = vrot.slane %v11995_v32, %v2208_v54  ;;  %v9990_v38 = vld [vmem:[#allocation14 + $0x148] ss:$16 sps:$4 sm:$0xff]  }
 0x4e2   : > { %v4176_v44 = vadd.f32 %v4175_v23, %v4063_v55  ;;  %v4065_v12 = vadd.f32 %v4064_v41, %v11988_v6  ;;  %6474 = vmatprep.mubr.bf16.mxu0 %v12076_v16  ;;  %v9998_v6 = vld [vmem:[#allocation14 + $0x12c] ss:$16 sps:$4 sm:$0xff]   ;;  %v4523_v59 = vmax.f32 %v4174_v61, 0.0 }
 0x4e3   : > { %v4177_v37 = vpop.f32.mrf.mxu1  ;;  %v4214_v31 = vpop.f32.mrf.mxu0  ;;  %6475 = vmatmul.mubr.bf16.gmra.mxu0 %v12078_v13  ;;  %v4522_v39 = vmax.f32 %v4172_v40, 0.0  ;;  %v10004_v61 = vld [vmem:[#allocation14 + $0x10c] ss:$16 sps:$4 sm:$0xff]  }
 0x4e4   : > { %v4178_v27 = vadd.f32 %v4177_v37, %v4065_v12  ;;  %6633 = vmatpush2.bf16.msra.mxu0 %v9984_v20  ;;  %v4530_v58 = vmax.f32 %v4176_v44, 0.0  ;;  %v4215_v53 = vadd.f32 %v4214_v31, %v12086_v33  ;;  %v9996_v20 = vld [vmem:[#allocation14 + $0x128] ss:$16 sps:$4 sm:$0xff]  }
 0x4e5   : > { %v4327_v50 = vpop.f32.mrf.mxu1  ;;  %v4216_v7 = vpop.f32.mrf.mxu0  ;;  %6634 = vmatprep.subr.bf16.mxu0 %v9992_v26 }
 0x4e6   : > { %v4531_v55 = vmax.f32 %v4178_v27, 0.0  ;;  %v4217_v51 = vadd.f32 %v4216_v7, %v12083_v30  ;;  %v12094_v44 = vpack.c.bf16 %v4530_v58, %v4522_v39  ;;  %v4328_v31 = vadd.f32 %v4327_v50, %v4215_v53  ;;  %v10002_v58 = vld [vmem:[#allocation14 + $0x108] ss:$16 sps:$4 sm:$0xff]  }
 0x4e7   : > { %v4329_v32 = vpop.f32.mrf.mxu1  ;;  %v4218_v54 = vpop.f32.mrf.mxu0 }
 0x4e8   : > { %v4219_v23 = vadd.f32 %v4218_v54, %v12086_v33  ;;  %6635 = vmatpush2.bf16.msra.mxu0 %v9990_v38  ;;  %v12092_v41 = vpack.c.bf16 %v4531_v55, %v4523_v59  ;;  %13228 = vst [vmem:[#allocation40_spill] sm:$0xff] %v12094_v44  ;;  %v4330_v37 = vadd.f32 %v4329_v32, %v4217_v51  ;;  %v13229_v59 = vld [vmem:[#allocation41_spill] sm:$0xff] }
 0x4e9   : > { %v4331_v12 = vpop.f32.mrf.mxu1  ;;  %v4220_v26 = vpop.f32.mrf.mxu0  ;;  %6636 = vmatprep.subr.bf16.mxu0 %v9998_v6  ;;  %v10010_v51 = vld [vmem:[#allocation14 + $0x4ec] ss:$16 sps:$4 sm:$0xff]  }
 0x4ea   : > { %13227 = vst [vmem:[#allocation38_spill] sm:$0xff] %v12092_v41  ;;  %v4332_v27 = vadd.f32 %v4331_v12, %v4219_v23  ;;  %v4221_v40 = vadd.f32 %v4220_v26, %v12083_v30  ;;  %6484 = vmatprep.mubr.bf16.mxu0 %v12092_v41  ;;  %v4413_v32 = vmax.f32 %v4330_v37, 0.0  ;;  %v4412_v12 = vmax.f32 %v4328_v31, 0.0  ;;  %v10013_v37 = vld [vmem:[#allocation14 + $0x2cc] ss:$16 sps:$4 sm:$0xff]  }
 0x4eb   : > { %v4333_v7 = vpop.f32.mrf.mxu1  ;;  %v4224_v13 = vpop.f32.mrf.mxu0  ;;  %6485 = vmatmul.mubr.bf16.gmra.mxu0 %v12094_v44  ;;  %v10008_v44 = vld [vmem:[#allocation14 + $0x4e8] ss:$16 sps:$4 sm:$0xff]  }
 0x4ec   : > { %v4334_v38 = vadd.f32 %v4333_v7, %v4221_v40  ;;  %6637 = vmatpush2.bf16.msra.mxu0 %v9996_v20  ;;  %6640 = vmatprep.mubr.bf16.mxu0 %v13229_v59  ;;  %v4420_v55 = vmax.f32 %v4332_v27, 0.0  ;;  %v4225_v50 = vadd.f32 %v4224_v13, %v12086_v33  ;;  %v10005_v7 = vld [vmem:[#allocation14 + $0x2e8] ss:$16 sps:$4 sm:$0xff]   ;;  %v10016_v13 = vld [vmem:[#allocation14 + $0x4cc] ss:$16 sps:$4 sm:$0xff]  }
 0x4ed   : > { %v4337_v39 = vpop.f32.mrf.mxu1  ;;  %v4226_v6 = vpop.f32.mrf.mxu0  ;;  %6638 = vmatprep.subr.bf16.mxu0 %v10004_v61 }
 0x4ee   : > { %v4421_v54 = vmax.f32 %v4334_v38, 0.0  ;;  %v4227_v23 = vadd.f32 %v4226_v6, %v12083_v30  ;;  %v12105_v27 = vpack.c.bf16 %v4420_v55, %v4412_v12  ;;  %v4338_v41 = vadd.f32 %v4337_v39, %v4225_v50 }
 0x4ef   : > { %v4339_v53 = vpop.f32.mrf.mxu1  ;;  %v4228_v26 = vpop.f32.mrf.mxu0 }
 0x4f0   : > { %v4229_v40 = vadd.f32 %v4228_v26, %v12086_v33  ;;  %6639 = vmatpush2.bf16.msra.mxu0 %v10002_v58  ;;  %v12103_v20 = vpack.c.bf16 %v4421_v54, %v4413_v32  ;;  %13230 = vst [vmem:[#allocation28_spill] sm:$0xff] %v12105_v27  ;;  %v4340_v38 = vadd.f32 %v4339_v53, %v4227_v23  ;;  %v13231_v32 = vld [vmem:[#allocation42_spill] sm:$0xff]  ;;  %v10014_v53 = vld [vmem:[#allocation14 + $0x4c8] ss:$16 sps:$4 sm:$0xff]  }
 0x4f1   : > { %v4341_v59 = vpop.f32.mrf.mxu1  ;;  %v4230_v61 = vpop.f32.mrf.mxu0  ;;  %6834 = vmatprep.subr.bf16.mxu0 %v10010_v51  ;;  %v10011_v51 = vld [vmem:[#allocation14 + $0x2c8] ss:$16 sps:$4 sm:$0xff]  }
 0x4f2   : > { %v4342_v6 = vadd.f32 %v4341_v59, %v4229_v40  ;;  %v4231_v31 = vadd.f32 %v4230_v61, %v12083_v30  ;;  %6527 = vmatprep.mubr.bf16.mxu1 %v12103_v20  ;;  %v10019_v40 = vld [vmem:[#allocation14 + $0x2ac] ss:$16 sps:$4 sm:$0xff]   ;;  %v4429_v59 = vmax.f32 %v4340_v38, 0.0 }
 0x4f3   : > { %v4343_v26 = vpop.f32.mrf.mxu1  ;;  %v4234_v58 = vpop.f32.mrf.mxu0  ;;  %6528 = vmatmul.mubr.bf16.vlgmr.msra.gmra.mxu1 %v12105_v27  ;;  %6641 = vmatmul.mubr.bf16.vlgmr.msra.gmra.mxu0 %v11784_v36  ;;  %v10022_v61 = vld [vmem:[#allocation14 + $0x4ac] ss:$16 sps:$4 sm:$0xff]   ;;  %v4428_v27 = vmax.f32 %v4338_v41, 0.0 }
 0x4f4   : > { %v4344_v55 = vadd.f32 %v4343_v26, %v4231_v31  ;;  %6722 = vmatpush1.bf16.msra.mxu1 %v10005_v7  ;;  %6650 = vmatprep.mubr.bf16.mxu0 %v13231_v32  ;;  %v4436_v54 = vmax.f32 %v4342_v6, 0.0  ;;  %v4235_v36 = vadd.f32 %v4234_v58, %v12086_v33 }
 0x4f5   : > { %v4347_v23 = vpop.f32.mrf.mxu1  ;;  %6835 = vmatpush1.bf16.msra.mxu0 %v10008_v44  ;;  %v4236_v12 = vpop.f32.mrf.mxu0  ;;  %6723 = vmatprep.subr.bf16.mxu1 %v10013_v37  ;;  %v10017_v44 = vld [vmem:[#allocation14 + $0x2a8] ss:$16 sps:$4 sm:$0xff]  }
 0x4f6   : > { %v4437_v39 = vmax.f32 %v4344_v55, 0.0  ;;  %v4237_v50 = vadd.f32 %v4236_v12, %v12083_v30  ;;  %6836 = vmatprep.subr.bf16.mxu0 %v10016_v13  ;;  %v12117_v37 = vpack.c.bf16 %v4436_v54, %v4428_v27  ;;  %v10020_v55 = vld [vmem:[#allocation14 + $0x4a8] ss:$16 sps:$4 sm:$0xff]   ;;  %v10025_v13 = vld [vmem:[#allocation14 + $0x28c] ss:$16 sps:$4 sm:$0xff]  }
 0x4f7   : > { %v4349_v7 = vpop.f32.mrf.mxu1  ;;  %v4238_v31 = vpop.f32.mrf.mxu0  ;;  %v10023_v54 = vld [vmem:[#allocation14 + $0x288] ss:$16 sps:$4 sm:$0xff]  }
 0x4f8   : > { %v4239_v26 = vadd.f32 %v4238_v31, %v12086_v33  ;;  %6724 = vmatpush1.bf16.msra.mxu1 %v10011_v51  ;;  %v12115_v6 = vpack.c.bf16 %v4437_v39, %v4429_v59  ;;  %v4350_v12 = vadd.f32 %v4349_v7, %v4237_v50  ;;  %v10028_v31 = vld [vmem:[#allocation14 + $0x48c] ss:$16 sps:$4 sm:$0xff]   ;;  %v4348_v51 = vadd.f32 %v4347_v23, %v4235_v36  ;;  %v10026_v7 = vld [vmem:[#allocation14 + $0x488] ss:$16 sps:$4 sm:$0xff]  }
 0x4f9   : > { %v4351_v32 = vpop.f32.mrf.mxu1  ;;  %6837 = vmatpush1.bf16.msra.mxu0 %v10014_v53  ;;  %v4240_v38 = vpop.f32.mrf.mxu0  ;;  %6725 = vmatprep.subr.bf16.mxu1 %v10019_v40 }
 0x4fa   : > { %v4352_v41 = vadd.f32 %v4351_v32, %v4239_v26  ;;  %v4241_v58 = vadd.f32 %v4240_v38, %v12083_v30  ;;  %6537 = vmatprep.mubr.bf16.mxu1 %v12115_v6  ;;  %6838 = vmatprep.subr.bf16.mxu0 %v10022_v61  ;;  %v10031_v61 = vld [vmem:[#allocation14 + $0x26c] ss:$16 sps:$4 sm:$0xff]   ;;  %v4445_v26 = vmax.f32 %v4350_v12, 0.0  ;;  %v4444_v38 = vmax.f32 %v4348_v51, 0.0 }
 0x4fb   : > { %v4353_v59 = vpop.f32.mrf.mxu1  ;;  %v4244_v39 = vpop.f32.mrf.mxu0  ;;  %6538 = vmatmul.mubr.bf16.gmra.mxu1 %v12117_v37  ;;  %6651 = vmatmul.mubr.bf16.gmra.mxu0 %v11818_v49  ;;  %v10034_v32 = vld [vmem:[#allocation14 + $0x46c] ss:$16 sps:$4 sm:$0xff]  }
 0x4fc   : > { %v4354_v27 = vadd.f32 %v4353_v59, %v4241_v58  ;;  %6726 = vmatpush1.bf16.msra.mxu1 %v10017_v44  ;;  %6660 = vmatprep.mubr.bf16.mxu0 %v11823_v29  ;;  %v4452_v53 = vmax.f32 %v4352_v41, 0.0  ;;  %v4245_v49 = vadd.f32 %v4244_v39, %v12086_v33 }
 0x4fd   : > { %v4357_v40 = vpop.f32.mrf.mxu1  ;;  %6839 = vmatpush1.bf16.msra.mxu0 %v10020_v55  ;;  %v4246_v50 = vpop.f32.mrf.mxu0  ;;  %6727 = vmatprep.subr.bf16.mxu1 %v10025_v13  ;;  %v10029_v55 = vld [vmem:[#allocation14 + $0x268] ss:$16 sps:$4 sm:$0xff]  }
 0x4fe   : > { %v4453_v23 = vmax.f32 %v4354_v27, 0.0  ;;  %v4247_v36 = vadd.f32 %v4246_v50, %v12083_v30  ;;  %6840 = vmatprep.subr.bf16.mxu0 %v10028_v31  ;;  %v12129_v13 = vpack.c.bf16 %v4452_v53, %v4444_v38  ;;  %v10032_v27 = vld [vmem:[#allocation14 + $0x468] ss:$16 sps:$4 sm:$0xff]   ;;  %v10037_v31 = vld [vmem:[#allocation14 + $0x24c] ss:$16 sps:$4 sm:$0xff]  }
 0x4ff   : > { %v4359_v44 = vpop.f32.mrf.mxu1  ;;  %v4248_v58 = vpop.f32.mrf.mxu0 }
 0x500   : > { %v4249_v29 = vadd.f32 %v4248_v58, %v12086_v33  ;;  %6728 = vmatpush1.bf16.msra.mxu1 %v10023_v54  ;;  %v12127_v41 = vpack.c.bf16 %v4453_v23, %v4445_v26  ;;  %v4360_v50 = vadd.f32 %v4359_v44, %v4247_v36  ;;  %v10040_v58 = vld [vmem:[#allocation14 + $0x44c] ss:$16 sps:$4 sm:$0xff]   ;;  %v4358_v54 = vadd.f32 %v4357_v40, %v4245_v49  ;;  %v10038_v44 = vld [vmem:[#allocation14 + $0x448] ss:$16 sps:$4 sm:$0xff]  }
 0x501   : > { %v4361_v59 = vpop.f32.mrf.mxu1  ;;  %6841 = vmatpush1.bf16.msra.mxu0 %v10026_v7  ;;  %v4250_v12 = vpop.f32.mrf.mxu0  ;;  %6729 = vmatprep.subr.bf16.mxu1 %v10031_v61  ;;  %v10035_v7 = vld [vmem:[#allocation14 + $0x248] ss:$16 sps:$4 sm:$0xff]  }
 0x502   : > { %v4362_v51 = vadd.f32 %v4361_v59, %v4249_v29  ;;  %v4251_v39 = vadd.f32 %v4250_v12, %v12083_v30  ;;  %6547 = vmatprep.mubr.bf16.mxu1 %v12127_v41  ;;  %6842 = vmatprep.subr.bf16.mxu0 %v10034_v32  ;;  %v10043_v32 = vld [vmem:[#allocation14 + $0x22c] ss:$16 sps:$4 sm:$0xff]   ;;  %v4461_v29 = vmax.f32 %v4360_v50, 0.0  ;;  %v4460_v12 = vmax.f32 %v4358_v54, 0.0 }
 0x503   : > { %v4363_v26 = vpop.f32.mrf.mxu1  ;;  %v4254_v23 = vpop.f32.mrf.mxu0  ;;  %6548 = vmatmul.mubr.bf16.gmra.mxu1 %v12129_v13  ;;  %6661 = vmatmul.mubr.bf16.gmra.mxu0 %v11840_v48  ;;  %v10046_v59 = vld [vmem:[#allocation14 + $0x42c] ss:$16 sps:$4 sm:$0xff]  }
 0x504   : > { %v4364_v53 = vadd.f32 %v4363_v26, %v4251_v39  ;;  %6730 = vmatpush1.bf16.msra.mxu1 %v10029_v55  ;;  %6670 = vmatprep.mubr.bf16.mxu0 %v11852_v21  ;;  %v4468_v61 = vmax.f32 %v4362_v51, 0.0  ;;  %v4255_v48 = vadd.f32 %v4254_v23, %v12086_v33 }
 0x505   : > { %v4367_v36 = vpop.f32.mrf.mxu1  ;;  %6843 = vmatpush1.bf16.msra.mxu0 %v10032_v27  ;;  %v4256_v38 = vpop.f32.mrf.mxu0  ;;  %6731 = vmatprep.subr.bf16.mxu1 %v10037_v31  ;;  %v10041_v27 = vld [vmem:[#allocation14 + $0x228] ss:$16 sps:$4 sm:$0xff]  }
 0x506   : > { %v4469_v40 = vmax.f32 %v4364_v53, 0.0  ;;  %v4257_v49 = vadd.f32 %v4256_v38, %v12083_v30  ;;  %6844 = vmatprep.subr.bf16.mxu0 %v10040_v58  ;;  %v12141_v31 = vpack.c.bf16 %v4468_v61, %v4460_v12  ;;  %v10044_v53 = vld [vmem:[#allocation14 + $0x428] ss:$16 sps:$4 sm:$0xff]   ;;  %v10049_v58 = vld [vmem:[#allocation14 + $0x20c] ss:$16 sps:$4 sm:$0xff]  }
 0x507   : > { %v4369_v55 = vpop.f32.mrf.mxu1  ;;  %v4258_v39 = vpop.f32.mrf.mxu0 }
 0x508   : > { %v4259_v21 = vadd.f32 %v4258_v39, %v12086_v33  ;;  %6732 = vmatpush1.bf16.msra.mxu1 %v10035_v7  ;;  %v12139_v51 = vpack.c.bf16 %v4469_v40, %v4461_v29  ;;  %v4370_v38 = vadd.f32 %v4369_v55, %v4257_v49  ;;  %v10052_v39 = vld [vmem:[#allocation14 + $0x40c] ss:$16 sps:$4 sm:$0xff]   ;;  %v4368_v7 = vadd.f32 %v4367_v36, %v4255_v48  ;;  %v10050_v55 = vld [vmem:[#allocation14 + $0x408] ss:$16 sps:$4 sm:$0xff]  }
 0x509   : > { %v4371_v26 = vpop.f32.mrf.mxu1  ;;  %6845 = vmatpush1.bf16.msra.mxu0 %v10038_v44  ;;  %v4260_v50 = vpop.f32.mrf.mxu0  ;;  %6733 = vmatprep.subr.bf16.mxu1 %v10043_v32  ;;  %v10047_v44 = vld [vmem:[#allocation14 + $0x208] ss:$16 sps:$4 sm:$0xff]  }
 0x50a   : > { %v4372_v54 = vadd.f32 %v4371_v26, %v4259_v21  ;;  %v4261_v23 = vadd.f32 %v4260_v50, %v12083_v30  ;;  %6557 = vmatprep.mubr.bf16.mxu1 %v12139_v51  ;;  %6846 = vmatprep.subr.bf16.mxu0 %v10046_v59  ;;  %v10055_v59 = vld [vmem:[#allocation14 + $0x3ec] ss:$16 sps:$4 sm:$0xff]   ;;  %v4477_v21 = vmax.f32 %v4370_v38, 0.0  ;;  %v4476_v50 = vmax.f32 %v4368_v7, 0.0 }
 0x50b   : > { %v4373_v29 = vpop.f32.mrf.mxu1  ;;  %v4264_v40 = vpop.f32.mrf.mxu0  ;;  %6558 = vmatmul.mubr.bf16.gmra.mxu1 %v12141_v31  ;;  %6671 = vmatmul.mubr.bf16.gmra.mxu0 %v11860_v52  ;;  %v10058_v26 = vld [vmem:[#allocation14 + $0x5ec] ss:$16 sps:$4 sm:$0xff]  }
 0x50c   : > { %v4374_v61 = vadd.f32 %v4373_v29, %v4261_v23  ;;  %6734 = vmatpush1.bf16.msra.mxu1 %v10041_v27  ;;  %6680 = vmatprep.mubr.bf16.mxu0 %v11880_v3  ;;  %v4484_v32 = vmax.f32 %v4372_v54, 0.0  ;;  %v4265_v52 = vadd.f32 %v4264_v40, %v12086_v33 }
 0x50d   : > { %v4377_v49 = vpop.f32.mrf.mxu1  ;;  %6847 = vmatpush1.bf16.msra.mxu0 %v10044_v53  ;;  %v4266_v12 = vpop.f32.mrf.mxu0  ;;  %6735 = vmatprep.subr.bf16.mxu1 %v10049_v58  ;;  %v10053_v53 = vld [vmem:[#allocation14 + $0x3e8] ss:$16 sps:$4 sm:$0xff]  }
 0x50e   : > { %v4485_v36 = vmax.f32 %v4374_v61, 0.0  ;;  %v4267_v48 = vadd.f32 %v4266_v12, %v12083_v30  ;;  %6848 = vmatprep.subr.bf16.mxu0 %v10052_v39  ;;  %v12153_v58 = vpack.c.bf16 %v4484_v32, %v4476_v50  ;;  %v10056_v61 = vld [vmem:[#allocation14 + $0x5e8] ss:$16 sps:$4 sm:$0xff]   ;;  %v10061_v39 = vld [vmem:[#allocation14 + $0x3cc] ss:$16 sps:$4 sm:$0xff]  }
 0x50f   : > { %v4379_v27 = vpop.f32.mrf.mxu1  ;;  %v4268_v23 = vpop.f32.mrf.mxu0 }
 0x510   : > { %v4269_v3 = vadd.f32 %v4268_v23, %v12086_v33  ;;  %6736 = vmatpush1.bf16.msra.mxu1 %v10047_v44  ;;  %v12151_v54 = vpack.c.bf16 %v4485_v36, %v4477_v21  ;;  %v4380_v12 = vadd.f32 %v4379_v27, %v4267_v48  ;;  %v10064_v23 = vld [vmem:[#allocation14 + $0x5cc] ss:$16 sps:$4 sm:$0xff]   ;;  %v4378_v44 = vadd.f32 %v4377_v49, %v4265_v52  ;;  %v10062_v27 = vld [vmem:[#allocation14 + $0x5c8] ss:$16 sps:$4 sm:$0xff]  }
 0x511   : > { %v4381_v29 = vpop.f32.mrf.mxu1  ;;  %6849 = vmatpush1.bf16.msra.mxu0 %v10050_v55  ;;  %v4270_v38 = vpop.f32.mrf.mxu0  ;;  %6737 = vmatprep.subr.bf16.mxu1 %v10055_v59  ;;  %v10059_v55 = vld [vmem:[#allocation14 + $0x3c8] ss:$16 sps:$4 sm:$0xff]  }
 0x512   : > { %v4382_v7 = vadd.f32 %v4381_v29, %v4269_v3  ;;  %v4271_v40 = vadd.f32 %v4270_v38, %v12083_v30  ;;  %6567 = vmatprep.mubr.bf16.mxu1 %v12151_v54  ;;  %6850 = vmatprep.subr.bf16.mxu0 %v10058_v26  ;;  %v10067_v26 = vld [vmem:[#allocation14 + $0x3ac] ss:$16 sps:$4 sm:$0xff]   ;;  %v4493_v3 = vmax.f32 %v4380_v12, 0.0  ;;  %v4492_v38 = vmax.f32 %v4378_v44, 0.0 }
 0x513   : > { %v4383_v21 = vpop.f32.mrf.mxu1  ;;  %v4274_v36 = vpop.f32.mrf.mxu0  ;;  %6568 = vmatmul.mubr.bf16.gmra.mxu1 %v12153_v58  ;;  %6681 = vmatmul.mubr.bf16.gmra.mxu0 %v11898_v17  ;;  %v10070_v29 = vld [vmem:[#allocation14 + $0x5ac] ss:$16 sps:$4 sm:$0xff]  }
 0x514   : > { %v4384_v32 = vadd.f32 %v4383_v21, %v4271_v40  ;;  %6738 = vmatpush2.bf16.msra.mxu1 %v10053_v53  ;;  %6690 = vmatprep.mubr.bf16.mxu0 %v11907_v35  ;;  %v4500_v59 = vmax.f32 %v4382_v7, 0.0  ;;  %v4275_v17 = vadd.f32 %v4274_v36, %v12086_v33 }
 0x515   : > { %v4387_v48 = vpop.f32.mrf.mxu1  ;;  %6851 = vmatpush2.bf16.msra.mxu0 %v10056_v61  ;;  %v4276_v50 = vpop.f32.mrf.mxu0  ;;  %6739 = vmatprep.subr.bf16.mxu1 %v10061_v39  ;;  %v10065_v61 = vld [vmem:[#allocation14 + $0x3a8] ss:$16 sps:$4 sm:$0xff]  }
 0x516   : > { %v4501_v49 = vmax.f32 %v4384_v32, 0.0  ;;  %v4277_v52 = vadd.f32 %v4276_v50, %v12083_v30  ;;  %6852 = vmatprep.subr.bf16.mxu0 %v10064_v23  ;;  %v12165_v39 = vpack.c.bf16 %v4500_v59, %v4492_v38  ;;  %v10068_v32 = vld [vmem:[#allocation14 + $0x5a8] ss:$16 sps:$4 sm:$0xff]   ;;  %v10073_v23 = vld [vmem:[#allocation14 + $0x38c] ss:$16 sps:$4 sm:$0xff]  }
 0x517   : > { %v4389_v53 = vpop.f32.mrf.mxu1  ;;  %v4278_v40 = vpop.f32.mrf.mxu0 }
 0x518   : > { %v4279_v35 = vadd.f32 %v4278_v40, %v12086_v33  ;;  %6740 = vmatpush2.bf16.msra.mxu1 %v10059_v55  ;;  %v12163_v7 = vpack.c.bf16 %v4501_v49, %v4493_v3  ;;  %v4390_v50 = vadd.f32 %v4389_v53, %v4277_v52  ;;  %v10076_v40 = vld [vmem:[#allocation14 + $0x58c] ss:$16 sps:$4 sm:$0xff]   ;;  %v4388_v55 = vadd.f32 %v4387_v48, %v4275_v17  ;;  %v10074_v53 = vld [vmem:[#allocation14 + $0x588] ss:$16 sps:$4 sm:$0xff]  }
 0x519   : > { %v4391_v21 = vpop.f32.mrf.mxu1  ;;  %6853 = vmatpush2.bf16.msra.mxu0 %v10062_v27  ;;  %v4280_v12 = vpop.f32.mrf.mxu0  ;;  %6741 = vmatprep.subr.bf16.mxu1 %v10067_v26  ;;  %v10071_v27 = vld [vmem:[#allocation14 + $0x388] ss:$16 sps:$4 sm:$0xff]  }
 0x51a   : > { %v4392_v44 = vadd.f32 %v4391_v21, %v4279_v35  ;;  %v4281_v36 = vadd.f32 %v4280_v12, %v12083_v30  ;;  %6577 = vmatprep.mubr.bf16.mxu1 %v12163_v7  ;;  %6854 = vmatprep.subr.bf16.mxu0 %v10070_v29  ;;  %v10079_v29 = vld [vmem:[#allocation14 + $0x36c] ss:$16 sps:$4 sm:$0xff]   ;;  %v4509_v35 = vmax.f32 %v4390_v50, 0.0  ;;  %v4508_v12 = vmax.f32 %v4388_v55, 0.0 }
 0x51b   : > { %v4393_v3 = vpop.f32.mrf.mxu1  ;;  %v4284_v49 = vpop.f32.mrf.mxu0  ;;  %6578 = vmatmul.mubr.bf16.gmra.mxu1 %v12165_v39  ;;  %6691 = vmatmul.mubr.bf16.gmra.mxu0 %v11921_v1  ;;  %v10082_v21 = vld [vmem:[#allocation14 + $0x56c] ss:$16 sps:$4 sm:$0xff]  }
 0x51c   : > { %v4394_v59 = vadd.f32 %v4393_v3, %v4281_v36  ;;  %6742 = vmatpush2.bf16.msra.mxu1 %v10065_v61  ;;  %6700 = vmatprep.mubr.bf16.mxu0 %v11935_v0  ;;  %v4516_v26 = vmax.f32 %v4392_v44, 0.0  ;;  %v4285_v1 = vadd.f32 %v4284_v49, %v12086_v33 }
 0x51d   : > { %v4397_v52 = vpop.f32.mrf.mxu1  ;;  %6855 = vmatpush2.bf16.msra.mxu0 %v10068_v32  ;;  %v4286_v38 = vpop.f32.mrf.mxu0  ;;  %6743 = vmatprep.subr.bf16.mxu1 %v10073_v23  ;;  %v10077_v32 = vld [vmem:[#allocation14 + $0x368] ss:$16 sps:$4 sm:$0xff]  }
 0x51e   : > { %v4517_v48 = vmax.f32 %v4394_v59, 0.0  ;;  %v4287_v17 = vadd.f32 %v4286_v38, %v12083_v30  ;;  %6856 = vmatprep.subr.bf16.mxu0 %v10076_v40  ;;  %v12177_v23 = vpack.c.bf16 %v4516_v26, %v4508_v12  ;;  %v10080_v59 = vld [vmem:[#allocation14 + $0x568] ss:$16 sps:$4 sm:$0xff]   ;;  %v10085_v40 = vld [vmem:[#allocation14 + $0x34c] ss:$16 sps:$4 sm:$0xff]  }
 0x51f   : > { %v4399_v61 = vpop.f32.mrf.mxu1  ;;  %v4288_v36 = vpop.f32.mrf.mxu0  ;;  %v10091_v12 = vld [vmem:[#allocation14 + $0x32c] ss:$16 sps:$4 sm:$0xff]  }
 0x520   : > { %v4289_v0 = vadd.f32 %v4288_v36, %v12086_v33  ;;  %6744 = vmatpush2.bf16.msra.mxu1 %v10071_v27  ;;  %v12175_v44 = vpack.c.bf16 %v4517_v48, %v4509_v35  ;;  %v4400_v38 = vadd.f32 %v4399_v61, %v4287_v17  ;;  %v10088_v33 = vld [vmem:[#allocation14 + $0x54c] ss:$16 sps:$4 sm:$0xff]   ;;  %v4398_v27 = vadd.f32 %v4397_v52, %v4285_v1 }
 0x521   : > { %v4401_v3 = vpop.f32.mrf.mxu1  ;;  %6857 = vmatpush2.bf16.msra.mxu0 %v10074_v53  ;;  %v4290_v50 = vpop.f32.mrf.mxu0  ;;  %6745 = vmatprep.subr.bf16.mxu1 %v10079_v29  ;;  %v10083_v53 = vld [vmem:[#allocation14 + $0x348] ss:$16 sps:$4 sm:$0xff]   ;;  %v10094_v52 = vld [vmem:[#allocation14 + $0x52c] ss:$16 sps:$4 sm:$0xff]  }
 0x522   : > { %v4402_v55 = vadd.f32 %v4401_v3, %v4289_v0  ;;  %v4291_v49 = vadd.f32 %v4290_v50, %v12083_v30  ;;  %6587 = vmatprep.mubr.bf16.mxu1 %v12175_v44  ;;  %6858 = vmatprep.subr.bf16.mxu0 %v10082_v21  ;;  %v10086_v30 = vld [vmem:[#allocation14 + $0x548] ss:$16 sps:$4 sm:$0xff]   ;;  %v4525_v21 = vmax.f32 %v4400_v38, 0.0  ;;  %v4524_v1 = vmax.f32 %v4398_v27, 0.0  ;;  %v10097_v50 = vld [vmem:[#allocation14 + $0x30c] ss:$16 sps:$4 sm:$0xff]  }
 0x523   : > { %v4403_v35 = vpop.f32.mrf.mxu1  ;;  %v6190_v48 = vpop.f32.mrf.mxu0  ;;  %6588 = vmatmul.mubr.bf16.gmra.mxu1 %v12177_v23  ;;  %6701 = vmatmul.mubr.bf16.gmra.mxu0 %v11949_v62  ;;  %v10089_v0 = vld [vmem:[#allocation14 + $0x328] ss:$16 sps:$4 sm:$0xff]   ;;  %v10103_v27 = vld [vmem:[#allocation14 + $0x6ec] ss:$16 sps:$4 sm:$0xff]  }
 0x524   : > { %v4404_v26 = vadd.f32 %v4403_v35, %v4291_v49  ;;  %6746 = vmatpush2.bf16.msra.mxu1 %v10077_v32  ;;  %6710 = vmatprep.mubr.bf16.mxu0 %v11957_v60  ;;  %v4532_v29 = vmax.f32 %v4402_v55, 0.0  ;;  %v10092_v3 = vld [vmem:[#allocation14 + $0x528] ss:$16 sps:$4 sm:$0xff]   ;;  %v13232_v35 = vld [vmem:[#allocation30_spill] sm:$0xff] }
 0x525   : > { %6859 = vmatpush2.bf16.msra.mxu0 %v10080_v59  ;;  %v6192_v17 = vpop.f32.mrf.mxu0  ;;  %6747 = vmatprep.subr.bf16.mxu1 %v10085_v40  ;;  %v10100_v59 = vld [vmem:[#allocation14 + $0x50c] ss:$16 sps:$4 sm:$0xff]   ;;  %v10095_v55 = vld [vmem:[#allocation14 + $0x308] ss:$16 sps:$4 sm:$0xff]  }
 0x526   : > { %v4533_v61 = vmax.f32 %v4404_v26, 0.0  ;;  %6860 = vmatprep.subr.bf16.mxu0 %v10088_v33  ;;  %v12188_v32 = vpack.c.bf16 %v4532_v29, %v4524_v1  ;;  %v4854_v40 = vld [vmem:[%s13103_s10] sm:$0xf]  ;;  %v10098_v33 = vld [vmem:[#allocation14 + $0x508] ss:$16 sps:$4 sm:$0xff]  }
 0x527   : > { %v12184_v36 = vpop.f32.mrf.mxu0  ;;  %v12201_v26 = vrot.slane %v4854_v40, %v13232_v35 }
 0x528   : > { %6748 = vmatpush2.bf16.msra.mxu1 %v10083_v53  ;;  %v12186_v62 = vpack.c.bf16 %v4533_v61, %v4525_v21  ;;  %v10151_v53 = vld [vmem:[#allocation16 + $0x74] ss:$8 sps:$4 sm:$0xff]   ;;  %v10149_v61 = vld [vmem:[#allocation16 + $0x70] ss:$8 sps:$4 sm:$0xff]  }
 0x529   : > { %6861 = vmatpush2.bf16.msra.mxu0 %v10086_v30  ;;  %v12190_v60 = vpop.f32.mrf.mxu0  ;;  %6749 = vmatprep.subr.bf16.mxu1 %v10091_v12  ;;  %v13233_v30 = vld [vmem:[#allocation29_spill] sm:$0xff] }
 0x52a   : > { %6597 = vmatprep.mubr.bf16.mxu1 %v12186_v62  ;;  %6862 = vmatprep.subr.bf16.mxu0 %v10094_v52  ;;  %v10106_v21 = vld [vmem:[#allocation14 + $0x6cc] ss:$16 sps:$4 sm:$0xff]  }
 0x52b   : > { %v6200_v38 = vpop.f32.mrf.mxu0  ;;  %6598 = vmatmul.mubr.bf16.gmra.mxu1 %v12188_v32  ;;  %6711 = vmatmul.mubr.bf16.gmra.mxu0 %v11970_v46  ;;  %v12206_v46 = vrot.slane %v4854_v40, %v13233_v30  ;;  %v10116_v30 = vld [vmem:[#allocation14 + $0x648] ss:$16 sps:$4 sm:$0xff]  }
 0x52c   : > { %6750 = vmatpush2.bf16.msra.mxu1 %v10089_v0  ;;  %6753 = vmatprep.mubr.bf16.mxu1 %v11843_v45  ;;  %v10101_v45 = vld [vmem:[#allocation14 + $0x6e8] ss:$16 sps:$4 sm:$0xff]   ;;  %v10154_v0 = vld [vmem:[#allocation16 + $0x64] ss:$8 sps:$4 sm:$0xff]  }
 0x52d   : > { %6863 = vmatpush2.bf16.msra.mxu0 %v10092_v3  ;;  %6866 = vmatprep.mubr.bf16.mxu0 %v12014_v56  ;;  %v6202_v49 = vpop.f32.mrf.mxu0  ;;  %v6191_v56 = vadd.f32 %v6190_v48, %v12201_v26  ;;  %v6193_v3 = vadd.f32 %v6192_v17, %v12206_v46 }
 0x52e   : > { %6751 = vmatprep.subr.bf16.mxu1 %v10097_v50  ;;  %6864 = vmatprep.subr.bf16.mxu0 %v10100_v59  ;;  %v10104_v59 = vld [vmem:[#allocation14 + $0x6c8] ss:$16 sps:$4 sm:$0xff]  }
 0x52f   : > { %v12203_v29 = vpop.f32.mrf.mxu0 }
 0x530   : > { %6752 = vmatpush2.bf16.msra.mxu1 %v10095_v55  ;;  %v10109_v55 = vld [vmem:[#allocation14 + $0x6ac] ss:$16 sps:$4 sm:$0xff]  }
 0x531   : > { %6865 = vmatpush2.bf16.msra.mxu0 %v10098_v33  ;;  %v12208_v12 = vpop.f32.mrf.mxu0  ;;  %6947 = vmatprep.subr.bf16.mxu1 %v10103_v27 }
 0x532   : > { %7552 = vmatprep.subr.bf16.mxu0 %v10151_v53  ;;  %v10107_v53 = vld [vmem:[#allocation14 + $0x6a8] ss:$16 sps:$4 sm:$0xff]  }
 0x533   : > { %v6210_v52 = vpop.f32.mrf.mxu0  ;;  %v6303_v1 = vpop.f32.mrf.mxu1  ;;  %6754 = vmatmul.mubr.bf16.vlgmr.msra.gmra.mxu1 %v11848_v11  ;;  %v10152_v11 = vld [vmem:[#allocation16 + $0x60] ss:$8 sps:$4 sm:$0xff]  }
 0x534   : > { %v12213_v50 = vadd.f32 %v6303_v1, %v6191_v56  ;;  %6867 = vmatmul.mubr.bf16.vlgmr.msra.gmra.mxu0 %v12016_v19  ;;  %6948 = vmatpush1.bf16.msra.mxu1 %v10101_v45  ;;  %v10157_v19 = vld [vmem:[#allocation16 + $0x54] ss:$8 sps:$4 sm:$0xff]  }
 0x535   : > { %6763 = vmatprep.mubr.bf16.mxu1 %v11875_v18  ;;  %6876 = vmatprep.mubr.bf16.mxu0 %v12024_v42  ;;  %v6212_v48 = vpop.f32.mrf.mxu0  ;;  %v6305_v40 = vpop.f32.mrf.mxu1  ;;  %v6201_v42 = vadd.f32 %v6200_v38, %v12201_v26  ;;  %v10112_v56 = vld [vmem:[#allocation14 + $0x68c] ss:$16 sps:$4 sm:$0xff]  }
 0x536   : > { %v12218_v33 = vadd.f32 %v6305_v40, %v6193_v3  ;;  %6949 = vmatprep.subr.bf16.mxu1 %v10106_v21  ;;  %7553 = vmatpush1.bf16.msra.mxu0 %v10149_v61  ;;  %v10155_v21 = vld [vmem:[#allocation16 + $0x50] ss:$8 sps:$4 sm:$0xff]   ;;  %v10160_v3 = vld [vmem:[#allocation16 + $0x44] ss:$8 sps:$4 sm:$0xff]  }
 0x537   : > { %v12220_v27 = vpop.f32.mrf.mxu0  ;;  %v12222_v17 = vpop.f32.mrf.mxu1  ;;  %7554 = vmatprep.subr.bf16.mxu0 %v10154_v0  ;;  %v6203_v0 = vadd.f32 %v6202_v49, %v12206_v46  ;;  %v10110_v40 = vld [vmem:[#allocation14 + $0x688] ss:$16 sps:$4 sm:$0xff]  }
 0x538   : > { %6950 = vmatpush1.bf16.msra.mxu1 %v10104_v59 }
 0x539   : > { %v12224_v45 = vpop.f32.mrf.mxu0  ;;  %v12226_v18 = vpop.f32.mrf.mxu1  ;;  %6951 = vmatprep.subr.bf16.mxu1 %v10109_v55 }
 0x53a   : > { %7555 = vmatpush1.bf16.msra.mxu0 %v10152_v11  ;;  %v10115_v11 = vld [vmem:[#allocation14 + $0x66c] ss:$16 sps:$4 sm:$0xff]  }
 0x53b   : > { %v6220_v61 = vpop.f32.mrf.mxu0  ;;  %v6313_v1 = vpop.f32.mrf.mxu1  ;;  %6764 = vmatmul.mubr.bf16.gmra.mxu1 %v11878_v4  ;;  %7556 = vmatprep.subr.bf16.mxu0 %v10157_v19  ;;  %v10158_v4 = vld [vmem:[#allocation16 + $0x40] ss:$8 sps:$4 sm:$0xff]  }
 0x53c   : > { %v12231_v59 = vadd.f32 %v6313_v1, %v6201_v42  ;;  %6877 = vmatmul.mubr.bf16.gmra.mxu0 %v12026_v15  ;;  %6952 = vmatpush1.bf16.msra.mxu1 %v10107_v53  ;;  %v10163_v15 = vld [vmem:[#allocation16 + $0x34] ss:$8 sps:$4 sm:$0xff]   ;;  %v10113_v53 = vld [vmem:[#allocation14 + $0x668] ss:$16 sps:$4 sm:$0xff]  }
 0x53d   : > { %6773 = vmatprep.mubr.bf16.mxu1 %v11902_v57  ;;  %6886 = vmatprep.mubr.bf16.mxu0 %v12034_v22  ;;  %v6222_v38 = vpop.f32.mrf.mxu0  ;;  %v6315_v55 = vpop.f32.mrf.mxu1  ;;  %v6211_v22 = vadd.f32 %v6210_v52, %v12201_v26  ;;  %v10118_v1 = vld [vmem:[#allocation14 + $0x64c] ss:$16 sps:$4 sm:$0xff]  }
 0x53e   : > { %v12236_v35 = vadd.f32 %v6315_v55, %v6203_v0  ;;  %6953 = vmatprep.subr.bf16.mxu1 %v10112_v56  ;;  %7557 = vmatpush1.bf16.msra.mxu0 %v10155_v21  ;;  %v10161_v56 = vld [vmem:[#allocation16 + $0x30] ss:$8 sps:$4 sm:$0xff]   ;;  %v10166_v55 = vld [vmem:[#allocation16 + $0x24] ss:$8 sps:$4 sm:$0xff]  }
 0x53f   : > { %v12238_v19 = vpop.f32.mrf.mxu0  ;;  %v12240_v49 = vpop.f32.mrf.mxu1  ;;  %7558 = vmatprep.subr.bf16.mxu0 %v10160_v3  ;;  %v6213_v3 = vadd.f32 %v6212_v48, %v12206_v46 }
 0x540   : > { %6954 = vmatpush1.bf16.msra.mxu1 %v10110_v40 }
 0x541   : > { %v12242_v42 = vpop.f32.mrf.mxu0  ;;  %v12244_v57 = vpop.f32.mrf.mxu1  ;;  %6955 = vmatprep.subr.bf16.mxu1 %v10115_v11 }
 0x542   : > { %13234 = vst [vmem:[#allocation41_spill] sm:$0xff] %v12242_v42  ;;  %7559 = vmatpush1.bf16.msra.mxu0 %v10158_v4  ;;  %v10121_v4 = vld [vmem:[#allocation14 + $0x62c] ss:$16 sps:$4 sm:$0xff]  }
 0x543   : > { %v6230_v21 = vpop.f32.mrf.mxu0  ;;  %v6323_v0 = vpop.f32.mrf.mxu1  ;;  %6774 = vmatmul.mubr.bf16.gmra.mxu1 %v11905_v25  ;;  %7560 = vmatprep.subr.bf16.mxu0 %v10163_v15  ;;  %v10164_v25 = vld [vmem:[#allocation16 + $0x20] ss:$8 sps:$4 sm:$0xff]  }
 0x544   : > { %v12249_v40 = vadd.f32 %v6323_v0, %v6211_v22  ;;  %6887 = vmatmul.mubr.bf16.gmra.mxu0 %v12036_v14  ;;  %6956 = vmatpush1.bf16.msra.mxu1 %v10113_v53  ;;  %v10169_v14 = vld [vmem:[#allocation16 + $0x14] ss:$8 sps:$4 sm:$0xff]   ;;  %v10119_v53 = vld [vmem:[#allocation14 + $0x628] ss:$16 sps:$4 sm:$0xff]  }
 0x545   : > { %6783 = vmatprep.mubr.bf16.mxu1 %v11930_v28  ;;  %6896 = vmatprep.mubr.bf16.mxu0 %v12044_v63  ;;  %v6232_v52 = vpop.f32.mrf.mxu0  ;;  %v6325_v11 = vpop.f32.mrf.mxu1  ;;  %v6221_v63 = vadd.f32 %v6220_v61, %v12201_v26  ;;  %v10124_v0 = vld [vmem:[#allocation14 + $0x60c] ss:$16 sps:$4 sm:$0xff]  }
 0x546   : > { %v12254_v42 = vadd.f32 %v6325_v11, %v6213_v3  ;;  %6957 = vmatprep.subr.bf16.mxu1 %v10118_v1  ;;  %7561 = vmatpush1.bf16.msra.mxu0 %v10161_v56  ;;  %v10167_v1 = vld [vmem:[#allocation16 + $0x10] ss:$8 sps:$4 sm:$0xff]   ;;  %v10172_v11 = vld [vmem:[#allocation16 + $0x4] ss:$8 sps:$4 sm:$0xff]  }
 0x547   : > { %v12256_v15 = vpop.f32.mrf.mxu0  ;;  %v12258_v48 = vpop.f32.mrf.mxu1  ;;  %7562 = vmatprep.subr.bf16.mxu0 %v10166_v55  ;;  %v6223_v55 = vadd.f32 %v6222_v38, %v12206_v46 }
 0x548   : > { %13235 = vst [vmem:[#allocation42_spill] sm:$0xff] %v12256_v15  ;;  %6958 = vmatpush1.bf16.msra.mxu1 %v10116_v30 }
 0x549   : > { %v12260_v22 = vpop.f32.mrf.mxu0  ;;  %v12262_v28 = vpop.f32.mrf.mxu1  ;;  %6959 = vmatprep.subr.bf16.mxu1 %v10121_v4 }
 0x54a   : > { %13236 = vst [vmem:[#allocation43_spill] sm:$0xff] %v12260_v22  ;;  %7563 = vmatpush1.bf16.msra.mxu0 %v10164_v25  ;;  %v10122_v22 = vld [vmem:[#allocation14 + $0x608] ss:$16 sps:$4 sm:$0xff]   ;;  %v10127_v25 = vld [vmem:[#allocation14 + $0x7ec] ss:$16 sps:$4 sm:$0xff]  }
 0x54b   : > { %v6240_v56 = vpop.f32.mrf.mxu0  ;;  %v6333_v3 = vpop.f32.mrf.mxu1  ;;  %6784 = vmatmul.mubr.bf16.gmra.mxu1 %v11933_v24  ;;  %7564 = vmatprep.subr.bf16.mxu0 %v10169_v14  ;;  %v10170_v24 = vld [vmem:[#allocation16] ss:$8 sps:$4 sm:$0xff]  }
 0x54c   : > { %v12267_v30 = vadd.f32 %v6333_v3, %v6221_v63  ;;  %6897 = vmatmul.mubr.bf16.gmra.mxu0 %v12046_v43  ;;  %6960 = vmatpush1.bf16.msra.mxu1 %v10119_v53  ;;  %v10175_v43 = vld [vmem:[#allocation16 + $0xf4] ss:$8 sps:$4 sm:$0xff]   ;;  %v10125_v53 = vld [vmem:[#allocation14 + $0x7e8] ss:$16 sps:$4 sm:$0xff]  }
 0x54d   : > { %6793 = vmatprep.mubr.bf16.mxu1 %v11952_v2  ;;  %6906 = vmatprep.mubr.bf16.mxu0 %v12054_v10  ;;  %v6242_v61 = vpop.f32.mrf.mxu0  ;;  %v6335_v4 = vpop.f32.mrf.mxu1  ;;  %v6231_v10 = vadd.f32 %v6230_v21, %v12201_v26  ;;  %v10130_v3 = vld [vmem:[#allocation14 + $0x7cc] ss:$16 sps:$4 sm:$0xff]  }
 0x54e   : > { %v12272_v15 = vadd.f32 %v6335_v4, %v6223_v55  ;;  %6961 = vmatprep.subr.bf16.mxu1 %v10124_v0  ;;  %7565 = vmatpush1.bf16.msra.mxu0 %v10167_v1  ;;  %v10173_v0 = vld [vmem:[#allocation16 + $0xf0] ss:$8 sps:$4 sm:$0xff]   ;;  %v10178_v55 = vld [vmem:[#allocation16 + $0xe4] ss:$8 sps:$4 sm:$0xff]  }
 0x54f   : > { %v12274_v14 = vpop.f32.mrf.mxu0  ;;  %v12276_v38 = vpop.f32.mrf.mxu1  ;;  %7566 = vmatprep.subr.bf16.mxu0 %v10172_v11  ;;  %v6233_v11 = vadd.f32 %v6232_v52, %v12206_v46  ;;  %v10181_v52 = vld [vmem:[#allocation16 + $0xd4] ss:$8 sps:$4 sm:$0xff]  }
 0x550   : > { %13237 = vst [vmem:[#allocation44_spill] sm:$0xff] %v12274_v14  ;;  %6962 = vmatpush1.bf16.msra.mxu1 %v10122_v22  ;;  %v10128_v22 = vld [vmem:[#allocation14 + $0x7c8] ss:$16 sps:$4 sm:$0xff]  }
 0x551   : > { %v12278_v63 = vpop.f32.mrf.mxu0  ;;  %v12280_v2 = vpop.f32.mrf.mxu1  ;;  %6963 = vmatprep.subr.bf16.mxu1 %v10127_v25  ;;  %v10133_v25 = vld [vmem:[#allocation14 + $0x7ac] ss:$16 sps:$4 sm:$0xff]  }
 0x552   : > { %13238 = vst [vmem:[#allocation45_spill] sm:$0xff] %v12278_v63  ;;  %7567 = vmatpush1.bf16.msra.mxu0 %v10170_v24 }
 0x553   : > { %v6343_v1 = vpop.f32.mrf.mxu1  ;;  %6794 = vmatmul.mubr.bf16.gmra.mxu1 %v11955_v9  ;;  %7568 = vmatprep.subr.bf16.mxu0 %v10175_v43  ;;  %v6250_v63 = vpop.f32.mrf.mxu0  ;;  %v10176_v9 = vld [vmem:[#allocation16 + $0xe0] ss:$8 sps:$4 sm:$0xff]  }
 0x554   : > { %v12285_v4 = vadd.f32 %v6343_v1, %v6231_v10  ;;  %6907 = vmatmul.mubr.bf16.gmra.mxu0 %v12056_v8  ;;  %6964 = vmatpush2.bf16.msra.mxu1 %v10125_v53  ;;  %v10131_v8 = vld [vmem:[#allocation14 + $0x7a8] ss:$16 sps:$4 sm:$0xff]  }
 0x555   : > { %6803 = vmatprep.mubr.bf16.mxu1 %v11968_v34  ;;  %6916 = vmatprep.mubr.bf16.mxu0 %v12064_v5  ;;  %v6345_v21 = vpop.f32.mrf.mxu1  ;;  %v6252_v53 = vpop.f32.mrf.mxu0  ;;  %v6241_v34 = vadd.f32 %v6240_v56, %v12201_v26  ;;  %v10136_v5 = vld [vmem:[#allocation14 + $0x78c] ss:$16 sps:$4 sm:$0xff]   ;;  %v10179_v1 = vld [vmem:[#allocation16 + $0xd0] ss:$8 sps:$4 sm:$0xff]  }
 0x556   : > { %13239 = vst [vmem:[#allocation46_spill] sm:$0xff] %v12285_v4  ;;  %v12290_v24 = vadd.f32 %v6345_v21, %v6233_v11  ;;  %6965 = vmatprep.subr.bf16.mxu1 %v10130_v3  ;;  %7569 = vmatpush2.bf16.msra.mxu0 %v10173_v0  ;;  %v10184_v3 = vld [vmem:[#allocation16 + $0xc4] ss:$8 sps:$4 sm:$0xff]   ;;  %v6243_v0 = vadd.f32 %v6242_v61, %v12206_v46  ;;  %v10134_v21 = vld [vmem:[#allocation14 + $0x788] ss:$16 sps:$4 sm:$0xff]  }
 0x557   : > { %v12292_v43 = vpop.f32.mrf.mxu1  ;;  %7570 = vmatprep.subr.bf16.mxu0 %v10178_v55  ;;  %v12302_v14 = vpop.f32.mrf.mxu0 }
 0x558   : > { %6966 = vmatpush2.bf16.msra.mxu1 %v10128_v22  ;;  %v13241_v22 = vld [vmem:[#allocation34_spill] sm:$0xff] }
 0x559   : > { %v12294_v10 = vpop.f32.mrf.mxu1  ;;  %6967 = vmatprep.subr.bf16.mxu1 %v10133_v25  ;;  %13242 = vst [vmem:[#allocation34_spill] sm:$0xff] %v12302_v14  ;;  %v13243_v25 = vld [vmem:[#allocation36_spill] sm:$0xff] }
 0x55a   : > { %7571 = vmatpush2.bf16.msra.mxu0 %v10176_v9  ;;  %v10139_v9 = vld [vmem:[#allocation14 + $0x76c] ss:$16 sps:$4 sm:$0xff]  }
 0x55b   : > { %v6353_v11 = vpop.f32.mrf.mxu1  ;;  %6804 = vmatmul.mubr.bf16.gmra.mxu1 %v11972_v47  ;;  %7572 = vmatprep.subr.bf16.mxu0 %v10181_v52  ;;  %v10182_v47 = vld [vmem:[#allocation16 + $0xc0] ss:$8 sps:$4 sm:$0xff]   ;;  %v10187_v52 = vld [vmem:[#allocation16 + $0xb4] ss:$8 sps:$4 sm:$0xff]  }
 0x55c   : > { %v12299_v55 = vadd.f32 %v6353_v11, %v6241_v34  ;;  %6917 = vmatmul.mubr.bf16.gmra.mxu0 %v13241_v22  ;;  %6968 = vmatpush2.bf16.msra.mxu1 %v10131_v8  ;;  %v10137_v8 = vld [vmem:[#allocation14 + $0x768] ss:$16 sps:$4 sm:$0xff]   ;;  %v12310_v34 = vpop.f32.mrf.mxu0  ;;  %v10142_v22 = vld [vmem:[#allocation14 + $0x74c] ss:$16 sps:$4 sm:$0xff]  }
 0x55d   : > { %6813 = vmatprep.mubr.bf16.mxu1 %v13243_v25  ;;  %6926 = vmatprep.mubr.bf16.mxu0 %v12076_v16  ;;  %v6355_v56 = vpop.f32.mrf.mxu1  ;;  %13246 = vst [vmem:[#allocation49_spill] sm:$0xff] %v12310_v34  ;;  %v6251_v16 = vadd.f32 %v6250_v63, %v12201_v26  ;;  %v10140_v34 = vld [vmem:[#allocation14 + $0x748] ss:$16 sps:$4 sm:$0xff]   ;;  %v13252_v63 = vld [vmem:[#allocation38_spill] sm:$0xff] }
 0x55e   : > { %13240 = vst [vmem:[#allocation47_spill] sm:$0xff] %v12299_v55  ;;  %v12306_v4 = vadd.f32 %v6355_v56, %v6243_v0  ;;  %6969 = vmatprep.subr.bf16.mxu1 %v10136_v5  ;;  %7573 = vmatpush2.bf16.msra.mxu0 %v10179_v1  ;;  %v10185_v0 = vld [vmem:[#allocation16 + $0xb0] ss:$8 sps:$4 sm:$0xff]   ;;  %v10190_v1 = vld [vmem:[#allocation16 + $0xa4] ss:$8 sps:$4 sm:$0xff]   ;;  %v6260_v14 = vpop.f32.mrf.mxu0 }
 0x55f   : > { %v12308_v61 = vpop.f32.mrf.mxu1  ;;  %7574 = vmatprep.subr.bf16.mxu0 %v10184_v3  ;;  %v13248_v5 = vld [vmem:[#allocation35_spill] sm:$0xff]  ;;  %v6253_v3 = vadd.f32 %v6252_v53, %v12206_v46 }
 0x560   : > { %13244 = vst [vmem:[#allocation36_spill] sm:$0xff] %v12306_v4  ;;  %13245 = vst [vmem:[#allocation48_spill] sm:$0xff] %v12308_v61  ;;  %6970 = vmatpush2.bf16.msra.mxu1 %v10134_v21  ;;  %v13250_v21 = vld [vmem:[#allocation39_spill] sm:$0xff] }
 0x561   : > { %v12312_v11 = vpop.f32.mrf.mxu1  ;;  %6971 = vmatprep.subr.bf16.mxu1 %v10139_v9  ;;  %v13251_v9 = vld [vmem:[#allocation33_spill] sm:$0xff]  ;;  %v10193_v53 = vld [vmem:[#allocation16 + $0x94] ss:$8 sps:$4 sm:$0xff]  }
 0x562   : > { %13247 = vst [vmem:[#allocation50_spill] sm:$0xff] %v12312_v11  ;;  %7575 = vmatpush2.bf16.msra.mxu0 %v10182_v47  ;;  %v10145_v55 = vld [vmem:[#allocation14 + $0x72c] ss:$16 sps:$4 sm:$0xff]   ;;  %v10221_v11 = vld [vmem:[#allocation16 + $0x1f0] ss:$8 sps:$4 sm:$0xff]  }
 0x563   : > { %v6363_v25 = vpop.f32.mrf.mxu1  ;;  %6814 = vmatmul.mubr.bf16.gmra.mxu1 %v13248_v5  ;;  %7576 = vmatprep.subr.bf16.mxu0 %v10187_v52  ;;  %v10188_v52 = vld [vmem:[#allocation16 + $0xa0] ss:$8 sps:$4 sm:$0xff]  }
 0x564   : > { %v12317_v56 = vadd.f32 %v6363_v25, %v6251_v16  ;;  %6927 = vmatmul.mubr.bf16.gmra.mxu0 %v13250_v21  ;;  %6972 = vmatpush2.bf16.msra.mxu1 %v10137_v8  ;;  %v10143_v16 = vld [vmem:[#allocation14 + $0x728] ss:$16 sps:$4 sm:$0xff]   ;;  %v6262_v8 = vpop.f32.mrf.mxu0  ;;  %v10148_v21 = vld [vmem:[#allocation14 + $0x70c] ss:$16 sps:$4 sm:$0xff]  }
 0x565   : > { %6823 = vmatprep.mubr.bf16.mxu1 %v13251_v9  ;;  %6936 = vmatprep.mubr.bf16.mxu0 %v13252_v63  ;;  %v6365_v47 = vpop.f32.mrf.mxu1  ;;  %v6261_v9 = vadd.f32 %v6260_v14, %v12201_v26  ;;  %v10191_v63 = vld [vmem:[#allocation16 + $0x90] ss:$8 sps:$4 sm:$0xff]  }
 0x566   : > { %13249 = vst [vmem:[#allocation35_spill] sm:$0xff] %v12317_v56  ;;  %v12322_v4 = vadd.f32 %v6365_v47, %v6253_v3  ;;  %6973 = vmatprep.subr.bf16.mxu1 %v10142_v22  ;;  %7577 = vmatpush2.bf16.msra.mxu0 %v10185_v0  ;;  %v13256_v47 = vld [vmem:[#allocation37_spill] sm:$0xff]  ;;  %v6263_v0 = vadd.f32 %v6262_v8, %v12206_v46 }
 0x567   : > { %v12324_v5 = vpop.f32.mrf.mxu1  ;;  %7578 = vmatprep.subr.bf16.mxu0 %v10190_v1  ;;  %v10196_v22 = vld [vmem:[#allocation16 + $0x84] ss:$8 sps:$4 sm:$0xff]   ;;  %v10146_v56 = vld [vmem:[#allocation14 + $0x708] ss:$16 sps:$4 sm:$0xff]  }
 0x568   : > { %13253 = vst [vmem:[#allocation39_spill] sm:$0xff] %v12322_v4  ;;  %13254 = vst [vmem:[#allocation33_spill] sm:$0xff] %v12324_v5  ;;  %6974 = vmatpush2.bf16.msra.mxu1 %v10140_v34  ;;  %v13258_v34 = vld [vmem:[#allocation40_spill] sm:$0xff]  ;;  %v12334_v4 = vpop.f32.mrf.mxu0 }
 0x569   : > { %v12326_v25 = vpop.f32.mrf.mxu1  ;;  %6975 = vmatprep.subr.bf16.mxu1 %v10145_v55  ;;  %13259 = vst [vmem:[#allocation40_spill] sm:$0xff] %v12334_v4 }
 0x56a   : > { %13255 = vst [vmem:[#allocation38_spill] sm:$0xff] %v12326_v25  ;;  %7579 = vmatpush2.bf16.msra.mxu0 %v10188_v52  ;;  %v10194_v52 = vld [vmem:[#allocation16 + $0x80] ss:$8 sps:$4 sm:$0xff]   ;;  %v10215_v25 = vld [vmem:[#allocation16 + $0x110] ss:$8 sps:$4 sm:$0xff]  }
 0x56b   : > { %v6373_v3 = vpop.f32.mrf.mxu1  ;;  %6824 = vmatmul.mubr.bf16.gmra.mxu1 %v13256_v47  ;;  %7580 = vmatprep.subr.bf16.mxu0 %v10193_v53  ;;  %v12339_v53 = vpop.f32.mrf.mxu0 }
 0x56c   : > { %v12331_v1 = vadd.f32 %v6373_v3, %v6261_v9  ;;  %6937 = vmatmul.mubr.bf16.gmra.mxu0 %v13258_v34  ;;  %6976 = vmatpush2.bf16.msra.mxu1 %v10143_v16  ;;  %13261 = vst [vmem:[#allocation52_spill] sm:$0xff] %v12339_v53  ;;  %v13262_v9 = vld [vmem:[#allocation28_spill] sm:$0xff]  ;;  %v10209_v53 = vld [vmem:[#allocation16 + $0x130] ss:$8 sps:$4 sm:$0xff]  }
 0x56d   : > { %6979 = vmatprep.mubr.bf16.mxu1 %v12103_v20  ;;  %v6375_v14 = vpop.f32.mrf.mxu1  ;;  %6977 = vmatprep.subr.bf16.mxu1 %v10148_v21 }
 0x56e   : > { %13257 = vst [vmem:[#allocation37_spill] sm:$0xff] %v12331_v1  ;;  %v12337_v55 = vadd.f32 %v6375_v14, %v6263_v0  ;;  %7581 = vmatpush2.bf16.msra.mxu0 %v10191_v63  ;;  %v10203_v1 = vld [vmem:[#allocation16 + $0x150] ss:$8 sps:$4 sm:$0xff]  }
 0x56f   : > { %7582 = vmatprep.subr.bf16.mxu0 %v10196_v22  ;;  %v10199_v22 = vld [vmem:[#allocation16 + $0x174] ss:$8 sps:$4 sm:$0xff]  }
 0x570   : > { %13260 = vst [vmem:[#allocation51_spill] sm:$0xff] %v12337_v55  ;;  %6978 = vmatpush2.bf16.msra.mxu1 %v10146_v56 }
 0x571   : > { %7665 = vmatprep.subr.bf16.mxu1 %v10199_v22  ;;  %v10206_v22 = vld [vmem:[#allocation16 + $0x140] ss:$8 sps:$4 sm:$0xff]  }
 0x572   : > { %7583 = vmatpush2.bf16.msra.mxu0 %v10194_v52 }
 0x573   : > { %v12341_v8 = vpop.f32.mrf.mxu0  ;;  %6980 = vmatmul.mubr.bf16.vlgmr.msra.gmra.mxu1 %v13262_v9  ;;  %v10205_v9 = vld [vmem:[#allocation16 + $0x154] ss:$8 sps:$4 sm:$0xff]  }
 0x574   : > { %6989 = vmatprep.mubr.bf16.mxu1 %v12115_v6  ;;  %v10197_v6 = vld [vmem:[#allocation16 + $0x170] ss:$8 sps:$4 sm:$0xff]  }
 0x575   : > { %v12345_v16 = vpop.f32.mrf.mxu0  ;;  %7666 = vmatpush1.bf16.msra.mxu1 %v10197_v6 }
 0x577   : > { %v12347_v20 = vpop.f32.mrf.mxu0 }
 0x579   : > { %v12349_v21 = vpop.f32.mrf.mxu0 }
 0x57b   : > { %v12351_v3 = vpop.f32.mrf.mxu0  ;;  %6990 = vmatmul.mubr.bf16.gmra.mxu1 %v12117_v37  ;;  %v10202_v37 = vld [vmem:[#allocation16 + $0x164] ss:$8 sps:$4 sm:$0xff]  }
 0x57c   : > { %6999 = vmatprep.mubr.bf16.mxu1 %v12127_v41  ;;  %v10200_v41 = vld [vmem:[#allocation16 + $0x160] ss:$8 sps:$4 sm:$0xff]   ;;  %7667 = vmatprep.subr.bf16.mxu1 %v10202_v37 }
 0x57d   : > { %v12355_v56 = vpop.f32.mrf.mxu0  ;;  %7668 = vmatpush1.bf16.msra.mxu1 %v10200_v41  ;;  %v10211_v41 = vld [vmem:[#allocation16 + $0x134] ss:$8 sps:$4 sm:$0xff]  }
 0x57e   : > { %7669 = vmatprep.subr.bf16.mxu1 %v10205_v9 }
 0x57f   : > { %v12357_v63 = vpop.f32.mrf.mxu0 }
 0x581   : > { %v12359_v47 = vpop.f32.mrf.mxu0  ;;  %7670 = vmatpush1.bf16.msra.mxu1 %v10203_v1  ;;  %v10212_v1 = vld [vmem:[#allocation16 + $0x120] ss:$8 sps:$4 sm:$0xff]  }
 0x583   : > { %v12361_v0 = vpop.f32.mrf.mxu0  ;;  %7000 = vmatmul.mubr.bf16.gmra.mxu1 %v12129_v13 }
 0x584   : > { %7009 = vmatprep.mubr.bf16.mxu1 %v12139_v51  ;;  %v10208_v51 = vld [vmem:[#allocation16 + $0x144] ss:$8 sps:$4 sm:$0xff]  }
 0x585   : > { %v12365_v34 = vpop.f32.mrf.mxu0  ;;  %7671 = vmatprep.subr.bf16.mxu1 %v10208_v51 }
 0x586   : > { %7672 = vmatpush1.bf16.msra.mxu1 %v10206_v22  ;;  %v10217_v22 = vld [vmem:[#allocation16 + $0x114] ss:$8 sps:$4 sm:$0xff]  }
 0x587   : > { %v12367_v14 = vpop.f32.mrf.mxu0  ;;  %7673 = vmatprep.subr.bf16.mxu1 %v10211_v41 }
 0x589   : > { %v12369_v52 = vpop.f32.mrf.mxu0 }
 0x58a   : > { %7674 = vmatpush1.bf16.msra.mxu1 %v10209_v53  ;;  %v10218_v53 = vld [vmem:[#allocation16 + $0x100] ss:$8 sps:$4 sm:$0xff]  }
 0x58b   : > { %v12371_v55 = vpop.f32.mrf.mxu0  ;;  %7010 = vmatmul.mubr.bf16.gmra.mxu1 %v12141_v31 }
 0x58c   : > { %7019 = vmatprep.mubr.bf16.mxu1 %v12151_v54  ;;  %v10214_v54 = vld [vmem:[#allocation16 + $0x124] ss:$8 sps:$4 sm:$0xff]  }
 0x58d   : > { %v12375_v13 = vpop.f32.mrf.mxu0  ;;  %7675 = vmatprep.subr.bf16.mxu1 %v10214_v54 }
 0x58e   : > { %7676 = vmatpush1.bf16.msra.mxu1 %v10212_v1  ;;  %v10223_v1 = vld [vmem:[#allocation16 + $0x1f4] ss:$8 sps:$4 sm:$0xff]  }
 0x58f   : > { %v12377_v6 = vpop.f32.mrf.mxu0  ;;  %7677 = vmatprep.subr.bf16.mxu1 %v10217_v22 }
 0x591   : > { %v12379_v37 = vpop.f32.mrf.mxu0 }
 0x592   : > { %7678 = vmatpush1.bf16.msra.mxu1 %v10215_v25  ;;  %v10224_v25 = vld [vmem:[#allocation16 + $0x1e0] ss:$8 sps:$4 sm:$0xff]  }
 0x593   : > { %v12381_v4 = vpop.f32.mrf.mxu0  ;;  %7020 = vmatmul.mubr.bf16.gmra.mxu1 %v12153_v58 }
 0x594   : > { %7029 = vmatprep.mubr.bf16.mxu1 %v12163_v7  ;;  %v10220_v7 = vld [vmem:[#allocation16 + $0x104] ss:$8 sps:$4 sm:$0xff]  }
 0x595   : > { %v12385_v31 = vpop.f32.mrf.mxu0  ;;  %7679 = vmatprep.subr.bf16.mxu1 %v10220_v7 }
 0x596   : > { %7680 = vmatpush1.bf16.msra.mxu1 %v10218_v53  ;;  %v10229_v53 = vld [vmem:[#allocation16 + $0x1d4] ss:$8 sps:$4 sm:$0xff]  }
 0x597   : > { %v12387_v9 = vpop.f32.mrf.mxu0  ;;  %7681 = vmatprep.subr.bf16.mxu1 %v10223_v1  ;;  %v10230_v1 = vld [vmem:[#allocation16 + $0x1c0] ss:$8 sps:$4 sm:$0xff]  }
 0x599   : > { %v12389_v51 = vpop.f32.mrf.mxu0 }
 0x59a   : > { %7682 = vmatpush2.bf16.msra.mxu1 %v10221_v11  ;;  %v10232_v11 = vld [vmem:[#allocation16 + $0x1c4] ss:$8 sps:$4 sm:$0xff]  }
 0x59b   : > { %v12391_v5 = vpop.f32.mrf.mxu0  ;;  %7030 = vmatmul.mubr.bf16.gmra.mxu1 %v12165_v39 }
 0x59c   : > { %13263 = vst [vmem:[#allocation28_spill] sm:$0xff] %v12391_v5  ;;  %7039 = vmatprep.mubr.bf16.mxu1 %v12175_v44  ;;  %v10226_v44 = vld [vmem:[#allocation16 + $0x1e4] ss:$8 sps:$4 sm:$0xff]  }
 0x59d   : > { %v12395_v58 = vpop.f32.mrf.mxu0  ;;  %7683 = vmatprep.subr.bf16.mxu1 %v10226_v44 }
 0x59e   : > { %7684 = vmatpush2.bf16.msra.mxu1 %v10224_v25 }
 0x59f   : > { %v12397_v41 = vpop.f32.mrf.mxu0  ;;  %7685 = vmatprep.subr.bf16.mxu1 %v10229_v53  ;;  %v10233_v53 = vld [vmem:[#allocation16 + $0x1b0] ss:$8 sps:$4 sm:$0xff]  }
 0x5a1   : > { %v12399_v54 = vpop.f32.mrf.mxu0 }
 0x5a2   : > { %13264 = vst [vmem:[#allocation53_spill] sm:$0xff] %v12399_v54  ;;  %v10227_v54 = vld [vmem:[#allocation16 + $0x1d0] ss:$8 sps:$4 sm:$0xff]  }
 0x5a3   : > { %v12401_v61 = vpop.f32.mrf.mxu0  ;;  %7040 = vmatmul.mubr.bf16.gmra.mxu1 %v12177_v23  ;;  %v12414_v23 = vpop.f32.mrf.mxu1 }
 0x5a4   : > { %13265 = vst [vmem:[#allocation54_spill] sm:$0xff] %v12401_v61  ;;  %7049 = vmatprep.mubr.bf16.mxu1 %v12186_v62  ;;  %7686 = vmatpush2.bf16.msra.mxu1 %v10227_v54  ;;  %13270 = vst [vmem:[#allocation59_spill] sm:$0xff] %v12414_v23  ;;  %v6419_v23 = vadd.f32 %v12345_v16, %v12218_v33  ;;  %v10241_v33 = vld [vmem:[#allocation16 + $0x194] ss:$8 sps:$4 sm:$0xff]  }
 0x5a5   : > { %v12405_v39 = vpop.f32.mrf.mxu0  ;;  %7687 = vmatprep.subr.bf16.mxu1 %v10232_v11  ;;  %v12420_v44 = vpop.f32.mrf.mxu1  ;;  %v6417_v11 = vadd.f32 %v12341_v8, %v12213_v50 }
 0x5a6   : > { %13266 = vst [vmem:[#allocation55_spill] sm:$0xff] %v12405_v39  ;;  %13273 = vst [vmem:[#allocation62_spill] sm:$0xff] %v12420_v44  ;;  %v10238_v44 = vld [vmem:[#allocation16 + $0x1a4] ss:$8 sps:$4 sm:$0xff]  }
 0x5a7   : > { %v12407_v22 = vpop.f32.mrf.mxu0 }
 0x5a8   : > { %13267 = vst [vmem:[#allocation56_spill] sm:$0xff] %v12407_v22  ;;  %7688 = vmatpush2.bf16.msra.mxu1 %v10230_v1  ;;  %v10236_v22 = vld [vmem:[#allocation16 + $0x1a0] ss:$8 sps:$4 sm:$0xff]  }
 0x5a9   : > { %v12409_v7 = vpop.f32.mrf.mxu0 }
 0x5aa   : > { %13268 = vst [vmem:[#allocation57_spill] sm:$0xff] %v12409_v7  ;;  %v10235_v7 = vld [vmem:[#allocation16 + $0x1b4] ss:$8 sps:$4 sm:$0xff]  }
 0x5ab   : > { %v12411_v5 = vpop.f32.mrf.mxu0  ;;  %7050 = vmatmul.mubr.bf16.gmra.mxu1 %v12188_v32  ;;  %v6195_v32 = vadd.f32 %v12184_v36, %v12201_v26  ;;  %7689 = vmatprep.subr.bf16.mxu1 %v10235_v7 }
 0x5ac   : > { %13269 = vst [vmem:[#allocation58_spill] sm:$0xff] %v12411_v5  ;;  %7690 = vmatpush2.bf16.msra.mxu1 %v10233_v53  ;;  %v10239_v53 = vld [vmem:[#allocation16 + $0x190] ss:$8 sps:$4 sm:$0xff]  }
 0x5ad   : > { %v12416_v62 = vpop.f32.mrf.mxu0  ;;  %7691 = vmatprep.subr.bf16.mxu1 %v10238_v44 }
 0x5ae   : > { %13271 = vst [vmem:[#allocation60_spill] sm:$0xff] %v12416_v62  ;;  %v6197_v62 = vadd.f32 %v12190_v60, %v12206_v46 }
 0x5af   : > { %v12418_v61 = vpop.f32.mrf.mxu0 }
 0x5b0   : > { %13272 = vst [vmem:[#allocation61_spill] sm:$0xff] %v12418_v61  ;;  %v6308_v61 = vadd.f32 %v12222_v17, %v6195_v32  ;;  %v6310_v36 = vadd.f32 %v12226_v18, %v6197_v62  ;;  %7692 = vmatpush2.bf16.msra.mxu1 %v10236_v22  ;;  %v6205_v32 = vadd.f32 %v12203_v29, %v12201_v26 }
 0x5b1   : > { %v12422_v25 = vpop.f32.mrf.mxu0  ;;  %7693 = vmatprep.subr.bf16.mxu1 %v10241_v33  ;;  %v6427_v29 = vadd.f32 %v12351_v3, %v12231_v59  ;;  %v6215_v33 = vadd.f32 %v12220_v27, %v12201_v26 }
 0x5b2   : > { %13274 = vst [vmem:[#allocation63_spill] sm:$0xff] %v12422_v25  ;;  %v6421_v7 = vadd.f32 %v12347_v20, %v6308_v61  ;;  %v6423_v50 = vadd.f32 %v12349_v21, %v6310_v36  ;;  %v6318_v44 = vadd.f32 %v12240_v49, %v6205_v32  ;;  %v10242_v32 = vld [vmem:[#allocation16 + $0x180] ss:$8 sps:$4 sm:$0xff]  }
 0x5b3   : > { %v6529_v54 = vpop.f32.mrf.mxu1  ;;  %v12426_v5 = vpop.f32.mrf.mxu0 }
 0x5b4   : > { %13275 = vst [vmem:[#allocation64_spill] sm:$0xff] %v12426_v5  ;;  %v6530_v5 = vadd.f32 %v6529_v54, %v6417_v11  ;;  %v6207_v54 = vadd.f32 %v12208_v12, %v12206_v46  ;;  %7694 = vmatpush2.bf16.msra.mxu1 %v10239_v53  ;;  %v6429_v12 = vadd.f32 %v12355_v56, %v12236_v35 }
 0x5b5   : > { %v6531_v1 = vpop.f32.mrf.mxu1  ;;  %v12433_v25 = vpop.f32.mrf.mxu0  ;;  %v6431_v49 = vadd.f32 %v12357_v63, %v6318_v44  ;;  %v6328_v53 = vadd.f32 %v12258_v48, %v6215_v33  ;;  %v6437_v44 = vadd.f32 %v12361_v0, %v12249_v40 }
 0x5b6   : > { %v6532_v17 = vadd.f32 %v6531_v1, %v6419_v23  ;;  %v7060_v16 = vmax.f32 %v6530_v5, 0.0  ;;  %v6320_v5 = vadd.f32 %v12244_v57, %v6207_v54 }
 0x5b7   : > { %v6533_v60 = vpop.f32.mrf.mxu1  ;;  %v12439_v39 = vpop.f32.mrf.mxu0 }
 0x5b8   : > { %v6534_v8 = vadd.f32 %v6533_v60, %v6421_v7  ;;  %v7061_v22 = vmax.f32 %v6532_v17, 0.0  ;;  %v10244_v60 = vld [vmem:[#allocation16 + $0x184] ss:$8 sps:$4 sm:$0xff]   ;;  %v6433_v3 = vadd.f32 %v12359_v47, %v6320_v5  ;;  %v6439_v5 = vadd.f32 %v12365_v34, %v12254_v42 }
 0x5b9   : > { %v6535_v18 = vpop.f32.mrf.mxu1  ;;  %v12444_v62 = vpop.f32.mrf.mxu0  ;;  %7695 = vmatprep.subr.bf16.mxu1 %v10244_v60 }
 0x5ba   : > { %v7064_v61 = vmax.f32 %v6534_v8, 0.0  ;;  %v6536_v20 = vadd.f32 %v6535_v18, %v6423_v50  ;;  %7696 = vmatpush2.bf16.msra.mxu1 %v10242_v32  ;;  %v13276_v32 = vld [vmem:[#allocation41_spill] sm:$0xff] }
 0x5bb   : > { %v6539_v21 = vpop.f32.mrf.mxu1  ;;  %v12449_v23 = vpop.f32.mrf.mxu0 }
 0x5bc   : > { %v7124_v11 = vpack.c.bf16 %v7064_v61, %v7060_v16  ;;  %v7065_v1 = vmax.f32 %v6536_v20, 0.0  ;;  %v6540_v50 = vadd.f32 %v6539_v21, %v6427_v29  ;;  %v6217_v20 = vadd.f32 %v12224_v45, %v12206_v46 }
 0x5bd   : > { %v6541_v36 = vpop.f32.mrf.mxu1  ;;  %v12454_v7 = vpop.f32.mrf.mxu0  ;;  %v6441_v45 = vadd.f32 %v12367_v14, %v6328_v53 }
 0x5be   : > { %v7125_v8 = vpack.c.bf16 %v7065_v1, %v7061_v22  ;;  %v6542_v17 = vadd.f32 %v6541_v36, %v6429_v12  ;;  %v7068_v56 = vmax.f32 %v6540_v50, 0.0  ;;  %v6330_v22 = vadd.f32 %v12262_v28, %v6217_v20 }
 0x5bf   : > { %v6543_v18 = vpop.f32.mrf.mxu1  ;;  %v12459_v59 = vpop.f32.mrf.mxu0  ;;  %v6225_v28 = vadd.f32 %v12238_v19, %v12201_v26  ;;  %v6449_v20 = vadd.f32 %v12375_v13, %v12272_v15 }
 0x5c0   : > { %v6544_v57 = vadd.f32 %v6543_v18, %v6431_v49  ;;  %7584 = vmatprep.mubr.bf16.mxu0 %v7125_v8  ;;  %v7069_v21 = vmax.f32 %v6542_v17, 0.0  ;;  %v6443_v40 = vadd.f32 %v12369_v52, %v6330_v22  ;;  %v6227_v18 = vadd.f32 %v13276_v32, %v12206_v46  ;;  %v13277_v22 = vld [vmem:[#allocation42_spill] sm:$0xff] }
 0x5c1   : > { %v6545_v16 = vpop.f32.mrf.mxu1  ;;  %v12464_v35 = vpop.f32.mrf.mxu0  ;;  %7585 = vmatmul.mubr.bf16.vlgmr.msra.gmra.mxu0 %v7124_v11  ;;  %v13279_v32 = vld [vmem:[#allocation46_spill] sm:$0xff] }
 0x5c2   : > { %v7072_v63 = vmax.f32 %v6544_v57, 0.0  ;;  %v6546_v61 = vadd.f32 %v6545_v16, %v6433_v3  ;;  %v6338_v3 = vadd.f32 %v12276_v38, %v6225_v28  ;;  %v6447_v57 = vadd.f32 %v12371_v55, %v12267_v30 }
 0x5c3   : > { %v6549_v47 = vpop.f32.mrf.mxu1  ;;  %v12469_v54 = vpop.f32.mrf.mxu0 }
 0x5c4   : > { %v7128_v27 = vpack.c.bf16 %v7072_v63, %v7068_v56  ;;  %v7073_v29 = vmax.f32 %v6546_v61, 0.0  ;;  %v6550_v48 = vadd.f32 %v6549_v47, %v6437_v44  ;;  %v6340_v56 = vadd.f32 %v12280_v2, %v6227_v18 }
 0x5c5   : > { %v6551_v11 = vpop.f32.mrf.mxu1  ;;  %v12474_v1 = vpop.f32.mrf.mxu0  ;;  %v6451_v53 = vadd.f32 %v12377_v6, %v6338_v3  ;;  %v6457_v18 = vadd.f32 %v12381_v4, %v13279_v32 }
 0x5c6   : > { %v7129_v36 = vpack.c.bf16 %v7073_v29, %v7069_v21  ;;  %v6552_v0 = vadd.f32 %v6551_v11, %v6439_v5  ;;  %v7076_v42 = vmax.f32 %v6550_v48, 0.0  ;;  %v6453_v30 = vadd.f32 %v12379_v37, %v6340_v56  ;;  %v13278_v5 = vld [vmem:[#allocation43_spill] sm:$0xff] }
 0x5c7   : > { %v6553_v60 = vpop.f32.mrf.mxu1  ;;  %v12479_v12 = vpop.f32.mrf.mxu0  ;;  %v6235_v11 = vadd.f32 %v13277_v22, %v12201_v26 }
 0x5c8   : > { %v6554_v49 = vadd.f32 %v6553_v60, %v6441_v45  ;;  %7594 = vmatprep.mubr.bf16.mxu0 %v7129_v36  ;;  %v7077_v33 = vmax.f32 %v6552_v0, 0.0  ;;  %v6237_v45 = vadd.f32 %v13278_v5, %v12206_v46  ;;  %v13285_v5 = vld [vmem:[#allocation47_spill] sm:$0xff] }
 0x5c9   : > { %v6555_v50 = vpop.f32.mrf.mxu1  ;;  %v12484_v8 = vpop.f32.mrf.mxu0  ;;  %7595 = vmatmul.mubr.bf16.gmra.mxu0 %v7128_v27  ;;  %v6348_v37 = vadd.f32 %v12292_v43, %v6235_v11  ;;  %v13284_v11 = vld [vmem:[#allocation36_spill] sm:$0xff] }
 0x5ca   : > { %v7080_v34 = vmax.f32 %v6554_v49, 0.0  ;;  %v6556_v14 = vadd.f32 %v6555_v50, %v6443_v40  ;;  %v6350_v50 = vadd.f32 %v12294_v10, %v6237_v45  ;;  %v13286_v45 = vld [vmem:[#allocation28_spill] sm:$0xff] }
 0x5cb   : > { %v6559_v17 = vpop.f32.mrf.mxu1  ;;  %v12489_v52 = vpop.f32.mrf.mxu0 }
 0x5cc   : > { %v7132_v19 = vpack.c.bf16 %v7080_v34, %v7076_v42  ;;  %v7081_v16 = vmax.f32 %v6556_v14, 0.0  ;;  %v6560_v38 = vadd.f32 %v6559_v17, %v6447_v57  ;;  %v6459_v42 = vadd.f32 %v12385_v31, %v12290_v24  ;;  %v13280_v24 = vld [vmem:[#allocation44_spill] sm:$0xff] }
 0x5cd   : > { %v6561_v63 = vpop.f32.mrf.mxu1  ;;  %v12494_v61 = vpop.f32.mrf.mxu0  ;;  %v6461_v34 = vadd.f32 %v12387_v9, %v6348_v37  ;;  %v6463_v43 = vadd.f32 %v12389_v51, %v6350_v50  ;;  %v6245_v31 = vadd.f32 %v13280_v24, %v12201_v26  ;;  %v13282_v51 = vld [vmem:[#allocation48_spill] sm:$0xff] }
 0x5ce   : > { %v7133_v47 = vpack.c.bf16 %v7081_v16, %v7077_v33  ;;  %v6562_v55 = vadd.f32 %v6561_v63, %v6449_v20  ;;  %v7084_v15 = vmax.f32 %v6560_v38, 0.0  ;;  %v13281_v20 = vld [vmem:[#allocation45_spill] sm:$0xff] }
 0x5cf   : > { %v6563_v44 = vpop.f32.mrf.mxu1  ;;  %v12499_v21 = vpop.f32.mrf.mxu0  ;;  %v6358_v38 = vadd.f32 %v13282_v51, %v6245_v31 }
 0x5d0   : > { %v6564_v27 = vadd.f32 %v6563_v44, %v6451_v53  ;;  %7604 = vmatprep.mubr.bf16.mxu0 %v7133_v47  ;;  %v7085_v60 = vmax.f32 %v6562_v55, 0.0  ;;  %v6247_v53 = vadd.f32 %v13281_v20, %v12206_v46 }
 0x5d1   : > { %v6565_v29 = vpop.f32.mrf.mxu1  ;;  %v12502_v2 = vpop.f32.mrf.mxu0  ;;  %7605 = vmatmul.mubr.bf16.gmra.mxu0 %v7132_v19 }
 0x5d2   : > { %v7088_v13 = vmax.f32 %v6564_v27, 0.0  ;;  %v6566_v6 = vadd.f32 %v6565_v29, %v6453_v30  ;;  %v13283_v29 = vld [vmem:[#allocation50_spill] sm:$0xff] }
 0x5d3   : > { %v6569_v48 = vpop.f32.mrf.mxu1  ;;  %v12508_v36 = vpop.f32.mrf.mxu0  ;;  %v6360_v22 = vadd.f32 %v13283_v29, %v6247_v53  ;;  %v13292_v53 = vld [vmem:[#allocation38_spill] sm:$0xff] }
 0x5d4   : > { %v7136_v40 = vpack.c.bf16 %v7088_v13, %v7084_v15  ;;  %v7089_v0 = vmax.f32 %v6566_v6, 0.0  ;;  %v6570_v19 = vadd.f32 %v6569_v48, %v6457_v18  ;;  %v6469_v15 = vadd.f32 %v12395_v58, %v13284_v11  ;;  %v13289_v58 = vld [vmem:[#allocation34_spill] sm:$0xff] }
 0x5d5   : > { %v6571_v49 = vpop.f32.mrf.mxu1  ;;  %v12511_v28 = vpop.f32.mrf.mxu0  ;;  %v6471_v13 = vadd.f32 %v12397_v41, %v6358_v38  ;;  %v6467_v48 = vadd.f32 %v13286_v45, %v13285_v5  ;;  %v6255_v41 = vadd.f32 %v13289_v58, %v12201_v26  ;;  %v13293_v38 = vld [vmem:[#allocation39_spill] sm:$0xff]  ;;  %v13297_v11 = vld [vmem:[#allocation54_spill] sm:$0xff]  ;;  %v13299_v45 = vld [vmem:[#allocation57_spill] sm:$0xff] }
 0x5d6   : > { %v7137_v14 = vpack.c.bf16 %v7089_v0, %v7085_v60  ;;  %v6572_v57 = vadd.f32 %v6571_v49, %v6459_v42  ;;  %v7092_v30 = vmax.f32 %v6570_v19, 0.0  ;;  %v13287_v0 = vld [vmem:[#allocation53_spill] sm:$0xff] }
 0x5d7   : > { %v6573_v3 = vpop.f32.mrf.mxu1  ;;  %v12519_v17 = vpop.f32.mrf.mxu0  ;;  %v6473_v49 = vadd.f32 %v13287_v0, %v6360_v22  ;;  %v13296_v22 = vld [vmem:[#allocation35_spill] sm:$0xff] }
 0x5d8   : > { %v6574_v33 = vadd.f32 %v6573_v3, %v6461_v34  ;;  %7614 = vmatprep.mubr.bf16.mxu0 %v7137_v14  ;;  %v7093_v47 = vmax.f32 %v6572_v57, 0.0 }
 0x5d9   : > { %v6575_v16 = vpop.f32.mrf.mxu1  ;;  %v12522_v10 = vpop.f32.mrf.mxu0  ;;  %7615 = vmatmul.mubr.bf16.gmra.mxu0 %v7136_v40 }
 0x5da   : > { %v6576_v9 = vadd.f32 %v6575_v16, %v6463_v43  ;;  %v7096_v56 = vmax.f32 %v6574_v33, 0.0  ;;  %v13290_v33 = vld [vmem:[#allocation49_spill] sm:$0xff] }
 0x5db   : > { %v6579_v63 = vpop.f32.mrf.mxu1  ;;  %v12526_v4 = vpop.f32.mrf.mxu0  ;;  %v6257_v19 = vadd.f32 %v13290_v33, %v12206_v46  ;;  %v13291_v16 = vld [vmem:[#allocation33_spill] sm:$0xff] }
 0x5dc   : > { %v7097_v44 = vmax.f32 %v6576_v9, 0.0  ;;  %v7140_v37 = vpack.c.bf16 %v7096_v56, %v7092_v30  ;;  %v6580_v34 = vadd.f32 %v6579_v63, %v6467_v48  ;;  %v6368_v24 = vadd.f32 %v13291_v16, %v6255_v41  ;;  %v13295_v30 = vld [vmem:[#allocation56_spill] sm:$0xff] }
 0x5dd   : > { %v6581_v55 = vpop.f32.mrf.mxu1  ;;  %v12531_v27 = vpop.f32.mrf.mxu0  ;;  %v6370_v51 = vadd.f32 %v13292_v53, %v6257_v19  ;;  %v13303_v19 = vld [vmem:[#allocation59_spill] sm:$0xff] }
 0x5de   : > { %v7141_v6 = vpack.c.bf16 %v7097_v44, %v7093_v47  ;;  %v6582_v50 = vadd.f32 %v6581_v55, %v6469_v15  ;;  %v7100_v56 = vmax.f32 %v6580_v34, 0.0  ;;  %v13294_v47 = vld [vmem:[#allocation55_spill] sm:$0xff]  ;;  %v6481_v55 = vadd.f32 %v13295_v30, %v6368_v24  ;;  %v13308_v30 = vld [vmem:[#allocation61_spill] sm:$0xff] }
 0x5df   : > { %v6583_v60 = vpop.f32.mrf.mxu1  ;;  %v12539_v40 = vpop.f32.mrf.mxu0  ;;  %v6479_v44 = vadd.f32 %v13294_v47, %v13293_v38  ;;  %v6477_v15 = vadd.f32 %v13297_v11, %v13296_v22  ;;  %v6483_v48 = vadd.f32 %v13299_v45, %v6370_v51  ;;  %v13305_v51 = vld [vmem:[#allocation62_spill] sm:$0xff]  ;;  %v13306_v47 = vld [vmem:[#allocation51_spill] sm:$0xff]  ;;  %v13309_v22 = vld [vmem:[#allocation37_spill] sm:$0xff] }
 0x5e0   : > { %v6584_v42 = vadd.f32 %v6583_v60, %v6471_v13  ;;  %7624 = vmatprep.mubr.bf16.mxu0 %v7141_v6  ;;  %v7101_v31 = vmax.f32 %v6582_v50, 0.0  ;;  %v13310_v11 = vld [vmem:[#allocation58_spill] sm:$0xff] }
 0x5e1   : > { %v6585_v14 = vpop.f32.mrf.mxu1  ;;  %v12542_v32 = vpop.f32.mrf.mxu0  ;;  %7625 = vmatmul.mubr.bf16.gmra.mxu0 %v7140_v37 }
 0x5e2   : > { %13288 = vst [vmem:[#allocation41_spill] sm:$0xff] %v12542_v32  ;;  %v6586_v18 = vadd.f32 %v6585_v14, %v6473_v49  ;;  %v7104_v3 = vmax.f32 %v6584_v42, 0.0  ;;  %v13301_v42 = vld [vmem:[#allocation40_spill] sm:$0xff] }
 0x5e3   : > { %v6589_v43 = vpop.f32.mrf.mxu1  ;;  %v12546_v57 = vpop.f32.mrf.mxu0  ;;  %v6265_v34 = vadd.f32 %v13301_v42, %v12201_v26 }
 0x5e4   : > { %v7105_v9 = vmax.f32 %v6586_v18, 0.0  ;;  %v7144_v13 = vpack.c.bf16 %v7104_v3, %v7100_v56  ;;  %v6590_v0 = vadd.f32 %v6589_v43, %v6477_v15  ;;  %v13302_v3 = vld [vmem:[#allocation52_spill] sm:$0xff]  ;;  %v10334_v43 = vld [vmem:[%s13103_s10] sm:$0xf]  ;;  %v6487_v15 = vadd.f32 %v13310_v11, %v13309_v22 }
 0x5e5   : > { %v6591_v63 = vpop.f32.mrf.mxu1  ;;  %v12551_v20 = vpop.f32.mrf.mxu0  ;;  %v6267_v33 = vadd.f32 %v13302_v3, %v12206_v46  ;;  %v6378_v16 = vadd.f32 %v13303_v19, %v6265_v34 }
 0x5e6   : > { %v7145_v29 = vpack.c.bf16 %v7105_v9, %v7101_v31  ;;  %v6592_v37 = vadd.f32 %v6591_v63, %v6479_v44  ;;  %v13304_v9 = vld [vmem:[#allocation32_spill] sm:$0xff]  ;;  %v7108_v26 = vmax.f32 %v6590_v0, 0.0 }
 0x5e7   : > { %v6593_v6 = vpop.f32.mrf.mxu1  ;;  %v12559_v5 = vpop.f32.mrf.mxu0  ;;  %v12575_v56 = vrot.slane %v10334_v43, %v13304_v9  ;;  %v6380_v38 = vadd.f32 %v13305_v51, %v6267_v33  ;;  %v13307_v44 = vld [vmem:[#allocation60_spill] sm:$0xff] }
 0x5e8   : > { %13298 = vst [vmem:[#allocation42_spill] sm:$0xff] %v12559_v5  ;;  %v6594_v60 = vadd.f32 %v6593_v6, %v6481_v55  ;;  %7634 = vmatprep.mubr.bf16.mxu0 %v7145_v29  ;;  %v7109_v24 = vmax.f32 %v6592_v37, 0.0  ;;  %v6489_v46 = vadd.f32 %v13307_v44, %v13306_v47  ;;  %v6491_v55 = vadd.f32 %v13308_v30, %v6378_v16  ;;  %v13315_v33 = vld [vmem:[#allocation64_spill] sm:$0xff] }
 0x5e9   : > { %v6595_v49 = vpop.f32.mrf.mxu1  ;;  %v12562_v50 = vpop.f32.mrf.mxu0  ;;  %7635 = vmatmul.mubr.bf16.gmra.mxu0 %v7144_v13  ;;  %v6643_v19 = vadd.f32 %v13315_v33, %v12575_v56 }
 0x5ea   : > { %13300 = vst [vmem:[#allocation43_spill] sm:$0xff] %v12562_v50  ;;  %v6596_v14 = vadd.f32 %v6595_v49, %v6483_v48  ;;  %v7112_v58 = vmax.f32 %v6594_v60, 0.0  ;;  %v13312_v48 = vld [vmem:[#allocation63_spill] sm:$0xff] }
 0x5eb   : > { %v6599_v41 = vpop.f32.mrf.mxu1  ;;  %v12566_v18 = vpop.f32.mrf.mxu0  ;;  %v6493_v37 = vadd.f32 %v13312_v48, %v6380_v38  ;;  %v13313_v60 = vld [vmem:[#allocation31_spill] sm:$0xff] }
 0x5ec   : > { %v7113_v31 = vmax.f32 %v6596_v14, 0.0  ;;  %v7148_v13 = vpack.c.bf16 %v7112_v58, %v7108_v26  ;;  %v12589_v0 = vrot.slane %v10334_v43, %v13313_v60  ;;  %v6600_v34 = vadd.f32 %v6599_v41, %v6487_v15 }
 0x5ed   : > { %v6601_v63 = vpop.f32.mrf.mxu1  ;;  %v12577_v53 = vpop.f32.mrf.mxu0 }
 0x5ee   : > { %v7149_v29 = vpack.c.bf16 %v7113_v31, %v7109_v24  ;;  %v6602_v49 = vadd.f32 %v6601_v63, %v6489_v46  ;;  %v6645_v31 = vadd.f32 %v12433_v25, %v12589_v0  ;;  %v7116_v41 = vmax.f32 %v6600_v34, 0.0 }
 0x5ef   : > { %v6603_v6 = vpop.f32.mrf.mxu1  ;;  %v12585_v45 = vpop.f32.mrf.mxu0  ;;  %v6653_v25 = vadd.f32 %v12449_v23, %v12575_v56  ;;  %v6655_v11 = vadd.f32 %v12454_v7, %v12589_v0  ;;  %v6663_v23 = vadd.f32 %v12469_v54, %v12575_v56  ;;  %v6665_v7 = vadd.f32 %v12474_v1, %v12589_v0 }
 0x5f0   : > { %13311 = vst [vmem:[#allocation46_spill] sm:$0xff] %v12585_v45  ;;  %v6604_v42 = vadd.f32 %v6603_v6, %v6491_v55  ;;  %7644 = vmatprep.mubr.bf16.mxu0 %v7149_v29  ;;  %v7117_v9 = vmax.f32 %v6602_v49, 0.0  ;;  %v6673_v54 = vadd.f32 %v12489_v52, %v12575_v56  ;;  %v6675_v1 = vadd.f32 %v12494_v61, %v12589_v0 }
 0x5f1   : > { %v6605_v14 = vpop.f32.mrf.mxu1  ;;  %v12591_v3 = vpop.f32.mrf.mxu0  ;;  %7645 = vmatmul.mubr.bf16.gmra.mxu0 %v7148_v13  ;;  %v6683_v52 = vadd.f32 %v12508_v36, %v12575_v56  ;;  %v6685_v61 = vadd.f32 %v12511_v28, %v12589_v0  ;;  %v6693_v36 = vadd.f32 %v12526_v4, %v12575_v56  ;;  %v6695_v28 = vadd.f32 %v12531_v27, %v12589_v0 }
 0x5f2   : > { %13314 = vst [vmem:[#allocation44_spill] sm:$0xff] %v12591_v3  ;;  %v6606_v58 = vadd.f32 %v6605_v14, %v6493_v37  ;;  %v7120_v16 = vmax.f32 %v6604_v42, 0.0  ;;  %v6703_v4 = vadd.f32 %v12546_v57, %v12575_v56  ;;  %v6705_v27 = vadd.f32 %v12551_v20, %v12589_v0 }
 0x5f3   : > { %v6755_v24 = vpop.f32.mrf.mxu1  ;;  %v6713_v57 = vadd.f32 %v12566_v18, %v12575_v56  ;;  %v6715_v20 = vadd.f32 %v12577_v53, %v12589_v0  ;;  %v6649_v18 = vadd.f32 %v12444_v62, %v12589_v0  ;;  %v6657_v62 = vadd.f32 %v12459_v59, %v12575_v56 }
 0x5f4   : > { %v7121_v43 = vmax.f32 %v6606_v58, 0.0  ;;  %v12597_v26 = vadd.f32 %v6755_v24, %v6643_v19  ;;  %v12599_v63 = vpop.f32.mrf.mxu0  ;;  %v7152_v44 = vpack.c.bf16 %v7120_v16, %v7116_v41 }
 0x5f5   : > { %v6757_v51 = vpop.f32.mrf.mxu1 }
 0x5f6   : > { %v12601_v38 = vadd.f32 %v6757_v51, %v6645_v31  ;;  %v7153_v47 = vpack.c.bf16 %v7121_v43, %v7117_v9  ;;  %v12603_v46 = vpop.f32.mrf.mxu0 }
 0x5f7   : > { %v12605_v30 = vpop.f32.mrf.mxu1 }
 0x5f8   : > { %7654 = vmatprep.mubr.bf16.mxu0 %v7153_v47  ;;  %v12611_v29 = vpop.f32.mrf.mxu0 }
 0x5f9   : > { %v12607_v55 = vpop.f32.mrf.mxu1  ;;  %7655 = vmatmul.mubr.bf16.gmra.mxu0 %v7152_v44 }
 0x5fa   : > { %v12619_v48 = vpop.f32.mrf.mxu0 }
 0x5fb   : > { %v6765_v22 = vpop.f32.mrf.mxu1 }
 0x5fc   : > { %v12615_v15 = vadd.f32 %v6765_v22, %v6653_v25  ;;  %v12627_v49 = vpop.f32.mrf.mxu0 }
 0x5fd   : > { %v6767_v13 = vpop.f32.mrf.mxu1 }
 0x5fe   : > { %v12617_v6 = vadd.f32 %v6767_v13, %v6655_v11  ;;  %v12635_v19 = vpop.f32.mrf.mxu0 }
 0x5ff   : > { %v12621_v37 = vpop.f32.mrf.mxu1 }
 0x600   : > { %v12643_v24 = vpop.f32.mrf.mxu0 }
 0x601   : > { %v12623_v60 = vpop.f32.mrf.mxu1 }
 0x602   : > { %v12651_v51 = vpop.f32.mrf.mxu0 }
 0x603   : > { %v6775_v42 = vpop.f32.mrf.mxu1 }
 0x604   : > { %v12631_v34 = vadd.f32 %v6775_v42, %v6663_v23  ;;  %v12659_v25 = vpop.f32.mrf.mxu0 }
 0x605   : > { %v6777_v14 = vpop.f32.mrf.mxu1 }
 0x606   : > { %v12633_v33 = vadd.f32 %v6777_v14, %v6665_v7  ;;  %v12667_v42 = vpop.f32.mrf.mxu0 }
 0x607   : > { %v12637_v58 = vpop.f32.mrf.mxu1 }
 0x609   : > { %v12639_v16 = vpop.f32.mrf.mxu1 }
 0x60b   : > { %v6785_v31 = vpop.f32.mrf.mxu1 }
 0x60c   : > { %v12647_v9 = vadd.f32 %v6785_v31, %v6673_v54  ;;  %v12675_v54 = vpop.f32.mrf.mxu0 }
 0x60d   : > { %v6787_v43 = vpop.f32.mrf.mxu1 }
 0x60e   : > { %v12649_v41 = vadd.f32 %v6787_v43, %v6675_v1 }
 0x60f   : > { %v12653_v47 = vpop.f32.mrf.mxu1 }
 0x611   : > { %v12655_v44 = vpop.f32.mrf.mxu1 }
 0x613   : > { %v6795_v22 = vpop.f32.mrf.mxu1 }
 0x614   : > { %v12663_v11 = vadd.f32 %v6795_v22, %v6683_v52  ;;  %v12683_v22 = vpop.f32.mrf.mxu0 }
 0x615   : > { %v6797_v13 = vpop.f32.mrf.mxu1 }
 0x616   : > { %v12665_v23 = vadd.f32 %v6797_v13, %v6685_v61  ;;  %v12691_v3 = vpop.f32.mrf.mxu0 }
 0x617   : > { %v12669_v7 = vpop.f32.mrf.mxu1 }
 0x619   : > { %v12671_v14 = vpop.f32.mrf.mxu1 }
 0x61b   : > { %v6805_v31 = vpop.f32.mrf.mxu1 }
 0x61c   : > { %v12679_v1 = vadd.f32 %v6805_v31, %v6693_v36 }
 0x61d   : > { %v6807_v43 = vpop.f32.mrf.mxu1 }
 0x61e   : > { %13316 = vst [vmem:[#allocation45_spill] sm:$0xff] %v12679_v1  ;;  %v12681_v52 = vadd.f32 %v6807_v43, %v6695_v28  ;;  %v12699_v43 = vpop.f32.mrf.mxu0 }
 0x61f   : > { %v12685_v61 = vpop.f32.mrf.mxu1 }
 0x620   : > { %13317 = vst [vmem:[#allocation48_spill] sm:$0xff] %v12681_v52  ;;  %13318 = vst [vmem:[#allocation50_spill] sm:$0xff] %v12685_v61  ;;  %v12707_v1 = vpop.f32.mrf.mxu0 }
 0x621   : > { %v12687_v13 = vpop.f32.mrf.mxu1 }
 0x622   : > { %13319 = vst [vmem:[#allocation36_spill] sm:$0xff] %v12687_v13 }
 0x623   : > { %v6815_v45 = vpop.f32.mrf.mxu1 }
 0x624   : > { %v12695_v36 = vadd.f32 %v6815_v45, %v6703_v4 }
 0x625   : > { %v6817_v31 = vpop.f32.mrf.mxu1 }
 0x626   : > { %13320 = vst [vmem:[#allocation47_spill] sm:$0xff] %v12695_v36  ;;  %v12697_v28 = vadd.f32 %v6817_v31, %v6705_v27  ;;  %v12715_v31 = vpop.f32.mrf.mxu0 }
 0x627   : > { %v12701_v50 = vpop.f32.mrf.mxu1 }
 0x628   : > { %13321 = vst [vmem:[#allocation28_spill] sm:$0xff] %v12697_v28  ;;  %13322 = vst [vmem:[#allocation53_spill] sm:$0xff] %v12701_v50  ;;  %v6647_v28 = vadd.f32 %v12439_v39, %v12575_v56  ;;  %v12726_v53 = vpop.f32.mrf.mxu0  ;;  %v6869_v39 = vadd.f32 %v12599_v63, %v12597_v26 }
 0x629   : > { %v12703_v5 = vpop.f32.mrf.mxu1 }
 0x62a   : > { %13323 = vst [vmem:[#allocation34_spill] sm:$0xff] %v12703_v5  ;;  %v6760_v50 = vadd.f32 %v12605_v30, %v6647_v28 }
 0x62b   : > { %v6825_v52 = vpop.f32.mrf.mxu1 }
 0x62c   : > { %v12711_v45 = vadd.f32 %v6825_v52, %v6713_v57  ;;  %v6762_v57 = vadd.f32 %v12607_v55, %v6649_v18 }
 0x62d   : > { %v6827_v4 = vpop.f32.mrf.mxu1 }
 0x62e   : > { %13324 = vst [vmem:[#allocation49_spill] sm:$0xff] %v12711_v45  ;;  %v12713_v27 = vadd.f32 %v6827_v4, %v6715_v20  ;;  %v6871_v4 = vadd.f32 %v12603_v46, %v12601_v38  ;;  %v6873_v45 = vadd.f32 %v12611_v29, %v6760_v50  ;;  %v6875_v30 = vadd.f32 %v12619_v48, %v6762_v57 }
 0x62f   : > { %v12717_v36 = vpop.f32.mrf.mxu1  ;;  %v6659_v38 = vadd.f32 %v12464_v35, %v12589_v0  ;;  %v6770_v50 = vadd.f32 %v12621_v37, %v6657_v62  ;;  %v6879_v35 = vadd.f32 %v12627_v49, %v12615_v15  ;;  %v10245_v62 = vld [vmem:[#allocation17 + $0x78] sm:$0xff]   ;;  %v6669_v15 = vadd.f32 %v12484_v8, %v12589_v0 }
 0x630   : > { %13325 = vst [vmem:[#allocation33_spill] sm:$0xff] %v12713_v27  ;;  %13326 = vst [vmem:[#allocation38_spill] sm:$0xff] %v12717_v36  ;;  %v12734_v27 = vpop.f32.mrf.mxu0  ;;  %9335 = vmatprep.subr.bf16.mxu0 %v10245_v62  ;;  %v6891_v8 = vadd.f32 %v12667_v42, %v12633_v33  ;;  %v10251_v33 = vld [vmem:[#allocation17 + $0x60] sm:$0xff]  }
 0x631   : > { %v12721_v5 = vpop.f32.mrf.mxu1  ;;  %v6772_v13 = vadd.f32 %v12623_v60, %v6659_v38  ;;  %v6667_v60 = vadd.f32 %v12479_v12, %v12575_v56  ;;  %v10249_v38 = vld [vmem:[#allocation17 + $0x68] sm:$0xff]  }
 0x632   : > { %13327 = vst [vmem:[#allocation39_spill] sm:$0xff] %v12721_v5  ;;  %v12742_v29 = vpop.f32.mrf.mxu0 }
 0x633   : > { %v6981_v52 = vpop.f32.mrf.mxu1 }
 0x634   : > { %v6982_v55 = vadd.f32 %v6981_v52, %v6869_v39  ;;  %v12750_v37 = vpop.f32.mrf.mxu0 }
 0x635   : > { %v6983_v20 = vpop.f32.mrf.mxu1 }
 0x636   : > { %v6984_v28 = vadd.f32 %v6983_v20, %v6871_v4  ;;  %v7062_v32 = vmax.f32 %v6982_v55, 0.0  ;;  %v6885_v20 = vadd.f32 %v12651_v51, %v6772_v13  ;;  %v10248_v13 = vld [vmem:[#allocation17 + $0x30] sm:$0xff]  }
 0x637   : > { %v6985_v5 = vpop.f32.mrf.mxu1 }
 0x638   : > { %v6986_v36 = vadd.f32 %v6985_v5, %v6873_v45  ;;  %v7063_v61 = vmax.f32 %v6984_v28, 0.0  ;;  %v6881_v5 = vadd.f32 %v12635_v19, %v12617_v6  ;;  %v6883_v45 = vadd.f32 %v12643_v24, %v6770_v50  ;;  %v10246_v6 = vld [vmem:[#allocation17 + $0x38] sm:$0xff]   ;;  %v10247_v19 = vld [vmem:[#allocation17 + $0x70] sm:$0xff]  }
 0x639   : > { %v6987_v18 = vpop.f32.mrf.mxu1  ;;  %9336 = vmatpush3.bf16.msra.mxu0 %v10246_v6  ;;  %v6782_v28 = vadd.f32 %v12639_v16, %v6669_v15  ;;  %v10253_v6 = vld [vmem:[#allocation17 + $0x58] sm:$0xff]   ;;  %v6687_v15 = vadd.f32 %v12519_v17, %v12575_v56  ;;  %v6689_v17 = vadd.f32 %v12522_v10, %v12589_v0  ;;  %v6911_v10 = vadd.f32 %v12734_v27, %v12665_v23 }
 0x63a   : > { %v6988_v46 = vadd.f32 %v6987_v18, %v6875_v30  ;;  %v7066_v26 = vmax.f32 %v6986_v36, 0.0  ;;  %v12758_v30 = vpop.f32.mrf.mxu0  ;;  %9337 = vmatprep.subr.bf16.mxu0 %v10247_v19 }
 0x63b   : > { %v6991_v63 = vpop.f32.mrf.mxu1 }
 0x63c   : > { %v7067_v59 = vmax.f32 %v6988_v46, 0.0  ;;  %v7126_v57 = vpack.c.bf16 %v7066_v26, %v7062_v32  ;;  %v6992_v24 = vadd.f32 %v6991_v63, %v6879_v35  ;;  %v6780_v32 = vadd.f32 %v12637_v58, %v6667_v60 }
 0x63d   : > { %v6993_v48 = vpop.f32.mrf.mxu1  ;;  %v6677_v63 = vadd.f32 %v12499_v21, %v12575_v56  ;;  %9338 = vmatpush3.bf16.msra.mxu0 %v10248_v13  ;;  %v6679_v21 = vadd.f32 %v12502_v2, %v12589_v0  ;;  %v6901_v2 = vadd.f32 %v12699_v43, %v12649_v41  ;;  %v10255_v41 = vld [vmem:[#allocation17 + $0x50] sm:$0xff]  }
 0x63e   : > { %v7127_v52 = vpack.c.bf16 %v7067_v59, %v7063_v61  ;;  %v6994_v4 = vadd.f32 %v6993_v48, %v6881_v5  ;;  %v7070_v50 = vmax.f32 %v6992_v24, 0.0  ;;  %v6893_v58 = vadd.f32 %v12675_v54, %v6780_v32  ;;  %v12768_v48 = vpop.f32.mrf.mxu0  ;;  %9339 = vmatprep.subr.bf16.mxu0 %v10249_v38 }
 0x63f   : > { %v6995_v36 = vpop.f32.mrf.mxu1  ;;  %v6889_v59 = vadd.f32 %v12659_v25, %v12631_v34  ;;  %v6790_v34 = vadd.f32 %v12653_v47, %v6677_v63  ;;  %v6899_v32 = vadd.f32 %v12691_v3, %v12647_v9  ;;  %v6800_v3 = vadd.f32 %v12669_v7, %v6687_v15 }
 0x640   : > { %v6996_v39 = vadd.f32 %v6995_v36, %v6883_v45  ;;  %7697 = vmatprep.mubr.bf16.mxu1 %v7127_v52  ;;  %v7071_v55 = vmax.f32 %v6994_v4, 0.0  ;;  %v10250_v45 = vld [vmem:[#allocation17 + $0x28] sm:$0xff]   ;;  %v6895_v52 = vadd.f32 %v12683_v22, %v6782_v28  ;;  %v12774_v36 = vpop.f32.mrf.mxu0  ;;  %v10252_v22 = vld [vmem:[#allocation17 + $0x20] sm:$0xff]   ;;  %v6792_v4 = vadd.f32 %v12655_v44, %v6679_v21  ;;  %v13329_v21 = vld [vmem:[#allocation50_spill] sm:$0xff] }
 0x641   : > { %v6997_v61 = vpop.f32.mrf.mxu1  ;;  %7698 = vmatmul.mubr.bf16.vlgmr.msra.gmra.mxu1 %v7126_v57  ;;  %9340 = vmatpush3.bf16.msra.mxu0 %v10250_v45  ;;  %v6903_v47 = vadd.f32 %v12707_v1, %v6790_v34  ;;  %v6913_v7 = vadd.f32 %v12742_v29, %v6800_v3  ;;  %v6909_v45 = vadd.f32 %v12726_v53, %v12663_v11  ;;  %v13328_v29 = vld [vmem:[#allocation41_spill] sm:$0xff] }
 0x642   : > { %v6998_v49 = vadd.f32 %v6997_v61, %v6885_v20  ;;  %v7074_v12 = vmax.f32 %v6996_v39, 0.0  ;;  %9341 = vmatprep.subr.bf16.mxu0 %v10251_v33  ;;  %v6905_v13 = vadd.f32 %v12715_v31, %v6792_v4  ;;  %v10256_v31 = vld [vmem:[#allocation17 + $0x10] sm:$0xff]  }
 0x643   : > { %v7001_v51 = vpop.f32.mrf.mxu1 }
 0x644   : > { %v7075_v18 = vmax.f32 %v6998_v49, 0.0  ;;  %v7130_v16 = vpack.c.bf16 %v7074_v12, %v7070_v50  ;;  %v7002_v42 = vadd.f32 %v7001_v51, %v6889_v59  ;;  %v12784_v49 = vpop.f32.mrf.mxu0  ;;  %v10254_v51 = vld [vmem:[#allocation17 + $0x18] sm:$0xff]  }
 0x645   : > { %v7003_v46 = vpop.f32.mrf.mxu1  ;;  %9342 = vmatpush3.bf16.msra.mxu0 %v10252_v22 }
 0x646   : > { %v7131_v26 = vpack.c.bf16 %v7075_v18, %v7071_v55  ;;  %v7004_v35 = vadd.f32 %v7003_v46, %v6891_v8  ;;  %v7078_v19 = vmax.f32 %v7002_v42, 0.0  ;;  %9343 = vmatprep.subr.bf16.mxu0 %v10253_v6  ;;  %v12790_v18 = vpop.f32.mrf.mxu0  ;;  %v6802_v46 = vadd.f32 %v12671_v14, %v6689_v17  ;;  %v13331_v6 = vld [vmem:[#allocation48_spill] sm:$0xff] }
 0x647   : > { %v7005_v5 = vpop.f32.mrf.mxu1 }
 0x648   : > { %v7006_v57 = vadd.f32 %v7005_v5, %v6893_v58  ;;  %7707 = vmatprep.mubr.bf16.mxu1 %v7131_v26  ;;  %v7079_v39 = vmax.f32 %v7004_v35, 0.0  ;;  %v10257_v26 = vld [vmem:[#allocation17 + $0x48] sm:$0xff]   ;;  %v6697_v5 = vadd.f32 %v12539_v40, %v12575_v56  ;;  %v6915_v33 = vadd.f32 %v12750_v37, %v6802_v46 }
 0x649   : > { %v7007_v54 = vpop.f32.mrf.mxu1  ;;  %7708 = vmatmul.mubr.bf16.gmra.mxu1 %v7130_v16  ;;  %9344 = vmatpush3.bf16.msra.mxu0 %v10254_v51  ;;  %v6699_v40 = vadd.f32 %v13328_v29, %v12589_v0 }
 0x64a   : > { %v7008_v25 = vadd.f32 %v7007_v54, %v6895_v52  ;;  %v7082_v60 = vmax.f32 %v7006_v57, 0.0  ;;  %9345 = vmatprep.subr.bf16.mxu0 %v10255_v41  ;;  %v6930_v52 = vpop.f32.mrf.mxu0  ;;  %v10258_v57 = vld [vmem:[#allocation17 + $0x8] sm:$0xff]   ;;  %v6810_v34 = vadd.f32 %v13329_v21, %v6697_v5 }
 0x64b   : > { %v7011_v20 = vpop.f32.mrf.mxu1 }
 0x64c   : > { %v7083_v62 = vmax.f32 %v7008_v25, 0.0  ;;  %v7134_v44 = vpack.c.bf16 %v7082_v60, %v7078_v19  ;;  %v7012_v1 = vadd.f32 %v7011_v20, %v6899_v32  ;;  %v6932_v53 = vpop.f32.mrf.mxu0  ;;  %v13330_v20 = vld [vmem:[#allocation36_spill] sm:$0xff]  ;;  %v6921_v19 = vadd.f32 %v12768_v48, %v13331_v6  ;;  %v13334_v48 = vld [vmem:[#allocation43_spill] sm:$0xff] }
 0x64d   : > { %v7013_v24 = vpop.f32.mrf.mxu1  ;;  %9346 = vmatpush3.bf16.msra.mxu0 %v10256_v31  ;;  %v6812_v22 = vadd.f32 %v13330_v20, %v6699_v40  ;;  %v13341_v40 = vld [vmem:[#allocation38_spill] sm:$0xff] }
 0x64e   : > { %v7135_v61 = vpack.c.bf16 %v7083_v62, %v7079_v39  ;;  %v7014_v28 = vadd.f32 %v7013_v24, %v6901_v2  ;;  %v7086_v63 = vmax.f32 %v7012_v1, 0.0  ;;  %9347 = vmatprep.subr.bf16.mxu0 %v10257_v26  ;;  %v6923_v24 = vadd.f32 %v12774_v36, %v6810_v34  ;;  %v6934_v15 = vpop.f32.mrf.mxu0  ;;  %v13337_v26 = vld [vmem:[#allocation28_spill] sm:$0xff] }
 0x64f   : > { %v7015_v12 = vpop.f32.mrf.mxu1  ;;  %v6709_v36 = vadd.f32 %v13334_v48, %v12589_v0 }
 0x650   : > { %v7016_v55 = vadd.f32 %v7015_v12, %v6903_v47  ;;  %7717 = vmatprep.mubr.bf16.mxu1 %v7135_v61  ;;  %v7087_v8 = vmax.f32 %v7014_v28, 0.0  ;;  %v13332_v47 = vld [vmem:[#allocation45_spill] sm:$0xff]  ;;  %v13333_v12 = vld [vmem:[#allocation42_spill] sm:$0xff]  ;;  %v6938_v3 = vpop.f32.mrf.mxu0 }
 0x651   : > { %v7017_v43 = vpop.f32.mrf.mxu1  ;;  %7718 = vmatmul.mubr.bf16.gmra.mxu1 %v7134_v44  ;;  %9348 = vmatpush3.bf16.msra.mxu0 %v10258_v57  ;;  %v6919_v61 = vadd.f32 %v12758_v30, %v13332_v47  ;;  %v6707_v51 = vadd.f32 %v13333_v12, %v12575_v56 }
 0x652   : > { %v7018_v9 = vadd.f32 %v7017_v43, %v6905_v13  ;;  %v7090_v38 = vmax.f32 %v7016_v55, 0.0  ;;  %v6925_v13 = vadd.f32 %v12784_v49, %v6812_v22  ;;  %v13335_v43 = vld [vmem:[#allocation53_spill] sm:$0xff]  ;;  %v6940_v5 = vpop.f32.mrf.mxu0 }
 0x653   : > { %v7021_v50 = vpop.f32.mrf.mxu1  ;;  %v6820_v17 = vadd.f32 %v13335_v43, %v6707_v51  ;;  %v10260_v43 = vld [vmem:[#allocation17] sm:$0xff]  }
 0x654   : > { %v7091_v58 = vmax.f32 %v7018_v9, 0.0  ;;  %v7138_v14 = vpack.c.bf16 %v7090_v38, %v7086_v63  ;;  %v7022_v23 = vadd.f32 %v7021_v50, %v6909_v45  ;;  %v13336_v50 = vld [vmem:[#allocation34_spill] sm:$0xff]  ;;  %v6931_v63 = vadd.f32 %v6930_v52, %v13337_v26  ;;  %v13340_v52 = vld [vmem:[#allocation44_spill] sm:$0xff] }
 0x655   : > { %v7023_v59 = vpop.f32.mrf.mxu1  ;;  %v6822_v31 = vadd.f32 %v13336_v50, %v6709_v36  ;;  %v6719_v29 = vadd.f32 %v13340_v52, %v12589_v0  ;;  %v10259_v36 = vld [vmem:[#allocation17 + $0x40] sm:$0xff]  }
 0x656   : > { %v7139_v16 = vpack.c.bf16 %v7091_v58, %v7087_v8  ;;  %v7024_v42 = vadd.f32 %v7023_v59, %v6911_v10  ;;  %v7094_v39 = vmax.f32 %v7022_v23, 0.0  ;;  %v6933_v59 = vadd.f32 %v6932_v53, %v6820_v17  ;;  %9349 = vmatprep.subr.bf16.mxu0 %v10259_v36 }
 0x657   : > { %v7025_v35 = vpop.f32.mrf.mxu1  ;;  %9350 = vmatpush3.bf16.msra.mxu0 %v10260_v43 }
 0x658   : > { %v7026_v54 = vadd.f32 %v7025_v35, %v6913_v7  ;;  %7727 = vmatprep.mubr.bf16.mxu1 %v7139_v16  ;;  %v7095_v37 = vmax.f32 %v7024_v42, 0.0  ;;  %v13338_v7 = vld [vmem:[#allocation47_spill] sm:$0xff]  ;;  %v13339_v35 = vld [vmem:[#allocation46_spill] sm:$0xff] }
 0x659   : > { %v7027_v27 = vpop.f32.mrf.mxu1  ;;  %7728 = vmatmul.mubr.bf16.gmra.mxu1 %v7138_v14  ;;  %v6929_v16 = vadd.f32 %v12790_v18, %v13338_v7  ;;  %v6717_v57 = vadd.f32 %v13339_v35, %v12575_v56  ;;  %v6942_v18 = vpop.f32.mrf.mxu0 }
 0x65a   : > { %v7028_v11 = vadd.f32 %v7027_v27, %v6915_v33  ;;  %v7098_v25 = vmax.f32 %v7026_v54, 0.0  ;;  %v6935_v33 = vadd.f32 %v6934_v15, %v6822_v31  ;;  %v10263_v31 = vld [vmem:[#allocation19 + $0x28] sm:$0xff]  }
 0x65b   : > { %v7031_v60 = vpop.f32.mrf.mxu1  ;;  %v6830_v21 = vadd.f32 %v13341_v40, %v6717_v57  ;;  %v13346_v57 = vld [vmem:[#allocation29_spill] sm:$0xff] }
 0x65c   : > { %v7099_v4 = vmax.f32 %v7028_v11, 0.0  ;;  %v7142_v32 = vpack.c.bf16 %v7098_v25, %v7094_v39  ;;  %v7032_v41 = vadd.f32 %v7031_v60, %v6919_v61  ;;  %v13342_v25 = vld [vmem:[#allocation39_spill] sm:$0xff] }
 0x65d   : > { %v7033_v62 = vpop.f32.mrf.mxu1  ;;  %v6832_v60 = vadd.f32 %v13342_v25, %v6719_v29 }
 0x65e   : > { %v7143_v2 = vpack.c.bf16 %v7099_v4, %v7095_v37  ;;  %v7034_v28 = vadd.f32 %v7033_v62, %v6921_v19  ;;  %v7102_v49 = vmax.f32 %v7032_v41, 0.0  ;;  %v13343_v4 = vld [vmem:[#allocation33_spill] sm:$0xff]  ;;  %v6943_v62 = vadd.f32 %v6942_v18, %v6830_v21 }
 0x65f   : > { %v7035_v44 = vpop.f32.mrf.mxu1  ;;  %v6941_v39 = vadd.f32 %v6940_v5, %v13343_v4  ;;  %v13344_v19 = vld [vmem:[#allocation49_spill] sm:$0xff] }
 0x660   : > { %v7036_v55 = vadd.f32 %v7035_v44, %v6923_v24  ;;  %7737 = vmatprep.mubr.bf16.mxu1 %v7143_v2  ;;  %v7103_v46 = vmax.f32 %v7034_v28, 0.0  ;;  %v6939_v24 = vadd.f32 %v6938_v3, %v13344_v19  ;;  %v6944_v2 = vpop.f32.mrf.mxu0 }
 0x661   : > { %v7037_v1 = vpop.f32.mrf.mxu1  ;;  %7738 = vmatmul.mubr.bf16.gmra.mxu1 %v7142_v32  ;;  %v6945_v61 = vadd.f32 %v6944_v2, %v6832_v60 }
 0x662   : > { %v7038_v30 = vadd.f32 %v7037_v1, %v6925_v13  ;;  %v7106_v9 = vmax.f32 %v7036_v55, 0.0 }
 0x663   : > { %v7041_v38 = vpop.f32.mrf.mxu1 }
 0x664   : > { %v7107_v8 = vmax.f32 %v7038_v30, 0.0  ;;  %v7146_v45 = vpack.c.bf16 %v7106_v9, %v7102_v49  ;;  %v7042_v23 = vadd.f32 %v7041_v38, %v6929_v16  ;;  %v10261_v9 = vld [vmem:[#allocation19 + $0x38] sm:$0xff]   ;;  %v10262_v38 = vld [vmem:[#allocation19 + $0x30] sm:$0xff]  }
 0x665   : > { %v7043_v58 = vpop.f32.mrf.mxu1  ;;  %9447 = vmatprep.subr.bf16.mxu1 %v10261_v9 }
 0x666   : > { %v7147_v10 = vpack.c.bf16 %v7107_v8, %v7103_v46  ;;  %v7044_v42 = vadd.f32 %v7043_v58, %v6931_v63  ;;  %v7110_v22 = vmax.f32 %v7042_v23, 0.0  ;;  %9448 = vmatpush3.bf16.msra.mxu1 %v10261_v9 }
 0x667   : > { %v7045_v14 = vpop.f32.mrf.mxu1  ;;  %9449 = vmatprep.subr.bf16.mxu1 %v10262_v38 }
 0x668   : > { %v7046_v54 = vadd.f32 %v7045_v14, %v6933_v59  ;;  %7747 = vmatprep.mubr.bf16.mxu1 %v7147_v10  ;;  %v7111_v20 = vmax.f32 %v7044_v42, 0.0  ;;  %v7220_v14 = vld [vmem:[%s13345_s3] sm:$0x3]  ;;  %v13347_v42 = vld [vmem:[#allocation30_spill] sm:$0xff]  ;;  %s10627_s3 = sshll.u32 %s10729_s12, 4  ;;  %s10628_s3 = int_to_ptr.vmem [resolvable:$false] %s10627_s3 }
 0x669   : > { %v7047_v27 = vpop.f32.mrf.mxu1  ;;  %7748 = vmatmul.mubr.bf16.gmra.mxu1 %v7146_v45  ;;  %s10629_s29 = scalar_lea.vmem %s10628_s3, 4096  ;;  %p10630_p8 = scmp.lt.s32.totalorder %s13048_s20, %s10628_s3 }
 0x66a   : > { %v7048_v34 = vadd.f32 %v7047_v27, %v6935_v33  ;;  %v7114_v11 = vmax.f32 %v7046_v54, 0.0  ;;  %9450 = vmatpush3.bf16.msra.mxu1 %v10262_v38  ;;  %v12842_v33 = vrot.slane %v7220_v14, %v13346_v57  ;;  %v12845_v54 = vrot.slane %v7220_v14, %v13347_v42  ;;  %p10631_p9 = scmp.lt.s32.totalorder %s10629_s29, %s10623_s19 }
 0x66b   : > { %v7051_v53 = vpop.f32.mrf.mxu1  ;;  %9451 = vmatprep.subr.bf16.mxu1 %v10263_v31 }
 0x66c   : > { %v7115_v56 = vmax.f32 %v7048_v34, 0.0  ;;  %v7150_v0 = vpack.c.bf16 %v7114_v11, %v7110_v22  ;;  %v7052_v44 = vadd.f32 %v7051_v53, %v6939_v24  ;;  %p10632_p10 = por %p10631_p9, %p10630_p8 }
 0x66d   : > { %v7053_v37 = vpop.f32.mrf.mxu1 }
 0x66e   : > { %v7151_v6 = vpack.c.bf16 %v7115_v56, %v7111_v20  ;;  %v7054_v15 = vadd.f32 %v7053_v37, %v6941_v39  ;;  %v7118_v41 = vmax.f32 %v7052_v44, 0.0  ;;  %9452 = vmatpush3.bf16.msra.mxu1 %v10263_v31  ;;  %p10633_p13 = pnand %p10632_p10, %p10626_p6 }
 0x66f   : > { %v7055_v47 = vpop.f32.mrf.mxu1 }
 0x670   : > { %v7056_v32 = vadd.f32 %v7055_v47, %v6943_v62  ;;  %7757 = vmatprep.mubr.bf16.mxu1 %v7151_v6  ;;  %v7119_v28 = vmax.f32 %v7054_v15, 0.0 }
 0x671   : > { %v7057_v12 = vpop.f32.mrf.mxu1  ;;  %7758 = vmatmul.mubr.bf16.gmra.mxu1 %v7150_v0 }
 0x672   : > { %v7058_v51 = vadd.f32 %v7057_v12, %v6945_v61  ;;  %v7122_v13 = vmax.f32 %v7056_v32, 0.0 }
 0x674   : > { %v7123_v55 = vmax.f32 %v7058_v51, 0.0  ;;  %v7154_v48 = vpack.c.bf16 %v7122_v13, %v7118_v41 }
 0x676   : > { %v7155_v1 = vpack.c.bf16 %v7123_v55, %v7119_v28 }
 0x678   : > { %7767 = vmatprep.mubr.bf16.mxu1 %v7155_v1 }
 0x679   : > { %7768 = vmatmul.mubr.bf16.gmra.mxu1 %v7154_v48 }
 0x681   : > { %v7586_v17 = vpop.f32.mrf.mxu0 }
 0x682   : > { %v7587_v21 = vadd.f32 %v7586_v17, %v12845_v54 }
 0x683   : > { %v7588_v30 = vpop.f32.mrf.mxu0 }
 0x684   : > { %v7589_v29 = vadd.f32 %v7588_v30, %v12842_v33 }
 0x685   : > { %v7590_v3 = vpop.f32.mrf.mxu0 }
 0x686   : > { %v7591_v40 = vadd.f32 %v7590_v3, %v12845_v54 }
 0x687   : > { %v7592_v50 = vpop.f32.mrf.mxu0 }
 0x688   : > { %v7593_v18 = vadd.f32 %v7592_v50, %v12842_v33 }
 0x689   : > { %v7596_v46 = vpop.f32.mrf.mxu0 }
 0x68a   : > { %v7597_v47 = vadd.f32 %v7596_v46, %v12845_v54 }
 0x68b   : > { %v7598_v8 = vpop.f32.mrf.mxu0 }
 0x68c   : > { %v7599_v24 = vadd.f32 %v7598_v8, %v12842_v33 }
 0x68d   : > { %v7600_v49 = vpop.f32.mrf.mxu0 }
 0x68e   : > { %v7601_v2 = vadd.f32 %v7600_v49, %v12845_v54 }
 0x68f   : > { %v7602_v58 = vpop.f32.mrf.mxu0 }
 0x690   : > { %v7603_v32 = vadd.f32 %v7602_v58, %v12842_v33 }
 0x691   : > { %v7606_v26 = vpop.f32.mrf.mxu0 }
 0x692   : > { %v7607_v50 = vadd.f32 %v7606_v26, %v12845_v54 }
 0x693   : > { %v7608_v63 = vpop.f32.mrf.mxu0 }
 0x694   : > { %v7609_v3 = vadd.f32 %v7608_v63, %v12842_v33 }
 0x695   : > { %v7610_v59 = vpop.f32.mrf.mxu0 }
 0x696   : > { %v7611_v9 = vadd.f32 %v7610_v59, %v12845_v54 }
 0x697   : > { %v7612_v10 = vpop.f32.mrf.mxu0 }
 0x698   : > { %v7613_v8 = vadd.f32 %v7612_v10, %v12842_v33 }
 0x699   : > { %v12828_v7 = vpop.f32.mrf.mxu0 }
 0x69b   : > { %v12830_v16 = vpop.f32.mrf.mxu0 }
 0x69c   : > { %v7619_v26 = vadd.f32 %v12830_v16, %v12842_v33 }
 0x69d   : > { %v12832_v5 = vpop.f32.mrf.mxu0 }
 0x69e   : > { %v7621_v10 = vadd.f32 %v12832_v5, %v12845_v54 }
 0x69f   : > { %v12834_v45 = vpop.f32.mrf.mxu0 }
 0x6a1   : > { %v12839_v35 = vpop.f32.mrf.mxu0 }
 0x6a3   : > { %v12847_v27 = vpop.f32.mrf.mxu0 }
 0x6a5   : > { %v12853_v25 = vpop.f32.mrf.mxu0 }
 0x6a7   : > { %v12855_v62 = vpop.f32.mrf.mxu0 }
 0x6a9   : > { %v12861_v51 = vpop.f32.mrf.mxu0 }
 0x6ab   : > { %v12863_v43 = vpop.f32.mrf.mxu0 }
 0x6ad   : > { %v7640_v14 = vpop.f32.mrf.mxu0 }
 0x6af   : > { %v7642_v59 = vpop.f32.mrf.mxu0 }
 0x701   : > { %v7699_v23 = vpop.f32.mrf.mxu1 }
 0x702   : > { %v7700_v60 = vadd.f32 %v7699_v23, %v7587_v21 }
 0x703   : > { %v7701_v52 = vpop.f32.mrf.mxu1 }
 0x704   : > { %v7702_v11 = vadd.f32 %v7701_v52, %v7589_v29  ;;  %v7778_v6 = vmax.f32 %v7700_v60, 0.0 }
 0x705   : > { %v7703_v34 = vpop.f32.mrf.mxu1 }
 0x706   : > { %v7704_v53 = vadd.f32 %v7703_v34, %v7591_v40  ;;  %v7779_v4 = vmax.f32 %v7702_v11, 0.0  ;;  %v7617_v11 = vadd.f32 %v12828_v7, %v12845_v54 }
 0x707   : > { %v7705_v20 = vpop.f32.mrf.mxu1 }
 0x708   : > { %v7706_v56 = vadd.f32 %v7705_v20, %v7593_v18  ;;  %v7780_v22 = vmax.f32 %v7704_v53, 0.0  ;;  %v7623_v20 = vadd.f32 %v12834_v45, %v12842_v33  ;;  %v7631_v45 = vadd.f32 %v12853_v25, %v12845_v54 }
 0x709   : > { %v7709_v37 = vpop.f32.mrf.mxu1 }
 0x70a   : > { %v7781_v39 = vmax.f32 %v7706_v56, 0.0  ;;  %v7810_v61 = vpack.c.bf16 %v7780_v22, %v7778_v6  ;;  %v7710_v13 = vadd.f32 %v7709_v37, %v7597_v47  ;;  %v7646_v37 = vpop.f32.mrf.mxu0  ;;  %v7629_v47 = vadd.f32 %v12847_v27, %v12842_v33 }
 0x70b   : > { %v7711_v19 = vpop.f32.mrf.mxu1 }
 0x70c   : > { %v7811_v0 = vpack.c.bf16 %v7781_v39, %v7779_v4  ;;  %v7712_v44 = vadd.f32 %v7711_v19, %v7599_v24  ;;  %v7782_v17 = vmax.f32 %v7710_v13, 0.0 }
 0x70d   : > { %v7713_v15 = vpop.f32.mrf.mxu1 }
 0x70e   : > { %v7714_v12 = vadd.f32 %v7713_v15, %v7601_v2  ;;  %7993 = vmatprep.mubr.bf16.mxu0 %v7811_v0  ;;  %v7783_v48 = vmax.f32 %v7712_v44, 0.0  ;;  %v7648_v2 = vpop.f32.mrf.mxu0  ;;  %v7627_v15 = vadd.f32 %v12839_v35, %v12845_v54 }
 0x70f   : > { %v7715_v28 = vpop.f32.mrf.mxu1  ;;  %7994 = vmatmul.mubr.bf16.vlgmr.msra.gmra.mxu0 %v7810_v61 }
 0x710   : > { %v7716_v55 = vadd.f32 %v7715_v28, %v7603_v32  ;;  %v7784_v41 = vmax.f32 %v7714_v12, 0.0  ;;  %v7633_v12 = vadd.f32 %v12855_v62, %v12842_v33  ;;  %v7641_v62 = vadd.f32 %v7640_v14, %v12845_v54 }
 0x711   : > { %v7719_v1 = vpop.f32.mrf.mxu1 }
 0x712   : > { %v7785_v36 = vmax.f32 %v7716_v55, 0.0  ;;  %v7812_v31 = vpack.c.bf16 %v7784_v41, %v7782_v17  ;;  %v7720_v57 = vadd.f32 %v7719_v1, %v7607_v50  ;;  %v7650_v55 = vpop.f32.mrf.mxu0  ;;  %v7637_v50 = vadd.f32 %v12861_v51, %v12845_v54 }
 0x713   : > { %v7721_v30 = vpop.f32.mrf.mxu1  ;;  %v7649_v51 = vadd.f32 %v7648_v2, %v12842_v33 }
 0x714   : > { %v7813_v38 = vpack.c.bf16 %v7785_v36, %v7783_v48  ;;  %v7722_v49 = vadd.f32 %v7721_v30, %v7609_v3  ;;  %v7786_v21 = vmax.f32 %v7720_v57, 0.0  ;;  %v7652_v30 = vpop.f32.mrf.mxu0 }
 0x715   : > { %v7723_v46 = vpop.f32.mrf.mxu1 }
 0x716   : > { %v7724_v58 = vadd.f32 %v7723_v46, %v7611_v9  ;;  %8001 = vmatprep.mubr.bf16.mxu0 %v7813_v38  ;;  %v7787_v63 = vmax.f32 %v7722_v49, 0.0  ;;  %v7639_v9 = vadd.f32 %v12863_v43, %v12842_v33  ;;  %v7656_v57 = vpop.f32.mrf.mxu0 }
 0x717   : > { %v7725_v42 = vpop.f32.mrf.mxu1  ;;  %8002 = vmatmul.mubr.bf16.gmra.mxu0 %v7812_v31 }
 0x718   : > { %v7726_v23 = vadd.f32 %v7725_v42, %v7613_v8  ;;  %v7788_v52 = vmax.f32 %v7724_v58, 0.0  ;;  %v7643_v8 = vadd.f32 %v7642_v59, %v12842_v33 }
 0x719   : > { %v7729_v29 = vpop.f32.mrf.mxu1 }
 0x71a   : > { %v7789_v40 = vmax.f32 %v7726_v23, 0.0  ;;  %v7814_v53 = vpack.c.bf16 %v7788_v52, %v7786_v21  ;;  %v7730_v4 = vadd.f32 %v7729_v29, %v7617_v11 }
 0x71b   : > { %v7731_v34 = vpop.f32.mrf.mxu1 }
 0x71c   : > { %v7815_v18 = vpack.c.bf16 %v7789_v40, %v7787_v63  ;;  %v7732_v56 = vadd.f32 %v7731_v34, %v7619_v26  ;;  %v7790_v0 = vmax.f32 %v7730_v4, 0.0  ;;  %v7658_v40 = vpop.f32.mrf.mxu0  ;;  %v7651_v26 = vadd.f32 %v7650_v55, %v12845_v54 }
 0x71d   : > { %v7733_v60 = vpop.f32.mrf.mxu1 }
 0x71e   : > { %v7734_v22 = vadd.f32 %v7733_v60, %v7621_v10  ;;  %8009 = vmatprep.mubr.bf16.mxu0 %v7815_v18  ;;  %v7791_v5 = vmax.f32 %v7732_v56, 0.0  ;;  %v7647_v10 = vadd.f32 %v7646_v37, %v12845_v54  ;;  %v7660_v56 = vpop.f32.mrf.mxu0  ;;  %v7659_v37 = vadd.f32 %v7658_v40, %v12842_v33 }
 0x71f   : > { %v7735_v39 = vpop.f32.mrf.mxu1  ;;  %8010 = vmatmul.mubr.bf16.gmra.mxu0 %v7814_v53  ;;  %v7653_v53 = vadd.f32 %v7652_v30, %v12842_v33  ;;  %v10267_v30 = vld [vmem:[#allocation19 + $0x8] sm:$0xff]  }
 0x720   : > { %v7736_v16 = vadd.f32 %v7735_v39, %v7623_v20  ;;  %v7792_v6 = vmax.f32 %v7734_v22, 0.0 }
 0x721   : > { %v7739_v19 = vpop.f32.mrf.mxu1 }
 0x722   : > { %v7793_v24 = vmax.f32 %v7736_v16, 0.0  ;;  %v7816_v32 = vpack.c.bf16 %v7792_v6, %v7790_v0  ;;  %v7740_v41 = vadd.f32 %v7739_v19, %v7627_v15 }
 0x723   : > { %v7741_v7 = vpop.f32.mrf.mxu1 }
 0x724   : > { %v7817_v61 = vpack.c.bf16 %v7793_v24, %v7791_v5  ;;  %v7742_v13 = vadd.f32 %v7741_v7, %v7629_v47  ;;  %v7794_v3 = vmax.f32 %v7740_v41, 0.0  ;;  %v7662_v24 = vpop.f32.mrf.mxu0  ;;  %v7661_v7 = vadd.f32 %v7660_v56, %v12845_v54 }
 0x725   : > { %v7743_v44 = vpop.f32.mrf.mxu1 }
 0x726   : > { %v7744_v28 = vadd.f32 %v7743_v44, %v7631_v45  ;;  %8017 = vmatprep.mubr.bf16.mxu0 %v7817_v61  ;;  %v7795_v25 = vmax.f32 %v7742_v13, 0.0  ;;  %v7657_v45 = vadd.f32 %v7656_v57, %v12845_v54  ;;  %v10264_v54 = vld [vmem:[#allocation19 + $0x20] sm:$0xff]  }
 0x727   : > { %v7745_v1 = vpop.f32.mrf.mxu1  ;;  %8018 = vmatmul.mubr.bf16.gmra.mxu0 %v7816_v32  ;;  %v7663_v32 = vadd.f32 %v7662_v24, %v12842_v33  ;;  %9453 = vmatprep.subr.bf16.mxu1 %v10264_v54  ;;  %v10266_v33 = vld [vmem:[#allocation19 + $0x10] sm:$0xff]  }
 0x728   : > { %v7746_v27 = vadd.f32 %v7745_v1, %v7633_v12  ;;  %v7796_v48 = vmax.f32 %v7744_v28, 0.0  ;;  %9454 = vmatpush3.bf16.msra.mxu1 %v10264_v54 }
 0x729   : > { %v7749_v36 = vpop.f32.mrf.mxu1 }
 0x72a   : > { %v7797_v17 = vmax.f32 %v7746_v27, 0.0  ;;  %v7818_v31 = vpack.c.bf16 %v7796_v48, %v7794_v3  ;;  %v7750_v42 = vadd.f32 %v7749_v36, %v7637_v50  ;;  %v10268_v3 = vld [vmem:[#allocation19] sm:$0xff]  }
 0x72b   : > { %v7751_v35 = vpop.f32.mrf.mxu1 }
 0x72c   : > { %v7819_v38 = vpack.c.bf16 %v7797_v17, %v7795_v25  ;;  %v7752_v49 = vadd.f32 %v7751_v35, %v7639_v9  ;;  %v7798_v21 = vmax.f32 %v7750_v42, 0.0  ;;  %v10265_v17 = vld [vmem:[#allocation19 + $0x18] sm:$0xff]  }
 0x72d   : > { %v7753_v46 = vpop.f32.mrf.mxu1  ;;  %9455 = vmatprep.subr.bf16.mxu1 %v10265_v17 }
 0x72e   : > { %v7754_v58 = vadd.f32 %v7753_v46, %v7641_v62  ;;  %8025 = vmatprep.mubr.bf16.mxu0 %v7819_v38  ;;  %v7799_v63 = vmax.f32 %v7752_v49, 0.0  ;;  %9456 = vmatpush3.bf16.msra.mxu1 %v10265_v17  ;;  %v12902_v38 = vld [vmem:[%s13348_s4] ss:$0 sm:$0xff] }
 0x72f   : > { %v7755_v23 = vpop.f32.mrf.mxu1  ;;  %8026 = vmatmul.mubr.bf16.gmra.mxu0 %v7818_v31  ;;  %9457 = vmatprep.subr.bf16.mxu1 %v10266_v33 }
 0x730   : > { %v7756_v52 = vadd.f32 %v7755_v23, %v7643_v8  ;;  %v7800_v29 = vmax.f32 %v7754_v58, 0.0 }
 0x731   : > { %v7759_v43 = vpop.f32.mrf.mxu1 }
 0x732   : > { %v7801_v14 = vmax.f32 %v7756_v52, 0.0  ;;  %v7820_v18 = vpack.c.bf16 %v7800_v29, %v7798_v21  ;;  %v7760_v22 = vadd.f32 %v7759_v43, %v7647_v10  ;;  %9458 = vmatpush3.bf16.msra.mxu1 %v10266_v33 }
 0x733   : > { %v7761_v34 = vpop.f32.mrf.mxu1  ;;  %9459 = vmatprep.subr.bf16.mxu1 %v10267_v30 }
 0x734   : > { %v7821_v59 = vpack.c.bf16 %v7801_v14, %v7799_v63  ;;  %v7762_v60 = vadd.f32 %v7761_v34, %v7649_v51  ;;  %v7802_v2 = vmax.f32 %v7760_v22, 0.0 }
 0x735   : > { %v7763_v11 = vpop.f32.mrf.mxu1 }
 0x736   : > { %v7764_v20 = vadd.f32 %v7763_v11, %v7651_v26  ;;  %8033 = vmatprep.mubr.bf16.mxu0 %v7821_v59  ;;  %v7803_v19 = vmax.f32 %v7762_v60, 0.0  ;;  %9460 = vmatpush3.bf16.msra.mxu1 %v10267_v30 }
 0x737   : > { %v7765_v4 = vpop.f32.mrf.mxu1  ;;  %8034 = vmatmul.mubr.bf16.gmra.mxu0 %v7820_v18  ;;  %9461 = vmatprep.subr.bf16.mxu1 %v10268_v3 }
 0x738   : > { %v7766_v39 = vadd.f32 %v7765_v4, %v7653_v53  ;;  %v7804_v16 = vmax.f32 %v7764_v20, 0.0 }
 0x739   : > { %v7769_v6 = vpop.f32.mrf.mxu1 }
 0x73a   : > { %v7805_v5 = vmax.f32 %v7766_v39, 0.0  ;;  %v7822_v61 = vpack.c.bf16 %v7804_v16, %v7802_v2  ;;  %v7770_v13 = vadd.f32 %v7769_v6, %v7657_v45  ;;  %9462 = vmatpush3.bf16.msra.mxu1 %v10268_v3 }
 0x73b   : > { %v7771_v0 = vpop.f32.mrf.mxu1 }
 0x73c   : > { %v7823_v47 = vpack.c.bf16 %v7805_v5, %v7803_v19  ;;  %v7772_v44 = vadd.f32 %v7771_v0, %v7659_v37  ;;  %v7806_v48 = vmax.f32 %v7770_v13, 0.0 }
 0x73d   : > { %v7773_v15 = vpop.f32.mrf.mxu1 }
 0x73e   : > { %v7774_v12 = vadd.f32 %v7773_v15, %v7661_v7  ;;  %8041 = vmatprep.mubr.bf16.mxu0 %v7823_v47  ;;  %v7807_v1 = vmax.f32 %v7772_v44, 0.0 }
 0x73f   : > { %v7775_v28 = vpop.f32.mrf.mxu1  ;;  %8042 = vmatmul.mubr.bf16.gmra.mxu0 %v7822_v61 }
 0x740   : > { %v7776_v55 = vadd.f32 %v7775_v28, %v7663_v32  ;;  %v7808_v41 = vmax.f32 %v7774_v12, 0.0 }
 0x742   : > { %v7809_v27 = vmax.f32 %v7776_v55, 0.0  ;;  %v7824_v25 = vpack.c.bf16 %v7808_v41, %v7806_v48 }
 0x744   : > { %v7825_v36 = vpack.c.bf16 %v7809_v27, %v7807_v1 }
 0x746   : > { %8049 = vmatprep.mubr.bf16.mxu0 %v7825_v36 }
 0x747   : > { %8050 = vmatmul.mubr.bf16.gmra.mxu0 %v7824_v25 }
 0x7cf   : > { %v9351_v35 = vpop.f32.mrf.mxu0 }
 0x7d1   : > { %v9352_v9 = vpop.f32.mrf.mxu0 }
 0x7d2   : > { %v9353_v62 = vadd.f32 %v9352_v9, %v9351_v35 }
 0x7d3   : > { %v9354_v50 = vpop.f32.mrf.mxu0 }
 0x7d4   : > { %v7996_v46 = vadd.f32 %v9353_v62, %v12902_v38 }
 0x7d5   : > { %v9355_v31 = vpop.f32.mrf.mxu0 }
 0x7d6   : > { %v9356_v8 = vadd.f32 %v9355_v31, %v9354_v50  ;;  %v8058_v42 = vmax.f32 %v7996_v46, 0.0 }
 0x7d7   : > { %v9357_v49 = vpop.f32.mrf.mxu0 }
 0x7d8   : > { %v7999_v58 = vadd.f32 %v9356_v8, %v12902_v38 }
 0x7d9   : > { %v9358_v57 = vpop.f32.mrf.mxu0 }
 0x7da   : > { %v8059_v23 = vmax.f32 %v7999_v58, 0.0  ;;  %v9359_v52 = vadd.f32 %v9358_v57, %v9357_v49 }
 0x7db   : > { %v9360_v29 = vpop.f32.mrf.mxu0 }
 0x7dc   : > { %v8074_v43 = vpack.c.bf16 %v8059_v23, %v8058_v42  ;;  %v8004_v14 = vadd.f32 %v9359_v52, %v12902_v38 }
 0x7dd   : > { %v9361_v63 = vpop.f32.mrf.mxu0 }
 0x7de   : > { %v9362_v40 = vadd.f32 %v9361_v63, %v9360_v29  ;;  %9463 = vmatprep.mubr.bf16.mxu1 %v8074_v43  ;;  %v8060_v26 = vmax.f32 %v8004_v14, 0.0 }
 0x7df   : > { %v9363_v21 = vpop.f32.mrf.mxu0 }
 0x7e0   : > { %v8007_v34 = vadd.f32 %v9362_v40, %v12902_v38 }
 0x7e1   : > { %v9364_v51 = vpop.f32.mrf.mxu0 }
 0x7e2   : > { %v8061_v59 = vmax.f32 %v8007_v34, 0.0  ;;  %v9365_v10 = vadd.f32 %v9364_v51, %v9363_v21 }
 0x7e3   : > { %v9366_v18 = vpop.f32.mrf.mxu0 }
 0x7e4   : > { %v8075_v11 = vpack.c.bf16 %v8061_v59, %v8060_v26  ;;  %v8012_v60 = vadd.f32 %v9365_v10, %v12902_v38 }
 0x7e5   : > { %v9367_v53 = vpop.f32.mrf.mxu0 }
 0x7e6   : > { %v9368_v20 = vadd.f32 %v9367_v53, %v9366_v18  ;;  %9464 = vmatmul.mubr.bf16.vlgmr.msra.gmra.mxu1 %v8075_v11  ;;  %v8062_v39 = vmax.f32 %v8012_v60, 0.0  ;;  %v9303_v11 = vld [vmem:[%s13349_s30] ss:$0 sm:$0xff] }
 0x7e7   : > { %v9369_v56 = vpop.f32.mrf.mxu0 }
 0x7e8   : > { %v8015_v22 = vadd.f32 %v9368_v20, %v12902_v38 }
 0x7e9   : > { %v9370_v4 = vpop.f32.mrf.mxu0 }
 0x7ea   : > { %v8063_v16 = vmax.f32 %v8015_v22, 0.0  ;;  %v9371_v6 = vadd.f32 %v9370_v4, %v9369_v56 }
 0x7eb   : > { %v9372_v19 = vpop.f32.mrf.mxu0 }
 0x7ec   : > { %v8076_v5 = vpack.c.bf16 %v8063_v16, %v8062_v39  ;;  %v8020_v2 = vadd.f32 %v9371_v6, %v12902_v38 }
 0x7ed   : > { %v9373_v24 = vpop.f32.mrf.mxu0 }
 0x7ee   : > { %v9374_v0 = vadd.f32 %v9373_v24, %v9372_v19  ;;  %9467 = vmatprep.mubr.bf16.mxu1 %v8076_v5  ;;  %v8064_v45 = vmax.f32 %v8020_v2, 0.0 }
 0x7ef   : > { %v9375_v37 = vpop.f32.mrf.mxu0 }
 0x7f0   : > { %v8023_v7 = vadd.f32 %v9374_v0, %v12902_v38 }
 0x7f1   : > { %v9376_v47 = vpop.f32.mrf.mxu0 }
 0x7f2   : > { %v8065_v61 = vmax.f32 %v8023_v7, 0.0  ;;  %v9377_v15 = vadd.f32 %v9376_v47, %v9375_v37 }
 0x7f3   : > { %v9378_v32 = vpop.f32.mrf.mxu0 }
 0x7f4   : > { %v8077_v44 = vpack.c.bf16 %v8065_v61, %v8064_v45  ;;  %v8028_v13 = vadd.f32 %v9377_v15, %v12902_v38 }
 0x7f5   : > { %v9379_v12 = vpop.f32.mrf.mxu0 }
 0x7f6   : > { %v9380_v28 = vadd.f32 %v9379_v12, %v9378_v32  ;;  %9468 = vmatmul.mubr.bf16.gmra.mxu1 %v8077_v44  ;;  %v8066_v27 = vmax.f32 %v8028_v13, 0.0 }
 0x7f7   : > { %v9381_v55 = vpop.f32.mrf.mxu0 }
 0x7f8   : > { %v8031_v41 = vadd.f32 %v9380_v28, %v12902_v38 }
 0x7f9   : > { %v9382_v1 = vpop.f32.mrf.mxu0 }
 0x7fa   : > { %v8067_v48 = vmax.f32 %v8031_v41, 0.0  ;;  %v9383_v36 = vadd.f32 %v9382_v1, %v9381_v55 }
 0x7fb   : > { %v9384_v25 = vpop.f32.mrf.mxu0 }
 0x7fc   : > { %v8078_v54 = vpack.c.bf16 %v8067_v48, %v8066_v27  ;;  %v8036_v33 = vadd.f32 %v9383_v36, %v12902_v38 }
 0x7fd   : > { %v9385_v17 = vpop.f32.mrf.mxu0 }
 0x7fe   : > { %v9386_v30 = vadd.f32 %v9385_v17, %v9384_v25  ;;  %9471 = vmatprep.mubr.bf16.mxu1 %v8078_v54  ;;  %v8068_v62 = vmax.f32 %v8036_v33, 0.0 }
 0x7ff   : > { %v9387_v3 = vpop.f32.mrf.mxu0 }
 0x800   : > { %v8039_v35 = vadd.f32 %v9386_v30, %v12902_v38 }
 0x801   : > { %v9388_v9 = vpop.f32.mrf.mxu0 }
 0x802   : > { %v8069_v50 = vmax.f32 %v8039_v35, 0.0  ;;  %v9389_v31 = vadd.f32 %v9388_v9, %v9387_v3 }
 0x803   : > { %v9390_v46 = vpop.f32.mrf.mxu0 }
 0x804   : > { %v8079_v8 = vpack.c.bf16 %v8069_v50, %v8068_v62  ;;  %v8044_v58 = vadd.f32 %v9389_v31, %v12902_v38 }
 0x805   : > { %v9391_v49 = vpop.f32.mrf.mxu0 }
 0x806   : > { %v9392_v57 = vadd.f32 %v9391_v49, %v9390_v46  ;;  %9472 = vmatmul.mubr.bf16.gmra.mxu1 %v8079_v8  ;;  %v8070_v29 = vmax.f32 %v8044_v58, 0.0 }
 0x807   : > { %v9393_v42 = vpop.f32.mrf.mxu0 }
 0x808   : > { %v8047_v23 = vadd.f32 %v9392_v57, %v12902_v38 }
 0x809   : > { %v9394_v52 = vpop.f32.mrf.mxu0 }
 0x80a   : > { %v8071_v43 = vmax.f32 %v8047_v23, 0.0  ;;  %v9395_v63 = vadd.f32 %v9394_v52, %v9393_v42 }
 0x80b   : > { %v9396_v14 = vpop.f32.mrf.mxu0 }
 0x80c   : > { %v8080_v40 = vpack.c.bf16 %v8071_v43, %v8070_v29  ;;  %v8052_v34 = vadd.f32 %v9395_v63, %v12902_v38 }
 0x80d   : > { %v9397_v21 = vpop.f32.mrf.mxu0 }
 0x80e   : > { %v9398_v51 = vadd.f32 %v9397_v21, %v9396_v14  ;;  %9475 = vmatprep.mubr.bf16.mxu1 %v8080_v40  ;;  %v8072_v59 = vmax.f32 %v8052_v34, 0.0 }
 0x810   : > { %v8055_v26 = vadd.f32 %v9398_v51, %v12902_v38 }
 0x812   : > { %v8073_v10 = vmax.f32 %v8055_v26, 0.0 }
 0x814   : > { %v8081_v18 = vpack.c.bf16 %v8073_v10, %v8072_v59 }
 0x816   : > { %9476 = vmatmul.mubr.bf16.gmra.mxu1 %v8081_v18 }
 0x8a6   : > { %v9465_v53 = vpop.f32.mrf.mxu1 }
 0x8a7   : > { %v8196_v60 = vadd.f32 %v9465_v53, %v9303_v11 }
 0x8a8   : > { %v8187_v20 = vpop.f32.mrf.mxu1 }
 0x8a9   : > { %v8188_v56 = vadd.f32 %v9303_v11, %v8187_v20  ;;  %8254 = vmax.xlane.f32.xlu1 %v8196_v60 }
 0x8aa   : > { %v9466_v22 = vpop.f32.mrf.mxu1 }
 0x8ab   : > { %v8199_v4 = vadd.f32 %v9466_v22, %v9303_v11  ;;  %8250 = vmax.xlane.f32.xlu0 %v8188_v56 }
 0x8ac   : > { %v8190_v39 = vpop.f32.mrf.mxu1 }
 0x8ad   : > { %v8191_v16 = vadd.f32 %v9303_v11, %v8190_v39  ;;  %8256 = vmax.xlane.f32.xlu1 %v8199_v4 }
 0x8af   : > { %8252 = vmax.xlane.f32.xlu0 %v8191_v16 }
 0x8b6   : > { %v9469_v38 = vpop.f32.mrf.mxu1 }
 0x8b7   : > { %v8212_v6 = vadd.f32 %v9469_v38, %v9303_v11 }
 0x8b8   : > { %v8203_v19 = vpop.f32.mrf.mxu1 }
 0x8b9   : > { %8262 = vmax.xlane.f32.xlu0 %v8212_v6  ;;  %v8204_v24 = vadd.f32 %v9303_v11, %v8203_v19 }
 0x8ba   : > { %v9470_v5 = vpop.f32.mrf.mxu1 }
 0x8bb   : > { %v8215_v2 = vadd.f32 %v9470_v5, %v9303_v11 }
 0x8bc   : > { %v8206_v0 = vpop.f32.mrf.mxu1 }
 0x8bd   : > { %8264 = vmax.xlane.f32.xlu1 %v8215_v2  ;;  %8258 = vmax.xlane.f32.xlu0 %v8204_v24  ;;  %v12923_v37 = vadd.f32 %v9303_v11, %v8206_v0 }
 0x8c1   : > { %8260 = vmax.xlane.f32.xlu1 %v12923_v37 }
 0x8c6   : > { %v9473_v7 = vpop.f32.mrf.mxu1 }
 0x8c7   : > { %v12926_v47 = vadd.f32 %v9473_v7, %v9303_v11 }
 0x8c8   : > { %v8219_v45 = vpop.f32.mrf.mxu1 }
 0x8c9   : > { %8270 = vmax.xlane.f32.xlu0 %v12926_v47  ;;  %v12929_v15 = vadd.f32 %v9303_v11, %v8219_v45 }
 0x8ca   : > { %v9474_v61 = vpop.f32.mrf.mxu1 }
 0x8cb   : > { %v12931_v32 = vadd.f32 %v9474_v61, %v9303_v11 }
 0x8cc   : > { %v8222_v44 = vpop.f32.mrf.mxu1 }
 0x8cd   : > { %8272 = vmax.xlane.f32.xlu1 %v12931_v32  ;;  %8266 = vmax.xlane.f32.xlu0 %v12929_v15  ;;  %v12935_v12 = vadd.f32 %v9303_v11, %v8222_v44 }
 0x8d1   : > { %8268 = vmax.xlane.f32.xlu1 %v12935_v12 }
 0x8d6   : > { %v9477_v13 = vpop.f32.mrf.mxu1 }
 0x8d7   : > { %v12941_v27 = vadd.f32 %v9477_v13, %v9303_v11 }
 0x8d8   : > { %v8235_v28 = vpop.f32.mrf.mxu1 }
 0x8d9   : > { %v12938_v55 = vadd.f32 %v9303_v11, %v8235_v28 }
 0x8da   : > { %v9478_v41 = vpop.f32.mrf.mxu1 }
 0x8db   : > { %8274 = vmax.xlane.f32.xlu0 %v12938_v55  ;;  %v12947_v36 = vadd.f32 %v9478_v41, %v9303_v11 }
 0x8dc   : > { %v8238_v1 = vpop.f32.mrf.mxu1 }
 0x8dd   : > { %v12943_v48 = vadd.f32 %v9303_v11, %v8238_v1 }
 0x8df   : > { %8276 = vmax.xlane.f32.xlu1 %v12943_v48  ;;  %8278 = vmax.xlane.f32.xlu0 %v12941_v27 }
 0x8e3   : > { %8280 = vmax.xlane.f32.xlu1 %v12947_v36 }
 0x932   : > { %v8255_v25 = vpop.xlane.xlu1 %8254 }
 0x933   : > { %v8284_v54 = vsub.f32 %v8196_v60, %v8255_v25 }
 0x934   : > { %v8251_v17 = vpop.xlane.xlu0 %8250 }
 0x935   : > { %v8302_v33 = vmul.f32 1.442695, %v8284_v54  ;;  %v8282_v30 = vsub.f32 %v8188_v56, %v8251_v17 }
 0x936   : > { %v8257_v3 = vpop.xlane.xlu1 %8256 }
 0x937   : > { %10269 = vpow2.f32 %v8302_v33  ;;  %v8298_v35 = vmul.f32 1.442695, %v8282_v30  ;;  %v8285_v9 = vsub.f32 %v8199_v4, %v8257_v3 }
 0x938   : > { %v8253_v62 = vpop.xlane.xlu0 %8252 }
 0x939   : > { %v8304_v50 = vmul.f32 1.442695, %v8285_v9  ;;  %v8283_v31 = vsub.f32 %v8191_v16, %v8253_v62  ;;  %10271 = vpow2.f32 %v8298_v35 }
 0x93b   : > { %10273 = vpow2.f32 %v8304_v50  ;;  %v8300_v46 = vmul.f32 1.442695, %v8283_v31 }
 0x93d   : > { %10275 = vpow2.f32 %v8300_v46 }
 0x942   : > { %v8263_v8 = vpop.xlane.xlu0 %8262 }
 0x943   : > { %v8288_v49 = vsub.f32 %v8212_v6, %v8263_v8 }
 0x944   : > { %v12950_v58 = vpop.eup %10269 }
 0x945   : > { %v8310_v57 = vmul.f32 1.442695, %v8288_v49  ;;  %8334 = vadd.xlane.f32.xlu0 %v12950_v58 }
 0x946   : > { %v8265_v42 = vpop.xlane.xlu1 %8264  ;;  %v8259_v23 = vpop.xlane.xlu0 %8258 }
 0x947   : > { %v12953_v52 = vpop.eup %10271  ;;  %10277 = vpow2.f32 %v8310_v57  ;;  %v8289_v29 = vsub.f32 %v8215_v2, %v8265_v42  ;;  %v8286_v43 = vsub.f32 %v8204_v24, %v8259_v23 }
 0x948   : > { %v12955_v63 = vpop.eup %10273 }
 0x949   : > { %v8312_v14 = vmul.f32 1.442695, %v8289_v29  ;;  %v8306_v40 = vmul.f32 1.442695, %v8286_v43  ;;  %8336 = vadd.xlane.f32.xlu1 %v12955_v63  ;;  %8330 = vadd.xlane.f32.xlu0 %v12953_v52 }
 0x94a   : > { %v8261_v21 = vpop.xlane.xlu1 %8260  ;;  %v12960_v51 = vpop.eup %10275 }
 0x94b   : > { %10279 = vpow2.f32 %v8312_v14  ;;  %v8287_v34 = vsub.f32 %v12923_v37, %v8261_v21 }
 0x94c   : > { %10281 = vpow2.f32 %v8306_v40 }
 0x94d   : > { %v8308_v26 = vmul.f32 1.442695, %v8287_v34  ;;  %8332 = vadd.xlane.f32.xlu1 %v12960_v51 }
 0x94f   : > { %10283 = vpow2.f32 %v8308_v26 }
 0x952   : > { %v8271_v59 = vpop.xlane.xlu0 %8270 }
 0x953   : > { %v8292_v10 = vsub.f32 %v12926_v47, %v8271_v59 }
 0x954   : > { %v12964_v18 = vpop.eup %10277 }
 0x955   : > { %v8318_v11 = vmul.f32 1.442695, %v8292_v10  ;;  %8342 = vadd.xlane.f32.xlu0 %v12964_v18 }
 0x956   : > { %v8273_v53 = vpop.xlane.xlu1 %8272  ;;  %v8267_v60 = vpop.xlane.xlu0 %8266 }
 0x957   : > { %10285 = vpow2.f32 %v8318_v11  ;;  %v8293_v20 = vsub.f32 %v12931_v32, %v8273_v53  ;;  %v8290_v56 = vsub.f32 %v12929_v15, %v8267_v60 }
 0x958   : > { %v12969_v22 = vpop.eup %10279 }
 0x959   : > { %v12971_v4 = vpop.eup %10281  ;;  %v8320_v39 = vmul.f32 1.442695, %v8293_v20  ;;  %v8314_v16 = vmul.f32 1.442695, %v8290_v56  ;;  %8344 = vadd.xlane.f32.xlu1 %v12969_v22 }
 0x95a   : > { %8338 = vadd.xlane.f32.xlu0 %v12971_v4  ;;  %v8269_v38 = vpop.xlane.xlu1 %8268 }
 0x95b   : > { %10287 = vpow2.f32 %v8320_v39  ;;  %v8291_v6 = vsub.f32 %v12935_v12, %v8269_v38 }
 0x95c   : > { %v12976_v19 = vpop.eup %10283  ;;  %10289 = vpow2.f32 %v8314_v16 }
 0x95d   : > { %v8316_v5 = vmul.f32 1.442695, %v8291_v6  ;;  %8340 = vadd.xlane.f32.xlu1 %v12976_v19 }
 0x95f   : > { %10291 = vpow2.f32 %v8316_v5 }
 0x964   : > { %v12979_v24 = vpop.eup %10285  ;;  %v8275_v2 = vpop.xlane.xlu0 %8274 }
 0x965   : > { %v8294_v0 = vsub.f32 %v12938_v55, %v8275_v2  ;;  %8350 = vadd.xlane.f32.xlu0 %v12979_v24 }
 0x967   : > { %v8322_v37 = vmul.f32 1.442695, %v8294_v0 }
 0x968   : > { %v12983_v7 = vpop.eup %10287  ;;  %v8277_v47 = vpop.xlane.xlu1 %8276 }
 0x969   : > { %v8279_v45 = vpop.xlane.xlu0 %8278  ;;  %v12985_v61 = vpop.eup %10289  ;;  %10293 = vpow2.f32 %v8322_v37  ;;  %v8295_v15 = vsub.f32 %v12943_v48, %v8277_v47  ;;  %8352 = vadd.xlane.f32.xlu1 %v12983_v7 }
 0x96a   : > { %v8296_v32 = vsub.f32 %v12941_v27, %v8279_v45  ;;  %8346 = vadd.xlane.f32.xlu0 %v12985_v61 }
 0x96b   : > { %v8324_v44 = vmul.f32 1.442695, %v8295_v15 }
 0x96c   : > { %v8326_v12 = vmul.f32 1.442695, %v8296_v32  ;;  %v12991_v13 = vpop.eup %10291  ;;  %v8281_v28 = vpop.xlane.xlu1 %8280 }
 0x96d   : > { %10295 = vpow2.f32 %v8324_v44  ;;  %v8297_v55 = vsub.f32 %v12947_v36, %v8281_v28  ;;  %8348 = vadd.xlane.f32.xlu1 %v12991_v13 }
 0x96e   : > { %10297 = vpow2.f32 %v8326_v12 }
 0x96f   : > { %v8328_v41 = vmul.f32 1.442695, %v8297_v55 }
 0x971   : > { %10299 = vpow2.f32 %v8328_v41 }
 0x976   : > { %v12995_v1 = vpop.eup %10293 }
 0x977   : > { %8354 = vadd.xlane.f32.xlu0 %v12995_v1 }
 0x97a   : > { %v12998_v27 = vpop.eup %10295 }
 0x97b   : > { %v13000_v48 = vpop.eup %10297  ;;  %8356 = vadd.xlane.f32.xlu1 %v12998_v27 }
 0x97c   : > { %8358 = vadd.xlane.f32.xlu0 %v13000_v48 }
 0x97e   : > { %v13004_v25 = vpop.eup %10299 }
 0x97f   : > { %8360 = vadd.xlane.f32.xlu1 %v13004_v25 }
 0x9ce   : > { %v8335_v36 = vpop.xlane.xlu0 %8334 }
 0x9cf   : > { %10301 = vrcp.f32 %v8335_v36 }
 0x9d2   : > { %v8337_v54 = vpop.xlane.xlu1 %8336  ;;  %v8331_v17 = vpop.xlane.xlu0 %8330 }
 0x9d3   : > { %10303 = vrcp.f32 %v8337_v54 }
 0x9d4   : > { %10305 = vrcp.f32 %v8331_v17 }
 0x9d6   : > { %v8333_v33 = vpop.xlane.xlu1 %8332 }
 0x9d7   : > { %10307 = vrcp.f32 %v8333_v33 }
 0x9dc   : > { %v10302_v30 = vpop.eup %10301 }
 0x9dd   : > { %v8367_v3 = vmul.f32 %v10302_v30, %v12950_v58 }
 0x9de   : > { %v8343_v35 = vpop.xlane.xlu0 %8342 }
 0x9df   : > { %8396 = vst [vmem:[%s13010_s21 + $0x10] sm:$0xff] %v8367_v3  ;;  %10309 = vrcp.f32 %v8343_v35 }
 0x9e0   : > { %v10304_v9 = vpop.eup %10303 }
 0x9e1   : > { %v10306_v62 = vpop.eup %10305  ;;  %v8369_v50 = vmul.f32 %v10304_v9, %v12955_v63 }
 0x9e2   : > { %v8363_v31 = vmul.f32 %v10306_v62, %v12953_v52  ;;  %v8345_v46 = vpop.xlane.xlu1 %8344 }
 0x9e3   : > { %8397 = vst [vmem:[%s13010_s21 + $0x18] sm:$0xff] %v8369_v50  ;;  %10311 = vrcp.f32 %v8345_v46  ;;  %v8339_v8 = vpop.xlane.xlu0 %8338 }
 0x9e4   : > { %v10308_v49 = vpop.eup %10307  ;;  %8394 = vst [vmem:[%s13010_s21] sm:$0xff] %v8363_v31  ;;  %10313 = vrcp.f32 %v8339_v8 }
 0x9e5   : > { %v8365_v58 = vmul.f32 %v10308_v49, %v12960_v51 }
 0x9e6   : > { %v8341_v57 = vpop.xlane.xlu1 %8340 }
 0x9e7   : > { %8395 = vst [vmem:[%s13010_s21 + $0x8] sm:$0xff] %v8365_v58  ;;  %10315 = vrcp.f32 %v8341_v57 }
 0x9ec   : > { %v10310_v42 = vpop.eup %10309 }
 0x9ed   : > { %v8375_v23 = vmul.f32 %v10310_v42, %v12964_v18 }
 0x9ee   : > { %v8351_v29 = vpop.xlane.xlu0 %8350 }
 0x9ef   : > { %8400 = vst [vmem:[%s13010_s21 + $0x30] sm:$0xff] %v8375_v23  ;;  %10317 = vrcp.f32 %v8351_v29 }
 0x9f0   : > { %v10312_v52 = vpop.eup %10311 }
 0x9f1   : > { %v10314_v43 = vpop.eup %10313  ;;  %v8377_v63 = vmul.f32 %v10312_v52, %v12969_v22 }
 0x9f2   : > { %v8371_v14 = vmul.f32 %v10314_v43, %v12971_v4  ;;  %v8353_v40 = vpop.xlane.xlu1 %8352 }
 0x9f3   : > { %8401 = vst [vmem:[%s13010_s21 + $0x38] sm:$0xff] %v8377_v63  ;;  %10319 = vrcp.f32 %v8353_v40  ;;  %v8347_v21 = vpop.xlane.xlu0 %8346 }
 0x9f4   : > { %v10316_v34 = vpop.eup %10315  ;;  %8398 = vst [vmem:[%s13010_s21 + $0x20] sm:$0xff] %v8371_v14  ;;  %10321 = vrcp.f32 %v8347_v21 }
 0x9f5   : > { %v8373_v51 = vmul.f32 %v10316_v34, %v12976_v19 }
 0x9f6   : > { %v8349_v26 = vpop.xlane.xlu1 %8348 }
 0x9f7   : > { %8399 = vst [vmem:[%s13010_s21 + $0x28] sm:$0xff] %v8373_v51  ;;  %10323 = vrcp.f32 %v8349_v26 }
 0x9fc   : > { %v10318_v59 = vpop.eup %10317 }
 0x9fd   : > { %v8383_v10 = vmul.f32 %v10318_v59, %v12979_v24 }
 0x9ff   : > { %8404 = vst [vmem:[%s13010_s21 + $0x50] sm:$0xff] %v8383_v10 }
 0xa00   : > { %v10320_v18 = vpop.eup %10319  ;;  %v8355_v11 = vpop.xlane.xlu0 %8354 }
 0xa01   : > { %v10322_v53 = vpop.eup %10321  ;;  %v8385_v60 = vmul.f32 %v10320_v18, %v12983_v7  ;;  %10325 = vrcp.f32 %v8355_v11 }
 0xa02   : > { %v8379_v20 = vmul.f32 %v10322_v53, %v12985_v61 }
 0xa03   : > { %8405 = vst [vmem:[%s13010_s21 + $0x58] sm:$0xff] %v8385_v60 }
 0xa04   : > { %v10324_v56 = vpop.eup %10323  ;;  %8402 = vst [vmem:[%s13010_s21 + $0x40] sm:$0xff] %v8379_v20  ;;  %v8357_v22 = vpop.xlane.xlu1 %8356 }
 0xa05   : > { %v8381_v4 = vmul.f32 %v10324_v56, %v12991_v13  ;;  %10327 = vrcp.f32 %v8357_v22  ;;  %v8359_v39 = vpop.xlane.xlu0 %8358 }
 0xa06   : > { %10329 = vrcp.f32 %v8359_v39 }
 0xa07   : > { %8403 = vst [vmem:[%s13010_s21 + $0x48] sm:$0xff] %v8381_v4 }
 0xa08   : > { %v8361_v16 = vpop.xlane.xlu1 %8360 }
 0xa09   : > { %10331 = vrcp.f32 %v8361_v16 }
 0xa0e   : > { %v10326_v38 = vpop.eup %10325 }
 0xa0f   : > { %v8387_v6 = vmul.f32 %v10326_v38, %v12995_v1 }
 0xa11   : > { %8406 = vst [vmem:[%s13010_s21 + $0x60] sm:$0xff] %v8387_v6 }
 0xa12   : > { %v10328_v19 = vpop.eup %10327 }
 0xa13   : > { %v10330_v5 = vpop.eup %10329  ;;  %v8389_v24 = vmul.f32 %v10328_v19, %v12998_v27 }
 0xa14   : > { %v8391_v2 = vmul.f32 %v10330_v5, %v13000_v48 }
 0xa15   : > { %8407 = vst [vmem:[%s13010_s21 + $0x68] sm:$0xff] %v8389_v24 }
 0xa16   : > { %v10332_v0 = vpop.eup %10331  ;;  %8408 = vst [vmem:[%s13010_s21 + $0x70] sm:$0xff] %v8391_v2 }
 0xa17   : > { %v8393_v37 = vmul.f32 %v10332_v0, %v13004_v25 }
 0xa19   : > { %8409 = vst [vmem:[%s13010_s21 + $0x78] sm:$0xff] %v8393_v37 }
 0xa1a   : > { %10636 = shalt.err (!%p10633_p13)
}
 0xa1b   : > { %s10637_s7 = scalar_lea.hbm %s13046_s1, 2048  ;;  %s10641_s9 = scalar_lea.hbm %s13350_s14, 4096 }
 0xa1c   : > { %p10638_p1 = scmp.ne.s32.totalorder %s13046_s1, %s10637_s7  ;;  %p10642_p0 = scmp.lt.s32.totalorder %s13046_s1, %s13350_s14 }
 0xa1d   : > { %p10643_p2 = scmp.lt.s32.totalorder %s10641_s9, %s10637_s7 }
 0xa1e   : > { %p10639_p3 = pnand %p10638_p1, %p13351_p12 }
 0xa1f   : > { %p10644_p5 = por %p10643_p2, %p10642_p0 }
 0xa20   : > { %p10640_p4 = pneg %p10639_p3 }
 0xa22   : > { %p10645_p11 = pnand %p10644_p5, %p10640_p4 }
 0xa24   : > { %10648 = shalt.err (!%p10645_p11)
}
 0xa25   : > { %s10730_s13 = smov 128   ;;  %s10731_s2 = smov 8  }
 0xa26   : > { %9521 = dma.vmem_to_hbm [thread:$0]  (%p13351_p12), %s13048_s20, 2048, %s13046_s1, %s8411_s0, %s10730_s13, %s10730_s13, %s10731_s2  }
 0xa27 PF: > { %s8439_s17 = sand.u32 1, %s10695_s24   ;;  %p13352_p7 = scmp.ne.s32.totalorder %s13180_s23, 0 }
 0xa28   : > { %p13353_p6 = scmp.ge.s32.totalorder %s10707_s27, 2  ;;  %s8440_s19 = scalar_lea.sflag [#allocation4], %s8439_s17 }
 0xa2a   : > { %p9559_p8 = pnand %p13353_p6, %p13352_p7 }
 0xa2c   : > { %p9560_p9 = pneg %p9559_p8 }
 0xa2e   : > { %10690 = dma.done.wait (%p9560_p9), %s8440_s19, 2048  }
 0xa2f   : > { %10692 = vsyncadd (%p9560_p9), %s8440_s19, 4294965248  ;;  %p35_p10 = scmp.ge.s32.totalorder %s10964_s22, 4   ;;  %s13354_s24 = smov %s10699_s25 }
 0xa30   : > { %s13355_s25 = smov %s10703_s26  ;;  %s13356_s26 = smov %s10975_s28 }
 0xa31   : > { %s13357_s27 = smov %s10964_s22  ;;  %37 = sbr.rel (!%p35_p10) target bundleno = 25 (0x19), region = 173 }
 0xa36   :  { %8445 = vsyncpa [#allocation3], 1 }
 0xa37   :  { %8447 = vsyncpa [#allocation3 + $0x1], 1 }
 0xa38   :  { %8448 = vsyncpa [#allocation6], 1 }
 0xa39   :  { %8449 = vsyncpa [#allocation9], 1 }
 0xa3a   :  { %8450 = vsyncpa [#allocation12], 1 }
 0xa3b   :  { %8451 = vsyncpa [#allocation15], 1 }
 0xa3c   :  { %8452 = vsyncpa [#allocation18], 1 }
 0xa3d   :  { %8453 = vsyncpa [#allocation4], 1 }
 0xa3e   :  { %8455 = vsyncpa [#allocation4 + $0x1], 1 }

</bundles_post_ra>
